<compile_context>
chip_gen: v5e
topology: v5e:2x2
jax: 0.10.0
libtpu: 0.0.40
codegen_flags: <defaults>
</compile_context>

<pallas_src>
import jax
import jax.numpy as jnp
from jax.experimental import pallas as pl
from jax.experimental.pallas import tpu as pltpu

N_NODES = 8
IN_DIM = 16
EDGE_IN_DIM = 16
F_IN = IN_DIM + EDGE_IN_DIM
HIDDEN = 128            # module default hidden_dim
N_LAYERS = 12           # module builds 12 DeepGCN layers; forward uses layers[1:]
N_GCN = N_LAYERS - 1    # 11 in-kernel layer iterations
LN_EPS = 1e-5
BN_EPS = 1e-5
GEN_EPS = 1e-7
PRELU_INIT = 0.25
NEG_BIG = -1e30


# ----------------------------- in-kernel helpers -----------------------------

def _layer_norm(x, g, b):
    mu = jnp.mean(x, axis=-1, keepdims=True)
    xc = x - mu
    var = jnp.mean(xc * xc, axis=-1, keepdims=True)
    return xc * jax.lax.rsqrt(var + LN_EPS) * g + b


def _prelu(x, a):
    # nn.PReLU() default: single learnable slope, broadcast over all elements
    return jnp.where(x >= 0, x, a * x)


# --------------------------------- fused kernel -------------------------------

def fused_encoder_kernel(scal_ref,                       # SMEM (13,)   f32 scalars
                         x_in_ref,                       # (N, F_IN)    f32
                         adj_ref,                        # (N, N)       bf16 0/1 (dst x src)
                         negm3_ref,                      # (N, N, H)    f32 additive mask (0 / -1e30)
                         aux_ref,                        # (N, 2)       f32 [1/deg, has_in]
                         mlp_w0_ref, mlp_w1_ref,         # bf16 weights
                         mlp_vec_ref,                    # (8, H)       f32 packed MLP/layer0 vectors
                         w1_ref, w2_ref, vec_ref,        # stacked per-layer params
                         out_ref):                       # (N, H)       f32
    # ---- scalars (SMEM) ----
    a_mlp = scal_ref[0]          # MLP PReLU slope
    a_0 = scal_ref[1]            # shared layers[0].act slope

    # ---- input MLP: Linear -> PReLU -> Linear -> BatchNorm1d (eval) ----
    x0 = x_in_ref[...]
    b0 = mlp_vec_ref[0:1, :]
    b1 = mlp_vec_ref[1:2, :]
    bn_g = mlp_vec_ref[2:3, :]
    bn_b = mlp_vec_ref[3:4, :]
    bn_m = mlp_vec_ref[4:5, :]
    bn_v = mlp_vec_ref[5:6, :]
    ln0_g = mlp_vec_ref[6:7, :]  # shared layers[0].norm
    ln0_b = mlp_vec_ref[7:8, :]

    h = jnp.dot(x0.astype(jnp.bfloat16), mlp_w0_ref[...],
                preferred_element_type=jnp.float32) + b0
    h = _prelu(h, a_mlp)
    h = jnp.dot(h.astype(jnp.bfloat16), mlp_w1_ref[...],
                preferred_element_type=jnp.float32) + b1
    x = (h - bn_m) * jax.lax.rsqrt(bn_v + BN_EPS) * bn_g + bn_b      # (N, H) f32

    # ---- graph quantities, hoisted: identical for every layer ----
    adj_bf = adj_ref[...]                                            # (N, N) bf16
    neg_full = negm3_ref[...]                                        # (N, N, H) f32
    inv_deg = aux_ref[:, 0:1]                                        # (N, 1)
    has_in = aux_ref[:, 1:2] > 0.5                                   # (N, 1) bool

    # ---- 11 DeepGCN 'res+' layers, fully in-kernel (static unroll) ----
    for l in range(N_GCN):
        v = vec_ref[l]                                               # (8, 2H) f32
        ln_g = v[0:1, :HIDDEN]
        ln_b = v[1:2, :HIDDEN]
        cb1 = v[2:3, :]
        cln_g = v[3:4, :]
        cln_b = v[4:5, :]
        cb2 = v[5:6, :HIDDEN]
        a_l = scal_ref[2 + l]

        # pre-norm + act (dropout identity in eval)
        h = _prelu(_layer_norm(x, ln_g, ln_b), a_l)

        # GENConv message (edge_attr is None): relu(x_j) + eps
        msg = jnp.maximum(h, 0.0) + GEN_EPS                          # (N_src, H)
        msg_b = jnp.expand_dims(msg, 0)                              # (1, N_src, H)

        # max / min via one additive neg-mask (min = -max(-msg)); sum on the MXU
        max_agg = jnp.max(msg_b + neg_full, axis=1)                  # (N, H)
        min_agg = -jnp.max(neg_full - msg_b, axis=1)
        sum_agg = jnp.dot(adj_bf, msg.astype(jnp.bfloat16),
                          preferred_element_type=jnp.float32)
        mean_agg = sum_agg * inv_deg
        max_agg = jnp.where(has_in, max_agg, 0.0)
        min_agg = jnp.where(has_in, min_agg, 0.0)

        # TODO(synk): GENConv2 / 'maxminmean' is not defined in the reference
        # snippet; implemented here as the mean of the max/min/mean aggregations.
        agg = (max_agg + min_agg + mean_agg) * jnp.float32(1.0 / 3.0)

        # GENConv update MLP: (x_i + aggr) -> Linear(H,2H) -> LN -> ReLU -> Linear(2H,H)
        z = h + agg
        z1 = jnp.dot(z.astype(jnp.bfloat16), w1_ref[l],
                     preferred_element_type=jnp.float32) + cb1
        z1 = jnp.maximum(_layer_norm(z1, cln_g, cln_b), 0.0)
        hc = jnp.dot(z1.astype(jnp.bfloat16), w2_ref[l],
                     preferred_element_type=jnp.float32) + cb2

        # residual add, then shared layers[0].norm / layers[0].act
        y = x + hc
        x = _prelu(_layer_norm(y, ln0_g, ln0_b), a_0)

    out_ref[...] = x


# --------------------------------- wrapper -------------------------------------

def mm_kg_encoder_forward(scal, x, adj_bf, negm3, aux,
                          mlp_w0, mlp_w1, mlp_vec, gcn_w1, gcn_w2, gcn_vec):
    vmem = lambda: pl.BlockSpec(memory_space=pltpu.MemorySpace.VMEM)
    smem = lambda: pl.BlockSpec(memory_space=pltpu.MemorySpace.SMEM)
    in_specs = [smem(),          # scalars
                vmem(),          # x_in
                vmem(),          # adjacency (bf16)
                vmem(),          # additive neg mask (N,N,H)
                vmem(),          # aux [1/deg, has_in]
                vmem(), vmem(),  # mlp weights
                vmem(),          # packed mlp/layer0 vectors
                vmem(), vmem(),  # stacked conv weights
                vmem()]          # stacked conv vectors
    return pl.pallas_call(
        fused_encoder_kernel,
        out_shape=jax.ShapeDtypeStruct((N_NODES, HIDDEN), jnp.float32),
        in_specs=in_specs,
        out_specs=pl.BlockSpec(memory_space=pltpu.MemorySpace.VMEM),
    )(scal, x, adj_bf, negm3, aux, mlp_w0, mlp_w1, mlp_vec, gcn_w1, gcn_w2, gcn_vec)


# ----------------------------- deterministic init ------------------------------

def init_params(key):
    keys = jax.random.split(key, 4 + 4 * N_LAYERS)
    ki = iter(keys)

    def nrm(shape, scale=0.1):
        return scale * jax.random.normal(next(ki), shape, dtype=jnp.float32)

    mlp_p = dict(
        w0=nrm((F_IN, HIDDEN)),
        b0=nrm((1, HIDDEN)),
        a0=jnp.full((1, 1), PRELU_INIT, jnp.float32),
        w1=nrm((HIDDEN, HIDDEN)),
        b1=nrm((1, HIDDEN)),
        bn_g=jnp.ones((1, HIDDEN), jnp.float32),
        bn_b=jnp.zeros((1, HIDDEN), jnp.float32),
        bn_m=jnp.zeros((1, HIDDEN), jnp.float32),
        bn_v=jnp.ones((1, HIDDEN), jnp.float32),
    )
    layer_ps = []
    for _ in range(N_LAYERS):
        layer_ps.append(dict(
            ln_g=jnp.ones((1, HIDDEN), jnp.float32),
            ln_b=jnp.zeros((1, HIDDEN), jnp.float32),
            act_a=jnp.full((1, 1), PRELU_INIT, jnp.float32),
            conv_w1=nrm((HIDDEN, 2 * HIDDEN)),
            conv_b1=nrm((1, 2 * HIDDEN)),
            conv_ln_g=jnp.ones((1, 2 * HIDDEN), jnp.float32),
            conv_ln_b=jnp.zeros((1, 2 * HIDDEN), jnp.float32),
            conv_w2=nrm((2 * HIDDEN, HIDDEN)),
            conv_b2=nrm((1, HIDDEN)),
        ))
    return mlp_p, layer_ps


def pack_params(mlp_p, layer_ps):
    H = HIDDEN
    # MLP + shared layer0 norm vectors packed into one (8, H) f32 array.
    mlp_vec = jnp.zeros((8, H), jnp.float32)
    mlp_vec = mlp_vec.at[0].set(mlp_p['b0'][0])
    mlp_vec = mlp_vec.at[1].set(mlp_p['b1'][0])
    mlp_vec = mlp_vec.at[2].set(mlp_p['bn_g'][0])
    mlp_vec = mlp_vec.at[3].set(mlp_p['bn_b'][0])
    mlp_vec = mlp_vec.at[4].set(mlp_p['bn_m'][0])
    mlp_vec = mlp_vec.at[5].set(mlp_p['bn_v'][0])
    mlp_vec = mlp_vec.at[6].set(layer_ps[0]['ln_g'][0])
    mlp_vec = mlp_vec.at[7].set(layer_ps[0]['ln_b'][0])

    # True scalars (PReLU slopes) -> SMEM: [a_mlp, a_layer0, a_layer1..a_layer11]
    scal = jnp.concatenate(
        [mlp_p['a0'][0, 0:1], layer_ps[0]['act_a'][0, 0:1]]
        + [layer_ps[l]['act_a'][0, 0:1] for l in range(1, N_LAYERS)]).astype(jnp.float32)

    # Stacked per-layer GENConv matmul weights (bf16 -> MXU native path, f32 acc).
    gcn_w1 = jnp.stack([layer_ps[l]['conv_w1'] for l in range(1, N_LAYERS)]).astype(jnp.bfloat16)
    gcn_w2 = jnp.stack([layer_ps[l]['conv_w2'] for l in range(1, N_LAYERS)]).astype(jnp.bfloat16)

    # Per-layer vector params packed into one stacked (L, 8, 2H) f32 array.
    vecs = []
    for l in range(1, N_LAYERS):
        p = layer_ps[l]
        v = jnp.zeros((8, 2 * H), jnp.float32)
        v = v.at[0, :H].set(p['ln_g'][0])
        v = v.at[1, :H].set(p['ln_b'][0])
        v = v.at[2].set(p['conv_b1'][0])
        v = v.at[3].set(p['conv_ln_g'][0])
        v = v.at[4].set(p['conv_ln_b'][0])
        v = v.at[5, :H].set(p['conv_b2'][0])
        vecs.append(v)
    gcn_vec = jnp.stack(vecs)

    mlp_w0 = mlp_p['w0'].astype(jnp.bfloat16)
    mlp_w1 = mlp_p['w1'].astype(jnp.bfloat16)
    return scal, mlp_w0, mlp_w1, mlp_vec, gcn_w1, gcn_w2, gcn_vec


# ------------------------------------ main -------------------------------------

if __name__ == "__main__":
    key = jax.random.PRNGKey(0)
    k_feat, k_param = jax.random.split(key)

    # node features: [N, in_dim + edge_in_dim]
    x = jax.random.normal(k_feat, (N_NODES, F_IN), dtype=jnp.float32)

    # deterministic edge_index [2, E]: three circulant rings (all edges unique,
    # every node has incoming edges).  Row 0 = source, row 1 = target.
    base = jnp.arange(N_NODES)
    src = jnp.concatenate([base, base, base])
    dst = jnp.concatenate([(base + 1) % N_NODES, (base + 2) % N_NODES, (base + 3) % N_NODES])
    edge_index = jnp.stack([src, dst]).astype(jnp.int32)               # [2, 24]

    # glue: densify graph connectivity for the kernel (dedupe multi-edges so
    # max/min/mean all see the same 0/1 adjacency).
    adj = jnp.zeros((N_NODES, N_NODES), jnp.float32).at[edge_index[1], edge_index[0]].set(1.0)
    deg = jnp.sum(adj, axis=1, keepdims=True)                          # (N, 1) in-degree
    inv_deg = 1.0 / jnp.maximum(deg, 1.0)
    has_in = (deg > 0.0).astype(jnp.float32)
    aux = jnp.concatenate([inv_deg, has_in], axis=1)                   # (N, 2)
    adj_bf = adj.astype(jnp.bfloat16)                                  # (N, N) for MXU sum
    negm = jnp.where(adj > 0.5, 0.0, NEG_BIG).astype(jnp.float32)      # additive mask
    negm3 = jnp.broadcast_to(negm[:, :, None],
                             (N_NODES, N_NODES, HIDDEN)).astype(jnp.float32)

    mlp_p, layer_ps = init_params(k_param)
    scal, mlp_w0, mlp_w1, mlp_vec, gcn_w1, gcn_w2, gcn_vec = pack_params(mlp_p, layer_ps)

    out = jax.jit(mm_kg_encoder_forward)(
        scal, x, adj_bf, negm3, aux, mlp_w0, mlp_w1, mlp_vec, gcn_w1, gcn_w2, gcn_vec)
    out = jax.block_until_ready(out)

    assert out.shape == (N_NODES, HIDDEN), out.shape
    assert bool(jnp.all(jnp.isfinite(out)))
    print("KERNEL_OK")
</pallas_src>

<mosaic_0001>
module attributes {stable_mosaic.version = 11 : i64} {
  func.func @fused_encoder_kernel(%arg0: memref<13xf32, #tpu.memory_space<smem>>, %arg1: memref<8x32xf32, #tpu.memory_space<vmem>>, %arg2: memref<8x8xbf16, #tpu.memory_space<vmem>>, %arg3: memref<8x8x128xf32, #tpu.memory_space<vmem>>, %arg4: memref<8x2xf32, #tpu.memory_space<vmem>>, %arg5: memref<32x128xbf16, #tpu.memory_space<vmem>>, %arg6: memref<128x128xbf16, #tpu.memory_space<vmem>>, %arg7: memref<8x128xf32, #tpu.memory_space<vmem>>, %arg8: memref<11x128x256xbf16, #tpu.memory_space<vmem>>, %arg9: memref<11x256x128xbf16, #tpu.memory_space<vmem>>, %arg10: memref<11x8x256xf32, #tpu.memory_space<vmem>>, %arg11: memref<8x128xf32, #tpu.memory_space<vmem>>) attributes {dimension_semantics = [], scalar_prefetch = 0 : i64, scratch_operands = 0 : i64, tpu.core_type = #tpu.core_type<tc>} {
    %c0 = arith.constant 0 : index
    %0 = memref.load %arg0[%c0] : memref<13xf32, #tpu.memory_space<smem>>
    %c1 = arith.constant 1 : index
    %1 = memref.load %arg0[%c1] : memref<13xf32, #tpu.memory_space<smem>>
    %c0_0 = arith.constant 0 : index
    %c0_1 = arith.constant 0 : index
    %2 = vector.load %arg1[%c0_0, %c0_1] : memref<8x32xf32, #tpu.memory_space<vmem>>, vector<8x32xf32>
    %c0_2 = arith.constant 0 : index
    %c0_3 = arith.constant 0 : index
    %3 = vector.load %arg7[%c0_2, %c0_3] : memref<8x128xf32, #tpu.memory_space<vmem>>, vector<1x128xf32>
    %c1_4 = arith.constant 1 : index
    %c0_5 = arith.constant 0 : index
    %4 = vector.load %arg7[%c1_4, %c0_5] : memref<8x128xf32, #tpu.memory_space<vmem>>, vector<1x128xf32>
    %c2 = arith.constant 2 : index
    %c0_6 = arith.constant 0 : index
    %5 = vector.load %arg7[%c2, %c0_6] : memref<8x128xf32, #tpu.memory_space<vmem>>, vector<1x128xf32>
    %c3 = arith.constant 3 : index
    %c0_7 = arith.constant 0 : index
    %6 = vector.load %arg7[%c3, %c0_7] : memref<8x128xf32, #tpu.memory_space<vmem>>, vector<1x128xf32>
    %c4 = arith.constant 4 : index
    %c0_8 = arith.constant 0 : index
    %7 = vector.load %arg7[%c4, %c0_8] : memref<8x128xf32, #tpu.memory_space<vmem>>, vector<1x128xf32>
    %c5 = arith.constant 5 : index
    %c0_9 = arith.constant 0 : index
    %8 = vector.load %arg7[%c5, %c0_9] : memref<8x128xf32, #tpu.memory_space<vmem>>, vector<1x128xf32>
    %c6 = arith.constant 6 : index
    %c0_10 = arith.constant 0 : index
    %9 = vector.load %arg7[%c6, %c0_10] : memref<8x128xf32, #tpu.memory_space<vmem>>, vector<1x128xf32>
    %c7 = arith.constant 7 : index
    %c0_11 = arith.constant 0 : index
    %10 = vector.load %arg7[%c7, %c0_11] : memref<8x128xf32, #tpu.memory_space<vmem>>, vector<1x128xf32>
    %11 = arith.truncf %2 : vector<8x32xf32> to vector<8x32xbf16>
    %c0_12 = arith.constant 0 : index
    %c0_13 = arith.constant 0 : index
    %12 = vector.load %arg5[%c0_12, %c0_13] : memref<32x128xbf16, #tpu.memory_space<vmem>>, vector<32x128xbf16>
    %cst = arith.constant dense<0.000000e+00> : vector<8x128xf32>
    %13 = tpu.matmul %11, %12, %cst {dimension_numbers = #tpu.dot_dimension_numbers<[1], [0], [0], [1], [0, 0, 1, 1], [], []>} : vector<8x32xbf16>, vector<32x128xbf16>, vector<8x128xf32> -> vector<8x128xf32>
    %14 = vector.broadcast %3 : vector<1x128xf32> to vector<8x128xf32>
    %15 = arith.addf %13, %14 : vector<8x128xf32>
    %cst_14 = arith.constant 0.000000e+00 : f32
    %16 = vector.broadcast %cst_14 : f32 to vector<8x128xf32>
    %17 = arith.cmpf oge, %15, %16 : vector<8x128xf32>
    %18 = vector.broadcast %0 : f32 to vector<8x128xf32>
    %19 = arith.mulf %18, %15 : vector<8x128xf32>
    %20 = arith.select %17, %15, %19 : vector<8x128xi1>, vector<8x128xf32>
    %21 = arith.truncf %20 : vector<8x128xf32> to vector<8x128xbf16>
    %c0_15 = arith.constant 0 : index
    %c0_16 = arith.constant 0 : index
    %22 = vector.load %arg6[%c0_15, %c0_16] : memref<128x128xbf16, #tpu.memory_space<vmem>>, vector<128x128xbf16>
    %cst_17 = arith.constant dense<0.000000e+00> : vector<8x128xf32>
    %23 = tpu.matmul %21, %22, %cst_17 {dimension_numbers = #tpu.dot_dimension_numbers<[1], [0], [0], [1], [0, 0, 1, 1], [], []>} : vector<8x128xbf16>, vector<128x128xbf16>, vector<8x128xf32> -> vector<8x128xf32>
    %24 = vector.broadcast %4 : vector<1x128xf32> to vector<8x128xf32>
    %25 = arith.addf %23, %24 : vector<8x128xf32>
    %26 = vector.broadcast %7 : vector<1x128xf32> to vector<8x128xf32>
    %27 = arith.subf %25, %26 : vector<8x128xf32>
    %cst_18 = arith.constant 9.99999974E-6 : f32
    %28 = vector.broadcast %cst_18 : f32 to vector<1x128xf32>
    %29 = arith.addf %8, %28 : vector<1x128xf32>
    %30 = math.rsqrt %29 : vector<1x128xf32>
    %31 = vector.broadcast %30 : vector<1x128xf32> to vector<8x128xf32>
    %32 = arith.mulf %27, %31 : vector<8x128xf32>
    %33 = vector.broadcast %5 : vector<1x128xf32> to vector<8x128xf32>
    %34 = arith.mulf %32, %33 : vector<8x128xf32>
    %35 = vector.broadcast %6 : vector<1x128xf32> to vector<8x128xf32>
    %36 = arith.addf %34, %35 : vector<8x128xf32>
    %c0_19 = arith.constant 0 : index
    %c0_20 = arith.constant 0 : index
    %37 = vector.load %arg2[%c0_19, %c0_20] : memref<8x8xbf16, #tpu.memory_space<vmem>>, vector<8x8xbf16>
    %c0_21 = arith.constant 0 : index
    %c0_22 = arith.constant 0 : index
    %c0_23 = arith.constant 0 : index
    %38 = vector.load %arg3[%c0_21, %c0_22, %c0_23] : memref<8x8x128xf32, #tpu.memory_space<vmem>>, vector<8x8x128xf32>
    %c0_24 = arith.constant 0 : index
    %c0_25 = arith.constant 0 : index
    %39 = vector.load %arg4[%c0_24, %c0_25] : memref<8x2xf32, #tpu.memory_space<vmem>>, vector<8x1xf32>
    %c0_26 = arith.constant 0 : index
    %c1_27 = arith.constant 1 : index
    %40 = vector.load %arg4[%c0_26, %c1_27] : memref<8x2xf32, #tpu.memory_space<vmem>>, vector<8x1xf32>
    %cst_28 = arith.constant 5.000000e-01 : f32
    %41 = vector.broadcast %cst_28 : f32 to vector<8x1xf32>
    %42 = arith.cmpf ogt, %40, %41 : vector<8x1xf32>
    %c0_29 = arith.constant 0 : index
    %c0_30 = arith.constant 0 : index
    %c0_31 = arith.constant 0 : index
    %43 = vector.load %arg10[%c0_29, %c0_30, %c0_31] : memref<11x8x256xf32, #tpu.memory_space<vmem>>, vector<1x8x256xf32>
    %44 = vector.shape_cast %43 : vector<1x8x256xf32> to vector<8x256xf32>
    %45 = vector.extract_strided_slice %44 {offsets = [0, 0], sizes = [1, 128], strides = [1, 1]} : vector<8x256xf32> to vector<1x128xf32>
    %46 = vector.extract_strided_slice %44 {offsets = [1, 0], sizes = [1, 128], strides = [1, 1]} : vector<8x256xf32> to vector<1x128xf32>
    %47 = vector.extract_strided_slice %44 {offsets = [2, 0], sizes = [1, 256], strides = [1, 1]} : vector<8x256xf32> to vector<1x256xf32>
    %48 = vector.extract_strided_slice %44 {offsets = [3, 0], sizes = [1, 256], strides = [1, 1]} : vector<8x256xf32> to vector<1x256xf32>
    %49 = vector.extract_strided_slice %44 {offsets = [4, 0], sizes = [1, 256], strides = [1, 1]} : vector<8x256xf32> to vector<1x256xf32>
    %50 = vector.extract_strided_slice %44 {offsets = [5, 0], sizes = [1, 128], strides = [1, 1]} : vector<8x256xf32> to vector<1x128xf32>
    %c2_32 = arith.constant 2 : index
    %51 = memref.load %arg0[%c2_32] : memref<13xf32, #tpu.memory_space<smem>>
    %cst_33 = arith.constant dense<0.000000e+00> : vector<8xf32>
    %52 = vector.multi_reduction <add>, %36, %cst_33 [1] : vector<8x128xf32> to vector<8xf32>
    %53 = vector.shape_cast %52 : vector<8xf32> to vector<8x1xf32>
    %cst_34 = arith.constant 1.280000e+02 : f32
    %54 = vector.broadcast %cst_34 : f32 to vector<8x1xf32>
    %55 = arith.divf %53, %54 : vector<8x1xf32>
    %56 = vector.broadcast %55 : vector<8x1xf32> to vector<8x128xf32>
    %57 = arith.subf %36, %56 : vector<8x128xf32>
    %58 = arith.mulf %57, %57 : vector<8x128xf32>
    %cst_35 = arith.constant dense<0.000000e+00> : vector<8xf32>
    %59 = vector.multi_reduction <add>, %58, %cst_35 [1] : vector<8x128xf32> to vector<8xf32>
    %60 = vector.shape_cast %59 : vector<8xf32> to vector<8x1xf32>
    %cst_36 = arith.constant 1.280000e+02 : f32
    %61 = vector.broadcast %cst_36 : f32 to vector<8x1xf32>
    %62 = arith.divf %60, %61 : vector<8x1xf32>
    %cst_37 = arith.constant 9.99999974E-6 : f32
    %63 = vector.broadcast %cst_37 : f32 to vector<8x1xf32>
    %64 = arith.addf %62, %63 : vector<8x1xf32>
    %65 = math.rsqrt %64 : vector<8x1xf32>
    %66 = vector.broadcast %65 : vector<8x1xf32> to vector<8x128xf32>
    %67 = arith.mulf %57, %66 : vector<8x128xf32>
    %68 = vector.broadcast %45 : vector<1x128xf32> to vector<8x128xf32>
    %69 = arith.mulf %67, %68 : vector<8x128xf32>
    %70 = vector.broadcast %46 : vector<1x128xf32> to vector<8x128xf32>
    %71 = arith.addf %69, %70 : vector<8x128xf32>
    %cst_38 = arith.constant 0.000000e+00 : f32
    %72 = vector.broadcast %cst_38 : f32 to vector<8x128xf32>
    %73 = arith.cmpf oge, %71, %72 : vector<8x128xf32>
    %74 = vector.broadcast %51 : f32 to vector<8x128xf32>
    %75 = arith.mulf %74, %71 : vector<8x128xf32>
    %76 = arith.select %73, %71, %75 : vector<8x128xi1>, vector<8x128xf32>
    %cst_39 = arith.constant 0.000000e+00 : f32
    %77 = vector.broadcast %cst_39 : f32 to vector<8x128xf32>
    %78 = arith.maximumf %76, %77 : vector<8x128xf32>
    %cst_40 = arith.constant 1.000000e-07 : f32
    %79 = vector.broadcast %cst_40 : f32 to vector<8x128xf32>
    %80 = arith.addf %78, %79 : vector<8x128xf32>
    %81 = vector.shape_cast %80 : vector<8x128xf32> to vector<1x8x128xf32>
    %82 = vector.broadcast %81 : vector<1x8x128xf32> to vector<8x8x128xf32>
    %83 = arith.addf %82, %38 : vector<8x8x128xf32>
    %cst_41 = arith.constant dense<0xFF800000> : vector<8x128xf32>
    %84 = vector.multi_reduction <maximumf>, %83, %cst_41 [1] : vector<8x8x128xf32> to vector<8x128xf32>
    %85 = vector.broadcast %81 : vector<1x8x128xf32> to vector<8x8x128xf32>
    %86 = arith.subf %38, %85 : vector<8x8x128xf32>
    %cst_42 = arith.constant dense<0xFF800000> : vector<8x128xf32>
    %87 = vector.multi_reduction <maximumf>, %86, %cst_42 [1] : vector<8x8x128xf32> to vector<8x128xf32>
    %cst_43 = arith.constant 0.000000e+00 : f32
    %88 = vector.broadcast %cst_43 : f32 to vector<8x128xf32>
    %89 = arith.subf %88, %87 : vector<8x128xf32>
    %90 = arith.truncf %80 : vector<8x128xf32> to vector<8x128xbf16>
    %cst_44 = arith.constant dense<0.000000e+00> : vector<8x128xf32>
    %91 = tpu.matmul %37, %90, %cst_44 {dimension_numbers = #tpu.dot_dimension_numbers<[1], [0], [0], [1], [0, 0, 1, 1], [], []>} : vector<8x8xbf16>, vector<8x128xbf16>, vector<8x128xf32> -> vector<8x128xf32>
    %92 = vector.broadcast %39 : vector<8x1xf32> to vector<8x128xf32>
    %93 = arith.mulf %91, %92 : vector<8x128xf32>
    %cst_45 = arith.constant 0.000000e+00 : f32
    %94 = vector.shape_cast %42 : vector<8x1xi1> to vector<8x1xi1>
    %95 = vector.broadcast %94 : vector<8x1xi1> to vector<8x128xi1>
    %96 = vector.broadcast %cst_45 : f32 to vector<8x128xf32>
    %97 = arith.select %95, %84, %96 : vector<8x128xi1>, vector<8x128xf32>
    %cst_46 = arith.constant 0.000000e+00 : f32
    %98 = vector.shape_cast %42 : vector<8x1xi1> to vector<8x1xi1>
    %99 = vector.broadcast %98 : vector<8x1xi1> to vector<8x128xi1>
    %100 = vector.broadcast %cst_46 : f32 to vector<8x128xf32>
    %101 = arith.select %99, %89, %100 : vector<8x128xi1>, vector<8x128xf32>
    %102 = arith.addf %97, %101 : vector<8x128xf32>
    %103 = arith.addf %102, %93 : vector<8x128xf32>
    %cst_47 = arith.constant 0.333333343 : f32
    %104 = vector.broadcast %cst_47 : f32 to vector<8x128xf32>
    %105 = arith.mulf %103, %104 : vector<8x128xf32>
    %106 = arith.addf %76, %105 : vector<8x128xf32>
    %107 = arith.truncf %106 : vector<8x128xf32> to vector<8x128xbf16>
    %c0_48 = arith.constant 0 : index
    %c0_49 = arith.constant 0 : index
    %c0_50 = arith.constant 0 : index
    %108 = vector.load %arg8[%c0_48, %c0_49, %c0_50] : memref<11x128x256xbf16, #tpu.memory_space<vmem>>, vector<1x128x256xbf16>
    %109 = vector.shape_cast %108 : vector<1x128x256xbf16> to vector<128x256xbf16>
    %cst_51 = arith.constant dense<0.000000e+00> : vector<8x256xf32>
    %110 = tpu.matmul %107, %109, %cst_51 {dimension_numbers = #tpu.dot_dimension_numbers<[1], [0], [0], [1], [0, 0, 1, 1], [], []>} : vector<8x128xbf16>, vector<128x256xbf16>, vector<8x256xf32> -> vector<8x256xf32>
    %111 = vector.broadcast %47 : vector<1x256xf32> to vector<8x256xf32>
    %112 = arith.addf %110, %111 : vector<8x256xf32>
    %cst_52 = arith.constant dense<0.000000e+00> : vector<8xf32>
    %113 = vector.multi_reduction <add>, %112, %cst_52 [1] : vector<8x256xf32> to vector<8xf32>
    %114 = vector.shape_cast %113 : vector<8xf32> to vector<8x1xf32>
    %cst_53 = arith.constant 2.560000e+02 : f32
    %115 = vector.broadcast %cst_53 : f32 to vector<8x1xf32>
    %116 = arith.divf %114, %115 : vector<8x1xf32>
    %117 = vector.broadcast %116 : vector<8x1xf32> to vector<8x256xf32>
    %118 = arith.subf %112, %117 : vector<8x256xf32>
    %119 = arith.mulf %118, %118 : vector<8x256xf32>
    %cst_54 = arith.constant dense<0.000000e+00> : vector<8xf32>
    %120 = vector.multi_reduction <add>, %119, %cst_54 [1] : vector<8x256xf32> to vector<8xf32>
    %121 = vector.shape_cast %120 : vector<8xf32> to vector<8x1xf32>
    %cst_55 = arith.constant 2.560000e+02 : f32
    %122 = vector.broadcast %cst_55 : f32 to vector<8x1xf32>
    %123 = arith.divf %121, %122 : vector<8x1xf32>
    %cst_56 = arith.constant 9.99999974E-6 : f32
    %124 = vector.broadcast %cst_56 : f32 to vector<8x1xf32>
    %125 = arith.addf %123, %124 : vector<8x1xf32>
    %126 = math.rsqrt %125 : vector<8x1xf32>
    %127 = vector.broadcast %126 : vector<8x1xf32> to vector<8x256xf32>
    %128 = arith.mulf %118, %127 : vector<8x256xf32>
    %129 = vector.broadcast %48 : vector<1x256xf32> to vector<8x256xf32>
    %130 = arith.mulf %128, %129 : vector<8x256xf32>
    %131 = vector.broadcast %49 : vector<1x256xf32> to vector<8x256xf32>
    %132 = arith.addf %130, %131 : vector<8x256xf32>
    %cst_57 = arith.constant 0.000000e+00 : f32
    %133 = vector.broadcast %cst_57 : f32 to vector<8x256xf32>
    %134 = arith.maximumf %132, %133 : vector<8x256xf32>
    %135 = arith.truncf %134 : vector<8x256xf32> to vector<8x256xbf16>
    %c0_58 = arith.constant 0 : index
    %c0_59 = arith.constant 0 : index
    %c0_60 = arith.constant 0 : index
    %136 = vector.load %arg9[%c0_58, %c0_59, %c0_60] : memref<11x256x128xbf16, #tpu.memory_space<vmem>>, vector<1x256x128xbf16>
    %137 = vector.shape_cast %136 : vector<1x256x128xbf16> to vector<256x128xbf16>
    %cst_61 = arith.constant dense<0.000000e+00> : vector<8x128xf32>
    %138 = tpu.matmul %135, %137, %cst_61 {dimension_numbers = #tpu.dot_dimension_numbers<[1], [0], [0], [1], [0, 0, 1, 1], [], []>} : vector<8x256xbf16>, vector<256x128xbf16>, vector<8x128xf32> -> vector<8x128xf32>
    %139 = vector.broadcast %50 : vector<1x128xf32> to vector<8x128xf32>
    %140 = arith.addf %138, %139 : vector<8x128xf32>
    %141 = arith.addf %36, %140 : vector<8x128xf32>
    %cst_62 = arith.constant dense<0.000000e+00> : vector<8xf32>
    %142 = vector.multi_reduction <add>, %141, %cst_62 [1] : vector<8x128xf32> to vector<8xf32>
    %143 = vector.shape_cast %142 : vector<8xf32> to vector<8x1xf32>
    %cst_63 = arith.constant 1.280000e+02 : f32
    %144 = vector.broadcast %cst_63 : f32 to vector<8x1xf32>
    %145 = arith.divf %143, %144 : vector<8x1xf32>
    %146 = vector.broadcast %145 : vector<8x1xf32> to vector<8x128xf32>
    %147 = arith.subf %141, %146 : vector<8x128xf32>
    %148 = arith.mulf %147, %147 : vector<8x128xf32>
    %cst_64 = arith.constant dense<0.000000e+00> : vector<8xf32>
    %149 = vector.multi_reduction <add>, %148, %cst_64 [1] : vector<8x128xf32> to vector<8xf32>
    %150 = vector.shape_cast %149 : vector<8xf32> to vector<8x1xf32>
    %cst_65 = arith.constant 1.280000e+02 : f32
    %151 = vector.broadcast %cst_65 : f32 to vector<8x1xf32>
    %152 = arith.divf %150, %151 : vector<8x1xf32>
    %cst_66 = arith.constant 9.99999974E-6 : f32
    %153 = vector.broadcast %cst_66 : f32 to vector<8x1xf32>
    %154 = arith.addf %152, %153 : vector<8x1xf32>
    %155 = math.rsqrt %154 : vector<8x1xf32>
    %156 = vector.broadcast %155 : vector<8x1xf32> to vector<8x128xf32>
    %157 = arith.mulf %147, %156 : vector<8x128xf32>
    %158 = vector.broadcast %9 : vector<1x128xf32> to vector<8x128xf32>
    %159 = arith.mulf %157, %158 : vector<8x128xf32>
    %160 = vector.broadcast %10 : vector<1x128xf32> to vector<8x128xf32>
    %161 = arith.addf %159, %160 : vector<8x128xf32>
    %cst_67 = arith.constant 0.000000e+00 : f32
    %162 = vector.broadcast %cst_67 : f32 to vector<8x128xf32>
    %163 = arith.cmpf oge, %161, %162 : vector<8x128xf32>
    %164 = vector.broadcast %1 : f32 to vector<8x128xf32>
    %165 = arith.mulf %164, %161 : vector<8x128xf32>
    %166 = arith.select %163, %161, %165 : vector<8x128xi1>, vector<8x128xf32>
    %c1_68 = arith.constant 1 : index
    %c0_69 = arith.constant 0 : index
    %c0_70 = arith.constant 0 : index
    %167 = vector.load %arg10[%c1_68, %c0_69, %c0_70] : memref<11x8x256xf32, #tpu.memory_space<vmem>>, vector<1x8x256xf32>
    %168 = vector.shape_cast %167 : vector<1x8x256xf32> to vector<8x256xf32>
    %169 = vector.extract_strided_slice %168 {offsets = [0, 0], sizes = [1, 128], strides = [1, 1]} : vector<8x256xf32> to vector<1x128xf32>
    %170 = vector.extract_strided_slice %168 {offsets = [1, 0], sizes = [1, 128], strides = [1, 1]} : vector<8x256xf32> to vector<1x128xf32>
    %171 = vector.extract_strided_slice %168 {offsets = [2, 0], sizes = [1, 256], strides = [1, 1]} : vector<8x256xf32> to vector<1x256xf32>
    %172 = vector.extract_strided_slice %168 {offsets = [3, 0], sizes = [1, 256], strides = [1, 1]} : vector<8x256xf32> to vector<1x256xf32>
    %173 = vector.extract_strided_slice %168 {offsets = [4, 0], sizes = [1, 256], strides = [1, 1]} : vector<8x256xf32> to vector<1x256xf32>
    %174 = vector.extract_strided_slice %168 {offsets = [5, 0], sizes = [1, 128], strides = [1, 1]} : vector<8x256xf32> to vector<1x128xf32>
    %c3_71 = arith.constant 3 : index
    %175 = memref.load %arg0[%c3_71] : memref<13xf32, #tpu.memory_space<smem>>
    %cst_72 = arith.constant dense<0.000000e+00> : vector<8xf32>
    %176 = vector.multi_reduction <add>, %166, %cst_72 [1] : vector<8x128xf32> to vector<8xf32>
    %177 = vector.shape_cast %176 : vector<8xf32> to vector<8x1xf32>
    %cst_73 = arith.constant 1.280000e+02 : f32
    %178 = vector.broadcast %cst_73 : f32 to vector<8x1xf32>
    %179 = arith.divf %177, %178 : vector<8x1xf32>
    %180 = vector.broadcast %179 : vector<8x1xf32> to vector<8x128xf32>
    %181 = arith.subf %166, %180 : vector<8x128xf32>
    %182 = arith.mulf %181, %181 : vector<8x128xf32>
    %cst_74 = arith.constant dense<0.000000e+00> : vector<8xf32>
    %183 = vector.multi_reduction <add>, %182, %cst_74 [1] : vector<8x128xf32> to vector<8xf32>
    %184 = vector.shape_cast %183 : vector<8xf32> to vector<8x1xf32>
    %cst_75 = arith.constant 1.280000e+02 : f32
    %185 = vector.broadcast %cst_75 : f32 to vector<8x1xf32>
    %186 = arith.divf %184, %185 : vector<8x1xf32>
    %cst_76 = arith.constant 9.99999974E-6 : f32
    %187 = vector.broadcast %cst_76 : f32 to vector<8x1xf32>
    %188 = arith.addf %186, %187 : vector<8x1xf32>
    %189 = math.rsqrt %188 : vector<8x1xf32>
    %190 = vector.broadcast %189 : vector<8x1xf32> to vector<8x128xf32>
    %191 = arith.mulf %181, %190 : vector<8x128xf32>
    %192 = vector.broadcast %169 : vector<1x128xf32> to vector<8x128xf32>
    %193 = arith.mulf %191, %192 : vector<8x128xf32>
    %194 = vector.broadcast %170 : vector<1x128xf32> to vector<8x128xf32>
    %195 = arith.addf %193, %194 : vector<8x128xf32>
    %cst_77 = arith.constant 0.000000e+00 : f32
    %196 = vector.broadcast %cst_77 : f32 to vector<8x128xf32>
    %197 = arith.cmpf oge, %195, %196 : vector<8x128xf32>
    %198 = vector.broadcast %175 : f32 to vector<8x128xf32>
    %199 = arith.mulf %198, %195 : vector<8x128xf32>
    %200 = arith.select %197, %195, %199 : vector<8x128xi1>, vector<8x128xf32>
    %cst_78 = arith.constant 0.000000e+00 : f32
    %201 = vector.broadcast %cst_78 : f32 to vector<8x128xf32>
    %202 = arith.maximumf %200, %201 : vector<8x128xf32>
    %cst_79 = arith.constant 1.000000e-07 : f32
    %203 = vector.broadcast %cst_79 : f32 to vector<8x128xf32>
    %204 = arith.addf %202, %203 : vector<8x128xf32>
    %205 = vector.shape_cast %204 : vector<8x128xf32> to vector<1x8x128xf32>
    %206 = vector.broadcast %205 : vector<1x8x128xf32> to vector<8x8x128xf32>
    %207 = arith.addf %206, %38 : vector<8x8x128xf32>
    %cst_80 = arith.constant dense<0xFF800000> : vector<8x128xf32>
    %208 = vector.multi_reduction <maximumf>, %207, %cst_80 [1] : vector<8x8x128xf32> to vector<8x128xf32>
    %209 = vector.broadcast %205 : vector<1x8x128xf32> to vector<8x8x128xf32>
    %210 = arith.subf %38, %209 : vector<8x8x128xf32>
    %cst_81 = arith.constant dense<0xFF800000> : vector<8x128xf32>
    %211 = vector.multi_reduction <maximumf>, %210, %cst_81 [1] : vector<8x8x128xf32> to vector<8x128xf32>
    %cst_82 = arith.constant 0.000000e+00 : f32
    %212 = vector.broadcast %cst_82 : f32 to vector<8x128xf32>
    %213 = arith.subf %212, %211 : vector<8x128xf32>
    %214 = arith.truncf %204 : vector<8x128xf32> to vector<8x128xbf16>
    %cst_83 = arith.constant dense<0.000000e+00> : vector<8x128xf32>
    %215 = tpu.matmul %37, %214, %cst_83 {dimension_numbers = #tpu.dot_dimension_numbers<[1], [0], [0], [1], [0, 0, 1, 1], [], []>} : vector<8x8xbf16>, vector<8x128xbf16>, vector<8x128xf32> -> vector<8x128xf32>
    %216 = vector.broadcast %39 : vector<8x1xf32> to vector<8x128xf32>
    %217 = arith.mulf %215, %216 : vector<8x128xf32>
    %cst_84 = arith.constant 0.000000e+00 : f32
    %218 = vector.shape_cast %42 : vector<8x1xi1> to vector<8x1xi1>
    %219 = vector.broadcast %218 : vector<8x1xi1> to vector<8x128xi1>
    %220 = vector.broadcast %cst_84 : f32 to vector<8x128xf32>
    %221 = arith.select %219, %208, %220 : vector<8x128xi1>, vector<8x128xf32>
    %cst_85 = arith.constant 0.000000e+00 : f32
    %222 = vector.shape_cast %42 : vector<8x1xi1> to vector<8x1xi1>
    %223 = vector.broadcast %222 : vector<8x1xi1> to vector<8x128xi1>
    %224 = vector.broadcast %cst_85 : f32 to vector<8x128xf32>
    %225 = arith.select %223, %213, %224 : vector<8x128xi1>, vector<8x128xf32>
    %226 = arith.addf %221, %225 : vector<8x128xf32>
    %227 = arith.addf %226, %217 : vector<8x128xf32>
    %cst_86 = arith.constant 0.333333343 : f32
    %228 = vector.broadcast %cst_86 : f32 to vector<8x128xf32>
    %229 = arith.mulf %227, %228 : vector<8x128xf32>
    %230 = arith.addf %200, %229 : vector<8x128xf32>
    %231 = arith.truncf %230 : vector<8x128xf32> to vector<8x128xbf16>
    %c1_87 = arith.constant 1 : index
    %c0_88 = arith.constant 0 : index
    %c0_89 = arith.constant 0 : index
    %232 = vector.load %arg8[%c1_87, %c0_88, %c0_89] : memref<11x128x256xbf16, #tpu.memory_space<vmem>>, vector<1x128x256xbf16>
    %233 = vector.shape_cast %232 : vector<1x128x256xbf16> to vector<128x256xbf16>
    %cst_90 = arith.constant dense<0.000000e+00> : vector<8x256xf32>
    %234 = tpu.matmul %231, %233, %cst_90 {dimension_numbers = #tpu.dot_dimension_numbers<[1], [0], [0], [1], [0, 0, 1, 1], [], []>} : vector<8x128xbf16>, vector<128x256xbf16>, vector<8x256xf32> -> vector<8x256xf32>
    %235 = vector.broadcast %171 : vector<1x256xf32> to vector<8x256xf32>
    %236 = arith.addf %234, %235 : vector<8x256xf32>
    %cst_91 = arith.constant dense<0.000000e+00> : vector<8xf32>
    %237 = vector.multi_reduction <add>, %236, %cst_91 [1] : vector<8x256xf32> to vector<8xf32>
    %238 = vector.shape_cast %237 : vector<8xf32> to vector<8x1xf32>
    %cst_92 = arith.constant 2.560000e+02 : f32
    %239 = vector.broadcast %cst_92 : f32 to vector<8x1xf32>
    %240 = arith.divf %238, %239 : vector<8x1xf32>
    %241 = vector.broadcast %240 : vector<8x1xf32> to vector<8x256xf32>
    %242 = arith.subf %236, %241 : vector<8x256xf32>
    %243 = arith.mulf %242, %242 : vector<8x256xf32>
    %cst_93 = arith.constant dense<0.000000e+00> : vector<8xf32>
    %244 = vector.multi_reduction <add>, %243, %cst_93 [1] : vector<8x256xf32> to vector<8xf32>
    %245 = vector.shape_cast %244 : vector<8xf32> to vector<8x1xf32>
    %cst_94 = arith.constant 2.560000e+02 : f32
    %246 = vector.broadcast %cst_94 : f32 to vector<8x1xf32>
    %247 = arith.divf %245, %246 : vector<8x1xf32>
    %cst_95 = arith.constant 9.99999974E-6 : f32
    %248 = vector.broadcast %cst_95 : f32 to vector<8x1xf32>
    %249 = arith.addf %247, %248 : vector<8x1xf32>
    %250 = math.rsqrt %249 : vector<8x1xf32>
    %251 = vector.broadcast %250 : vector<8x1xf32> to vector<8x256xf32>
    %252 = arith.mulf %242, %251 : vector<8x256xf32>
    %253 = vector.broadcast %172 : vector<1x256xf32> to vector<8x256xf32>
    %254 = arith.mulf %252, %253 : vector<8x256xf32>
    %255 = vector.broadcast %173 : vector<1x256xf32> to vector<8x256xf32>
    %256 = arith.addf %254, %255 : vector<8x256xf32>
    %cst_96 = arith.constant 0.000000e+00 : f32
    %257 = vector.broadcast %cst_96 : f32 to vector<8x256xf32>
    %258 = arith.maximumf %256, %257 : vector<8x256xf32>
    %259 = arith.truncf %258 : vector<8x256xf32> to vector<8x256xbf16>
    %c1_97 = arith.constant 1 : index
    %c0_98 = arith.constant 0 : index
    %c0_99 = arith.constant 0 : index
    %260 = vector.load %arg9[%c1_97, %c0_98, %c0_99] : memref<11x256x128xbf16, #tpu.memory_space<vmem>>, vector<1x256x128xbf16>
    %261 = vector.shape_cast %260 : vector<1x256x128xbf16> to vector<256x128xbf16>
    %cst_100 = arith.constant dense<0.000000e+00> : vector<8x128xf32>
    %262 = tpu.matmul %259, %261, %cst_100 {dimension_numbers = #tpu.dot_dimension_numbers<[1], [0], [0], [1], [0, 0, 1, 1], [], []>} : vector<8x256xbf16>, vector<256x128xbf16>, vector<8x128xf32> -> vector<8x128xf32>
    %263 = vector.broadcast %174 : vector<1x128xf32> to vector<8x128xf32>
    %264 = arith.addf %262, %263 : vector<8x128xf32>
    %265 = arith.addf %166, %264 : vector<8x128xf32>
    %cst_101 = arith.constant dense<0.000000e+00> : vector<8xf32>
    %266 = vector.multi_reduction <add>, %265, %cst_101 [1] : vector<8x128xf32> to vector<8xf32>
    %267 = vector.shape_cast %266 : vector<8xf32> to vector<8x1xf32>
    %cst_102 = arith.constant 1.280000e+02 : f32
    %268 = vector.broadcast %cst_102 : f32 to vector<8x1xf32>
    %269 = arith.divf %267, %268 : vector<8x1xf32>
    %270 = vector.broadcast %269 : vector<8x1xf32> to vector<8x128xf32>
    %271 = arith.subf %265, %270 : vector<8x128xf32>
    %272 = arith.mulf %271, %271 : vector<8x128xf32>
    %cst_103 = arith.constant dense<0.000000e+00> : vector<8xf32>
    %273 = vector.multi_reduction <add>, %272, %cst_103 [1] : vector<8x128xf32> to vector<8xf32>
    %274 = vector.shape_cast %273 : vector<8xf32> to vector<8x1xf32>
    %cst_104 = arith.constant 1.280000e+02 : f32
    %275 = vector.broadcast %cst_104 : f32 to vector<8x1xf32>
    %276 = arith.divf %274, %275 : vector<8x1xf32>
    %cst_105 = arith.constant 9.99999974E-6 : f32
    %277 = vector.broadcast %cst_105 : f32 to vector<8x1xf32>
    %278 = arith.addf %276, %277 : vector<8x1xf32>
    %279 = math.rsqrt %278 : vector<8x1xf32>
    %280 = vector.broadcast %279 : vector<8x1xf32> to vector<8x128xf32>
    %281 = arith.mulf %271, %280 : vector<8x128xf32>
    %282 = vector.broadcast %9 : vector<1x128xf32> to vector<8x128xf32>
    %283 = arith.mulf %281, %282 : vector<8x128xf32>
    %284 = vector.broadcast %10 : vector<1x128xf32> to vector<8x128xf32>
    %285 = arith.addf %283, %284 : vector<8x128xf32>
    %cst_106 = arith.constant 0.000000e+00 : f32
    %286 = vector.broadcast %cst_106 : f32 to vector<8x128xf32>
    %287 = arith.cmpf oge, %285, %286 : vector<8x128xf32>
    %288 = vector.broadcast %1 : f32 to vector<8x128xf32>
    %289 = arith.mulf %288, %285 : vector<8x128xf32>
    %290 = arith.select %287, %285, %289 : vector<8x128xi1>, vector<8x128xf32>
    %c2_107 = arith.constant 2 : index
    %c0_108 = arith.constant 0 : index
    %c0_109 = arith.constant 0 : index
    %291 = vector.load %arg10[%c2_107, %c0_108, %c0_109] : memref<11x8x256xf32, #tpu.memory_space<vmem>>, vector<1x8x256xf32>
    %292 = vector.shape_cast %291 : vector<1x8x256xf32> to vector<8x256xf32>
    %293 = vector.extract_strided_slice %292 {offsets = [0, 0], sizes = [1, 128], strides = [1, 1]} : vector<8x256xf32> to vector<1x128xf32>
    %294 = vector.extract_strided_slice %292 {offsets = [1, 0], sizes = [1, 128], strides = [1, 1]} : vector<8x256xf32> to vector<1x128xf32>
    %295 = vector.extract_strided_slice %292 {offsets = [2, 0], sizes = [1, 256], strides = [1, 1]} : vector<8x256xf32> to vector<1x256xf32>
    %296 = vector.extract_strided_slice %292 {offsets = [3, 0], sizes = [1, 256], strides = [1, 1]} : vector<8x256xf32> to vector<1x256xf32>
    %297 = vector.extract_strided_slice %292 {offsets = [4, 0], sizes = [1, 256], strides = [1, 1]} : vector<8x256xf32> to vector<1x256xf32>
    %298 = vector.extract_strided_slice %292 {offsets = [5, 0], sizes = [1, 128], strides = [1, 1]} : vector<8x256xf32> to vector<1x128xf32>
    %c4_110 = arith.constant 4 : index
    %299 = memref.load %arg0[%c4_110] : memref<13xf32, #tpu.memory_space<smem>>
    %cst_111 = arith.constant dense<0.000000e+00> : vector<8xf32>
    %300 = vector.multi_reduction <add>, %290, %cst_111 [1] : vector<8x128xf32> to vector<8xf32>
    %301 = vector.shape_cast %300 : vector<8xf32> to vector<8x1xf32>
    %cst_112 = arith.constant 1.280000e+02 : f32
    %302 = vector.broadcast %cst_112 : f32 to vector<8x1xf32>
    %303 = arith.divf %301, %302 : vector<8x1xf32>
    %304 = vector.broadcast %303 : vector<8x1xf32> to vector<8x128xf32>
    %305 = arith.subf %290, %304 : vector<8x128xf32>
    %306 = arith.mulf %305, %305 : vector<8x128xf32>
    %cst_113 = arith.constant dense<0.000000e+00> : vector<8xf32>
    %307 = vector.multi_reduction <add>, %306, %cst_113 [1] : vector<8x128xf32> to vector<8xf32>
    %308 = vector.shape_cast %307 : vector<8xf32> to vector<8x1xf32>
    %cst_114 = arith.constant 1.280000e+02 : f32
    %309 = vector.broadcast %cst_114 : f32 to vector<8x1xf32>
    %310 = arith.divf %308, %309 : vector<8x1xf32>
    %cst_115 = arith.constant 9.99999974E-6 : f32
    %311 = vector.broadcast %cst_115 : f32 to vector<8x1xf32>
    %312 = arith.addf %310, %311 : vector<8x1xf32>
    %313 = math.rsqrt %312 : vector<8x1xf32>
    %314 = vector.broadcast %313 : vector<8x1xf32> to vector<8x128xf32>
    %315 = arith.mulf %305, %314 : vector<8x128xf32>
    %316 = vector.broadcast %293 : vector<1x128xf32> to vector<8x128xf32>
    %317 = arith.mulf %315, %316 : vector<8x128xf32>
    %318 = vector.broadcast %294 : vector<1x128xf32> to vector<8x128xf32>
    %319 = arith.addf %317, %318 : vector<8x128xf32>
    %cst_116 = arith.constant 0.000000e+00 : f32
    %320 = vector.broadcast %cst_116 : f32 to vector<8x128xf32>
    %321 = arith.cmpf oge, %319, %320 : vector<8x128xf32>
    %322 = vector.broadcast %299 : f32 to vector<8x128xf32>
    %323 = arith.mulf %322, %319 : vector<8x128xf32>
    %324 = arith.select %321, %319, %323 : vector<8x128xi1>, vector<8x128xf32>
    %cst_117 = arith.constant 0.000000e+00 : f32
    %325 = vector.broadcast %cst_117 : f32 to vector<8x128xf32>
    %326 = arith.maximumf %324, %325 : vector<8x128xf32>
    %cst_118 = arith.constant 1.000000e-07 : f32
    %327 = vector.broadcast %cst_118 : f32 to vector<8x128xf32>
    %328 = arith.addf %326, %327 : vector<8x128xf32>
    %329 = vector.shape_cast %328 : vector<8x128xf32> to vector<1x8x128xf32>
    %330 = vector.broadcast %329 : vector<1x8x128xf32> to vector<8x8x128xf32>
    %331 = arith.addf %330, %38 : vector<8x8x128xf32>
    %cst_119 = arith.constant dense<0xFF800000> : vector<8x128xf32>
    %332 = vector.multi_reduction <maximumf>, %331, %cst_119 [1] : vector<8x8x128xf32> to vector<8x128xf32>
    %333 = vector.broadcast %329 : vector<1x8x128xf32> to vector<8x8x128xf32>
    %334 = arith.subf %38, %333 : vector<8x8x128xf32>
    %cst_120 = arith.constant dense<0xFF800000> : vector<8x128xf32>
    %335 = vector.multi_reduction <maximumf>, %334, %cst_120 [1] : vector<8x8x128xf32> to vector<8x128xf32>
    %cst_121 = arith.constant 0.000000e+00 : f32
    %336 = vector.broadcast %cst_121 : f32 to vector<8x128xf32>
    %337 = arith.subf %336, %335 : vector<8x128xf32>
    %338 = arith.truncf %328 : vector<8x128xf32> to vector<8x128xbf16>
    %cst_122 = arith.constant dense<0.000000e+00> : vector<8x128xf32>
    %339 = tpu.matmul %37, %338, %cst_122 {dimension_numbers = #tpu.dot_dimension_numbers<[1], [0], [0], [1], [0, 0, 1, 1], [], []>} : vector<8x8xbf16>, vector<8x128xbf16>, vector<8x128xf32> -> vector<8x128xf32>
    %340 = vector.broadcast %39 : vector<8x1xf32> to vector<8x128xf32>
    %341 = arith.mulf %339, %340 : vector<8x128xf32>
    %cst_123 = arith.constant 0.000000e+00 : f32
    %342 = vector.shape_cast %42 : vector<8x1xi1> to vector<8x1xi1>
    %343 = vector.broadcast %342 : vector<8x1xi1> to vector<8x128xi1>
    %344 = vector.broadcast %cst_123 : f32 to vector<8x128xf32>
    %345 = arith.select %343, %332, %344 : vector<8x128xi1>, vector<8x128xf32>
    %cst_124 = arith.constant 0.000000e+00 : f32
    %346 = vector.shape_cast %42 : vector<8x1xi1> to vector<8x1xi1>
    %347 = vector.broadcast %346 : vector<8x1xi1> to vector<8x128xi1>
    %348 = vector.broadcast %cst_124 : f32 to vector<8x128xf32>
    %349 = arith.select %347, %337, %348 : vector<8x128xi1>, vector<8x128xf32>
    %350 = arith.addf %345, %349 : vector<8x128xf32>
    %351 = arith.addf %350, %341 : vector<8x128xf32>
    %cst_125 = arith.constant 0.333333343 : f32
    %352 = vector.broadcast %cst_125 : f32 to vector<8x128xf32>
    %353 = arith.mulf %351, %352 : vector<8x128xf32>
    %354 = arith.addf %324, %353 : vector<8x128xf32>
    %355 = arith.truncf %354 : vector<8x128xf32> to vector<8x128xbf16>
    %c2_126 = arith.constant 2 : index
    %c0_127 = arith.constant 0 : index
    %c0_128 = arith.constant 0 : index
    %356 = vector.load %arg8[%c2_126, %c0_127, %c0_128] : memref<11x128x256xbf16, #tpu.memory_space<vmem>>, vector<1x128x256xbf16>
    %357 = vector.shape_cast %356 : vector<1x128x256xbf16> to vector<128x256xbf16>
    %cst_129 = arith.constant dense<0.000000e+00> : vector<8x256xf32>
    %358 = tpu.matmul %355, %357, %cst_129 {dimension_numbers = #tpu.dot_dimension_numbers<[1], [0], [0], [1], [0, 0, 1, 1], [], []>} : vector<8x128xbf16>, vector<128x256xbf16>, vector<8x256xf32> -> vector<8x256xf32>
    %359 = vector.broadcast %295 : vector<1x256xf32> to vector<8x256xf32>
    %360 = arith.addf %358, %359 : vector<8x256xf32>
    %cst_130 = arith.constant dense<0.000000e+00> : vector<8xf32>
    %361 = vector.multi_reduction <add>, %360, %cst_130 [1] : vector<8x256xf32> to vector<8xf32>
    %362 = vector.shape_cast %361 : vector<8xf32> to vector<8x1xf32>
    %cst_131 = arith.constant 2.560000e+02 : f32
    %363 = vector.broadcast %cst_131 : f32 to vector<8x1xf32>
    %364 = arith.divf %362, %363 : vector<8x1xf32>
    %365 = vector.broadcast %364 : vector<8x1xf32> to vector<8x256xf32>
    %366 = arith.subf %360, %365 : vector<8x256xf32>
    %367 = arith.mulf %366, %366 : vector<8x256xf32>
    %cst_132 = arith.constant dense<0.000000e+00> : vector<8xf32>
    %368 = vector.multi_reduction <add>, %367, %cst_132 [1] : vector<8x256xf32> to vector<8xf32>
    %369 = vector.shape_cast %368 : vector<8xf32> to vector<8x1xf32>
    %cst_133 = arith.constant 2.560000e+02 : f32
    %370 = vector.broadcast %cst_133 : f32 to vector<8x1xf32>
    %371 = arith.divf %369, %370 : vector<8x1xf32>
    %cst_134 = arith.constant 9.99999974E-6 : f32
    %372 = vector.broadcast %cst_134 : f32 to vector<8x1xf32>
    %373 = arith.addf %371, %372 : vector<8x1xf32>
    %374 = math.rsqrt %373 : vector<8x1xf32>
    %375 = vector.broadcast %374 : vector<8x1xf32> to vector<8x256xf32>
    %376 = arith.mulf %366, %375 : vector<8x256xf32>
    %377 = vector.broadcast %296 : vector<1x256xf32> to vector<8x256xf32>
    %378 = arith.mulf %376, %377 : vector<8x256xf32>
    %379 = vector.broadcast %297 : vector<1x256xf32> to vector<8x256xf32>
    %380 = arith.addf %378, %379 : vector<8x256xf32>
    %cst_135 = arith.constant 0.000000e+00 : f32
    %381 = vector.broadcast %cst_135 : f32 to vector<8x256xf32>
    %382 = arith.maximumf %380, %381 : vector<8x256xf32>
    %383 = arith.truncf %382 : vector<8x256xf32> to vector<8x256xbf16>
    %c2_136 = arith.constant 2 : index
    %c0_137 = arith.constant 0 : index
    %c0_138 = arith.constant 0 : index
    %384 = vector.load %arg9[%c2_136, %c0_137, %c0_138] : memref<11x256x128xbf16, #tpu.memory_space<vmem>>, vector<1x256x128xbf16>
    %385 = vector.shape_cast %384 : vector<1x256x128xbf16> to vector<256x128xbf16>
    %cst_139 = arith.constant dense<0.000000e+00> : vector<8x128xf32>
    %386 = tpu.matmul %383, %385, %cst_139 {dimension_numbers = #tpu.dot_dimension_numbers<[1], [0], [0], [1], [0, 0, 1, 1], [], []>} : vector<8x256xbf16>, vector<256x128xbf16>, vector<8x128xf32> -> vector<8x128xf32>
    %387 = vector.broadcast %298 : vector<1x128xf32> to vector<8x128xf32>
    %388 = arith.addf %386, %387 : vector<8x128xf32>
    %389 = arith.addf %290, %388 : vector<8x128xf32>
    %cst_140 = arith.constant dense<0.000000e+00> : vector<8xf32>
    %390 = vector.multi_reduction <add>, %389, %cst_140 [1] : vector<8x128xf32> to vector<8xf32>
    %391 = vector.shape_cast %390 : vector<8xf32> to vector<8x1xf32>
    %cst_141 = arith.constant 1.280000e+02 : f32
    %392 = vector.broadcast %cst_141 : f32 to vector<8x1xf32>
    %393 = arith.divf %391, %392 : vector<8x1xf32>
    %394 = vector.broadcast %393 : vector<8x1xf32> to vector<8x128xf32>
    %395 = arith.subf %389, %394 : vector<8x128xf32>
    %396 = arith.mulf %395, %395 : vector<8x128xf32>
    %cst_142 = arith.constant dense<0.000000e+00> : vector<8xf32>
    %397 = vector.multi_reduction <add>, %396, %cst_142 [1] : vector<8x128xf32> to vector<8xf32>
    %398 = vector.shape_cast %397 : vector<8xf32> to vector<8x1xf32>
    %cst_143 = arith.constant 1.280000e+02 : f32
    %399 = vector.broadcast %cst_143 : f32 to vector<8x1xf32>
    %400 = arith.divf %398, %399 : vector<8x1xf32>
    %cst_144 = arith.constant 9.99999974E-6 : f32
    %401 = vector.broadcast %cst_144 : f32 to vector<8x1xf32>
    %402 = arith.addf %400, %401 : vector<8x1xf32>
    %403 = math.rsqrt %402 : vector<8x1xf32>
    %404 = vector.broadcast %403 : vector<8x1xf32> to vector<8x128xf32>
    %405 = arith.mulf %395, %404 : vector<8x128xf32>
    %406 = vector.broadcast %9 : vector<1x128xf32> to vector<8x128xf32>
    %407 = arith.mulf %405, %406 : vector<8x128xf32>
    %408 = vector.broadcast %10 : vector<1x128xf32> to vector<8x128xf32>
    %409 = arith.addf %407, %408 : vector<8x128xf32>
    %cst_145 = arith.constant 0.000000e+00 : f32
    %410 = vector.broadcast %cst_145 : f32 to vector<8x128xf32>
    %411 = arith.cmpf oge, %409, %410 : vector<8x128xf32>
    %412 = vector.broadcast %1 : f32 to vector<8x128xf32>
    %413 = arith.mulf %412, %409 : vector<8x128xf32>
    %414 = arith.select %411, %409, %413 : vector<8x128xi1>, vector<8x128xf32>
    %c3_146 = arith.constant 3 : index
    %c0_147 = arith.constant 0 : index
    %c0_148 = arith.constant 0 : index
    %415 = vector.load %arg10[%c3_146, %c0_147, %c0_148] : memref<11x8x256xf32, #tpu.memory_space<vmem>>, vector<1x8x256xf32>
    %416 = vector.shape_cast %415 : vector<1x8x256xf32> to vector<8x256xf32>
    %417 = vector.extract_strided_slice %416 {offsets = [0, 0], sizes = [1, 128], strides = [1, 1]} : vector<8x256xf32> to vector<1x128xf32>
    %418 = vector.extract_strided_slice %416 {offsets = [1, 0], sizes = [1, 128], strides = [1, 1]} : vector<8x256xf32> to vector<1x128xf32>
    %419 = vector.extract_strided_slice %416 {offsets = [2, 0], sizes = [1, 256], strides = [1, 1]} : vector<8x256xf32> to vector<1x256xf32>
    %420 = vector.extract_strided_slice %416 {offsets = [3, 0], sizes = [1, 256], strides = [1, 1]} : vector<8x256xf32> to vector<1x256xf32>
    %421 = vector.extract_strided_slice %416 {offsets = [4, 0], sizes = [1, 256], strides = [1, 1]} : vector<8x256xf32> to vector<1x256xf32>
    %422 = vector.extract_strided_slice %416 {offsets = [5, 0], sizes = [1, 128], strides = [1, 1]} : vector<8x256xf32> to vector<1x128xf32>
    %c5_149 = arith.constant 5 : index
    %423 = memref.load %arg0[%c5_149] : memref<13xf32, #tpu.memory_space<smem>>
    %cst_150 = arith.constant dense<0.000000e+00> : vector<8xf32>
    %424 = vector.multi_reduction <add>, %414, %cst_150 [1] : vector<8x128xf32> to vector<8xf32>
    %425 = vector.shape_cast %424 : vector<8xf32> to vector<8x1xf32>
    %cst_151 = arith.constant 1.280000e+02 : f32
    %426 = vector.broadcast %cst_151 : f32 to vector<8x1xf32>
    %427 = arith.divf %425, %426 : vector<8x1xf32>
    %428 = vector.broadcast %427 : vector<8x1xf32> to vector<8x128xf32>
    %429 = arith.subf %414, %428 : vector<8x128xf32>
    %430 = arith.mulf %429, %429 : vector<8x128xf32>
    %cst_152 = arith.constant dense<0.000000e+00> : vector<8xf32>
    %431 = vector.multi_reduction <add>, %430, %cst_152 [1] : vector<8x128xf32> to vector<8xf32>
    %432 = vector.shape_cast %431 : vector<8xf32> to vector<8x1xf32>
    %cst_153 = arith.constant 1.280000e+02 : f32
    %433 = vector.broadcast %cst_153 : f32 to vector<8x1xf32>
    %434 = arith.divf %432, %433 : vector<8x1xf32>
    %cst_154 = arith.constant 9.99999974E-6 : f32
    %435 = vector.broadcast %cst_154 : f32 to vector<8x1xf32>
    %436 = arith.addf %434, %435 : vector<8x1xf32>
    %437 = math.rsqrt %436 : vector<8x1xf32>
    %438 = vector.broadcast %437 : vector<8x1xf32> to vector<8x128xf32>
    %439 = arith.mulf %429, %438 : vector<8x128xf32>
    %440 = vector.broadcast %417 : vector<1x128xf32> to vector<8x128xf32>
    %441 = arith.mulf %439, %440 : vector<8x128xf32>
    %442 = vector.broadcast %418 : vector<1x128xf32> to vector<8x128xf32>
    %443 = arith.addf %441, %442 : vector<8x128xf32>
    %cst_155 = arith.constant 0.000000e+00 : f32
    %444 = vector.broadcast %cst_155 : f32 to vector<8x128xf32>
    %445 = arith.cmpf oge, %443, %444 : vector<8x128xf32>
    %446 = vector.broadcast %423 : f32 to vector<8x128xf32>
    %447 = arith.mulf %446, %443 : vector<8x128xf32>
    %448 = arith.select %445, %443, %447 : vector<8x128xi1>, vector<8x128xf32>
    %cst_156 = arith.constant 0.000000e+00 : f32
    %449 = vector.broadcast %cst_156 : f32 to vector<8x128xf32>
    %450 = arith.maximumf %448, %449 : vector<8x128xf32>
    %cst_157 = arith.constant 1.000000e-07 : f32
    %451 = vector.broadcast %cst_157 : f32 to vector<8x128xf32>
    %452 = arith.addf %450, %451 : vector<8x128xf32>
    %453 = vector.shape_cast %452 : vector<8x128xf32> to vector<1x8x128xf32>
    %454 = vector.broadcast %453 : vector<1x8x128xf32> to vector<8x8x128xf32>
    %455 = arith.addf %454, %38 : vector<8x8x128xf32>
    %cst_158 = arith.constant dense<0xFF800000> : vector<8x128xf32>
    %456 = vector.multi_reduction <maximumf>, %455, %cst_158 [1] : vector<8x8x128xf32> to vector<8x128xf32>
    %457 = vector.broadcast %453 : vector<1x8x128xf32> to vector<8x8x128xf32>
    %458 = arith.subf %38, %457 : vector<8x8x128xf32>
    %cst_159 = arith.constant dense<0xFF800000> : vector<8x128xf32>
    %459 = vector.multi_reduction <maximumf>, %458, %cst_159 [1] : vector<8x8x128xf32> to vector<8x128xf32>
    %cst_160 = arith.constant 0.000000e+00 : f32
    %460 = vector.broadcast %cst_160 : f32 to vector<8x128xf32>
    %461 = arith.subf %460, %459 : vector<8x128xf32>
    %462 = arith.truncf %452 : vector<8x128xf32> to vector<8x128xbf16>
    %cst_161 = arith.constant dense<0.000000e+00> : vector<8x128xf32>
    %463 = tpu.matmul %37, %462, %cst_161 {dimension_numbers = #tpu.dot_dimension_numbers<[1], [0], [0], [1], [0, 0, 1, 1], [], []>} : vector<8x8xbf16>, vector<8x128xbf16>, vector<8x128xf32> -> vector<8x128xf32>
    %464 = vector.broadcast %39 : vector<8x1xf32> to vector<8x128xf32>
    %465 = arith.mulf %463, %464 : vector<8x128xf32>
    %cst_162 = arith.constant 0.000000e+00 : f32
    %466 = vector.shape_cast %42 : vector<8x1xi1> to vector<8x1xi1>
    %467 = vector.broadcast %466 : vector<8x1xi1> to vector<8x128xi1>
    %468 = vector.broadcast %cst_162 : f32 to vector<8x128xf32>
    %469 = arith.select %467, %456, %468 : vector<8x128xi1>, vector<8x128xf32>
    %cst_163 = arith.constant 0.000000e+00 : f32
    %470 = vector.shape_cast %42 : vector<8x1xi1> to vector<8x1xi1>
    %471 = vector.broadcast %470 : vector<8x1xi1> to vector<8x128xi1>
    %472 = vector.broadcast %cst_163 : f32 to vector<8x128xf32>
    %473 = arith.select %471, %461, %472 : vector<8x128xi1>, vector<8x128xf32>
    %474 = arith.addf %469, %473 : vector<8x128xf32>
    %475 = arith.addf %474, %465 : vector<8x128xf32>
    %cst_164 = arith.constant 0.333333343 : f32
    %476 = vector.broadcast %cst_164 : f32 to vector<8x128xf32>
    %477 = arith.mulf %475, %476 : vector<8x128xf32>
    %478 = arith.addf %448, %477 : vector<8x128xf32>
    %479 = arith.truncf %478 : vector<8x128xf32> to vector<8x128xbf16>
    %c3_165 = arith.constant 3 : index
    %c0_166 = arith.constant 0 : index
    %c0_167 = arith.constant 0 : index
    %480 = vector.load %arg8[%c3_165, %c0_166, %c0_167] : memref<11x128x256xbf16, #tpu.memory_space<vmem>>, vector<1x128x256xbf16>
    %481 = vector.shape_cast %480 : vector<1x128x256xbf16> to vector<128x256xbf16>
    %cst_168 = arith.constant dense<0.000000e+00> : vector<8x256xf32>
    %482 = tpu.matmul %479, %481, %cst_168 {dimension_numbers = #tpu.dot_dimension_numbers<[1], [0], [0], [1], [0, 0, 1, 1], [], []>} : vector<8x128xbf16>, vector<128x256xbf16>, vector<8x256xf32> -> vector<8x256xf32>
    %483 = vector.broadcast %419 : vector<1x256xf32> to vector<8x256xf32>
    %484 = arith.addf %482, %483 : vector<8x256xf32>
    %cst_169 = arith.constant dense<0.000000e+00> : vector<8xf32>
    %485 = vector.multi_reduction <add>, %484, %cst_169 [1] : vector<8x256xf32> to vector<8xf32>
    %486 = vector.shape_cast %485 : vector<8xf32> to vector<8x1xf32>
    %cst_170 = arith.constant 2.560000e+02 : f32
    %487 = vector.broadcast %cst_170 : f32 to vector<8x1xf32>
    %488 = arith.divf %486, %487 : vector<8x1xf32>
    %489 = vector.broadcast %488 : vector<8x1xf32> to vector<8x256xf32>
    %490 = arith.subf %484, %489 : vector<8x256xf32>
    %491 = arith.mulf %490, %490 : vector<8x256xf32>
    %cst_171 = arith.constant dense<0.000000e+00> : vector<8xf32>
    %492 = vector.multi_reduction <add>, %491, %cst_171 [1] : vector<8x256xf32> to vector<8xf32>
    %493 = vector.shape_cast %492 : vector<8xf32> to vector<8x1xf32>
    %cst_172 = arith.constant 2.560000e+02 : f32
    %494 = vector.broadcast %cst_172 : f32 to vector<8x1xf32>
    %495 = arith.divf %493, %494 : vector<8x1xf32>
    %cst_173 = arith.constant 9.99999974E-6 : f32
    %496 = vector.broadcast %cst_173 : f32 to vector<8x1xf32>
    %497 = arith.addf %495, %496 : vector<8x1xf32>
    %498 = math.rsqrt %497 : vector<8x1xf32>
    %499 = vector.broadcast %498 : vector<8x1xf32> to vector<8x256xf32>
    %500 = arith.mulf %490, %499 : vector<8x256xf32>
    %501 = vector.broadcast %420 : vector<1x256xf32> to vector<8x256xf32>
    %502 = arith.mulf %500, %501 : vector<8x256xf32>
    %503 = vector.broadcast %421 : vector<1x256xf32> to vector<8x256xf32>
    %504 = arith.addf %502, %503 : vector<8x256xf32>
    %cst_174 = arith.constant 0.000000e+00 : f32
    %505 = vector.broadcast %cst_174 : f32 to vector<8x256xf32>
    %506 = arith.maximumf %504, %505 : vector<8x256xf32>
    %507 = arith.truncf %506 : vector<8x256xf32> to vector<8x256xbf16>
    %c3_175 = arith.constant 3 : index
    %c0_176 = arith.constant 0 : index
    %c0_177 = arith.constant 0 : index
    %508 = vector.load %arg9[%c3_175, %c0_176, %c0_177] : memref<11x256x128xbf16, #tpu.memory_space<vmem>>, vector<1x256x128xbf16>
    %509 = vector.shape_cast %508 : vector<1x256x128xbf16> to vector<256x128xbf16>
    %cst_178 = arith.constant dense<0.000000e+00> : vector<8x128xf32>
    %510 = tpu.matmul %507, %509, %cst_178 {dimension_numbers = #tpu.dot_dimension_numbers<[1], [0], [0], [1], [0, 0, 1, 1], [], []>} : vector<8x256xbf16>, vector<256x128xbf16>, vector<8x128xf32> -> vector<8x128xf32>
    %511 = vector.broadcast %422 : vector<1x128xf32> to vector<8x128xf32>
    %512 = arith.addf %510, %511 : vector<8x128xf32>
    %513 = arith.addf %414, %512 : vector<8x128xf32>
    %cst_179 = arith.constant dense<0.000000e+00> : vector<8xf32>
    %514 = vector.multi_reduction <add>, %513, %cst_179 [1] : vector<8x128xf32> to vector<8xf32>
    %515 = vector.shape_cast %514 : vector<8xf32> to vector<8x1xf32>
    %cst_180 = arith.constant 1.280000e+02 : f32
    %516 = vector.broadcast %cst_180 : f32 to vector<8x1xf32>
    %517 = arith.divf %515, %516 : vector<8x1xf32>
    %518 = vector.broadcast %517 : vector<8x1xf32> to vector<8x128xf32>
    %519 = arith.subf %513, %518 : vector<8x128xf32>
    %520 = arith.mulf %519, %519 : vector<8x128xf32>
    %cst_181 = arith.constant dense<0.000000e+00> : vector<8xf32>
    %521 = vector.multi_reduction <add>, %520, %cst_181 [1] : vector<8x128xf32> to vector<8xf32>
    %522 = vector.shape_cast %521 : vector<8xf32> to vector<8x1xf32>
    %cst_182 = arith.constant 1.280000e+02 : f32
    %523 = vector.broadcast %cst_182 : f32 to vector<8x1xf32>
    %524 = arith.divf %522, %523 : vector<8x1xf32>
    %cst_183 = arith.constant 9.99999974E-6 : f32
    %525 = vector.broadcast %cst_183 : f32 to vector<8x1xf32>
    %526 = arith.addf %524, %525 : vector<8x1xf32>
    %527 = math.rsqrt %526 : vector<8x1xf32>
    %528 = vector.broadcast %527 : vector<8x1xf32> to vector<8x128xf32>
    %529 = arith.mulf %519, %528 : vector<8x128xf32>
    %530 = vector.broadcast %9 : vector<1x128xf32> to vector<8x128xf32>
    %531 = arith.mulf %529, %530 : vector<8x128xf32>
    %532 = vector.broadcast %10 : vector<1x128xf32> to vector<8x128xf32>
    %533 = arith.addf %531, %532 : vector<8x128xf32>
    %cst_184 = arith.constant 0.000000e+00 : f32
    %534 = vector.broadcast %cst_184 : f32 to vector<8x128xf32>
    %535 = arith.cmpf oge, %533, %534 : vector<8x128xf32>
    %536 = vector.broadcast %1 : f32 to vector<8x128xf32>
    %537 = arith.mulf %536, %533 : vector<8x128xf32>
    %538 = arith.select %535, %533, %537 : vector<8x128xi1>, vector<8x128xf32>
    %c4_185 = arith.constant 4 : index
    %c0_186 = arith.constant 0 : index
    %c0_187 = arith.constant 0 : index
    %539 = vector.load %arg10[%c4_185, %c0_186, %c0_187] : memref<11x8x256xf32, #tpu.memory_space<vmem>>, vector<1x8x256xf32>
    %540 = vector.shape_cast %539 : vector<1x8x256xf32> to vector<8x256xf32>
    %541 = vector.extract_strided_slice %540 {offsets = [0, 0], sizes = [1, 128], strides = [1, 1]} : vector<8x256xf32> to vector<1x128xf32>
    %542 = vector.extract_strided_slice %540 {offsets = [1, 0], sizes = [1, 128], strides = [1, 1]} : vector<8x256xf32> to vector<1x128xf32>
    %543 = vector.extract_strided_slice %540 {offsets = [2, 0], sizes = [1, 256], strides = [1, 1]} : vector<8x256xf32> to vector<1x256xf32>
    %544 = vector.extract_strided_slice %540 {offsets = [3, 0], sizes = [1, 256], strides = [1, 1]} : vector<8x256xf32> to vector<1x256xf32>
    %545 = vector.extract_strided_slice %540 {offsets = [4, 0], sizes = [1, 256], strides = [1, 1]} : vector<8x256xf32> to vector<1x256xf32>
    %546 = vector.extract_strided_slice %540 {offsets = [5, 0], sizes = [1, 128], strides = [1, 1]} : vector<8x256xf32> to vector<1x128xf32>
    %c6_188 = arith.constant 6 : index
    %547 = memref.load %arg0[%c6_188] : memref<13xf32, #tpu.memory_space<smem>>
    %cst_189 = arith.constant dense<0.000000e+00> : vector<8xf32>
    %548 = vector.multi_reduction <add>, %538, %cst_189 [1] : vector<8x128xf32> to vector<8xf32>
    %549 = vector.shape_cast %548 : vector<8xf32> to vector<8x1xf32>
    %cst_190 = arith.constant 1.280000e+02 : f32
    %550 = vector.broadcast %cst_190 : f32 to vector<8x1xf32>
    %551 = arith.divf %549, %550 : vector<8x1xf32>
    %552 = vector.broadcast %551 : vector<8x1xf32> to vector<8x128xf32>
    %553 = arith.subf %538, %552 : vector<8x128xf32>
    %554 = arith.mulf %553, %553 : vector<8x128xf32>
    %cst_191 = arith.constant dense<0.000000e+00> : vector<8xf32>
    %555 = vector.multi_reduction <add>, %554, %cst_191 [1] : vector<8x128xf32> to vector<8xf32>
    %556 = vector.shape_cast %555 : vector<8xf32> to vector<8x1xf32>
    %cst_192 = arith.constant 1.280000e+02 : f32
    %557 = vector.broadcast %cst_192 : f32 to vector<8x1xf32>
    %558 = arith.divf %556, %557 : vector<8x1xf32>
    %cst_193 = arith.constant 9.99999974E-6 : f32
    %559 = vector.broadcast %cst_193 : f32 to vector<8x1xf32>
    %560 = arith.addf %558, %559 : vector<8x1xf32>
    %561 = math.rsqrt %560 : vector<8x1xf32>
    %562 = vector.broadcast %561 : vector<8x1xf32> to vector<8x128xf32>
    %563 = arith.mulf %553, %562 : vector<8x128xf32>
    %564 = vector.broadcast %541 : vector<1x128xf32> to vector<8x128xf32>
    %565 = arith.mulf %563, %564 : vector<8x128xf32>
    %566 = vector.broadcast %542 : vector<1x128xf32> to vector<8x128xf32>
    %567 = arith.addf %565, %566 : vector<8x128xf32>
    %cst_194 = arith.constant 0.000000e+00 : f32
    %568 = vector.broadcast %cst_194 : f32 to vector<8x128xf32>
    %569 = arith.cmpf oge, %567, %568 : vector<8x128xf32>
    %570 = vector.broadcast %547 : f32 to vector<8x128xf32>
    %571 = arith.mulf %570, %567 : vector<8x128xf32>
    %572 = arith.select %569, %567, %571 : vector<8x128xi1>, vector<8x128xf32>
    %cst_195 = arith.constant 0.000000e+00 : f32
    %573 = vector.broadcast %cst_195 : f32 to vector<8x128xf32>
    %574 = arith.maximumf %572, %573 : vector<8x128xf32>
    %cst_196 = arith.constant 1.000000e-07 : f32
    %575 = vector.broadcast %cst_196 : f32 to vector<8x128xf32>
    %576 = arith.addf %574, %575 : vector<8x128xf32>
    %577 = vector.shape_cast %576 : vector<8x128xf32> to vector<1x8x128xf32>
    %578 = vector.broadcast %577 : vector<1x8x128xf32> to vector<8x8x128xf32>
    %579 = arith.addf %578, %38 : vector<8x8x128xf32>
    %cst_197 = arith.constant dense<0xFF800000> : vector<8x128xf32>
    %580 = vector.multi_reduction <maximumf>, %579, %cst_197 [1] : vector<8x8x128xf32> to vector<8x128xf32>
    %581 = vector.broadcast %577 : vector<1x8x128xf32> to vector<8x8x128xf32>
    %582 = arith.subf %38, %581 : vector<8x8x128xf32>
    %cst_198 = arith.constant dense<0xFF800000> : vector<8x128xf32>
    %583 = vector.multi_reduction <maximumf>, %582, %cst_198 [1] : vector<8x8x128xf32> to vector<8x128xf32>
    %cst_199 = arith.constant 0.000000e+00 : f32
    %584 = vector.broadcast %cst_199 : f32 to vector<8x128xf32>
    %585 = arith.subf %584, %583 : vector<8x128xf32>
    %586 = arith.truncf %576 : vector<8x128xf32> to vector<8x128xbf16>
    %cst_200 = arith.constant dense<0.000000e+00> : vector<8x128xf32>
    %587 = tpu.matmul %37, %586, %cst_200 {dimension_numbers = #tpu.dot_dimension_numbers<[1], [0], [0], [1], [0, 0, 1, 1], [], []>} : vector<8x8xbf16>, vector<8x128xbf16>, vector<8x128xf32> -> vector<8x128xf32>
    %588 = vector.broadcast %39 : vector<8x1xf32> to vector<8x128xf32>
    %589 = arith.mulf %587, %588 : vector<8x128xf32>
    %cst_201 = arith.constant 0.000000e+00 : f32
    %590 = vector.shape_cast %42 : vector<8x1xi1> to vector<8x1xi1>
    %591 = vector.broadcast %590 : vector<8x1xi1> to vector<8x128xi1>
    %592 = vector.broadcast %cst_201 : f32 to vector<8x128xf32>
    %593 = arith.select %591, %580, %592 : vector<8x128xi1>, vector<8x128xf32>
    %cst_202 = arith.constant 0.000000e+00 : f32
    %594 = vector.shape_cast %42 : vector<8x1xi1> to vector<8x1xi1>
    %595 = vector.broadcast %594 : vector<8x1xi1> to vector<8x128xi1>
    %596 = vector.broadcast %cst_202 : f32 to vector<8x128xf32>
    %597 = arith.select %595, %585, %596 : vector<8x128xi1>, vector<8x128xf32>
    %598 = arith.addf %593, %597 : vector<8x128xf32>
    %599 = arith.addf %598, %589 : vector<8x128xf32>
    %cst_203 = arith.constant 0.333333343 : f32
    %600 = vector.broadcast %cst_203 : f32 to vector<8x128xf32>
    %601 = arith.mulf %599, %600 : vector<8x128xf32>
    %602 = arith.addf %572, %601 : vector<8x128xf32>
    %603 = arith.truncf %602 : vector<8x128xf32> to vector<8x128xbf16>
    %c4_204 = arith.constant 4 : index
    %c0_205 = arith.constant 0 : index
    %c0_206 = arith.constant 0 : index
    %604 = vector.load %arg8[%c4_204, %c0_205, %c0_206] : memref<11x128x256xbf16, #tpu.memory_space<vmem>>, vector<1x128x256xbf16>
    %605 = vector.shape_cast %604 : vector<1x128x256xbf16> to vector<128x256xbf16>
    %cst_207 = arith.constant dense<0.000000e+00> : vector<8x256xf32>
    %606 = tpu.matmul %603, %605, %cst_207 {dimension_numbers = #tpu.dot_dimension_numbers<[1], [0], [0], [1], [0, 0, 1, 1], [], []>} : vector<8x128xbf16>, vector<128x256xbf16>, vector<8x256xf32> -> vector<8x256xf32>
    %607 = vector.broadcast %543 : vector<1x256xf32> to vector<8x256xf32>
    %608 = arith.addf %606, %607 : vector<8x256xf32>
    %cst_208 = arith.constant dense<0.000000e+00> : vector<8xf32>
    %609 = vector.multi_reduction <add>, %608, %cst_208 [1] : vector<8x256xf32> to vector<8xf32>
    %610 = vector.shape_cast %609 : vector<8xf32> to vector<8x1xf32>
    %cst_209 = arith.constant 2.560000e+02 : f32
    %611 = vector.broadcast %cst_209 : f32 to vector<8x1xf32>
    %612 = arith.divf %610, %611 : vector<8x1xf32>
    %613 = vector.broadcast %612 : vector<8x1xf32> to vector<8x256xf32>
    %614 = arith.subf %608, %613 : vector<8x256xf32>
    %615 = arith.mulf %614, %614 : vector<8x256xf32>
    %cst_210 = arith.constant dense<0.000000e+00> : vector<8xf32>
    %616 = vector.multi_reduction <add>, %615, %cst_210 [1] : vector<8x256xf32> to vector<8xf32>
    %617 = vector.shape_cast %616 : vector<8xf32> to vector<8x1xf32>
    %cst_211 = arith.constant 2.560000e+02 : f32
    %618 = vector.broadcast %cst_211 : f32 to vector<8x1xf32>
    %619 = arith.divf %617, %618 : vector<8x1xf32>
    %cst_212 = arith.constant 9.99999974E-6 : f32
    %620 = vector.broadcast %cst_212 : f32 to vector<8x1xf32>
    %621 = arith.addf %619, %620 : vector<8x1xf32>
    %622 = math.rsqrt %621 : vector<8x1xf32>
    %623 = vector.broadcast %622 : vector<8x1xf32> to vector<8x256xf32>
    %624 = arith.mulf %614, %623 : vector<8x256xf32>
    %625 = vector.broadcast %544 : vector<1x256xf32> to vector<8x256xf32>
    %626 = arith.mulf %624, %625 : vector<8x256xf32>
    %627 = vector.broadcast %545 : vector<1x256xf32> to vector<8x256xf32>
    %628 = arith.addf %626, %627 : vector<8x256xf32>
    %cst_213 = arith.constant 0.000000e+00 : f32
    %629 = vector.broadcast %cst_213 : f32 to vector<8x256xf32>
    %630 = arith.maximumf %628, %629 : vector<8x256xf32>
    %631 = arith.truncf %630 : vector<8x256xf32> to vector<8x256xbf16>
    %c4_214 = arith.constant 4 : index
    %c0_215 = arith.constant 0 : index
    %c0_216 = arith.constant 0 : index
    %632 = vector.load %arg9[%c4_214, %c0_215, %c0_216] : memref<11x256x128xbf16, #tpu.memory_space<vmem>>, vector<1x256x128xbf16>
    %633 = vector.shape_cast %632 : vector<1x256x128xbf16> to vector<256x128xbf16>
    %cst_217 = arith.constant dense<0.000000e+00> : vector<8x128xf32>
    %634 = tpu.matmul %631, %633, %cst_217 {dimension_numbers = #tpu.dot_dimension_numbers<[1], [0], [0], [1], [0, 0, 1, 1], [], []>} : vector<8x256xbf16>, vector<256x128xbf16>, vector<8x128xf32> -> vector<8x128xf32>
    %635 = vector.broadcast %546 : vector<1x128xf32> to vector<8x128xf32>
    %636 = arith.addf %634, %635 : vector<8x128xf32>
    %637 = arith.addf %538, %636 : vector<8x128xf32>
    %cst_218 = arith.constant dense<0.000000e+00> : vector<8xf32>
    %638 = vector.multi_reduction <add>, %637, %cst_218 [1] : vector<8x128xf32> to vector<8xf32>
    %639 = vector.shape_cast %638 : vector<8xf32> to vector<8x1xf32>
    %cst_219 = arith.constant 1.280000e+02 : f32
    %640 = vector.broadcast %cst_219 : f32 to vector<8x1xf32>
    %641 = arith.divf %639, %640 : vector<8x1xf32>
    %642 = vector.broadcast %641 : vector<8x1xf32> to vector<8x128xf32>
    %643 = arith.subf %637, %642 : vector<8x128xf32>
    %644 = arith.mulf %643, %643 : vector<8x128xf32>
    %cst_220 = arith.constant dense<0.000000e+00> : vector<8xf32>
    %645 = vector.multi_reduction <add>, %644, %cst_220 [1] : vector<8x128xf32> to vector<8xf32>
    %646 = vector.shape_cast %645 : vector<8xf32> to vector<8x1xf32>
    %cst_221 = arith.constant 1.280000e+02 : f32
    %647 = vector.broadcast %cst_221 : f32 to vector<8x1xf32>
    %648 = arith.divf %646, %647 : vector<8x1xf32>
    %cst_222 = arith.constant 9.99999974E-6 : f32
    %649 = vector.broadcast %cst_222 : f32 to vector<8x1xf32>
    %650 = arith.addf %648, %649 : vector<8x1xf32>
    %651 = math.rsqrt %650 : vector<8x1xf32>
    %652 = vector.broadcast %651 : vector<8x1xf32> to vector<8x128xf32>
    %653 = arith.mulf %643, %652 : vector<8x128xf32>
    %654 = vector.broadcast %9 : vector<1x128xf32> to vector<8x128xf32>
    %655 = arith.mulf %653, %654 : vector<8x128xf32>
    %656 = vector.broadcast %10 : vector<1x128xf32> to vector<8x128xf32>
    %657 = arith.addf %655, %656 : vector<8x128xf32>
    %cst_223 = arith.constant 0.000000e+00 : f32
    %658 = vector.broadcast %cst_223 : f32 to vector<8x128xf32>
    %659 = arith.cmpf oge, %657, %658 : vector<8x128xf32>
    %660 = vector.broadcast %1 : f32 to vector<8x128xf32>
    %661 = arith.mulf %660, %657 : vector<8x128xf32>
    %662 = arith.select %659, %657, %661 : vector<8x128xi1>, vector<8x128xf32>
    %c5_224 = arith.constant 5 : index
    %c0_225 = arith.constant 0 : index
    %c0_226 = arith.constant 0 : index
    %663 = vector.load %arg10[%c5_224, %c0_225, %c0_226] : memref<11x8x256xf32, #tpu.memory_space<vmem>>, vector<1x8x256xf32>
    %664 = vector.shape_cast %663 : vector<1x8x256xf32> to vector<8x256xf32>
    %665 = vector.extract_strided_slice %664 {offsets = [0, 0], sizes = [1, 128], strides = [1, 1]} : vector<8x256xf32> to vector<1x128xf32>
    %666 = vector.extract_strided_slice %664 {offsets = [1, 0], sizes = [1, 128], strides = [1, 1]} : vector<8x256xf32> to vector<1x128xf32>
    %667 = vector.extract_strided_slice %664 {offsets = [2, 0], sizes = [1, 256], strides = [1, 1]} : vector<8x256xf32> to vector<1x256xf32>
    %668 = vector.extract_strided_slice %664 {offsets = [3, 0], sizes = [1, 256], strides = [1, 1]} : vector<8x256xf32> to vector<1x256xf32>
    %669 = vector.extract_strided_slice %664 {offsets = [4, 0], sizes = [1, 256], strides = [1, 1]} : vector<8x256xf32> to vector<1x256xf32>
    %670 = vector.extract_strided_slice %664 {offsets = [5, 0], sizes = [1, 128], strides = [1, 1]} : vector<8x256xf32> to vector<1x128xf32>
    %c7_227 = arith.constant 7 : index
    %671 = memref.load %arg0[%c7_227] : memref<13xf32, #tpu.memory_space<smem>>
    %cst_228 = arith.constant dense<0.000000e+00> : vector<8xf32>
    %672 = vector.multi_reduction <add>, %662, %cst_228 [1] : vector<8x128xf32> to vector<8xf32>
    %673 = vector.shape_cast %672 : vector<8xf32> to vector<8x1xf32>
    %cst_229 = arith.constant 1.280000e+02 : f32
    %674 = vector.broadcast %cst_229 : f32 to vector<8x1xf32>
    %675 = arith.divf %673, %674 : vector<8x1xf32>
    %676 = vector.broadcast %675 : vector<8x1xf32> to vector<8x128xf32>
    %677 = arith.subf %662, %676 : vector<8x128xf32>
    %678 = arith.mulf %677, %677 : vector<8x128xf32>
    %cst_230 = arith.constant dense<0.000000e+00> : vector<8xf32>
    %679 = vector.multi_reduction <add>, %678, %cst_230 [1] : vector<8x128xf32> to vector<8xf32>
    %680 = vector.shape_cast %679 : vector<8xf32> to vector<8x1xf32>
    %cst_231 = arith.constant 1.280000e+02 : f32
    %681 = vector.broadcast %cst_231 : f32 to vector<8x1xf32>
    %682 = arith.divf %680, %681 : vector<8x1xf32>
    %cst_232 = arith.constant 9.99999974E-6 : f32
    %683 = vector.broadcast %cst_232 : f32 to vector<8x1xf32>
    %684 = arith.addf %682, %683 : vector<8x1xf32>
    %685 = math.rsqrt %684 : vector<8x1xf32>
    %686 = vector.broadcast %685 : vector<8x1xf32> to vector<8x128xf32>
    %687 = arith.mulf %677, %686 : vector<8x128xf32>
    %688 = vector.broadcast %665 : vector<1x128xf32> to vector<8x128xf32>
    %689 = arith.mulf %687, %688 : vector<8x128xf32>
    %690 = vector.broadcast %666 : vector<1x128xf32> to vector<8x128xf32>
    %691 = arith.addf %689, %690 : vector<8x128xf32>
    %cst_233 = arith.constant 0.000000e+00 : f32
    %692 = vector.broadcast %cst_233 : f32 to vector<8x128xf32>
    %693 = arith.cmpf oge, %691, %692 : vector<8x128xf32>
    %694 = vector.broadcast %671 : f32 to vector<8x128xf32>
    %695 = arith.mulf %694, %691 : vector<8x128xf32>
    %696 = arith.select %693, %691, %695 : vector<8x128xi1>, vector<8x128xf32>
    %cst_234 = arith.constant 0.000000e+00 : f32
    %697 = vector.broadcast %cst_234 : f32 to vector<8x128xf32>
    %698 = arith.maximumf %696, %697 : vector<8x128xf32>
    %cst_235 = arith.constant 1.000000e-07 : f32
    %699 = vector.broadcast %cst_235 : f32 to vector<8x128xf32>
    %700 = arith.addf %698, %699 : vector<8x128xf32>
    %701 = vector.shape_cast %700 : vector<8x128xf32> to vector<1x8x128xf32>
    %702 = vector.broadcast %701 : vector<1x8x128xf32> to vector<8x8x128xf32>
    %703 = arith.addf %702, %38 : vector<8x8x128xf32>
    %cst_236 = arith.constant dense<0xFF800000> : vector<8x128xf32>
    %704 = vector.multi_reduction <maximumf>, %703, %cst_236 [1] : vector<8x8x128xf32> to vector<8x128xf32>
    %705 = vector.broadcast %701 : vector<1x8x128xf32> to vector<8x8x128xf32>
    %706 = arith.subf %38, %705 : vector<8x8x128xf32>
    %cst_237 = arith.constant dense<0xFF800000> : vector<8x128xf32>
    %707 = vector.multi_reduction <maximumf>, %706, %cst_237 [1] : vector<8x8x128xf32> to vector<8x128xf32>
    %cst_238 = arith.constant 0.000000e+00 : f32
    %708 = vector.broadcast %cst_238 : f32 to vector<8x128xf32>
    %709 = arith.subf %708, %707 : vector<8x128xf32>
    %710 = arith.truncf %700 : vector<8x128xf32> to vector<8x128xbf16>
    %cst_239 = arith.constant dense<0.000000e+00> : vector<8x128xf32>
    %711 = tpu.matmul %37, %710, %cst_239 {dimension_numbers = #tpu.dot_dimension_numbers<[1], [0], [0], [1], [0, 0, 1, 1], [], []>} : vector<8x8xbf16>, vector<8x128xbf16>, vector<8x128xf32> -> vector<8x128xf32>
    %712 = vector.broadcast %39 : vector<8x1xf32> to vector<8x128xf32>
    %713 = arith.mulf %711, %712 : vector<8x128xf32>
    %cst_240 = arith.constant 0.000000e+00 : f32
    %714 = vector.shape_cast %42 : vector<8x1xi1> to vector<8x1xi1>
    %715 = vector.broadcast %714 : vector<8x1xi1> to vector<8x128xi1>
    %716 = vector.broadcast %cst_240 : f32 to vector<8x128xf32>
    %717 = arith.select %715, %704, %716 : vector<8x128xi1>, vector<8x128xf32>
    %cst_241 = arith.constant 0.000000e+00 : f32
    %718 = vector.shape_cast %42 : vector<8x1xi1> to vector<8x1xi1>
    %719 = vector.broadcast %718 : vector<8x1xi1> to vector<8x128xi1>
    %720 = vector.broadcast %cst_241 : f32 to vector<8x128xf32>
    %721 = arith.select %719, %709, %720 : vector<8x128xi1>, vector<8x128xf32>
    %722 = arith.addf %717, %721 : vector<8x128xf32>
    %723 = arith.addf %722, %713 : vector<8x128xf32>
    %cst_242 = arith.constant 0.333333343 : f32
    %724 = vector.broadcast %cst_242 : f32 to vector<8x128xf32>
    %725 = arith.mulf %723, %724 : vector<8x128xf32>
    %726 = arith.addf %696, %725 : vector<8x128xf32>
    %727 = arith.truncf %726 : vector<8x128xf32> to vector<8x128xbf16>
    %c5_243 = arith.constant 5 : index
    %c0_244 = arith.constant 0 : index
    %c0_245 = arith.constant 0 : index
    %728 = vector.load %arg8[%c5_243, %c0_244, %c0_245] : memref<11x128x256xbf16, #tpu.memory_space<vmem>>, vector<1x128x256xbf16>
    %729 = vector.shape_cast %728 : vector<1x128x256xbf16> to vector<128x256xbf16>
    %cst_246 = arith.constant dense<0.000000e+00> : vector<8x256xf32>
    %730 = tpu.matmul %727, %729, %cst_246 {dimension_numbers = #tpu.dot_dimension_numbers<[1], [0], [0], [1], [0, 0, 1, 1], [], []>} : vector<8x128xbf16>, vector<128x256xbf16>, vector<8x256xf32> -> vector<8x256xf32>
    %731 = vector.broadcast %667 : vector<1x256xf32> to vector<8x256xf32>
    %732 = arith.addf %730, %731 : vector<8x256xf32>
    %cst_247 = arith.constant dense<0.000000e+00> : vector<8xf32>
    %733 = vector.multi_reduction <add>, %732, %cst_247 [1] : vector<8x256xf32> to vector<8xf32>
    %734 = vector.shape_cast %733 : vector<8xf32> to vector<8x1xf32>
    %cst_248 = arith.constant 2.560000e+02 : f32
    %735 = vector.broadcast %cst_248 : f32 to vector<8x1xf32>
    %736 = arith.divf %734, %735 : vector<8x1xf32>
    %737 = vector.broadcast %736 : vector<8x1xf32> to vector<8x256xf32>
    %738 = arith.subf %732, %737 : vector<8x256xf32>
    %739 = arith.mulf %738, %738 : vector<8x256xf32>
    %cst_249 = arith.constant dense<0.000000e+00> : vector<8xf32>
    %740 = vector.multi_reduction <add>, %739, %cst_249 [1] : vector<8x256xf32> to vector<8xf32>
    %741 = vector.shape_cast %740 : vector<8xf32> to vector<8x1xf32>
    %cst_250 = arith.constant 2.560000e+02 : f32
    %742 = vector.broadcast %cst_250 : f32 to vector<8x1xf32>
    %743 = arith.divf %741, %742 : vector<8x1xf32>
    %cst_251 = arith.constant 9.99999974E-6 : f32
    %744 = vector.broadcast %cst_251 : f32 to vector<8x1xf32>
    %745 = arith.addf %743, %744 : vector<8x1xf32>
    %746 = math.rsqrt %745 : vector<8x1xf32>
    %747 = vector.broadcast %746 : vector<8x1xf32> to vector<8x256xf32>
    %748 = arith.mulf %738, %747 : vector<8x256xf32>
    %749 = vector.broadcast %668 : vector<1x256xf32> to vector<8x256xf32>
    %750 = arith.mulf %748, %749 : vector<8x256xf32>
    %751 = vector.broadcast %669 : vector<1x256xf32> to vector<8x256xf32>
    %752 = arith.addf %750, %751 : vector<8x256xf32>
    %cst_252 = arith.constant 0.000000e+00 : f32
    %753 = vector.broadcast %cst_252 : f32 to vector<8x256xf32>
    %754 = arith.maximumf %752, %753 : vector<8x256xf32>
    %755 = arith.truncf %754 : vector<8x256xf32> to vector<8x256xbf16>
    %c5_253 = arith.constant 5 : index
    %c0_254 = arith.constant 0 : index
    %c0_255 = arith.constant 0 : index
    %756 = vector.load %arg9[%c5_253, %c0_254, %c0_255] : memref<11x256x128xbf16, #tpu.memory_space<vmem>>, vector<1x256x128xbf16>
    %757 = vector.shape_cast %756 : vector<1x256x128xbf16> to vector<256x128xbf16>
    %cst_256 = arith.constant dense<0.000000e+00> : vector<8x128xf32>
    %758 = tpu.matmul %755, %757, %cst_256 {dimension_numbers = #tpu.dot_dimension_numbers<[1], [0], [0], [1], [0, 0, 1, 1], [], []>} : vector<8x256xbf16>, vector<256x128xbf16>, vector<8x128xf32> -> vector<8x128xf32>
    %759 = vector.broadcast %670 : vector<1x128xf32> to vector<8x128xf32>
    %760 = arith.addf %758, %759 : vector<8x128xf32>
    %761 = arith.addf %662, %760 : vector<8x128xf32>
    %cst_257 = arith.constant dense<0.000000e+00> : vector<8xf32>
    %762 = vector.multi_reduction <add>, %761, %cst_257 [1] : vector<8x128xf32> to vector<8xf32>
    %763 = vector.shape_cast %762 : vector<8xf32> to vector<8x1xf32>
    %cst_258 = arith.constant 1.280000e+02 : f32
    %764 = vector.broadcast %cst_258 : f32 to vector<8x1xf32>
    %765 = arith.divf %763, %764 : vector<8x1xf32>
    %766 = vector.broadcast %765 : vector<8x1xf32> to vector<8x128xf32>
    %767 = arith.subf %761, %766 : vector<8x128xf32>
    %768 = arith.mulf %767, %767 : vector<8x128xf32>
    %cst_259 = arith.constant dense<0.000000e+00> : vector<8xf32>
    %769 = vector.multi_reduction <add>, %768, %cst_259 [1] : vector<8x128xf32> to vector<8xf32>
    %770 = vector.shape_cast %769 : vector<8xf32> to vector<8x1xf32>
    %cst_260 = arith.constant 1.280000e+02 : f32
    %771 = vector.broadcast %cst_260 : f32 to vector<8x1xf32>
    %772 = arith.divf %770, %771 : vector<8x1xf32>
    %cst_261 = arith.constant 9.99999974E-6 : f32
    %773 = vector.broadcast %cst_261 : f32 to vector<8x1xf32>
    %774 = arith.addf %772, %773 : vector<8x1xf32>
    %775 = math.rsqrt %774 : vector<8x1xf32>
    %776 = vector.broadcast %775 : vector<8x1xf32> to vector<8x128xf32>
    %777 = arith.mulf %767, %776 : vector<8x128xf32>
    %778 = vector.broadcast %9 : vector<1x128xf32> to vector<8x128xf32>
    %779 = arith.mulf %777, %778 : vector<8x128xf32>
    %780 = vector.broadcast %10 : vector<1x128xf32> to vector<8x128xf32>
    %781 = arith.addf %779, %780 : vector<8x128xf32>
    %cst_262 = arith.constant 0.000000e+00 : f32
    %782 = vector.broadcast %cst_262 : f32 to vector<8x128xf32>
    %783 = arith.cmpf oge, %781, %782 : vector<8x128xf32>
    %784 = vector.broadcast %1 : f32 to vector<8x128xf32>
    %785 = arith.mulf %784, %781 : vector<8x128xf32>
    %786 = arith.select %783, %781, %785 : vector<8x128xi1>, vector<8x128xf32>
    %c6_263 = arith.constant 6 : index
    %c0_264 = arith.constant 0 : index
    %c0_265 = arith.constant 0 : index
    %787 = vector.load %arg10[%c6_263, %c0_264, %c0_265] : memref<11x8x256xf32, #tpu.memory_space<vmem>>, vector<1x8x256xf32>
    %788 = vector.shape_cast %787 : vector<1x8x256xf32> to vector<8x256xf32>
    %789 = vector.extract_strided_slice %788 {offsets = [0, 0], sizes = [1, 128], strides = [1, 1]} : vector<8x256xf32> to vector<1x128xf32>
    %790 = vector.extract_strided_slice %788 {offsets = [1, 0], sizes = [1, 128], strides = [1, 1]} : vector<8x256xf32> to vector<1x128xf32>
    %791 = vector.extract_strided_slice %788 {offsets = [2, 0], sizes = [1, 256], strides = [1, 1]} : vector<8x256xf32> to vector<1x256xf32>
    %792 = vector.extract_strided_slice %788 {offsets = [3, 0], sizes = [1, 256], strides = [1, 1]} : vector<8x256xf32> to vector<1x256xf32>
    %793 = vector.extract_strided_slice %788 {offsets = [4, 0], sizes = [1, 256], strides = [1, 1]} : vector<8x256xf32> to vector<1x256xf32>
    %794 = vector.extract_strided_slice %788 {offsets = [5, 0], sizes = [1, 128], strides = [1, 1]} : vector<8x256xf32> to vector<1x128xf32>
    %c8 = arith.constant 8 : index
    %795 = memref.load %arg0[%c8] : memref<13xf32, #tpu.memory_space<smem>>
    %cst_266 = arith.constant dense<0.000000e+00> : vector<8xf32>
    %796 = vector.multi_reduction <add>, %786, %cst_266 [1] : vector<8x128xf32> to vector<8xf32>
    %797 = vector.shape_cast %796 : vector<8xf32> to vector<8x1xf32>
    %cst_267 = arith.constant 1.280000e+02 : f32
    %798 = vector.broadcast %cst_267 : f32 to vector<8x1xf32>
    %799 = arith.divf %797, %798 : vector<8x1xf32>
    %800 = vector.broadcast %799 : vector<8x1xf32> to vector<8x128xf32>
    %801 = arith.subf %786, %800 : vector<8x128xf32>
    %802 = arith.mulf %801, %801 : vector<8x128xf32>
    %cst_268 = arith.constant dense<0.000000e+00> : vector<8xf32>
    %803 = vector.multi_reduction <add>, %802, %cst_268 [1] : vector<8x128xf32> to vector<8xf32>
    %804 = vector.shape_cast %803 : vector<8xf32> to vector<8x1xf32>
    %cst_269 = arith.constant 1.280000e+02 : f32
    %805 = vector.broadcast %cst_269 : f32 to vector<8x1xf32>
    %806 = arith.divf %804, %805 : vector<8x1xf32>
    %cst_270 = arith.constant 9.99999974E-6 : f32
    %807 = vector.broadcast %cst_270 : f32 to vector<8x1xf32>
    %808 = arith.addf %806, %807 : vector<8x1xf32>
    %809 = math.rsqrt %808 : vector<8x1xf32>
    %810 = vector.broadcast %809 : vector<8x1xf32> to vector<8x128xf32>
    %811 = arith.mulf %801, %810 : vector<8x128xf32>
    %812 = vector.broadcast %789 : vector<1x128xf32> to vector<8x128xf32>
    %813 = arith.mulf %811, %812 : vector<8x128xf32>
    %814 = vector.broadcast %790 : vector<1x128xf32> to vector<8x128xf32>
    %815 = arith.addf %813, %814 : vector<8x128xf32>
    %cst_271 = arith.constant 0.000000e+00 : f32
    %816 = vector.broadcast %cst_271 : f32 to vector<8x128xf32>
    %817 = arith.cmpf oge, %815, %816 : vector<8x128xf32>
    %818 = vector.broadcast %795 : f32 to vector<8x128xf32>
    %819 = arith.mulf %818, %815 : vector<8x128xf32>
    %820 = arith.select %817, %815, %819 : vector<8x128xi1>, vector<8x128xf32>
    %cst_272 = arith.constant 0.000000e+00 : f32
    %821 = vector.broadcast %cst_272 : f32 to vector<8x128xf32>
    %822 = arith.maximumf %820, %821 : vector<8x128xf32>
    %cst_273 = arith.constant 1.000000e-07 : f32
    %823 = vector.broadcast %cst_273 : f32 to vector<8x128xf32>
    %824 = arith.addf %822, %823 : vector<8x128xf32>
    %825 = vector.shape_cast %824 : vector<8x128xf32> to vector<1x8x128xf32>
    %826 = vector.broadcast %825 : vector<1x8x128xf32> to vector<8x8x128xf32>
    %827 = arith.addf %826, %38 : vector<8x8x128xf32>
    %cst_274 = arith.constant dense<0xFF800000> : vector<8x128xf32>
    %828 = vector.multi_reduction <maximumf>, %827, %cst_274 [1] : vector<8x8x128xf32> to vector<8x128xf32>
    %829 = vector.broadcast %825 : vector<1x8x128xf32> to vector<8x8x128xf32>
    %830 = arith.subf %38, %829 : vector<8x8x128xf32>
    %cst_275 = arith.constant dense<0xFF800000> : vector<8x128xf32>
    %831 = vector.multi_reduction <maximumf>, %830, %cst_275 [1] : vector<8x8x128xf32> to vector<8x128xf32>
    %cst_276 = arith.constant 0.000000e+00 : f32
    %832 = vector.broadcast %cst_276 : f32 to vector<8x128xf32>
    %833 = arith.subf %832, %831 : vector<8x128xf32>
    %834 = arith.truncf %824 : vector<8x128xf32> to vector<8x128xbf16>
    %cst_277 = arith.constant dense<0.000000e+00> : vector<8x128xf32>
    %835 = tpu.matmul %37, %834, %cst_277 {dimension_numbers = #tpu.dot_dimension_numbers<[1], [0], [0], [1], [0, 0, 1, 1], [], []>} : vector<8x8xbf16>, vector<8x128xbf16>, vector<8x128xf32> -> vector<8x128xf32>
    %836 = vector.broadcast %39 : vector<8x1xf32> to vector<8x128xf32>
    %837 = arith.mulf %835, %836 : vector<8x128xf32>
    %cst_278 = arith.constant 0.000000e+00 : f32
    %838 = vector.shape_cast %42 : vector<8x1xi1> to vector<8x1xi1>
    %839 = vector.broadcast %838 : vector<8x1xi1> to vector<8x128xi1>
    %840 = vector.broadcast %cst_278 : f32 to vector<8x128xf32>
    %841 = arith.select %839, %828, %840 : vector<8x128xi1>, vector<8x128xf32>
    %cst_279 = arith.constant 0.000000e+00 : f32
    %842 = vector.shape_cast %42 : vector<8x1xi1> to vector<8x1xi1>
    %843 = vector.broadcast %842 : vector<8x1xi1> to vector<8x128xi1>
    %844 = vector.broadcast %cst_279 : f32 to vector<8x128xf32>
    %845 = arith.select %843, %833, %844 : vector<8x128xi1>, vector<8x128xf32>
    %846 = arith.addf %841, %845 : vector<8x128xf32>
    %847 = arith.addf %846, %837 : vector<8x128xf32>
    %cst_280 = arith.constant 0.333333343 : f32
    %848 = vector.broadcast %cst_280 : f32 to vector<8x128xf32>
    %849 = arith.mulf %847, %848 : vector<8x128xf32>
    %850 = arith.addf %820, %849 : vector<8x128xf32>
    %851 = arith.truncf %850 : vector<8x128xf32> to vector<8x128xbf16>
    %c6_281 = arith.constant 6 : index
    %c0_282 = arith.constant 0 : index
    %c0_283 = arith.constant 0 : index
    %852 = vector.load %arg8[%c6_281, %c0_282, %c0_283] : memref<11x128x256xbf16, #tpu.memory_space<vmem>>, vector<1x128x256xbf16>
    %853 = vector.shape_cast %852 : vector<1x128x256xbf16> to vector<128x256xbf16>
    %cst_284 = arith.constant dense<0.000000e+00> : vector<8x256xf32>
    %854 = tpu.matmul %851, %853, %cst_284 {dimension_numbers = #tpu.dot_dimension_numbers<[1], [0], [0], [1], [0, 0, 1, 1], [], []>} : vector<8x128xbf16>, vector<128x256xbf16>, vector<8x256xf32> -> vector<8x256xf32>
    %855 = vector.broadcast %791 : vector<1x256xf32> to vector<8x256xf32>
    %856 = arith.addf %854, %855 : vector<8x256xf32>
    %cst_285 = arith.constant dense<0.000000e+00> : vector<8xf32>
    %857 = vector.multi_reduction <add>, %856, %cst_285 [1] : vector<8x256xf32> to vector<8xf32>
    %858 = vector.shape_cast %857 : vector<8xf32> to vector<8x1xf32>
    %cst_286 = arith.constant 2.560000e+02 : f32
    %859 = vector.broadcast %cst_286 : f32 to vector<8x1xf32>
    %860 = arith.divf %858, %859 : vector<8x1xf32>
    %861 = vector.broadcast %860 : vector<8x1xf32> to vector<8x256xf32>
    %862 = arith.subf %856, %861 : vector<8x256xf32>
    %863 = arith.mulf %862, %862 : vector<8x256xf32>
    %cst_287 = arith.constant dense<0.000000e+00> : vector<8xf32>
    %864 = vector.multi_reduction <add>, %863, %cst_287 [1] : vector<8x256xf32> to vector<8xf32>
    %865 = vector.shape_cast %864 : vector<8xf32> to vector<8x1xf32>
    %cst_288 = arith.constant 2.560000e+02 : f32
    %866 = vector.broadcast %cst_288 : f32 to vector<8x1xf32>
    %867 = arith.divf %865, %866 : vector<8x1xf32>
    %cst_289 = arith.constant 9.99999974E-6 : f32
    %868 = vector.broadcast %cst_289 : f32 to vector<8x1xf32>
    %869 = arith.addf %867, %868 : vector<8x1xf32>
    %870 = math.rsqrt %869 : vector<8x1xf32>
    %871 = vector.broadcast %870 : vector<8x1xf32> to vector<8x256xf32>
    %872 = arith.mulf %862, %871 : vector<8x256xf32>
    %873 = vector.broadcast %792 : vector<1x256xf32> to vector<8x256xf32>
    %874 = arith.mulf %872, %873 : vector<8x256xf32>
    %875 = vector.broadcast %793 : vector<1x256xf32> to vector<8x256xf32>
    %876 = arith.addf %874, %875 : vector<8x256xf32>
    %cst_290 = arith.constant 0.000000e+00 : f32
    %877 = vector.broadcast %cst_290 : f32 to vector<8x256xf32>
    %878 = arith.maximumf %876, %877 : vector<8x256xf32>
    %879 = arith.truncf %878 : vector<8x256xf32> to vector<8x256xbf16>
    %c6_291 = arith.constant 6 : index
    %c0_292 = arith.constant 0 : index
    %c0_293 = arith.constant 0 : index
    %880 = vector.load %arg9[%c6_291, %c0_292, %c0_293] : memref<11x256x128xbf16, #tpu.memory_space<vmem>>, vector<1x256x128xbf16>
    %881 = vector.shape_cast %880 : vector<1x256x128xbf16> to vector<256x128xbf16>
    %cst_294 = arith.constant dense<0.000000e+00> : vector<8x128xf32>
    %882 = tpu.matmul %879, %881, %cst_294 {dimension_numbers = #tpu.dot_dimension_numbers<[1], [0], [0], [1], [0, 0, 1, 1], [], []>} : vector<8x256xbf16>, vector<256x128xbf16>, vector<8x128xf32> -> vector<8x128xf32>
    %883 = vector.broadcast %794 : vector<1x128xf32> to vector<8x128xf32>
    %884 = arith.addf %882, %883 : vector<8x128xf32>
    %885 = arith.addf %786, %884 : vector<8x128xf32>
    %cst_295 = arith.constant dense<0.000000e+00> : vector<8xf32>
    %886 = vector.multi_reduction <add>, %885, %cst_295 [1] : vector<8x128xf32> to vector<8xf32>
    %887 = vector.shape_cast %886 : vector<8xf32> to vector<8x1xf32>
    %cst_296 = arith.constant 1.280000e+02 : f32
    %888 = vector.broadcast %cst_296 : f32 to vector<8x1xf32>
    %889 = arith.divf %887, %888 : vector<8x1xf32>
    %890 = vector.broadcast %889 : vector<8x1xf32> to vector<8x128xf32>
    %891 = arith.subf %885, %890 : vector<8x128xf32>
    %892 = arith.mulf %891, %891 : vector<8x128xf32>
    %cst_297 = arith.constant dense<0.000000e+00> : vector<8xf32>
    %893 = vector.multi_reduction <add>, %892, %cst_297 [1] : vector<8x128xf32> to vector<8xf32>
    %894 = vector.shape_cast %893 : vector<8xf32> to vector<8x1xf32>
    %cst_298 = arith.constant 1.280000e+02 : f32
    %895 = vector.broadcast %cst_298 : f32 to vector<8x1xf32>
    %896 = arith.divf %894, %895 : vector<8x1xf32>
    %cst_299 = arith.constant 9.99999974E-6 : f32
    %897 = vector.broadcast %cst_299 : f32 to vector<8x1xf32>
    %898 = arith.addf %896, %897 : vector<8x1xf32>
    %899 = math.rsqrt %898 : vector<8x1xf32>
    %900 = vector.broadcast %899 : vector<8x1xf32> to vector<8x128xf32>
    %901 = arith.mulf %891, %900 : vector<8x128xf32>
    %902 = vector.broadcast %9 : vector<1x128xf32> to vector<8x128xf32>
    %903 = arith.mulf %901, %902 : vector<8x128xf32>
    %904 = vector.broadcast %10 : vector<1x128xf32> to vector<8x128xf32>
    %905 = arith.addf %903, %904 : vector<8x128xf32>
    %cst_300 = arith.constant 0.000000e+00 : f32
    %906 = vector.broadcast %cst_300 : f32 to vector<8x128xf32>
    %907 = arith.cmpf oge, %905, %906 : vector<8x128xf32>
    %908 = vector.broadcast %1 : f32 to vector<8x128xf32>
    %909 = arith.mulf %908, %905 : vector<8x128xf32>
    %910 = arith.select %907, %905, %909 : vector<8x128xi1>, vector<8x128xf32>
    %c7_301 = arith.constant 7 : index
    %c0_302 = arith.constant 0 : index
    %c0_303 = arith.constant 0 : index
    %911 = vector.load %arg10[%c7_301, %c0_302, %c0_303] : memref<11x8x256xf32, #tpu.memory_space<vmem>>, vector<1x8x256xf32>
    %912 = vector.shape_cast %911 : vector<1x8x256xf32> to vector<8x256xf32>
    %913 = vector.extract_strided_slice %912 {offsets = [0, 0], sizes = [1, 128], strides = [1, 1]} : vector<8x256xf32> to vector<1x128xf32>
    %914 = vector.extract_strided_slice %912 {offsets = [1, 0], sizes = [1, 128], strides = [1, 1]} : vector<8x256xf32> to vector<1x128xf32>
    %915 = vector.extract_strided_slice %912 {offsets = [2, 0], sizes = [1, 256], strides = [1, 1]} : vector<8x256xf32> to vector<1x256xf32>
    %916 = vector.extract_strided_slice %912 {offsets = [3, 0], sizes = [1, 256], strides = [1, 1]} : vector<8x256xf32> to vector<1x256xf32>
    %917 = vector.extract_strided_slice %912 {offsets = [4, 0], sizes = [1, 256], strides = [1, 1]} : vector<8x256xf32> to vector<1x256xf32>
    %918 = vector.extract_strided_slice %912 {offsets = [5, 0], sizes = [1, 128], strides = [1, 1]} : vector<8x256xf32> to vector<1x128xf32>
    %c9 = arith.constant 9 : index
    %919 = memref.load %arg0[%c9] : memref<13xf32, #tpu.memory_space<smem>>
    %cst_304 = arith.constant dense<0.000000e+00> : vector<8xf32>
    %920 = vector.multi_reduction <add>, %910, %cst_304 [1] : vector<8x128xf32> to vector<8xf32>
    %921 = vector.shape_cast %920 : vector<8xf32> to vector<8x1xf32>
    %cst_305 = arith.constant 1.280000e+02 : f32
    %922 = vector.broadcast %cst_305 : f32 to vector<8x1xf32>
    %923 = arith.divf %921, %922 : vector<8x1xf32>
    %924 = vector.broadcast %923 : vector<8x1xf32> to vector<8x128xf32>
    %925 = arith.subf %910, %924 : vector<8x128xf32>
    %926 = arith.mulf %925, %925 : vector<8x128xf32>
    %cst_306 = arith.constant dense<0.000000e+00> : vector<8xf32>
    %927 = vector.multi_reduction <add>, %926, %cst_306 [1] : vector<8x128xf32> to vector<8xf32>
    %928 = vector.shape_cast %927 : vector<8xf32> to vector<8x1xf32>
    %cst_307 = arith.constant 1.280000e+02 : f32
    %929 = vector.broadcast %cst_307 : f32 to vector<8x1xf32>
    %930 = arith.divf %928, %929 : vector<8x1xf32>
    %cst_308 = arith.constant 9.99999974E-6 : f32
    %931 = vector.broadcast %cst_308 : f32 to vector<8x1xf32>
    %932 = arith.addf %930, %931 : vector<8x1xf32>
    %933 = math.rsqrt %932 : vector<8x1xf32>
    %934 = vector.broadcast %933 : vector<8x1xf32> to vector<8x128xf32>
    %935 = arith.mulf %925, %934 : vector<8x128xf32>
    %936 = vector.broadcast %913 : vector<1x128xf32> to vector<8x128xf32>
    %937 = arith.mulf %935, %936 : vector<8x128xf32>
    %938 = vector.broadcast %914 : vector<1x128xf32> to vector<8x128xf32>
    %939 = arith.addf %937, %938 : vector<8x128xf32>
    %cst_309 = arith.constant 0.000000e+00 : f32
    %940 = vector.broadcast %cst_309 : f32 to vector<8x128xf32>
    %941 = arith.cmpf oge, %939, %940 : vector<8x128xf32>
    %942 = vector.broadcast %919 : f32 to vector<8x128xf32>
    %943 = arith.mulf %942, %939 : vector<8x128xf32>
    %944 = arith.select %941, %939, %943 : vector<8x128xi1>, vector<8x128xf32>
    %cst_310 = arith.constant 0.000000e+00 : f32
    %945 = vector.broadcast %cst_310 : f32 to vector<8x128xf32>
    %946 = arith.maximumf %944, %945 : vector<8x128xf32>
    %cst_311 = arith.constant 1.000000e-07 : f32
    %947 = vector.broadcast %cst_311 : f32 to vector<8x128xf32>
    %948 = arith.addf %946, %947 : vector<8x128xf32>
    %949 = vector.shape_cast %948 : vector<8x128xf32> to vector<1x8x128xf32>
    %950 = vector.broadcast %949 : vector<1x8x128xf32> to vector<8x8x128xf32>
    %951 = arith.addf %950, %38 : vector<8x8x128xf32>
    %cst_312 = arith.constant dense<0xFF800000> : vector<8x128xf32>
    %952 = vector.multi_reduction <maximumf>, %951, %cst_312 [1] : vector<8x8x128xf32> to vector<8x128xf32>
    %953 = vector.broadcast %949 : vector<1x8x128xf32> to vector<8x8x128xf32>
    %954 = arith.subf %38, %953 : vector<8x8x128xf32>
    %cst_313 = arith.constant dense<0xFF800000> : vector<8x128xf32>
    %955 = vector.multi_reduction <maximumf>, %954, %cst_313 [1] : vector<8x8x128xf32> to vector<8x128xf32>
    %cst_314 = arith.constant 0.000000e+00 : f32
    %956 = vector.broadcast %cst_314 : f32 to vector<8x128xf32>
    %957 = arith.subf %956, %955 : vector<8x128xf32>
    %958 = arith.truncf %948 : vector<8x128xf32> to vector<8x128xbf16>
    %cst_315 = arith.constant dense<0.000000e+00> : vector<8x128xf32>
    %959 = tpu.matmul %37, %958, %cst_315 {dimension_numbers = #tpu.dot_dimension_numbers<[1], [0], [0], [1], [0, 0, 1, 1], [], []>} : vector<8x8xbf16>, vector<8x128xbf16>, vector<8x128xf32> -> vector<8x128xf32>
    %960 = vector.broadcast %39 : vector<8x1xf32> to vector<8x128xf32>
    %961 = arith.mulf %959, %960 : vector<8x128xf32>
    %cst_316 = arith.constant 0.000000e+00 : f32
    %962 = vector.shape_cast %42 : vector<8x1xi1> to vector<8x1xi1>
    %963 = vector.broadcast %962 : vector<8x1xi1> to vector<8x128xi1>
    %964 = vector.broadcast %cst_316 : f32 to vector<8x128xf32>
    %965 = arith.select %963, %952, %964 : vector<8x128xi1>, vector<8x128xf32>
    %cst_317 = arith.constant 0.000000e+00 : f32
    %966 = vector.shape_cast %42 : vector<8x1xi1> to vector<8x1xi1>
    %967 = vector.broadcast %966 : vector<8x1xi1> to vector<8x128xi1>
    %968 = vector.broadcast %cst_317 : f32 to vector<8x128xf32>
    %969 = arith.select %967, %957, %968 : vector<8x128xi1>, vector<8x128xf32>
    %970 = arith.addf %965, %969 : vector<8x128xf32>
    %971 = arith.addf %970, %961 : vector<8x128xf32>
    %cst_318 = arith.constant 0.333333343 : f32
    %972 = vector.broadcast %cst_318 : f32 to vector<8x128xf32>
    %973 = arith.mulf %971, %972 : vector<8x128xf32>
    %974 = arith.addf %944, %973 : vector<8x128xf32>
    %975 = arith.truncf %974 : vector<8x128xf32> to vector<8x128xbf16>
    %c7_319 = arith.constant 7 : index
    %c0_320 = arith.constant 0 : index
    %c0_321 = arith.constant 0 : index
    %976 = vector.load %arg8[%c7_319, %c0_320, %c0_321] : memref<11x128x256xbf16, #tpu.memory_space<vmem>>, vector<1x128x256xbf16>
    %977 = vector.shape_cast %976 : vector<1x128x256xbf16> to vector<128x256xbf16>
    %cst_322 = arith.constant dense<0.000000e+00> : vector<8x256xf32>
    %978 = tpu.matmul %975, %977, %cst_322 {dimension_numbers = #tpu.dot_dimension_numbers<[1], [0], [0], [1], [0, 0, 1, 1], [], []>} : vector<8x128xbf16>, vector<128x256xbf16>, vector<8x256xf32> -> vector<8x256xf32>
    %979 = vector.broadcast %915 : vector<1x256xf32> to vector<8x256xf32>
    %980 = arith.addf %978, %979 : vector<8x256xf32>
    %cst_323 = arith.constant dense<0.000000e+00> : vector<8xf32>
    %981 = vector.multi_reduction <add>, %980, %cst_323 [1] : vector<8x256xf32> to vector<8xf32>
    %982 = vector.shape_cast %981 : vector<8xf32> to vector<8x1xf32>
    %cst_324 = arith.constant 2.560000e+02 : f32
    %983 = vector.broadcast %cst_324 : f32 to vector<8x1xf32>
    %984 = arith.divf %982, %983 : vector<8x1xf32>
    %985 = vector.broadcast %984 : vector<8x1xf32> to vector<8x256xf32>
    %986 = arith.subf %980, %985 : vector<8x256xf32>
    %987 = arith.mulf %986, %986 : vector<8x256xf32>
    %cst_325 = arith.constant dense<0.000000e+00> : vector<8xf32>
    %988 = vector.multi_reduction <add>, %987, %cst_325 [1] : vector<8x256xf32> to vector<8xf32>
    %989 = vector.shape_cast %988 : vector<8xf32> to vector<8x1xf32>
    %cst_326 = arith.constant 2.560000e+02 : f32
    %990 = vector.broadcast %cst_326 : f32 to vector<8x1xf32>
    %991 = arith.divf %989, %990 : vector<8x1xf32>
    %cst_327 = arith.constant 9.99999974E-6 : f32
    %992 = vector.broadcast %cst_327 : f32 to vector<8x1xf32>
    %993 = arith.addf %991, %992 : vector<8x1xf32>
    %994 = math.rsqrt %993 : vector<8x1xf32>
    %995 = vector.broadcast %994 : vector<8x1xf32> to vector<8x256xf32>
    %996 = arith.mulf %986, %995 : vector<8x256xf32>
    %997 = vector.broadcast %916 : vector<1x256xf32> to vector<8x256xf32>
    %998 = arith.mulf %996, %997 : vector<8x256xf32>
    %999 = vector.broadcast %917 : vector<1x256xf32> to vector<8x256xf32>
    %1000 = arith.addf %998, %999 : vector<8x256xf32>
    %cst_328 = arith.constant 0.000000e+00 : f32
    %1001 = vector.broadcast %cst_328 : f32 to vector<8x256xf32>
    %1002 = arith.maximumf %1000, %1001 : vector<8x256xf32>
    %1003 = arith.truncf %1002 : vector<8x256xf32> to vector<8x256xbf16>
    %c7_329 = arith.constant 7 : index
    %c0_330 = arith.constant 0 : index
    %c0_331 = arith.constant 0 : index
    %1004 = vector.load %arg9[%c7_329, %c0_330, %c0_331] : memref<11x256x128xbf16, #tpu.memory_space<vmem>>, vector<1x256x128xbf16>
    %1005 = vector.shape_cast %1004 : vector<1x256x128xbf16> to vector<256x128xbf16>
    %cst_332 = arith.constant dense<0.000000e+00> : vector<8x128xf32>
    %1006 = tpu.matmul %1003, %1005, %cst_332 {dimension_numbers = #tpu.dot_dimension_numbers<[1], [0], [0], [1], [0, 0, 1, 1], [], []>} : vector<8x256xbf16>, vector<256x128xbf16>, vector<8x128xf32> -> vector<8x128xf32>
    %1007 = vector.broadcast %918 : vector<1x128xf32> to vector<8x128xf32>
    %1008 = arith.addf %1006, %1007 : vector<8x128xf32>
    %1009 = arith.addf %910, %1008 : vector<8x128xf32>
    %cst_333 = arith.constant dense<0.000000e+00> : vector<8xf32>
    %1010 = vector.multi_reduction <add>, %1009, %cst_333 [1] : vector<8x128xf32> to vector<8xf32>
    %1011 = vector.shape_cast %1010 : vector<8xf32> to vector<8x1xf32>
    %cst_334 = arith.constant 1.280000e+02 : f32
    %1012 = vector.broadcast %cst_334 : f32 to vector<8x1xf32>
    %1013 = arith.divf %1011, %1012 : vector<8x1xf32>
    %1014 = vector.broadcast %1013 : vector<8x1xf32> to vector<8x128xf32>
    %1015 = arith.subf %1009, %1014 : vector<8x128xf32>
    %1016 = arith.mulf %1015, %1015 : vector<8x128xf32>
    %cst_335 = arith.constant dense<0.000000e+00> : vector<8xf32>
    %1017 = vector.multi_reduction <add>, %1016, %cst_335 [1] : vector<8x128xf32> to vector<8xf32>
    %1018 = vector.shape_cast %1017 : vector<8xf32> to vector<8x1xf32>
    %cst_336 = arith.constant 1.280000e+02 : f32
    %1019 = vector.broadcast %cst_336 : f32 to vector<8x1xf32>
    %1020 = arith.divf %1018, %1019 : vector<8x1xf32>
    %cst_337 = arith.constant 9.99999974E-6 : f32
    %1021 = vector.broadcast %cst_337 : f32 to vector<8x1xf32>
    %1022 = arith.addf %1020, %1021 : vector<8x1xf32>
    %1023 = math.rsqrt %1022 : vector<8x1xf32>
    %1024 = vector.broadcast %1023 : vector<8x1xf32> to vector<8x128xf32>
    %1025 = arith.mulf %1015, %1024 : vector<8x128xf32>
    %1026 = vector.broadcast %9 : vector<1x128xf32> to vector<8x128xf32>
    %1027 = arith.mulf %1025, %1026 : vector<8x128xf32>
    %1028 = vector.broadcast %10 : vector<1x128xf32> to vector<8x128xf32>
    %1029 = arith.addf %1027, %1028 : vector<8x128xf32>
    %cst_338 = arith.constant 0.000000e+00 : f32
    %1030 = vector.broadcast %cst_338 : f32 to vector<8x128xf32>
    %1031 = arith.cmpf oge, %1029, %1030 : vector<8x128xf32>
    %1032 = vector.broadcast %1 : f32 to vector<8x128xf32>
    %1033 = arith.mulf %1032, %1029 : vector<8x128xf32>
    %1034 = arith.select %1031, %1029, %1033 : vector<8x128xi1>, vector<8x128xf32>
    %c8_339 = arith.constant 8 : index
    %c0_340 = arith.constant 0 : index
    %c0_341 = arith.constant 0 : index
    %1035 = vector.load %arg10[%c8_339, %c0_340, %c0_341] : memref<11x8x256xf32, #tpu.memory_space<vmem>>, vector<1x8x256xf32>
    %1036 = vector.shape_cast %1035 : vector<1x8x256xf32> to vector<8x256xf32>
    %1037 = vector.extract_strided_slice %1036 {offsets = [0, 0], sizes = [1, 128], strides = [1, 1]} : vector<8x256xf32> to vector<1x128xf32>
    %1038 = vector.extract_strided_slice %1036 {offsets = [1, 0], sizes = [1, 128], strides = [1, 1]} : vector<8x256xf32> to vector<1x128xf32>
    %1039 = vector.extract_strided_slice %1036 {offsets = [2, 0], sizes = [1, 256], strides = [1, 1]} : vector<8x256xf32> to vector<1x256xf32>
    %1040 = vector.extract_strided_slice %1036 {offsets = [3, 0], sizes = [1, 256], strides = [1, 1]} : vector<8x256xf32> to vector<1x256xf32>
    %1041 = vector.extract_strided_slice %1036 {offsets = [4, 0], sizes = [1, 256], strides = [1, 1]} : vector<8x256xf32> to vector<1x256xf32>
    %1042 = vector.extract_strided_slice %1036 {offsets = [5, 0], sizes = [1, 128], strides = [1, 1]} : vector<8x256xf32> to vector<1x128xf32>
    %c10 = arith.constant 10 : index
    %1043 = memref.load %arg0[%c10] : memref<13xf32, #tpu.memory_space<smem>>
    %cst_342 = arith.constant dense<0.000000e+00> : vector<8xf32>
    %1044 = vector.multi_reduction <add>, %1034, %cst_342 [1] : vector<8x128xf32> to vector<8xf32>
    %1045 = vector.shape_cast %1044 : vector<8xf32> to vector<8x1xf32>
    %cst_343 = arith.constant 1.280000e+02 : f32
    %1046 = vector.broadcast %cst_343 : f32 to vector<8x1xf32>
    %1047 = arith.divf %1045, %1046 : vector<8x1xf32>
    %1048 = vector.broadcast %1047 : vector<8x1xf32> to vector<8x128xf32>
    %1049 = arith.subf %1034, %1048 : vector<8x128xf32>
    %1050 = arith.mulf %1049, %1049 : vector<8x128xf32>
    %cst_344 = arith.constant dense<0.000000e+00> : vector<8xf32>
    %1051 = vector.multi_reduction <add>, %1050, %cst_344 [1] : vector<8x128xf32> to vector<8xf32>
    %1052 = vector.shape_cast %1051 : vector<8xf32> to vector<8x1xf32>
    %cst_345 = arith.constant 1.280000e+02 : f32
    %1053 = vector.broadcast %cst_345 : f32 to vector<8x1xf32>
    %1054 = arith.divf %1052, %1053 : vector<8x1xf32>
    %cst_346 = arith.constant 9.99999974E-6 : f32
    %1055 = vector.broadcast %cst_346 : f32 to vector<8x1xf32>
    %1056 = arith.addf %1054, %1055 : vector<8x1xf32>
    %1057 = math.rsqrt %1056 : vector<8x1xf32>
    %1058 = vector.broadcast %1057 : vector<8x1xf32> to vector<8x128xf32>
    %1059 = arith.mulf %1049, %1058 : vector<8x128xf32>
    %1060 = vector.broadcast %1037 : vector<1x128xf32> to vector<8x128xf32>
    %1061 = arith.mulf %1059, %1060 : vector<8x128xf32>
    %1062 = vector.broadcast %1038 : vector<1x128xf32> to vector<8x128xf32>
    %1063 = arith.addf %1061, %1062 : vector<8x128xf32>
    %cst_347 = arith.constant 0.000000e+00 : f32
    %1064 = vector.broadcast %cst_347 : f32 to vector<8x128xf32>
    %1065 = arith.cmpf oge, %1063, %1064 : vector<8x128xf32>
    %1066 = vector.broadcast %1043 : f32 to vector<8x128xf32>
    %1067 = arith.mulf %1066, %1063 : vector<8x128xf32>
    %1068 = arith.select %1065, %1063, %1067 : vector<8x128xi1>, vector<8x128xf32>
    %cst_348 = arith.constant 0.000000e+00 : f32
    %1069 = vector.broadcast %cst_348 : f32 to vector<8x128xf32>
    %1070 = arith.maximumf %1068, %1069 : vector<8x128xf32>
    %cst_349 = arith.constant 1.000000e-07 : f32
    %1071 = vector.broadcast %cst_349 : f32 to vector<8x128xf32>
    %1072 = arith.addf %1070, %1071 : vector<8x128xf32>
    %1073 = vector.shape_cast %1072 : vector<8x128xf32> to vector<1x8x128xf32>
    %1074 = vector.broadcast %1073 : vector<1x8x128xf32> to vector<8x8x128xf32>
    %1075 = arith.addf %1074, %38 : vector<8x8x128xf32>
    %cst_350 = arith.constant dense<0xFF800000> : vector<8x128xf32>
    %1076 = vector.multi_reduction <maximumf>, %1075, %cst_350 [1] : vector<8x8x128xf32> to vector<8x128xf32>
    %1077 = vector.broadcast %1073 : vector<1x8x128xf32> to vector<8x8x128xf32>
    %1078 = arith.subf %38, %1077 : vector<8x8x128xf32>
    %cst_351 = arith.constant dense<0xFF800000> : vector<8x128xf32>
    %1079 = vector.multi_reduction <maximumf>, %1078, %cst_351 [1] : vector<8x8x128xf32> to vector<8x128xf32>
    %cst_352 = arith.constant 0.000000e+00 : f32
    %1080 = vector.broadcast %cst_352 : f32 to vector<8x128xf32>
    %1081 = arith.subf %1080, %1079 : vector<8x128xf32>
    %1082 = arith.truncf %1072 : vector<8x128xf32> to vector<8x128xbf16>
    %cst_353 = arith.constant dense<0.000000e+00> : vector<8x128xf32>
    %1083 = tpu.matmul %37, %1082, %cst_353 {dimension_numbers = #tpu.dot_dimension_numbers<[1], [0], [0], [1], [0, 0, 1, 1], [], []>} : vector<8x8xbf16>, vector<8x128xbf16>, vector<8x128xf32> -> vector<8x128xf32>
    %1084 = vector.broadcast %39 : vector<8x1xf32> to vector<8x128xf32>
    %1085 = arith.mulf %1083, %1084 : vector<8x128xf32>
    %cst_354 = arith.constant 0.000000e+00 : f32
    %1086 = vector.shape_cast %42 : vector<8x1xi1> to vector<8x1xi1>
    %1087 = vector.broadcast %1086 : vector<8x1xi1> to vector<8x128xi1>
    %1088 = vector.broadcast %cst_354 : f32 to vector<8x128xf32>
    %1089 = arith.select %1087, %1076, %1088 : vector<8x128xi1>, vector<8x128xf32>
    %cst_355 = arith.constant 0.000000e+00 : f32
    %1090 = vector.shape_cast %42 : vector<8x1xi1> to vector<8x1xi1>
    %1091 = vector.broadcast %1090 : vector<8x1xi1> to vector<8x128xi1>
    %1092 = vector.broadcast %cst_355 : f32 to vector<8x128xf32>
    %1093 = arith.select %1091, %1081, %1092 : vector<8x128xi1>, vector<8x128xf32>
    %1094 = arith.addf %1089, %1093 : vector<8x128xf32>
    %1095 = arith.addf %1094, %1085 : vector<8x128xf32>
    %cst_356 = arith.constant 0.333333343 : f32
    %1096 = vector.broadcast %cst_356 : f32 to vector<8x128xf32>
    %1097 = arith.mulf %1095, %1096 : vector<8x128xf32>
    %1098 = arith.addf %1068, %1097 : vector<8x128xf32>
    %1099 = arith.truncf %1098 : vector<8x128xf32> to vector<8x128xbf16>
    %c8_357 = arith.constant 8 : index
    %c0_358 = arith.constant 0 : index
    %c0_359 = arith.constant 0 : index
    %1100 = vector.load %arg8[%c8_357, %c0_358, %c0_359] : memref<11x128x256xbf16, #tpu.memory_space<vmem>>, vector<1x128x256xbf16>
    %1101 = vector.shape_cast %1100 : vector<1x128x256xbf16> to vector<128x256xbf16>
    %cst_360 = arith.constant dense<0.000000e+00> : vector<8x256xf32>
    %1102 = tpu.matmul %1099, %1101, %cst_360 {dimension_numbers = #tpu.dot_dimension_numbers<[1], [0], [0], [1], [0, 0, 1, 1], [], []>} : vector<8x128xbf16>, vector<128x256xbf16>, vector<8x256xf32> -> vector<8x256xf32>
    %1103 = vector.broadcast %1039 : vector<1x256xf32> to vector<8x256xf32>
    %1104 = arith.addf %1102, %1103 : vector<8x256xf32>
    %cst_361 = arith.constant dense<0.000000e+00> : vector<8xf32>
    %1105 = vector.multi_reduction <add>, %1104, %cst_361 [1] : vector<8x256xf32> to vector<8xf32>
    %1106 = vector.shape_cast %1105 : vector<8xf32> to vector<8x1xf32>
    %cst_362 = arith.constant 2.560000e+02 : f32
    %1107 = vector.broadcast %cst_362 : f32 to vector<8x1xf32>
    %1108 = arith.divf %1106, %1107 : vector<8x1xf32>
    %1109 = vector.broadcast %1108 : vector<8x1xf32> to vector<8x256xf32>
    %1110 = arith.subf %1104, %1109 : vector<8x256xf32>
    %1111 = arith.mulf %1110, %1110 : vector<8x256xf32>
    %cst_363 = arith.constant dense<0.000000e+00> : vector<8xf32>
    %1112 = vector.multi_reduction <add>, %1111, %cst_363 [1] : vector<8x256xf32> to vector<8xf32>
    %1113 = vector.shape_cast %1112 : vector<8xf32> to vector<8x1xf32>
    %cst_364 = arith.constant 2.560000e+02 : f32
    %1114 = vector.broadcast %cst_364 : f32 to vector<8x1xf32>
    %1115 = arith.divf %1113, %1114 : vector<8x1xf32>
    %cst_365 = arith.constant 9.99999974E-6 : f32
    %1116 = vector.broadcast %cst_365 : f32 to vector<8x1xf32>
    %1117 = arith.addf %1115, %1116 : vector<8x1xf32>
    %1118 = math.rsqrt %1117 : vector<8x1xf32>
    %1119 = vector.broadcast %1118 : vector<8x1xf32> to vector<8x256xf32>
    %1120 = arith.mulf %1110, %1119 : vector<8x256xf32>
    %1121 = vector.broadcast %1040 : vector<1x256xf32> to vector<8x256xf32>
    %1122 = arith.mulf %1120, %1121 : vector<8x256xf32>
    %1123 = vector.broadcast %1041 : vector<1x256xf32> to vector<8x256xf32>
    %1124 = arith.addf %1122, %1123 : vector<8x256xf32>
    %cst_366 = arith.constant 0.000000e+00 : f32
    %1125 = vector.broadcast %cst_366 : f32 to vector<8x256xf32>
    %1126 = arith.maximumf %1124, %1125 : vector<8x256xf32>
    %1127 = arith.truncf %1126 : vector<8x256xf32> to vector<8x256xbf16>
    %c8_367 = arith.constant 8 : index
    %c0_368 = arith.constant 0 : index
    %c0_369 = arith.constant 0 : index
    %1128 = vector.load %arg9[%c8_367, %c0_368, %c0_369] : memref<11x256x128xbf16, #tpu.memory_space<vmem>>, vector<1x256x128xbf16>
    %1129 = vector.shape_cast %1128 : vector<1x256x128xbf16> to vector<256x128xbf16>
    %cst_370 = arith.constant dense<0.000000e+00> : vector<8x128xf32>
    %1130 = tpu.matmul %1127, %1129, %cst_370 {dimension_numbers = #tpu.dot_dimension_numbers<[1], [0], [0], [1], [0, 0, 1, 1], [], []>} : vector<8x256xbf16>, vector<256x128xbf16>, vector<8x128xf32> -> vector<8x128xf32>
    %1131 = vector.broadcast %1042 : vector<1x128xf32> to vector<8x128xf32>
    %1132 = arith.addf %1130, %1131 : vector<8x128xf32>
    %1133 = arith.addf %1034, %1132 : vector<8x128xf32>
    %cst_371 = arith.constant dense<0.000000e+00> : vector<8xf32>
    %1134 = vector.multi_reduction <add>, %1133, %cst_371 [1] : vector<8x128xf32> to vector<8xf32>
    %1135 = vector.shape_cast %1134 : vector<8xf32> to vector<8x1xf32>
    %cst_372 = arith.constant 1.280000e+02 : f32
    %1136 = vector.broadcast %cst_372 : f32 to vector<8x1xf32>
    %1137 = arith.divf %1135, %1136 : vector<8x1xf32>
    %1138 = vector.broadcast %1137 : vector<8x1xf32> to vector<8x128xf32>
    %1139 = arith.subf %1133, %1138 : vector<8x128xf32>
    %1140 = arith.mulf %1139, %1139 : vector<8x128xf32>
    %cst_373 = arith.constant dense<0.000000e+00> : vector<8xf32>
    %1141 = vector.multi_reduction <add>, %1140, %cst_373 [1] : vector<8x128xf32> to vector<8xf32>
    %1142 = vector.shape_cast %1141 : vector<8xf32> to vector<8x1xf32>
    %cst_374 = arith.constant 1.280000e+02 : f32
    %1143 = vector.broadcast %cst_374 : f32 to vector<8x1xf32>
    %1144 = arith.divf %1142, %1143 : vector<8x1xf32>
    %cst_375 = arith.constant 9.99999974E-6 : f32
    %1145 = vector.broadcast %cst_375 : f32 to vector<8x1xf32>
    %1146 = arith.addf %1144, %1145 : vector<8x1xf32>
    %1147 = math.rsqrt %1146 : vector<8x1xf32>
    %1148 = vector.broadcast %1147 : vector<8x1xf32> to vector<8x128xf32>
    %1149 = arith.mulf %1139, %1148 : vector<8x128xf32>
    %1150 = vector.broadcast %9 : vector<1x128xf32> to vector<8x128xf32>
    %1151 = arith.mulf %1149, %1150 : vector<8x128xf32>
    %1152 = vector.broadcast %10 : vector<1x128xf32> to vector<8x128xf32>
    %1153 = arith.addf %1151, %1152 : vector<8x128xf32>
    %cst_376 = arith.constant 0.000000e+00 : f32
    %1154 = vector.broadcast %cst_376 : f32 to vector<8x128xf32>
    %1155 = arith.cmpf oge, %1153, %1154 : vector<8x128xf32>
    %1156 = vector.broadcast %1 : f32 to vector<8x128xf32>
    %1157 = arith.mulf %1156, %1153 : vector<8x128xf32>
    %1158 = arith.select %1155, %1153, %1157 : vector<8x128xi1>, vector<8x128xf32>
    %c9_377 = arith.constant 9 : index
    %c0_378 = arith.constant 0 : index
    %c0_379 = arith.constant 0 : index
    %1159 = vector.load %arg10[%c9_377, %c0_378, %c0_379] : memref<11x8x256xf32, #tpu.memory_space<vmem>>, vector<1x8x256xf32>
    %1160 = vector.shape_cast %1159 : vector<1x8x256xf32> to vector<8x256xf32>
    %1161 = vector.extract_strided_slice %1160 {offsets = [0, 0], sizes = [1, 128], strides = [1, 1]} : vector<8x256xf32> to vector<1x128xf32>
    %1162 = vector.extract_strided_slice %1160 {offsets = [1, 0], sizes = [1, 128], strides = [1, 1]} : vector<8x256xf32> to vector<1x128xf32>
    %1163 = vector.extract_strided_slice %1160 {offsets = [2, 0], sizes = [1, 256], strides = [1, 1]} : vector<8x256xf32> to vector<1x256xf32>
    %1164 = vector.extract_strided_slice %1160 {offsets = [3, 0], sizes = [1, 256], strides = [1, 1]} : vector<8x256xf32> to vector<1x256xf32>
    %1165 = vector.extract_strided_slice %1160 {offsets = [4, 0], sizes = [1, 256], strides = [1, 1]} : vector<8x256xf32> to vector<1x256xf32>
    %1166 = vector.extract_strided_slice %1160 {offsets = [5, 0], sizes = [1, 128], strides = [1, 1]} : vector<8x256xf32> to vector<1x128xf32>
    %c11 = arith.constant 11 : index
    %1167 = memref.load %arg0[%c11] : memref<13xf32, #tpu.memory_space<smem>>
    %cst_380 = arith.constant dense<0.000000e+00> : vector<8xf32>
    %1168 = vector.multi_reduction <add>, %1158, %cst_380 [1] : vector<8x128xf32> to vector<8xf32>
    %1169 = vector.shape_cast %1168 : vector<8xf32> to vector<8x1xf32>
    %cst_381 = arith.constant 1.280000e+02 : f32
    %1170 = vector.broadcast %cst_381 : f32 to vector<8x1xf32>
    %1171 = arith.divf %1169, %1170 : vector<8x1xf32>
    %1172 = vector.broadcast %1171 : vector<8x1xf32> to vector<8x128xf32>
    %1173 = arith.subf %1158, %1172 : vector<8x128xf32>
    %1174 = arith.mulf %1173, %1173 : vector<8x128xf32>
    %cst_382 = arith.constant dense<0.000000e+00> : vector<8xf32>
    %1175 = vector.multi_reduction <add>, %1174, %cst_382 [1] : vector<8x128xf32> to vector<8xf32>
    %1176 = vector.shape_cast %1175 : vector<8xf32> to vector<8x1xf32>
    %cst_383 = arith.constant 1.280000e+02 : f32
    %1177 = vector.broadcast %cst_383 : f32 to vector<8x1xf32>
    %1178 = arith.divf %1176, %1177 : vector<8x1xf32>
    %cst_384 = arith.constant 9.99999974E-6 : f32
    %1179 = vector.broadcast %cst_384 : f32 to vector<8x1xf32>
    %1180 = arith.addf %1178, %1179 : vector<8x1xf32>
    %1181 = math.rsqrt %1180 : vector<8x1xf32>
    %1182 = vector.broadcast %1181 : vector<8x1xf32> to vector<8x128xf32>
    %1183 = arith.mulf %1173, %1182 : vector<8x128xf32>
    %1184 = vector.broadcast %1161 : vector<1x128xf32> to vector<8x128xf32>
    %1185 = arith.mulf %1183, %1184 : vector<8x128xf32>
    %1186 = vector.broadcast %1162 : vector<1x128xf32> to vector<8x128xf32>
    %1187 = arith.addf %1185, %1186 : vector<8x128xf32>
    %cst_385 = arith.constant 0.000000e+00 : f32
    %1188 = vector.broadcast %cst_385 : f32 to vector<8x128xf32>
    %1189 = arith.cmpf oge, %1187, %1188 : vector<8x128xf32>
    %1190 = vector.broadcast %1167 : f32 to vector<8x128xf32>
    %1191 = arith.mulf %1190, %1187 : vector<8x128xf32>
    %1192 = arith.select %1189, %1187, %1191 : vector<8x128xi1>, vector<8x128xf32>
    %cst_386 = arith.constant 0.000000e+00 : f32
    %1193 = vector.broadcast %cst_386 : f32 to vector<8x128xf32>
    %1194 = arith.maximumf %1192, %1193 : vector<8x128xf32>
    %cst_387 = arith.constant 1.000000e-07 : f32
    %1195 = vector.broadcast %cst_387 : f32 to vector<8x128xf32>
    %1196 = arith.addf %1194, %1195 : vector<8x128xf32>
    %1197 = vector.shape_cast %1196 : vector<8x128xf32> to vector<1x8x128xf32>
    %1198 = vector.broadcast %1197 : vector<1x8x128xf32> to vector<8x8x128xf32>
    %1199 = arith.addf %1198, %38 : vector<8x8x128xf32>
    %cst_388 = arith.constant dense<0xFF800000> : vector<8x128xf32>
    %1200 = vector.multi_reduction <maximumf>, %1199, %cst_388 [1] : vector<8x8x128xf32> to vector<8x128xf32>
    %1201 = vector.broadcast %1197 : vector<1x8x128xf32> to vector<8x8x128xf32>
    %1202 = arith.subf %38, %1201 : vector<8x8x128xf32>
    %cst_389 = arith.constant dense<0xFF800000> : vector<8x128xf32>
    %1203 = vector.multi_reduction <maximumf>, %1202, %cst_389 [1] : vector<8x8x128xf32> to vector<8x128xf32>
    %cst_390 = arith.constant 0.000000e+00 : f32
    %1204 = vector.broadcast %cst_390 : f32 to vector<8x128xf32>
    %1205 = arith.subf %1204, %1203 : vector<8x128xf32>
    %1206 = arith.truncf %1196 : vector<8x128xf32> to vector<8x128xbf16>
    %cst_391 = arith.constant dense<0.000000e+00> : vector<8x128xf32>
    %1207 = tpu.matmul %37, %1206, %cst_391 {dimension_numbers = #tpu.dot_dimension_numbers<[1], [0], [0], [1], [0, 0, 1, 1], [], []>} : vector<8x8xbf16>, vector<8x128xbf16>, vector<8x128xf32> -> vector<8x128xf32>
    %1208 = vector.broadcast %39 : vector<8x1xf32> to vector<8x128xf32>
    %1209 = arith.mulf %1207, %1208 : vector<8x128xf32>
    %cst_392 = arith.constant 0.000000e+00 : f32
    %1210 = vector.shape_cast %42 : vector<8x1xi1> to vector<8x1xi1>
    %1211 = vector.broadcast %1210 : vector<8x1xi1> to vector<8x128xi1>
    %1212 = vector.broadcast %cst_392 : f32 to vector<8x128xf32>
    %1213 = arith.select %1211, %1200, %1212 : vector<8x128xi1>, vector<8x128xf32>
    %cst_393 = arith.constant 0.000000e+00 : f32
    %1214 = vector.shape_cast %42 : vector<8x1xi1> to vector<8x1xi1>
    %1215 = vector.broadcast %1214 : vector<8x1xi1> to vector<8x128xi1>
    %1216 = vector.broadcast %cst_393 : f32 to vector<8x128xf32>
    %1217 = arith.select %1215, %1205, %1216 : vector<8x128xi1>, vector<8x128xf32>
    %1218 = arith.addf %1213, %1217 : vector<8x128xf32>
    %1219 = arith.addf %1218, %1209 : vector<8x128xf32>
    %cst_394 = arith.constant 0.333333343 : f32
    %1220 = vector.broadcast %cst_394 : f32 to vector<8x128xf32>
    %1221 = arith.mulf %1219, %1220 : vector<8x128xf32>
    %1222 = arith.addf %1192, %1221 : vector<8x128xf32>
    %1223 = arith.truncf %1222 : vector<8x128xf32> to vector<8x128xbf16>
    %c9_395 = arith.constant 9 : index
    %c0_396 = arith.constant 0 : index
    %c0_397 = arith.constant 0 : index
    %1224 = vector.load %arg8[%c9_395, %c0_396, %c0_397] : memref<11x128x256xbf16, #tpu.memory_space<vmem>>, vector<1x128x256xbf16>
    %1225 = vector.shape_cast %1224 : vector<1x128x256xbf16> to vector<128x256xbf16>
    %cst_398 = arith.constant dense<0.000000e+00> : vector<8x256xf32>
    %1226 = tpu.matmul %1223, %1225, %cst_398 {dimension_numbers = #tpu.dot_dimension_numbers<[1], [0], [0], [1], [0, 0, 1, 1], [], []>} : vector<8x128xbf16>, vector<128x256xbf16>, vector<8x256xf32> -> vector<8x256xf32>
    %1227 = vector.broadcast %1163 : vector<1x256xf32> to vector<8x256xf32>
    %1228 = arith.addf %1226, %1227 : vector<8x256xf32>
    %cst_399 = arith.constant dense<0.000000e+00> : vector<8xf32>
    %1229 = vector.multi_reduction <add>, %1228, %cst_399 [1] : vector<8x256xf32> to vector<8xf32>
    %1230 = vector.shape_cast %1229 : vector<8xf32> to vector<8x1xf32>
    %cst_400 = arith.constant 2.560000e+02 : f32
    %1231 = vector.broadcast %cst_400 : f32 to vector<8x1xf32>
    %1232 = arith.divf %1230, %1231 : vector<8x1xf32>
    %1233 = vector.broadcast %1232 : vector<8x1xf32> to vector<8x256xf32>
    %1234 = arith.subf %1228, %1233 : vector<8x256xf32>
    %1235 = arith.mulf %1234, %1234 : vector<8x256xf32>
    %cst_401 = arith.constant dense<0.000000e+00> : vector<8xf32>
    %1236 = vector.multi_reduction <add>, %1235, %cst_401 [1] : vector<8x256xf32> to vector<8xf32>
    %1237 = vector.shape_cast %1236 : vector<8xf32> to vector<8x1xf32>
    %cst_402 = arith.constant 2.560000e+02 : f32
    %1238 = vector.broadcast %cst_402 : f32 to vector<8x1xf32>
    %1239 = arith.divf %1237, %1238 : vector<8x1xf32>
    %cst_403 = arith.constant 9.99999974E-6 : f32
    %1240 = vector.broadcast %cst_403 : f32 to vector<8x1xf32>
    %1241 = arith.addf %1239, %1240 : vector<8x1xf32>
    %1242 = math.rsqrt %1241 : vector<8x1xf32>
    %1243 = vector.broadcast %1242 : vector<8x1xf32> to vector<8x256xf32>
    %1244 = arith.mulf %1234, %1243 : vector<8x256xf32>
    %1245 = vector.broadcast %1164 : vector<1x256xf32> to vector<8x256xf32>
    %1246 = arith.mulf %1244, %1245 : vector<8x256xf32>
    %1247 = vector.broadcast %1165 : vector<1x256xf32> to vector<8x256xf32>
    %1248 = arith.addf %1246, %1247 : vector<8x256xf32>
    %cst_404 = arith.constant 0.000000e+00 : f32
    %1249 = vector.broadcast %cst_404 : f32 to vector<8x256xf32>
    %1250 = arith.maximumf %1248, %1249 : vector<8x256xf32>
    %1251 = arith.truncf %1250 : vector<8x256xf32> to vector<8x256xbf16>
    %c9_405 = arith.constant 9 : index
    %c0_406 = arith.constant 0 : index
    %c0_407 = arith.constant 0 : index
    %1252 = vector.load %arg9[%c9_405, %c0_406, %c0_407] : memref<11x256x128xbf16, #tpu.memory_space<vmem>>, vector<1x256x128xbf16>
    %1253 = vector.shape_cast %1252 : vector<1x256x128xbf16> to vector<256x128xbf16>
    %cst_408 = arith.constant dense<0.000000e+00> : vector<8x128xf32>
    %1254 = tpu.matmul %1251, %1253, %cst_408 {dimension_numbers = #tpu.dot_dimension_numbers<[1], [0], [0], [1], [0, 0, 1, 1], [], []>} : vector<8x256xbf16>, vector<256x128xbf16>, vector<8x128xf32> -> vector<8x128xf32>
    %1255 = vector.broadcast %1166 : vector<1x128xf32> to vector<8x128xf32>
    %1256 = arith.addf %1254, %1255 : vector<8x128xf32>
    %1257 = arith.addf %1158, %1256 : vector<8x128xf32>
    %cst_409 = arith.constant dense<0.000000e+00> : vector<8xf32>
    %1258 = vector.multi_reduction <add>, %1257, %cst_409 [1] : vector<8x128xf32> to vector<8xf32>
    %1259 = vector.shape_cast %1258 : vector<8xf32> to vector<8x1xf32>
    %cst_410 = arith.constant 1.280000e+02 : f32
    %1260 = vector.broadcast %cst_410 : f32 to vector<8x1xf32>
    %1261 = arith.divf %1259, %1260 : vector<8x1xf32>
    %1262 = vector.broadcast %1261 : vector<8x1xf32> to vector<8x128xf32>
    %1263 = arith.subf %1257, %1262 : vector<8x128xf32>
    %1264 = arith.mulf %1263, %1263 : vector<8x128xf32>
    %cst_411 = arith.constant dense<0.000000e+00> : vector<8xf32>
    %1265 = vector.multi_reduction <add>, %1264, %cst_411 [1] : vector<8x128xf32> to vector<8xf32>
    %1266 = vector.shape_cast %1265 : vector<8xf32> to vector<8x1xf32>
    %cst_412 = arith.constant 1.280000e+02 : f32
    %1267 = vector.broadcast %cst_412 : f32 to vector<8x1xf32>
    %1268 = arith.divf %1266, %1267 : vector<8x1xf32>
    %cst_413 = arith.constant 9.99999974E-6 : f32
    %1269 = vector.broadcast %cst_413 : f32 to vector<8x1xf32>
    %1270 = arith.addf %1268, %1269 : vector<8x1xf32>
    %1271 = math.rsqrt %1270 : vector<8x1xf32>
    %1272 = vector.broadcast %1271 : vector<8x1xf32> to vector<8x128xf32>
    %1273 = arith.mulf %1263, %1272 : vector<8x128xf32>
    %1274 = vector.broadcast %9 : vector<1x128xf32> to vector<8x128xf32>
    %1275 = arith.mulf %1273, %1274 : vector<8x128xf32>
    %1276 = vector.broadcast %10 : vector<1x128xf32> to vector<8x128xf32>
    %1277 = arith.addf %1275, %1276 : vector<8x128xf32>
    %cst_414 = arith.constant 0.000000e+00 : f32
    %1278 = vector.broadcast %cst_414 : f32 to vector<8x128xf32>
    %1279 = arith.cmpf oge, %1277, %1278 : vector<8x128xf32>
    %1280 = vector.broadcast %1 : f32 to vector<8x128xf32>
    %1281 = arith.mulf %1280, %1277 : vector<8x128xf32>
    %1282 = arith.select %1279, %1277, %1281 : vector<8x128xi1>, vector<8x128xf32>
    %c10_415 = arith.constant 10 : index
    %c0_416 = arith.constant 0 : index
    %c0_417 = arith.constant 0 : index
    %1283 = vector.load %arg10[%c10_415, %c0_416, %c0_417] : memref<11x8x256xf32, #tpu.memory_space<vmem>>, vector<1x8x256xf32>
    %1284 = vector.shape_cast %1283 : vector<1x8x256xf32> to vector<8x256xf32>
    %1285 = vector.extract_strided_slice %1284 {offsets = [0, 0], sizes = [1, 128], strides = [1, 1]} : vector<8x256xf32> to vector<1x128xf32>
    %1286 = vector.extract_strided_slice %1284 {offsets = [1, 0], sizes = [1, 128], strides = [1, 1]} : vector<8x256xf32> to vector<1x128xf32>
    %1287 = vector.extract_strided_slice %1284 {offsets = [2, 0], sizes = [1, 256], strides = [1, 1]} : vector<8x256xf32> to vector<1x256xf32>
    %1288 = vector.extract_strided_slice %1284 {offsets = [3, 0], sizes = [1, 256], strides = [1, 1]} : vector<8x256xf32> to vector<1x256xf32>
    %1289 = vector.extract_strided_slice %1284 {offsets = [4, 0], sizes = [1, 256], strides = [1, 1]} : vector<8x256xf32> to vector<1x256xf32>
    %1290 = vector.extract_strided_slice %1284 {offsets = [5, 0], sizes = [1, 128], strides = [1, 1]} : vector<8x256xf32> to vector<1x128xf32>
    %c12 = arith.constant 12 : index
    %1291 = memref.load %arg0[%c12] : memref<13xf32, #tpu.memory_space<smem>>
    %cst_418 = arith.constant dense<0.000000e+00> : vector<8xf32>
    %1292 = vector.multi_reduction <add>, %1282, %cst_418 [1] : vector<8x128xf32> to vector<8xf32>
    %1293 = vector.shape_cast %1292 : vector<8xf32> to vector<8x1xf32>
    %cst_419 = arith.constant 1.280000e+02 : f32
    %1294 = vector.broadcast %cst_419 : f32 to vector<8x1xf32>
    %1295 = arith.divf %1293, %1294 : vector<8x1xf32>
    %1296 = vector.broadcast %1295 : vector<8x1xf32> to vector<8x128xf32>
    %1297 = arith.subf %1282, %1296 : vector<8x128xf32>
    %1298 = arith.mulf %1297, %1297 : vector<8x128xf32>
    %cst_420 = arith.constant dense<0.000000e+00> : vector<8xf32>
    %1299 = vector.multi_reduction <add>, %1298, %cst_420 [1] : vector<8x128xf32> to vector<8xf32>
    %1300 = vector.shape_cast %1299 : vector<8xf32> to vector<8x1xf32>
    %cst_421 = arith.constant 1.280000e+02 : f32
    %1301 = vector.broadcast %cst_421 : f32 to vector<8x1xf32>
    %1302 = arith.divf %1300, %1301 : vector<8x1xf32>
    %cst_422 = arith.constant 9.99999974E-6 : f32
    %1303 = vector.broadcast %cst_422 : f32 to vector<8x1xf32>
    %1304 = arith.addf %1302, %1303 : vector<8x1xf32>
    %1305 = math.rsqrt %1304 : vector<8x1xf32>
    %1306 = vector.broadcast %1305 : vector<8x1xf32> to vector<8x128xf32>
    %1307 = arith.mulf %1297, %1306 : vector<8x128xf32>
    %1308 = vector.broadcast %1285 : vector<1x128xf32> to vector<8x128xf32>
    %1309 = arith.mulf %1307, %1308 : vector<8x128xf32>
    %1310 = vector.broadcast %1286 : vector<1x128xf32> to vector<8x128xf32>
    %1311 = arith.addf %1309, %1310 : vector<8x128xf32>
    %cst_423 = arith.constant 0.000000e+00 : f32
    %1312 = vector.broadcast %cst_423 : f32 to vector<8x128xf32>
    %1313 = arith.cmpf oge, %1311, %1312 : vector<8x128xf32>
    %1314 = vector.broadcast %1291 : f32 to vector<8x128xf32>
    %1315 = arith.mulf %1314, %1311 : vector<8x128xf32>
    %1316 = arith.select %1313, %1311, %1315 : vector<8x128xi1>, vector<8x128xf32>
    %cst_424 = arith.constant 0.000000e+00 : f32
    %1317 = vector.broadcast %cst_424 : f32 to vector<8x128xf32>
    %1318 = arith.maximumf %1316, %1317 : vector<8x128xf32>
    %cst_425 = arith.constant 1.000000e-07 : f32
    %1319 = vector.broadcast %cst_425 : f32 to vector<8x128xf32>
    %1320 = arith.addf %1318, %1319 : vector<8x128xf32>
    %1321 = vector.shape_cast %1320 : vector<8x128xf32> to vector<1x8x128xf32>
    %1322 = vector.broadcast %1321 : vector<1x8x128xf32> to vector<8x8x128xf32>
    %1323 = arith.addf %1322, %38 : vector<8x8x128xf32>
    %cst_426 = arith.constant dense<0xFF800000> : vector<8x128xf32>
    %1324 = vector.multi_reduction <maximumf>, %1323, %cst_426 [1] : vector<8x8x128xf32> to vector<8x128xf32>
    %1325 = vector.broadcast %1321 : vector<1x8x128xf32> to vector<8x8x128xf32>
    %1326 = arith.subf %38, %1325 : vector<8x8x128xf32>
    %cst_427 = arith.constant dense<0xFF800000> : vector<8x128xf32>
    %1327 = vector.multi_reduction <maximumf>, %1326, %cst_427 [1] : vector<8x8x128xf32> to vector<8x128xf32>
    %cst_428 = arith.constant 0.000000e+00 : f32
    %1328 = vector.broadcast %cst_428 : f32 to vector<8x128xf32>
    %1329 = arith.subf %1328, %1327 : vector<8x128xf32>
    %1330 = arith.truncf %1320 : vector<8x128xf32> to vector<8x128xbf16>
    %cst_429 = arith.constant dense<0.000000e+00> : vector<8x128xf32>
    %1331 = tpu.matmul %37, %1330, %cst_429 {dimension_numbers = #tpu.dot_dimension_numbers<[1], [0], [0], [1], [0, 0, 1, 1], [], []>} : vector<8x8xbf16>, vector<8x128xbf16>, vector<8x128xf32> -> vector<8x128xf32>
    %1332 = vector.broadcast %39 : vector<8x1xf32> to vector<8x128xf32>
    %1333 = arith.mulf %1331, %1332 : vector<8x128xf32>
    %cst_430 = arith.constant 0.000000e+00 : f32
    %1334 = vector.shape_cast %42 : vector<8x1xi1> to vector<8x1xi1>
    %1335 = vector.broadcast %1334 : vector<8x1xi1> to vector<8x128xi1>
    %1336 = vector.broadcast %cst_430 : f32 to vector<8x128xf32>
    %1337 = arith.select %1335, %1324, %1336 : vector<8x128xi1>, vector<8x128xf32>
    %cst_431 = arith.constant 0.000000e+00 : f32
    %1338 = vector.shape_cast %42 : vector<8x1xi1> to vector<8x1xi1>
    %1339 = vector.broadcast %1338 : vector<8x1xi1> to vector<8x128xi1>
    %1340 = vector.broadcast %cst_431 : f32 to vector<8x128xf32>
    %1341 = arith.select %1339, %1329, %1340 : vector<8x128xi1>, vector<8x128xf32>
    %1342 = arith.addf %1337, %1341 : vector<8x128xf32>
    %1343 = arith.addf %1342, %1333 : vector<8x128xf32>
    %cst_432 = arith.constant 0.333333343 : f32
    %1344 = vector.broadcast %cst_432 : f32 to vector<8x128xf32>
    %1345 = arith.mulf %1343, %1344 : vector<8x128xf32>
    %1346 = arith.addf %1316, %1345 : vector<8x128xf32>
    %1347 = arith.truncf %1346 : vector<8x128xf32> to vector<8x128xbf16>
    %c10_433 = arith.constant 10 : index
    %c0_434 = arith.constant 0 : index
    %c0_435 = arith.constant 0 : index
    %1348 = vector.load %arg8[%c10_433, %c0_434, %c0_435] : memref<11x128x256xbf16, #tpu.memory_space<vmem>>, vector<1x128x256xbf16>
    %1349 = vector.shape_cast %1348 : vector<1x128x256xbf16> to vector<128x256xbf16>
    %cst_436 = arith.constant dense<0.000000e+00> : vector<8x256xf32>
    %1350 = tpu.matmul %1347, %1349, %cst_436 {dimension_numbers = #tpu.dot_dimension_numbers<[1], [0], [0], [1], [0, 0, 1, 1], [], []>} : vector<8x128xbf16>, vector<128x256xbf16>, vector<8x256xf32> -> vector<8x256xf32>
    %1351 = vector.broadcast %1287 : vector<1x256xf32> to vector<8x256xf32>
    %1352 = arith.addf %1350, %1351 : vector<8x256xf32>
    %cst_437 = arith.constant dense<0.000000e+00> : vector<8xf32>
    %1353 = vector.multi_reduction <add>, %1352, %cst_437 [1] : vector<8x256xf32> to vector<8xf32>
    %1354 = vector.shape_cast %1353 : vector<8xf32> to vector<8x1xf32>
    %cst_438 = arith.constant 2.560000e+02 : f32
    %1355 = vector.broadcast %cst_438 : f32 to vector<8x1xf32>
    %1356 = arith.divf %1354, %1355 : vector<8x1xf32>
    %1357 = vector.broadcast %1356 : vector<8x1xf32> to vector<8x256xf32>
    %1358 = arith.subf %1352, %1357 : vector<8x256xf32>
    %1359 = arith.mulf %1358, %1358 : vector<8x256xf32>
    %cst_439 = arith.constant dense<0.000000e+00> : vector<8xf32>
    %1360 = vector.multi_reduction <add>, %1359, %cst_439 [1] : vector<8x256xf32> to vector<8xf32>
    %1361 = vector.shape_cast %1360 : vector<8xf32> to vector<8x1xf32>
    %cst_440 = arith.constant 2.560000e+02 : f32
    %1362 = vector.broadcast %cst_440 : f32 to vector<8x1xf32>
    %1363 = arith.divf %1361, %1362 : vector<8x1xf32>
    %cst_441 = arith.constant 9.99999974E-6 : f32
    %1364 = vector.broadcast %cst_441 : f32 to vector<8x1xf32>
    %1365 = arith.addf %1363, %1364 : vector<8x1xf32>
    %1366 = math.rsqrt %1365 : vector<8x1xf32>
    %1367 = vector.broadcast %1366 : vector<8x1xf32> to vector<8x256xf32>
    %1368 = arith.mulf %1358, %1367 : vector<8x256xf32>
    %1369 = vector.broadcast %1288 : vector<1x256xf32> to vector<8x256xf32>
    %1370 = arith.mulf %1368, %1369 : vector<8x256xf32>
    %1371 = vector.broadcast %1289 : vector<1x256xf32> to vector<8x256xf32>
    %1372 = arith.addf %1370, %1371 : vector<8x256xf32>
    %cst_442 = arith.constant 0.000000e+00 : f32
    %1373 = vector.broadcast %cst_442 : f32 to vector<8x256xf32>
    %1374 = arith.maximumf %1372, %1373 : vector<8x256xf32>
    %1375 = arith.truncf %1374 : vector<8x256xf32> to vector<8x256xbf16>
    %c10_443 = arith.constant 10 : index
    %c0_444 = arith.constant 0 : index
    %c0_445 = arith.constant 0 : index
    %1376 = vector.load %arg9[%c10_443, %c0_444, %c0_445] : memref<11x256x128xbf16, #tpu.memory_space<vmem>>, vector<1x256x128xbf16>
    %1377 = vector.shape_cast %1376 : vector<1x256x128xbf16> to vector<256x128xbf16>
    %cst_446 = arith.constant dense<0.000000e+00> : vector<8x128xf32>
    %1378 = tpu.matmul %1375, %1377, %cst_446 {dimension_numbers = #tpu.dot_dimension_numbers<[1], [0], [0], [1], [0, 0, 1, 1], [], []>} : vector<8x256xbf16>, vector<256x128xbf16>, vector<8x128xf32> -> vector<8x128xf32>
    %1379 = vector.broadcast %1290 : vector<1x128xf32> to vector<8x128xf32>
    %1380 = arith.addf %1378, %1379 : vector<8x128xf32>
    %1381 = arith.addf %1282, %1380 : vector<8x128xf32>
    %cst_447 = arith.constant dense<0.000000e+00> : vector<8xf32>
    %1382 = vector.multi_reduction <add>, %1381, %cst_447 [1] : vector<8x128xf32> to vector<8xf32>
    %1383 = vector.shape_cast %1382 : vector<8xf32> to vector<8x1xf32>
    %cst_448 = arith.constant 1.280000e+02 : f32
    %1384 = vector.broadcast %cst_448 : f32 to vector<8x1xf32>
    %1385 = arith.divf %1383, %1384 : vector<8x1xf32>
    %1386 = vector.broadcast %1385 : vector<8x1xf32> to vector<8x128xf32>
    %1387 = arith.subf %1381, %1386 : vector<8x128xf32>
    %1388 = arith.mulf %1387, %1387 : vector<8x128xf32>
    %cst_449 = arith.constant dense<0.000000e+00> : vector<8xf32>
    %1389 = vector.multi_reduction <add>, %1388, %cst_449 [1] : vector<8x128xf32> to vector<8xf32>
    %1390 = vector.shape_cast %1389 : vector<8xf32> to vector<8x1xf32>
    %cst_450 = arith.constant 1.280000e+02 : f32
    %1391 = vector.broadcast %cst_450 : f32 to vector<8x1xf32>
    %1392 = arith.divf %1390, %1391 : vector<8x1xf32>
    %cst_451 = arith.constant 9.99999974E-6 : f32
    %1393 = vector.broadcast %cst_451 : f32 to vector<8x1xf32>
    %1394 = arith.addf %1392, %1393 : vector<8x1xf32>
    %1395 = math.rsqrt %1394 : vector<8x1xf32>
    %1396 = vector.broadcast %1395 : vector<8x1xf32> to vector<8x128xf32>
    %1397 = arith.mulf %1387, %1396 : vector<8x128xf32>
    %1398 = vector.broadcast %9 : vector<1x128xf32> to vector<8x128xf32>
    %1399 = arith.mulf %1397, %1398 : vector<8x128xf32>
    %1400 = vector.broadcast %10 : vector<1x128xf32> to vector<8x128xf32>
    %1401 = arith.addf %1399, %1400 : vector<8x128xf32>
    %cst_452 = arith.constant 0.000000e+00 : f32
    %1402 = vector.broadcast %cst_452 : f32 to vector<8x128xf32>
    %1403 = arith.cmpf oge, %1401, %1402 : vector<8x128xf32>
    %1404 = vector.broadcast %1 : f32 to vector<8x128xf32>
    %1405 = arith.mulf %1404, %1401 : vector<8x128xf32>
    %1406 = arith.select %1403, %1401, %1405 : vector<8x128xi1>, vector<8x128xf32>
    %c0_453 = arith.constant 0 : index
    %c0_454 = arith.constant 0 : index
    %1407 = vector.load %arg11[%c0_453, %c0_454] : memref<8x128xf32, #tpu.memory_space<vmem>>, vector<8x128xf32>
    tpu.vector_store %arg11[%c0_453, %c0_454], %1406 {strides = array<i32>} : memref<8x128xf32, #tpu.memory_space<vmem>>, vector<8x128xf32>,
    return
  }
}

</mosaic_0001>

<bundles_post_ra>
// kernel: mm_kg_encoder_forward.1
= control target key start
LH: loop header
LB: loop body
LE: loop exit
PB: predicated region body
PF: predicated region fallthrough
CT: control target
= control target key end

     0   :  { %16 = vsyncpa [#allocation5], 0  ;;  %s9874_s0 = inlined_call_operand.vmem [shape: f32[13], index: 0, kind: input, shape index: {}]   ;;  %s9875_s1 = inlined_call_operand.vmem [shape: f32[8,32], index: 1, kind: input, shape index: {}]   ;;  %s9876_s2 = inlined_call_operand.hbm [shape: bf16[8,8], index: 2, kind: input, shape index: {}]   ;;  %s9877_s3 = inlined_call_operand.hbm [shape: f32[8,8,128], index: 3, kind: input, shape index: {}]   ;;  %s9878_s4 = inlined_call_operand.vmem [shape: f32[8,2], index: 4, kind: input, shape index: {}]   ;;  %s9879_s5 = inlined_call_operand.hbm [shape: bf16[32,128], index: 5, kind: input, shape index: {}]   ;;  %s9880_s6 = inlined_call_operand.hbm [shape: bf16[128,128], index: 6, kind: input, shape index: {}]   ;;  %s9881_s7 = inlined_call_operand.hbm [shape: f32[8,128], index: 7, kind: input, shape index: {}]   ;;  %s9882_s8 = inlined_call_operand.hbm [shape: bf16[11,128,256], index: 8, kind: input, shape index: {}]   ;;  %s9883_s9 = inlined_call_operand.hbm [shape: bf16[11,256,128], index: 9, kind: input, shape index: {}]   ;;  %s9884_s10 = inlined_call_operand.hbm [shape: f32[11,8,256], index: 10, kind: input, shape index: {}]   ;;  %s9885_s11 = inlined_call_operand.hbm [shape: f32[8,128], index: 11, kind: output, shape index: {}]  }
   0x1   :  { %17 = vsyncpa [#allocation3], 0 }
   0x2   :  { %18 = vsyncpa [#allocation8], 0 }
   0x3   :  { %19 = vsyncpa [#allocation11], 0 }
   0x4   :  { %20 = vsyncpa [#allocation14], 0 }
   0x5   :  { %21 = vsyncpa [#allocation17], 0  ;;  %s49_s19 = sshll.u32 %s9877_s3, 4  ;;  %s50_s19 = int_to_ptr.hbm [resolvable:$true] %s49_s19 }
   0x6   :  { %22 = vsyncpa [#allocation4], 0  ;;  %s8730_s20 = smov [#allocation7]   ;;  %s8731_s22 = smov 128  }
   0x7   :  { %s51_s21 = sshll.u32 %s8730_s20, 4  ;;  %s8732_s23 = smov 8   ;;  %s52_s21 = int_to_ptr.vmem [resolvable:$true] %s51_s21 }
   0x8   :  { %57 = dma.hbm_to_vmem [thread:$0]  %s50_s19, 1024, %s52_s21, [#allocation8], %s8731_s22, %s8731_s22, %s8732_s23  }
   0x9   :  { %s77_s26 = sshll.u32 %s9880_s6, 4  ;;  %s8733_s27 = smov [#allocation10]   ;;  %s78_s26 = int_to_ptr.hbm [resolvable:$true] %s77_s26 }
   0xa   :  { %s79_s28 = sshll.u32 %s8733_s27, 4  ;;  %s101_s12 = sshll.u32 %s9882_s8, 4  ;;  %s80_s28 = int_to_ptr.vmem [resolvable:$true] %s79_s28  ;;  %s102_s12 = int_to_ptr.hbm [resolvable:$true] %s101_s12 }
   0xb   :  { %s8734_s3 = smov 64   ;;  %s8735_s13 = smov 4  }
   0xc   :  { %85 = dma.hbm_to_vmem [thread:$0]  %s78_s26, 1024, %s80_s28, [#allocation11], %s8734_s3, %s8734_s3, %s8735_s13  }
   0xd   :  { %s28_s16 = sshll.u32 %s9874_s0, 4  ;;  %s8736_s6 = smov [#allocation13]   ;;  %s29_s16 = int_to_ptr.vmem [resolvable:$true] %s28_s16 }
   0xe   :  { %s103_s17 = sshll.u32 %s8736_s6, 4  ;;  %s8737_s18 = smov [#allocation2]   ;;  %s104_s17 = int_to_ptr.vmem [resolvable:$true] %s103_s17 }
   0xf   :  { %109 = dma.hbm_to_vmem [thread:$0]  %s102_s12, 22528, %s104_s17, [#allocation14], %s8731_s22, %s8731_s22, %s8732_s23  }
  0x10   :  { %31 = dma.vmem_to_smem %s29_s16, 16, %s8737_s18, [#allocation5]  }
  0x11   :  { %s39_s20 = sshll.u32 %s9876_s2, 4  ;;  %s8738_s21 = smov [#allocation6]   ;;  %s40_s20 = int_to_ptr.hbm [resolvable:$true] %s39_s20 }
  0x12   :  { %s41_s24 = sshll.u32 %s8738_s21, 4  ;;  %s64_s27 = sshll.u32 %s9879_s5, 4  ;;  %s42_s24 = int_to_ptr.vmem [resolvable:$true] %s41_s24  ;;  %s65_s27 = int_to_ptr.hbm [resolvable:$true] %s64_s27 }
  0x13   :  { %44 = dma.hbm_to_vmem [thread:$0]  %s40_s20, 64, %s42_s24, [#allocation3]  }
  0x14   :  { %s8739_s0 = smov [#allocation9]   ;;  %s91_s23 = sshll.u32 %s9881_s7, 4  ;;  %s92_s23 = int_to_ptr.hbm [resolvable:$true] %s91_s23 }
  0x15   :  { %s66_s28 = sshll.u32 %s8739_s0, 4  ;;  %s114_s12 = sshll.u32 %s9883_s9, 4  ;;  %s67_s28 = int_to_ptr.vmem [resolvable:$true] %s66_s28  ;;  %s115_s12 = int_to_ptr.hbm [resolvable:$true] %s114_s12 }
  0x16   :  { %72 = dma.hbm_to_vmem [thread:$0]  %s65_s27, 256, %s67_s28, [#allocation8], %s8734_s3, %s8734_s3, %s8735_s13  }
  0x17   :  { %s8740_s14 = smov [#allocation12]   ;;  %s8741_s15 = smov [#allocation15]  }
  0x18   :  { %s93_s5 = sshll.u32 %s8740_s14, 4  ;;  %s116_s16 = sshll.u32 %s8741_s15, 4  ;;  %s94_s5 = int_to_ptr.vmem [resolvable:$true] %s93_s5  ;;  %s117_s16 = int_to_ptr.vmem [resolvable:$true] %s116_s16 }
  0x19   :  { %96 = dma.hbm_to_vmem [thread:$0]  %s92_s23, 128, %s94_s5, [#allocation11]  }
  0x1a   :  { %s127_s7 = sshll.u32 %s9884_s10, 4  ;;  %s8742_s18 = smov [#allocation16]   ;;  %s128_s7 = int_to_ptr.hbm [resolvable:$true] %s127_s7 }
  0x1b   :  { %122 = dma.hbm_to_vmem [thread:$0]  %s115_s12, 22528, %s117_s16, [#allocation14], %s8734_s3, %s8734_s3, %s8735_s13  }
  0x1c   :  { %s129_s8 = sshll.u32 %s8742_s18, 4  ;;  %s8743_s9 = smov 256   ;;  %s130_s8 = int_to_ptr.vmem [resolvable:$true] %s129_s8 }
  0x1d   :  { %s8744_s19 = smov 16  }
  0x1e   :  { %135 = dma.hbm_to_vmem [thread:$0]  %s128_s7, 2816, %s130_s8, [#allocation17], %s8743_s9, %s8743_s9, %s8744_s19  }
  0x1f   :  { %8716 = dma.done.wait [#allocation5], 16  }
  0x20   :  { %8717 = vsyncadd [#allocation5], 4294967280 }
  0x21   :  { %8718 = dma.done.wait [#allocation3], 64  }
  0x22   :  { %8719 = vsyncadd [#allocation3], 4294967232 }
  0x23   :  { %8720 = dma.done.wait [#allocation8], 1280  }
  0x24   :  { %8721 = vsyncadd [#allocation8], 4294966016 }
  0x25   :  { %8722 = dma.done.wait [#allocation11], 1152  }
  0x26   :  { %8723 = vsyncadd [#allocation11], 4294966144 }
  0x27   :  { %8724 = dma.done.wait [#allocation14], 45056  }
  0x28   :  { %8725 = vsyncadd [#allocation14], 4294922240 }
  0x29   :  { %8726 = dma.done.wait [#allocation17], 2816  }
  0x2a   :  { %8727 = vsyncadd [#allocation17], 4294964480 }
  0x2b   :  { %172 = sfence }
  0x2c   :  { %v7970_v0 = vld [vmem:[#allocation9 + $0x8] sm:$0xff]  ;;  %v7969_v2 = vld [vmem:[#allocation9] sm:$0xff]  ;;  %vm203_vm0 = vcmask 261120   ;;  %v7976_v6 = vld [vmem:[#allocation10 + $0x28] sm:$0xff]  ;;  %v8745_v41 = vmov 128.0   ;;  %v8746_v43 = vmov 1  }
  0x2d   :  { %v7978_v1 = vld [vmem:[#allocation10 + $0x38] sm:$0xff]  ;;  %213 = vmatpush.bf16.msra.mxu0 %v7970_v0  ;;  %v176_v3 = vld [vmem:[%s9875_s1] sm:$0xff]  ;;  %v7975_v7 = vld [vmem:[#allocation10 + $0x20] sm:$0xff]  ;;  %s174_s1 = sld [smem:[#allocation2]]  ;;  %8351 = vset.pattern.permute.xlu1 %v8746_v43  ;;  %v8747_v44 = vmov 0   ;;  %vm498_vm11 = vcmask 1043456  }
  0x2e   :  { %290 = vmatpush.bf16.msra.mxu1 %v7978_v1  ;;  %v7977_v4 = vld [vmem:[#allocation10 + $0x30] sm:$0xff]  ;;  %v185_v5 = vpack.c.bf16 %v176_v3, %v176_v3  ;;  %v7974_v8 = vld [vmem:[#allocation10 + $0x18] sm:$0xff]  ;;  %v7972_v10 = vld [vmem:[#allocation10 + $0x8] sm:$0xff]  ;;  %8353 = vset.pattern.permute.xlu0 %v8746_v43  ;;  %vm494_vm12 = vcmask 64512   ;;  %vm534_vm13 = vcmask 1041409   ;;  %vm536_vm14 = vcmask 1042434  }
  0x2f   :  { %v7973_v9 = vld [vmem:[#allocation10 + $0x10] sm:$0xff]  ;;  %v7971_v11 = vld [vmem:[#allocation10] sm:$0xff]  ;;  %v6599_v59 = vld [vmem:[#allocation13 + $0x70] sm:$0xf]  ;;  %vm538_vm15 = vcmask 1043459   ;;  %s6497_s21 = sld [smem:[#allocation2 + $0x1]] }
  0x30   :  { %v8354_v12 = vld [vmem:[#allocation12] ss:$0 sm:$0xff]  ;;  %v182_v20 = vld [vmem:[#allocation12 + $0x5] sm:$0x1]  ;;  %v8355_v28 = vld [vmem:[#allocation12 + $0x1] ss:$0 sm:$0xff] }
  0x31   :  { %214 = vmatpush.bf16.msra.mxu0 %v7969_v2  ;;  %v305_v21 = vadd.f32 1e-05, %v182_v20  ;;  %v8356_v30 = vld [vmem:[#allocation12 + $0x4] ss:$0 sm:$0xff]  ;;  %v8357_v35 = vld [vmem:[#allocation12 + $0x2] ss:$0 sm:$0xff] }
  0x32   :  { %291 = vmatpush.bf16.msra.mxu1 %v7977_v4  ;;  %v8358_v37 = vld [vmem:[#allocation12 + $0x3] ss:$0 sm:$0xff]  ;;  %v331_v42 = vld [vmem:[%s9878_s4] sm:$0xff]  ;;  %v6591_v63 = vld [vmem:[#allocation13 + $0x60] sm:$0xf]  ;;  %s6539_s4 = sld [smem:[#allocation2 + $0x2]] }
  0x33   :  { %v221_v14 = vstv %s174_s1  ;;  %8361 = vrsqrt.f32 %v305_v21  ;;  %vm312_vm2 = vweird.f32 %v305_v21  ;;  %vm332_vm5 = vcmp.gt.f32.partialorder %v331_v42, 0.5  ;;  %v7994_v60 = vld [vmem:[#allocation13 + $0x74] sm:$0xf0]  ;;  %v7992_v1 = vld [vmem:[#allocation13 + $0x64] sm:$0xf0]  ;;  %s8988_s24 = sld [smem:[#allocation2 + $0x3]] }
  0x34   :  { %6506 = vmatmul.msk.bf16.vlgmr.msra.gmra.mxu0 %vm203_vm0, %v185_v5  ;;  %8363 = vrcp.f32 %v8745_v41  ;;  %v521_v45 = vsel %vm332_vm5, 1, %v8747_v44  ;;  %v6600_v62 = vor.u32 %v7994_v60, %v6599_v59  ;;  %v6592_v2 = vor.u32 %v7992_v1, %v6591_v63  ;;  %v6583_v4 = vld [vmem:[#allocation13 + $0x50] sm:$0xf]  ;;  %v7990_v5 = vld [vmem:[#allocation13 + $0x54] sm:$0xf0]  ;;  %v8888_v59 = vld [vmem:[#allocation7 + $0x18] sm:$0xff] }
  0x35   :  { %523 = vperm.xlu1 %8351, %v521_v45   ;;  %v7989_v41 = vld [vmem:[#allocation13 + $0x54] sm:$0xf]  ;;  %v6577_v45 = vld [vmem:[#allocation13 + $0x48] sm:$0xf0]  ;;  %vm540_vm0 = vcmask 1044484   ;;  %s9060_s25 = sld [smem:[#allocation2 + $0x4]] }
  0x36   :  { %292 = vmatpush.bf16.msra.mxu1 %v7976_v6  ;;  %670 = vmatpush.bf16.msra.mxu3 %v6600_v62  ;;  %v8896_v63 = vld [vmem:[#allocation7 + $0x20] sm:$0xff]  ;;  %s9174_s26 = sld [smem:[#allocation2 + $0x5]]  ;;  %s8749_s30 = smov [#allocation18]  }
  0x37   :  { %s9246_s27 = sld [smem:[#allocation2 + $0x6]]  ;;  %s6480_s12 = sshll.u32 %s8749_s30, 4  ;;  %s6481_s12 = int_to_ptr.vmem [resolvable:$true] %s6480_s12 }
  0x38   :  { %s9360_s0 = sld [smem:[#allocation2 + $0x7]]  ;;  %s6482_s15 = sshll.u32 %s9885_s11, 4  ;;  %s6483_s15 = int_to_ptr.hbm [resolvable:$true] %s6482_s15 }
  0x39   :  { %v8362_v22 = vpop.eup %8361  ;;  %s9432_s28 = sld [smem:[#allocation2 + $0x8]] }
  0x3a   :  { %293 = vmatpush.bf16.msra.mxu1 %v7975_v7  ;;  %v307_v23 = vmul.f32 %v8362_v22, %v305_v21  ;;  %vm313_vm3 = vweird.f32 %v8362_v22  ;;  %v8364_v46 = vpop.eup %8363  ;;  %671 = vmatpush.bf16.msra.mxu3 %v6592_v2  ;;  %v6584_v7 = vor.u32 %v7990_v5, %v6583_v4  ;;  %s9546_s29 = sld [smem:[#allocation2 + $0x9]] }
  0x3b   :  { %vm314_vm4 = vmor %vm312_vm2, %vm313_vm3  ;;  %v339_v47 = vmul.f32 128.0, %v8364_v46  ;;  %vm343_vm6 = vweird.f32 %v8364_v46  ;;  %vm544_vm2 = vcmask 1046534   ;;  %vm546_vm3 = vcmask 1047559   ;;  %s9618_s22 = sld [smem:[#allocation2 + $0xa]] }
  0x3c   :  { %v308_v24 = vmul.f32 %v8362_v22, %v307_v23  ;;  %v6559_v23 = vld [vmem:[#allocation13 + $0x20] sm:$0xf]  ;;  %s9732_s23 = sld [smem:[#allocation2 + $0xb]] }
  0x3d   :  { %v340_v48 = vsub.f32 1.0, %v339_v47  ;;  %8352 = vset.pattern.permute.xlu1 %v8747_v44  ;;  %v7987_v44 = vld [vmem:[#allocation13 + $0x44] sm:$0xf]  ;;  %v7985_v47 = vld [vmem:[#allocation13 + $0x34] sm:$0xf]  ;;  %s9804_s2 = sld [smem:[#allocation2 + $0xc]] }
  0x3e   :  { %294 = vmatpush.bf16.msra.mxu1 %v7974_v8  ;;  %v309_v25 = vmul.f32 0.5, %v308_v24  ;;  %517 = vperm.xlu1 %8352, %v331_v42   ;;  %v8860_v8 = vld [vmem:[#allocation16] sm:$0xff]  ;;  %v7984_v24 = vld [vmem:[#allocation13 + $0x24] sm:$0xf0]  ;;  %v6585_v42 = vld [vmem:[#allocation13 + $0x58] sm:$0xf0] }
  0x3f   :  { %v341_v49 = vmul.f32 %v8364_v46, %v340_v48  ;;  %672 = vmatpush.bf16.msra.mxu3 %v6584_v7  ;;  %v6588_v43 = vor.u32 %v7989_v41, %v6585_v42  ;;  %v6569_v48 = vld [vmem:[#allocation13 + $0x38] sm:$0xf0] }
  0x40   :  { %v310_v26 = vsub.f32 1.5, %v309_v25 }
  0x41   :  { %v342_v50 = vadd.f32 %v8364_v46, %v341_v49  ;;  %v6572_v49 = vor.u32 %v7985_v47, %v6569_v48 }
  0x42   :  { %295 = vmatpush.bf16.msra.mxu1 %v7973_v9  ;;  %v311_v27 = vmul.f32 %v8362_v22, %v310_v26 }
  0x43   :  { %v8855_v51 = vsel %vm343_vm6, %v8364_v46, %v342_v50  ;;  %v6580_v46 = vor.u32 %v7987_v44, %v6577_v45  ;;  %v8876_v50 = vld [vmem:[#allocation7] sm:$0xff] }
  0x44   :  { %v315_v29 = vsel %vm314_vm4, %v8362_v22, %v311_v27  ;;  %v368_v22 = vstv %s6539_s4  ;;  %v6560_v27 = vor.u32 %v7984_v24, %v6559_v23 }
  0x45   :  { %v316_v33 = vperm.slane %v315_v29, 0 }
  0x46   :  { %296 = vmatpush.bf16.msra.mxu1 %v7972_v10  ;;  %v6575_v10 = vld [vmem:[#allocation13 + $0x40] sm:$0xf] }
  0x4a   :  { %297 = vmatpush.bf16.msra.mxu1 %v7971_v11  ;;  %v7988_v11 = vld [vmem:[#allocation13 + $0x44] sm:$0xf0] }
  0xb1   :  { %v216_v13 = vpop.f32.mrf.mxu0 }
  0xb2   :  { %v217_v15 = vadd.f32 %v8354_v12, %v216_v13  ;;  %v363_v13 = vperm.slane %v8860_v8, 0 }
  0xb4   :  { %v222_v16 = vmul.f32 %v221_v14, %v217_v15  ;;  %vm220_vm1 = vcmp.ge.f32.partialorder %v217_v15, 0.0  ;;  %v6576_v14 = vor.u32 %v7988_v11, %v6575_v10  ;;  %v8904_v10 = vld [vmem:[#allocation7 + $0x30] sm:$0xff] }
  0xb6   :  { %v223_v17 = vsel %vm220_vm1, %v217_v15, %v222_v16  ;;  %v6567_v16 = vld [vmem:[#allocation13 + $0x30] sm:$0xf]  ;;  %673 = vmatpush.bf16.msra.mxu3 %v6576_v14  ;;  %vm542_vm1 = vcmask 1045509  }
  0xb7   :  { %v224_v18 = vpack.c.bf16 %v223_v17, %v223_v17  ;;  %v7986_v17 = vld [vmem:[#allocation13 + $0x34] sm:$0xf0] }
  0xb8   :  { %v6568_v21 = vor.u32 %v7986_v17, %v6567_v16 }
  0xb9   :  { %v218_v19 = vpop.f32.mrf.mxu0  ;;  %298 = vmatmul.bf16.vlgmr.msra.gmra.mxu1 %v224_v18  ;;  %v365_v18 = vperm.slane %v8860_v8, 1 }
  0xba   :  { %674 = vmatpush.bf16.msra.mxu3 %v6568_v21 }
  0xbe   :  { %675 = vmatpush.bf16.msra.mxu3 %v6560_v27 }
 0x136   :  { %v299_v31 = vpop.f32.mrf.mxu1 }
 0x137   :  { %v300_v32 = vadd.f32 %v8355_v28, %v299_v31  ;;  %v6601_v31 = vld [vmem:[#allocation13 + $0x78] sm:$0xf0] }
 0x139   :  { %v304_v34 = vsub.f32 %v300_v32, %v8356_v30  ;;  %v7993_v30 = vld [vmem:[#allocation13 + $0x74] sm:$0xf] }
 0x13b   :  { %v317_v36 = vmul.f32 %v316_v33, %v304_v34  ;;  %v6604_v34 = vor.u32 %v7993_v30, %v6601_v31  ;;  %v8916_v30 = vld [vmem:[#allocation7 + $0x38] sm:$0xff] }
 0x13d   :  { %v319_v38 = vmul.f32 %v8357_v35, %v317_v36  ;;  %v7991_v35 = vld [vmem:[#allocation13 + $0x64] sm:$0xf]  ;;  %v6593_v36 = vld [vmem:[#allocation13 + $0x68] sm:$0xf0] }
 0x13e   :  { %v301_v39 = vpop.f32.mrf.mxu1 }
 0x13f   :  { %v8849_v40 = vadd.f32 %v8358_v37, %v319_v38  ;;  %v8872_v38 = vld [vmem:[#allocation6] sm:$0xf]  ;;  %v6596_v39 = vor.u32 %v7991_v35, %v6593_v36 }
 0x141   :  { %336 = vadd.xlane.f32.xlu0 %v8849_v40 }
 0x1b4   :  { %v337_v52 = vpop.xlane.xlu0 %336 }
 0x1b5   :  { %v345_v53 = vmul.f32 %v8855_v51, %v337_v52  ;;  %v8878_v52 = vld [vmem:[#allocation7 + $0x8] sm:$0xff] }
 0x1b7   :  { %v346_v54 = vsub.f32 %v8849_v40, %v345_v53 }
 0x1b9   :  { %v347_v55 = vmul.f32 %v346_v54, %v346_v54 }
 0x1bb   :  { %348 = vadd.xlane.f32.xlu0 %v347_v55  ;;  %v8884_v55 = vld [vmem:[#allocation7 + $0x10] sm:$0xff] }
 0x22e   :  { %v349_v56 = vpop.xlane.xlu0 %348 }
 0x22f   :  { %v350_v57 = vmul.f32 %v349_v56, %v8855_v51 }
 0x231   :  { %v351_v58 = vadd.f32 1e-05, %v350_v57 }
 0x233   :  { %8365 = vrsqrt.f32 %v351_v58  ;;  %vm358_vm8 = vweird.f32 %v351_v58 }
 0x239   :  { %v8366_v61 = vpop.eup %8365 }
 0x23a   :  { %v353_v0 = vmul.f32 %v8366_v61, %v351_v58  ;;  %vm359_vm7 = vweird.f32 %v8366_v61 }
 0x23b   :  { %vm360_vm9 = vmor %vm358_vm8, %vm359_vm7 }
 0x23c   :  { %v354_v3 = vmul.f32 %v8366_v61, %v353_v0 }
 0x23e   :  { %v355_v6 = vmul.f32 0.5, %v354_v3 }
 0x240   :  { %v356_v9 = vsub.f32 1.5, %v355_v6  ;;  %v8900_v6 = vld [vmem:[#allocation7 + $0x28] sm:$0xff] }
 0x242   :  { %v357_v12 = vmul.f32 %v8366_v61, %v356_v9 }
 0x244   :  { %v361_v15 = vsel %vm360_vm9, %v8366_v61, %v357_v12 }
 0x245   :  { %v362_v19 = vmul.f32 %v361_v15, %v346_v54 }
 0x247   :  { %v364_v20 = vmul.f32 %v363_v13, %v362_v19 }
 0x249   :  { %v366_v25 = vadd.f32 %v365_v18, %v364_v20 }
 0x24b   :  { %vm367_vm10 = vcmp.ge.f32.partialorder %v366_v25, 0.0  ;;  %v369_v26 = vmul.f32 %v368_v22, %v366_v25 }
 0x24d   :  { %v8864_v28 = vsel %vm367_vm10, %v366_v25, %v369_v26 }
 0x24e   :  { %v371_v29 = vmax.f32 %v8864_v28, 0.0 }
 0x250   :  { %v8867_v32 = vadd.f32 1e-07, %v371_v29 }
 0x252   :  { %v493_v33 = vpack.c.bf16 %v8867_v32, %v8867_v32  ;;  %v429_v53 = vsub.f32 %v8876_v50, %v8867_v32  ;;  %v430_v54 = vsub.f32 %v8878_v52, %v8867_v32  ;;  %v431_v56 = vsub.f32 %v8884_v55, %v8867_v32 }
 0x253   :  { %v373_v60 = vadd.f32 %v8867_v32, %v8876_v50  ;;  %v374_v61 = vadd.f32 %v8867_v32, %v8878_v52  ;;  %v375_v62 = vadd.f32 %v8867_v32, %v8884_v55  ;;  %v432_v0 = vsub.f32 %v8888_v59, %v8867_v32 }
 0x254   :  { %v500_v37 = vsel %vm498_vm11, %v493_v33, 0  ;;  %v437_v57 = vrot.slane %v429_v53, 4  ;;  %v443_v58 = vrot.slane %v430_v54, 4  ;;  %v449_v3 = vrot.slane %v431_v56, 4 }
 0x255   :  { %509 = vmatpush.bf16.msra.mxu2 %v500_v37  ;;  %v381_v4 = vrot.slane %v373_v60, 4  ;;  %v387_v5 = vrot.slane %v374_v61, 4  ;;  %v393_v7 = vrot.slane %v375_v62, 4  ;;  %v433_v9 = vsub.f32 %v8896_v63, %v8867_v32 }
 0x256   :  { %v438_v1 = vmax.f32 %v429_v53, %v437_v57  ;;  %v444_v2 = vmax.f32 %v430_v54, %v443_v58  ;;  %v450_v13 = vmax.f32 %v431_v56, %v449_v3  ;;  %v455_v14 = vrot.slane %v432_v0, 4 }
 0x257   :  { %v376_v15 = vadd.f32 %v8867_v32, %v8888_v59  ;;  %v377_v16 = vadd.f32 %v8867_v32, %v8896_v63  ;;  %v378_v17 = vadd.f32 %v8867_v32, %v8900_v6  ;;  %v382_v18 = vmax.f32 %v373_v60, %v381_v4 }
 0x258   :  { %6540 = vmatmul.msk.bf16.vlgmr.msra.gmra.mxu2 %vm494_vm12, %v8872_v38  ;;  %v439_v11 = vrot.slane %v438_v1, 2  ;;  %v445_v12 = vrot.slane %v444_v2, 2  ;;  %v388_v19 = vmax.f32 %v374_v61, %v387_v5  ;;  %v394_v20 = vmax.f32 %v375_v62, %v393_v7 }
 0x259   :  { %683 = vmatpush.bf16.msrb.mxu2 %v6604_v34  ;;  %v434_v21 = vsub.f32 %v8900_v6, %v8867_v32  ;;  %v435_v22 = vsub.f32 %v8904_v10, %v8867_v32  ;;  %v461_v23 = vrot.slane %v433_v9, 4  ;;  %v451_v26 = vrot.slane %v450_v13, 2 }
 0x25a   :  { %v440_v24 = vmax.f32 %v438_v1, %v439_v11  ;;  %v446_v25 = vmax.f32 %v444_v2, %v445_v12  ;;  %v456_v27 = vmax.f32 %v432_v0, %v455_v14  ;;  %v399_v29 = vrot.slane %v376_v15, 4 }
 0x25b   :  { %v383_v31 = vrot.slane %v382_v18, 2  ;;  %v389_v33 = vrot.slane %v388_v19, 2  ;;  %v405_v34 = vrot.slane %v377_v16, 4  ;;  %v411_v35 = vrot.slane %v378_v17, 4 }
 0x25c   :  { %v395_v36 = vrot.slane %v394_v20, 2  ;;  %v462_v37 = vmax.f32 %v433_v9, %v461_v23  ;;  %v473_v41 = vrot.slane %v435_v22, 4  ;;  %v441_v42 = vrot.slane %v440_v24, 1  ;;  %v7983_v23 = vld [vmem:[#allocation13 + $0x24] sm:$0xf] }
 0x25d   :  { %684 = vmatpush.bf16.msrb.mxu2 %v6596_v39  ;;  %v467_v39 = vrot.slane %v434_v21, 4  ;;  %v452_v44 = vmax.f32 %v450_v13, %v451_v26  ;;  %v457_v45 = vrot.slane %v456_v27, 2  ;;  %v8922_v47 = vadd.f32 %v8867_v32, %v8916_v30 }
 0x25e   :  { %v400_v48 = vmax.f32 %v376_v15, %v399_v29  ;;  %v384_v53 = vmax.f32 %v382_v18, %v383_v31  ;;  %v390_v54 = vmax.f32 %v388_v19, %v389_v33  ;;  %v406_v56 = vmax.f32 %v377_v16, %v405_v34  ;;  %v7982_v29 = vld [vmem:[#allocation13 + $0x14] sm:$0xf0]  ;;  %v7981_v31 = vld [vmem:[#allocation13 + $0x14] sm:$0xf]  ;;  %v6553_v33 = vld [vmem:[#allocation13 + $0x18] sm:$0xf0] }
 0x25f   :  { %v8926_v57 = vmax.f32 %v378_v17, %v411_v35  ;;  %v396_v58 = vmax.f32 %v394_v20, %v395_v36  ;;  %v463_v60 = vrot.slane %v462_v37, 2  ;;  %v468_v61 = vmax.f32 %v434_v21, %v467_v39 }
 0x260   :  { %v474_v62 = vmax.f32 %v435_v22, %v473_v41  ;;  %v442_v0 = vmax.f32 %v440_v24, %v441_v42  ;;  %v453_v2 = vrot.slane %v452_v44, 1  ;;  %v458_v3 = vmax.f32 %v456_v27, %v457_v45  ;;  %v6561_v24 = vld [vmem:[#allocation13 + $0x28] sm:$0xf0]  ;;  %v7980_v45 = vld [vmem:[#allocation13 + $0x4] sm:$0xf0] }
 0x261   :  { %685 = vmatpush.bf16.msrb.mxu2 %v6588_v43  ;;  %v447_v43 = vrot.slane %v446_v25, 1  ;;  %v401_v4 = vrot.slane %v400_v48, 2  ;;  %v423_v7 = vrot.slane %v8922_v47, 4  ;;  %v391_v11 = vrot.slane %v390_v54, 1 }
 0x262   :  { %v407_v12 = vrot.slane %v406_v56, 2  ;;  %v413_v13 = vrot.slane %v8926_v57, 2  ;;  %v397_v14 = vrot.slane %v396_v58, 1  ;;  %v464_v15 = vmax.f32 %v462_v37, %v463_v60 }
 0x263   :  { %v448_v1 = vmax.f32 %v446_v25, %v447_v43  ;;  %v469_v16 = vrot.slane %v468_v61, 2  ;;  %v475_v17 = vrot.slane %v474_v62, 2  ;;  %v454_v18 = vmax.f32 %v452_v44, %v453_v2  ;;  %v6551_v25 = vld [vmem:[#allocation13 + $0x10] sm:$0xf]  ;;  %v6543_v44 = vld [vmem:[#allocation13] sm:$0xf] }
 0x264   :  { %v459_v19 = vrot.slane %v458_v3, 1  ;;  %v485_v20 = vsub.f32 0.0, %v442_v0  ;;  %v402_v26 = vmax.f32 %v400_v48, %v401_v4  ;;  %v6564_v27 = vor.u32 %v7983_v23, %v6561_v24  ;;  %v6545_v2 = vld [vmem:[#allocation13 + $0x8] sm:$0xf0] }
 0x265   :  { %686 = vmatpush.bf16.msrb.mxu2 %v6580_v46  ;;  %v379_v46 = vadd.f32 %v8867_v32, %v8904_v10  ;;  %v486_v21 = vsub.f32 0.0, %v448_v1  ;;  %v392_v35 = vmax.f32 %v390_v54, %v391_v11  ;;  %v470_v36 = vmax.f32 %v468_v61, %v469_v16  ;;  %v7979_v1 = vld [vmem:[#allocation13 + $0x4] sm:$0xf] }
 0x266   :  { %v6552_v39 = vor.u32 %v7982_v29, %v6551_v25  ;;  %v465_v41 = vrot.slane %v464_v15, 1  ;;  %v487_v42 = vsub.f32 0.0, %v454_v18  ;;  %v6556_v43 = vor.u32 %v7981_v31, %v6553_v33 }
 0x267   :  { %v417_v5 = vrot.slane %v379_v46, 4  ;;  %v558_v0 = vsel %vm534_vm13, %v486_v21, %v485_v20  ;;  %v6544_v48 = vor.u32 %v7980_v45, %v6543_v44  ;;  %v398_v4 = vmax.f32 %v396_v58, %v397_v14 }
 0x268   :  { %676 = vmatpush.bf16.msra.mxu3 %v6552_v39  ;;  %v476_v54 = vmax.f32 %v474_v62, %v475_v17  ;;  %v403_v61 = vrot.slane %v402_v26, 1  ;;  %v466_v11 = vmax.f32 %v464_v15, %v465_v41  ;;  %v6548_v16 = vor.u32 %v7979_v1, %v6545_v2 }
 0x269   :  { %687 = vmatpush.bf16.msrb.mxu2 %v6572_v49  ;;  %v436_v49 = vsub.f32 %v8916_v30, %v8867_v32  ;;  %v385_v32 = vrot.slane %v384_v53, 1  ;;  %v418_v37 = vmax.f32 %v379_v46, %v417_v5  ;;  %v424_v46 = vmax.f32 %v8922_v47, %v423_v7 }
 0x26a   :  { %v471_v5 = vrot.slane %v470_v36, 1  ;;  %v414_v18 = vmax.f32 %v8926_v57, %v413_v13  ;;  %v477_v58 = vrot.slane %v476_v54, 1  ;;  %v404_v47 = vmax.f32 %v402_v26, %v403_v61 }
 0x26b   :  { %v479_v9 = vrot.slane %v436_v49, 4  ;;  %v386_v34 = vmax.f32 %v384_v53, %v385_v32  ;;  %v408_v53 = vmax.f32 %v406_v56, %v407_v12  ;;  %v419_v32 = vrot.slane %v418_v37, 2 }
 0x26c   :  { %677 = vmatpush.bf16.msra.mxu3 %v6544_v48  ;;  %v425_v7 = vrot.slane %v424_v46, 2  ;;  %v472_v12 = vmax.f32 %v470_v36, %v471_v5  ;;  %v489_v17 = vsub.f32 0.0, %v466_v11  ;;  %v415_v21 = vrot.slane %v414_v18, 1 }
 0x26d   :  { %v480_v22 = vmax.f32 %v436_v49, %v479_v9  ;;  %688 = vmatpush.bf16.msrb.mxu2 %v6564_v27  ;;  %v460_v49 = vmax.f32 %v458_v3, %v459_v19  ;;  %v535_v9 = vsel %vm534_vm13, %v392_v35, %v386_v34  ;;  %v559_v3 = vsel %vm536_vm14, %v487_v42, %v558_v0  ;;  %v8941_v35 = vpop.permute.xlu1 %523 }
 0x26e   :  { %v409_v56 = vrot.slane %v408_v53, 1  ;;  %v537_v62 = vsel %vm536_vm14, %v398_v4, %v535_v9  ;;  %v420_v15 = vmax.f32 %v418_v37, %v419_v32  ;;  %v426_v25 = vmax.f32 %v424_v46, %v425_v7  ;;  %v8957_v32 = vld [vmem:[#allocation16 + $0x8] sm:$0xff] }
 0x26f   :  { %v481_v60 = vrot.slane %v480_v22, 2  ;;  %v488_v20 = vsub.f32 0.0, %v460_v49  ;;  %v539_v57 = vsel %vm538_vm15, %v404_v47, %v537_v62  ;;  %v490_v27 = vsub.f32 0.0, %v472_v12 }
 0x270   :  { %v410_v13 = vmax.f32 %v408_v53, %v409_v56  ;;  %v421_v29 = vrot.slane %v420_v15, 1  ;;  %v416_v31 = vmax.f32 %v414_v18, %v415_v21  ;;  %v427_v39 = vrot.slane %v426_v25, 1 }
 0x271   :  { %689 = vmatpush.bf16.msrb.mxu2 %v6556_v43  ;;  %v482_v19 = vmax.f32 %v480_v22, %v481_v60  ;;  %v560_v14 = vsel %vm538_vm15, %v488_v20, %v559_v3  ;;  %v478_v22 = vmax.f32 %v476_v54, %v477_v58  ;;  %vm525_vm4 = vcmp.eq.s32.totalorder %v8941_v35, 1 }
 0x272   :  { %v561_v24 = vsel %vm540_vm0, %v489_v17, %v560_v14  ;;  %v541_v26 = vsel %vm540_vm0, %v410_v13, %v539_v57  ;;  %v422_v41 = vmax.f32 %v420_v15, %v421_v29  ;;  %v428_v45 = vmax.f32 %v426_v25, %v427_v39  ;;  %v8010_v29 = vld [vmem:[#allocation15 + $0x78] sm:$0xff]  ;;  %v8007_v39 = vld [vmem:[#allocation15 + $0x60] sm:$0xff] }
 0x273   :  { %v483_v23 = vrot.slane %v482_v19, 1  ;;  %v562_v34 = vsel %vm542_vm1, %v490_v27, %v561_v24  ;;  %v491_v36 = vsub.f32 0.0, %v478_v22  ;;  %v543_v37 = vsel %vm542_vm1, %v416_v31, %v541_v26  ;;  %v8002_v27 = vld [vmem:[#allocation15 + $0x38] sm:$0xff]  ;;  %882 = vmatpush.bf16.msrb.mxu1 %v8010_v29  ;;  %v8001_v26 = vld [vmem:[#allocation15 + $0x30] sm:$0xff] }
 0x274   :  { %v545_v44 = vsel %vm544_vm2, %v422_v41, %v543_v37  ;;  %v588_v11 = vperm.slane %v8860_v8, 2  ;;  %v589_v3 = vperm.slane %v8957_v32, 2  ;;  %v8748_v47 = vmov 256.0   ;;  %869 = vmatpush.bf16.msrb.mxu0 %v8002_v27  ;;  %v8009_v31 = vld [vmem:[#allocation15 + $0x70] sm:$0xff]  ;;  %v7998_v37 = vld [vmem:[#allocation15 + $0x18] sm:$0xff] }
 0x275   :  { %690 = vmatpush.bf16.msrb.mxu2 %v6548_v16  ;;  %v484_v33 = vmax.f32 %v482_v19, %v483_v23  ;;  %v563_v42 = vsel %vm544_vm2, %v491_v36, %v562_v34  ;;  %v547_v60 = vsel %vm546_vm3, %v428_v45, %v545_v44  ;;  %v8949_v0 = vpop.permute.xlu1 %517  ;;  %8367 = vrcp.f32 %v8748_v47  ;;  %v8008_v34 = vld [vmem:[#allocation15 + $0x68] sm:$0xff]  ;;  %v7999_v36 = vld [vmem:[#allocation15 + $0x20] sm:$0xff]  ;;  %v8006_v41 = vld [vmem:[#allocation15 + $0x58] sm:$0xff] }
 0x276   :  { %v549_v2 = vsel %vm525_vm4, %v547_v60, 0.0  ;;  %v7997_v44 = vld [vmem:[#allocation15 + $0x10] sm:$0xff]  ;;  %v7996_v60 = vld [vmem:[#allocation15 + $0x8] sm:$0xff] }
 0x277   :  { %v492_v43 = vsub.f32 0.0, %v484_v33  ;;  %883 = vmatpush.bf16.msrb.mxu1 %v8009_v31  ;;  %v8000_v33 = vld [vmem:[#allocation15 + $0x28] sm:$0xff]  ;;  %v8005_v45 = vld [vmem:[#allocation15 + $0x50] sm:$0xff] }
 0x278   :  { %870 = vmatpush.bf16.msrb.mxu0 %v8001_v26 }
 0x279   :  { %v564_v49 = vsel %vm546_vm3, %v492_v43, %v563_v42 }
 0x27a   :  { %v566_v48 = vsel %vm525_vm4, %v564_v49, 0.0 }
 0x27b   :  { %v567_v53 = vadd.f32 %v566_v48, %v549_v2  ;;  %884 = vmatpush.bf16.msrb.mxu1 %v8008_v34  ;;  %v8004_v48 = vld [vmem:[#allocation15 + $0x48] sm:$0xff]  ;;  %v8003_v2 = vld [vmem:[#allocation15 + $0x40] sm:$0xff] }
 0x27c   :  { %871 = vmatpush.bf16.msrb.mxu0 %v8000_v33 }
 0x27f   :  { %885 = vmatpush.bf16.msrb.mxu1 %v8007_v39 }
 0x280   :  { %872 = vmatpush.bf16.msrb.mxu0 %v7999_v36 }
 0x283   :  { %886 = vmatpush.bf16.msrb.mxu1 %v8006_v41 }
 0x284   :  { %873 = vmatpush.bf16.msrb.mxu0 %v7998_v37 }
 0x287   :  { %887 = vmatpush.bf16.msrb.mxu1 %v8005_v45  ;;  %v8975_v45 = vld [vmem:[#allocation12 + $0x7] ss:$0 sm:$0xff] }
 0x288   :  { %874 = vmatpush.bf16.msrb.mxu0 %v7997_v44 }
 0x28b   :  { %888 = vmatpush.bf16.msrb.mxu1 %v8004_v48 }
 0x28c   :  { %875 = vmatpush.bf16.msrb.mxu0 %v7996_v60  ;;  %v8978_v60 = vstv %s6497_s21 }
 0x28f   :  { %889 = vmatpush.bf16.msrb.mxu1 %v8003_v2 }
 0x2db   :  { %v511_v1 = vpop.f32.mrf.mxu2 }
 0x2dc   :  { %v520_v4 = vmul.f32 %v8949_v0, %v511_v1  ;;  %v7995_v1 = vld [vmem:[#allocation15] sm:$0xff] }
 0x2dd   :  { %876 = vmatpush.bf16.msrb.mxu0 %v7995_v1 }
 0x2de   :  { %v568_v54 = vadd.f32 %v567_v53, %v520_v4 }
 0x2e0   :  { %v569_v61 = vmul.f32 0.33333334, %v568_v54 }
 0x2e2   :  { %v570_v46 = vadd.f32 %v569_v61, %v8864_v28  ;;  %v8368_v28 = vpop.eup %8367 }
 0x2e3   :  { %v513_v5 = vpop.f32.mrf.mxu2  ;;  %v700_v7 = vmul.f32 256.0, %v8368_v28  ;;  %vm704_vm5 = vweird.f32 %v8368_v28 }
 0x2e4   :  { %v571_v9 = vpack.c.bf16 %v570_v46, %v570_v46 }
 0x2e5   :  { %v701_v12 = vsub.f32 1.0, %v700_v7 }
 0x2e6   :  { %678 = vmatmul.bf16.vlgmr.msra.gmra.mxu3 %v571_v9  ;;  %691 = vmatmul.bf16.vlgmr.msrb.gmra.mxu2 %v571_v9  ;;  %v729_v9 = vperm.slane %v8957_v32, 3 }
 0x2e7   :  { %v702_v14 = vmul.f32 %v8368_v28, %v701_v12 }
 0x2e9   :  { %v703_v15 = vadd.f32 %v8368_v28, %v702_v14 }
 0x2eb   :  { %v8961_v17 = vsel %vm704_vm5, %v8368_v28, %v703_v15  ;;  %v772_v15 = vperm.slane %v8860_v8, 5 }
 0x369   :  { %v679_v16 = vpop.f32.mrf.mxu3  ;;  %v692_v18 = vpop.f32.mrf.mxu2 }
 0x36a   :  { %v680_v19 = vadd.f32 %v679_v16, %v588_v11  ;;  %v693_v20 = vadd.f32 %v692_v18, %v589_v3  ;;  %v728_v11 = vperm.slane %v8860_v8, 3  ;;  %v732_v18 = vperm.slane %v8860_v8, 4 }
 0x36c   :  { %v696_v56 = vadd.f32 %v693_v20, %v680_v19 }
 0x36e   :  { %697 = vadd.xlane.f32.xlu2 %v696_v56 }
 0x371   :  { %v681_v58 = vpop.f32.mrf.mxu3  ;;  %v694_v62 = vpop.f32.mrf.mxu2 }
 0x3e1   :  { %v698_v21 = vpop.xlane.xlu2 %697 }
 0x3e2   :  { %v706_v23 = vmul.f32 %v8961_v17, %v698_v21 }
 0x3e4   :  { %v707_v57 = vsub.f32 %v680_v19, %v706_v23  ;;  %v708_v13 = vsub.f32 %v693_v20, %v706_v23  ;;  %v733_v20 = vperm.slane %v8957_v32, 4 }
 0x3e6   :  { %v709_v22 = vmul.f32 %v707_v57, %v707_v57  ;;  %v710_v24 = vmul.f32 %v708_v13, %v708_v13 }
 0x3e8   :  { %v711_v25 = vadd.f32 %v710_v24, %v709_v22 }
 0x3ea   :  { %712 = vadd.xlane.f32.xlu2 %v711_v25 }
 0x45d   :  { %v713_v42 = vpop.xlane.xlu2 %712 }
 0x45e   :  { %v714_v43 = vmul.f32 %v713_v42, %v8961_v17  ;;  %v8973_v42 = vld [vmem:[#allocation12 + $0x6] ss:$0 sm:$0xff] }
 0x460   :  { %v715_v49 = vadd.f32 1e-05, %v714_v43 }
 0x462   :  { %8369 = vrsqrt.f32 %v715_v49  ;;  %vm722_vm7 = vweird.f32 %v715_v49 }
 0x468   :  { %v8370_v4 = vpop.eup %8369 }
 0x469   :  { %v717_v53 = vmul.f32 %v8370_v4, %v715_v49  ;;  %vm723_vm6 = vweird.f32 %v8370_v4 }
 0x46a   :  { %vm724_vm8 = vmor %vm722_vm7, %vm723_vm6 }
 0x46b   :  { %v718_v54 = vmul.f32 %v8370_v4, %v717_v53 }
 0x46d   :  { %v719_v61 = vmul.f32 0.5, %v718_v54 }
 0x46f   :  { %v720_v46 = vsub.f32 1.5, %v719_v61 }
 0x471   :  { %v721_v5 = vmul.f32 %v8370_v4, %v720_v46 }
 0x473   :  { %v725_v3 = vsel %vm724_vm8, %v8370_v4, %v721_v5 }
 0x474   :  { %v726_v16 = vmul.f32 %v725_v3, %v707_v57  ;;  %v727_v19 = vmul.f32 %v725_v3, %v708_v13  ;;  %v8026_v3 = vld [vmem:[#allocation13 + $0xf4] sm:$0xf0] }
 0x476   :  { %v730_v56 = vmul.f32 %v728_v11, %v726_v16  ;;  %v731_v58 = vmul.f32 %v729_v9, %v727_v19  ;;  %v6729_v11 = vld [vmem:[#allocation13 + $0xf0] sm:$0xf]  ;;  %v8025_v16 = vld [vmem:[#allocation13 + $0xf4] sm:$0xf] }
 0x477   :  { %v6730_v19 = vor.u32 %v8026_v3, %v6729_v11 }
 0x478   :  { %v734_v62 = vadd.f32 %v732_v18, %v730_v56  ;;  %v735_v47 = vadd.f32 %v733_v20, %v731_v58  ;;  %v6731_v20 = vld [vmem:[#allocation13 + $0xf8] sm:$0xf0]  ;;  %v6721_v56 = vld [vmem:[#allocation13 + $0xe0] sm:$0xf]  ;;  %v8024_v58 = vld [vmem:[#allocation13 + $0xe4] sm:$0xf0] }
 0x479   :  { %1234 = vmatpush.bf16.msra.mxu2 %v6730_v19 }
 0x47a   :  { %v736_v28 = vmax.f32 %v734_v62, 0.0  ;;  %v737_v7 = vmax.f32 %v735_v47, 0.0  ;;  %v6734_v47 = vor.u32 %v8025_v16, %v6731_v20 }
 0x47c   :  { %v738_v12 = vpack.c.bf16 %v736_v28, %v736_v28  ;;  %v739_v14 = vpack.c.bf16 %v737_v7, %v737_v7  ;;  %v8023_v28 = vld [vmem:[#allocation13 + $0xe4] sm:$0xf]  ;;  %v6723_v7 = vld [vmem:[#allocation13 + $0xe8] sm:$0xf0]  ;;  %1247 = vmatpush.bf16.msra.mxu0 %v6734_v47 }
 0x47e   :  { %877 = vmatmul.bf16.vlgmr.msrb.gmra.mxu0 %v738_v12  ;;  %890 = vmatmul.bf16.vlgmr.msrb.gmra.mxu1 %v739_v14  ;;  %v6722_v12 = vor.u32 %v8024_v58, %v6721_v56 }
 0x480   :  { %1235 = vmatpush.bf16.msra.mxu2 %v6722_v12 }
 0x4fb   :  { %v878_v21 = vpop.f32.mrf.mxu0  ;;  %v891_v23 = vpop.f32.mrf.mxu1 }
 0x4fc   :  { %v879_v57 = vadd.f32 %v878_v21, %v772_v15  ;;  %v6726_v15 = vor.u32 %v8023_v28, %v6723_v7  ;;  %v6713_v21 = vld [vmem:[#allocation13 + $0xd0] sm:$0xf] }
 0x4fe   :  { %v892_v22 = vadd.f32 %v891_v23, %v879_v57  ;;  %v8022_v23 = vld [vmem:[#allocation13 + $0xd4] sm:$0xf0]  ;;  %v8021_v57 = vld [vmem:[#allocation13 + $0xd4] sm:$0xf]  ;;  %1248 = vmatpush.bf16.msra.mxu0 %v6726_v15 }
 0x500   :  { %v895_v13 = vadd.f32 %v892_v22, %v8849_v40  ;;  %v6715_v22 = vld [vmem:[#allocation13 + $0xd8] sm:$0xf0] }
 0x502   :  { %896 = vadd.xlane.f32.xlu0 %v895_v13 }
 0x503   :  { %v880_v32 = vpop.f32.mrf.mxu0  ;;  %v893_v24 = vpop.f32.mrf.mxu1 }
 0x504   :  { %v6714_v32 = vor.u32 %v8022_v23, %v6713_v21  ;;  %v8990_v24 = vld [vmem:[#allocation16 + $0x10] sm:$0xff] }
 0x506   :  { %1236 = vmatpush.bf16.msra.mxu2 %v6714_v32 }
 0x575   :  { %v897_v25 = vpop.xlane.xlu0 %896 }
 0x576   :  { %v898_v27 = vmul.f32 %v897_v25, %v8855_v51 }
 0x578   :  { %v899_v29 = vsub.f32 %v895_v13, %v898_v27  ;;  %v6718_v27 = vor.u32 %v8021_v57, %v6715_v22 }
 0x57a   :  { %v900_v26 = vmul.f32 %v899_v29, %v899_v29  ;;  %1249 = vmatpush.bf16.msra.mxu0 %v6718_v27 }
 0x57c   :  { %901 = vadd.xlane.f32.xlu1 %v900_v26  ;;  %v8020_v26 = vld [vmem:[#allocation13 + $0xc4] sm:$0xf0] }
 0x5ef   :  { %v902_v31 = vpop.xlane.xlu1 %901 }
 0x5f0   :  { %v903_v33 = vmul.f32 %v902_v31, %v8855_v51  ;;  %v8019_v31 = vld [vmem:[#allocation13 + $0xc4] sm:$0xf] }
 0x5f2   :  { %v904_v34 = vadd.f32 1e-05, %v903_v33  ;;  %v6707_v33 = vld [vmem:[#allocation13 + $0xc8] sm:$0xf0] }
 0x5f4   :  { %8371 = vrsqrt.f32 %v904_v34  ;;  %vm911_vm10 = vweird.f32 %v904_v34 }
 0x5fa   :  { %v8372_v8 = vpop.eup %8371 }
 0x5fb   :  { %v906_v36 = vmul.f32 %v8372_v8, %v904_v34  ;;  %vm912_vm9 = vweird.f32 %v8372_v8 }
 0x5fc   :  { %vm913_vm5 = vmor %vm911_vm10, %vm912_vm9 }
 0x5fd   :  { %v907_v39 = vmul.f32 %v8372_v8, %v906_v36 }
 0x5ff   :  { %v908_v37 = vmul.f32 0.5, %v907_v39 }
 0x601   :  { %v909_v41 = vsub.f32 1.5, %v908_v37  ;;  %v6710_v37 = vor.u32 %v8019_v31, %v6707_v33 }
 0x603   :  { %v910_v40 = vmul.f32 %v8372_v8, %v909_v41  ;;  %v6697_v41 = vld [vmem:[#allocation13 + $0xb0] sm:$0xf]  ;;  %1250 = vmatpush.bf16.msra.mxu0 %v6710_v37 }
 0x605   :  { %v914_v43 = vsel %vm913_vm5, %v8372_v8, %v910_v40  ;;  %v948_v8 = vperm.slane %v8990_v24, 0  ;;  %v8018_v40 = vld [vmem:[#allocation13 + $0xb4] sm:$0xf0] }
 0x606   :  { %v915_v44 = vmul.f32 %v914_v43, %v899_v29  ;;  %v6705_v29 = vld [vmem:[#allocation13 + $0xc0] sm:$0xf]  ;;  %v950_v43 = vperm.slane %v8990_v24, 1 }
 0x607   :  { %v6706_v36 = vor.u32 %v8020_v26, %v6705_v29 }
 0x608   :  { %v917_v49 = vmul.f32 %v8973_v42, %v915_v44 }
 0x609   :  { %1237 = vmatpush.bf16.msra.mxu2 %v6706_v36 }
 0x60a   :  { %v919_v48 = vadd.f32 %v8975_v45, %v917_v49  ;;  %v8017_v49 = vld [vmem:[#allocation13 + $0xb4] sm:$0xf] }
 0x60c   :  { %vm920_vm6 = vcmp.ge.f32.partialorder %v919_v48, 0.0  ;;  %v922_v1 = vmul.f32 %v8978_v60, %v919_v48 }
 0x60e   :  { %v8982_v2 = vsel %vm920_vm6, %v919_v48, %v922_v1  ;;  %v6699_v48 = vld [vmem:[#allocation13 + $0xb8] sm:$0xf0] }
 0x60f   :  { %928 = vadd.xlane.f32.xlu2 %v8982_v2 }
 0x682   :  { %v929_v4 = vpop.xlane.xlu2 %928 }
 0x683   :  { %v930_v53 = vmul.f32 %v929_v4, %v8855_v51  ;;  %v6698_v4 = vor.u32 %v8018_v40, %v6697_v41 }
 0x685   :  { %v931_v54 = vsub.f32 %v8982_v2, %v930_v53  ;;  %v953_v53 = vstv %s8988_s24  ;;  %1238 = vmatpush.bf16.msra.mxu2 %v6698_v4 }
 0x687   :  { %v932_v61 = vmul.f32 %v931_v54, %v931_v54 }
 0x689   :  { %933 = vadd.xlane.f32.xlu0 %v932_v61  ;;  %v6702_v61 = vor.u32 %v8017_v49, %v6699_v48 }
 0x68b   :  { %1251 = vmatpush.bf16.msra.mxu0 %v6702_v61 }
 0x6fc   :  { %v934_v46 = vpop.xlane.xlu0 %933 }
 0x6fd   :  { %v935_v5 = vmul.f32 %v934_v46, %v8855_v51 }
 0x6ff   :  { %v936_v9 = vadd.f32 1e-05, %v935_v5 }
 0x701   :  { %8373 = vrsqrt.f32 %v936_v9  ;;  %vm943_vm8 = vweird.f32 %v936_v9 }
 0x707   :  { %v8374_v18 = vpop.eup %8373 }
 0x708   :  { %v938_v62 = vmul.f32 %v8374_v18, %v936_v9  ;;  %vm944_vm7 = vweird.f32 %v8374_v18 }
 0x709   :  { %vm945_vm9 = vmor %vm943_vm8, %vm944_vm7 }
 0x70a   :  { %v939_v14 = vmul.f32 %v8374_v18, %v938_v62 }
 0x70c   :  { %v940_v13 = vmul.f32 0.5, %v939_v14 }
 0x70e   :  { %v941_v25 = vsub.f32 1.5, %v940_v13 }
 0x710   :  { %v942_v34 = vmul.f32 %v8374_v18, %v941_v25 }
 0x712   :  { %v946_v39 = vsel %vm945_vm9, %v8374_v18, %v942_v34 }
 0x713   :  { %v947_v44 = vmul.f32 %v946_v39, %v931_v54 }
 0x715   :  { %v949_v1 = vmul.f32 %v948_v8, %v947_v44 }
 0x717   :  { %v951_v46 = vadd.f32 %v950_v43, %v949_v1 }
 0x719   :  { %vm952_vm10 = vcmp.ge.f32.partialorder %v951_v46, 0.0  ;;  %v954_v5 = vmul.f32 %v953_v53, %v951_v46 }
 0x71b   :  { %v8995_v9 = vsel %vm952_vm10, %v951_v46, %v954_v5 }
 0x71c   :  { %v956_v11 = vmax.f32 %v8995_v9, 0.0 }
 0x71e   :  { %v957_v3 = vadd.f32 1e-07, %v956_v11 }
 0x720   :  { %v1078_v16 = vpack.c.bf16 %v957_v3, %v957_v3  ;;  %v1014_v18 = vsub.f32 %v8876_v50, %v957_v3  ;;  %v1015_v19 = vsub.f32 %v8878_v52, %v957_v3  ;;  %v1016_v20 = vsub.f32 %v8884_v55, %v957_v3 }
 0x721   :  { %v958_v62 = vadd.f32 %v957_v3, %v8876_v50  ;;  %v959_v47 = vadd.f32 %v957_v3, %v8878_v52  ;;  %v1017_v7 = vsub.f32 %v8888_v59, %v957_v3  ;;  %v960_v15 = vadd.f32 %v957_v3, %v8884_v55 }
 0x722   :  { %v1080_v54 = vsel %vm498_vm11, %v1078_v16, 0  ;;  %v1022_v56 = vrot.slane %v1014_v18, 4  ;;  %v1028_v58 = vrot.slane %v1015_v19, 4  ;;  %v1034_v28 = vrot.slane %v1016_v20, 4 }
 0x723   :  { %1089 = vmatpush.bf16.msrb.mxu3 %v1080_v54  ;;  %v972_v21 = vrot.slane %v959_v47, 4  ;;  %v1018_v23 = vsub.f32 %v8896_v63, %v957_v3  ;;  %v1040_v32 = vrot.slane %v1017_v7, 4  ;;  %v978_v25 = vrot.slane %v960_v15, 4 }
 0x724   :  { %v1023_v12 = vmax.f32 %v1014_v18, %v1022_v56  ;;  %v1029_v14 = vmax.f32 %v1015_v19, %v1028_v58  ;;  %v1035_v57 = vmax.f32 %v1016_v20, %v1034_v28  ;;  %v961_v50 = vadd.f32 %v957_v3, %v8888_v59 }
 0x725   :  { %v973_v52 = vmax.f32 %v959_v47, %v972_v21  ;;  %v1019_v29 = vsub.f32 %v8900_v6, %v957_v3  ;;  %v1046_v31 = vrot.slane %v1018_v23, 4  ;;  %v1041_v55 = vmax.f32 %v1017_v7, %v1040_v32 }
 0x726   :  { %6670 = vmatmul.msk.bf16.vlgmr.msrb.gmra.mxu3 %vm494_vm12, %v8872_v38  ;;  %v966_v38 = vrot.slane %v958_v62, 4  ;;  %v1024_v22 = vrot.slane %v1023_v12, 2  ;;  %v1030_v13 = vrot.slane %v1029_v14, 2  ;;  %v1036_v26 = vrot.slane %v1035_v57, 2 }
 0x727   :  { %v962_v8 = vadd.f32 %v957_v3, %v8896_v63  ;;  %v979_v36 = vmax.f32 %v960_v15, %v978_v25  ;;  %v1020_v39 = vsub.f32 %v8904_v10, %v957_v3  ;;  %v974_v41 = vrot.slane %v973_v52, 2 }
 0x728   :  { %v967_v27 = vmax.f32 %v958_v62, %v966_v38  ;;  %v1025_v33 = vmax.f32 %v1023_v12, %v1024_v22  ;;  %v1031_v34 = vmax.f32 %v1029_v14, %v1030_v13  ;;  %v984_v40 = vrot.slane %v961_v50, 4 }
 0x729   :  { %v1052_v43 = vrot.slane %v1019_v29, 4  ;;  %v963_v59 = vadd.f32 %v957_v3, %v8900_v6  ;;  %v1021_v44 = vsub.f32 %v8916_v30, %v957_v3  ;;  %v1037_v49 = vmax.f32 %v1035_v57, %v1036_v26 }
 0x72a   :  { %v968_v37 = vrot.slane %v967_v27, 2  ;;  %v1047_v48 = vmax.f32 %v1018_v23, %v1046_v31  ;;  %v1026_v1 = vrot.slane %v1025_v33, 1  ;;  %v1032_v4 = vrot.slane %v1031_v34, 1 }
 0x72b   :  { %v1042_v53 = vrot.slane %v1041_v55, 2  ;;  %v964_v61 = vadd.f32 %v957_v3, %v8904_v10  ;;  %v980_v46 = vrot.slane %v979_v36, 2  ;;  %v990_v63 = vrot.slane %v962_v8, 4 }
 0x72c   :  { %v1058_v5 = vrot.slane %v1020_v39, 4  ;;  %v969_v11 = vmax.f32 %v967_v27, %v968_v37  ;;  %v975_v16 = vmax.f32 %v973_v52, %v974_v41  ;;  %v985_v54 = vmax.f32 %v961_v50, %v984_v40 }
 0x72d   :  { %v1053_v18 = vmax.f32 %v1019_v29, %v1052_v43  ;;  %v996_v19 = vrot.slane %v963_v59, 4  ;;  %v1038_v20 = vrot.slane %v1037_v49, 1  ;;  %v1048_v56 = vrot.slane %v1047_v48, 2 }
 0x72e   :  { %v1064_v6 = vrot.slane %v1021_v44, 4  ;;  %v965_v58 = vadd.f32 %v957_v3, %v8916_v30  ;;  %v1027_v62 = vmax.f32 %v1025_v33, %v1026_v1  ;;  %v1033_v47 = vmax.f32 %v1031_v34, %v1032_v4 }
 0x72f   :  { %v1043_v28 = vmax.f32 %v1041_v55, %v1042_v53  ;;  %v981_v7 = vmax.f32 %v979_v36, %v980_v46  ;;  %v991_v12 = vmax.f32 %v962_v8, %v990_v63  ;;  %v1002_v14 = vrot.slane %v964_v61, 4  ;;  %v6681_v46 = vld [vmem:[#allocation13 + $0x90] sm:$0xf]  ;;  %v8014_v63 = vld [vmem:[#allocation13 + $0x94] sm:$0xf0] }
 0x730   :  { %v1059_v10 = vmax.f32 %v1020_v39, %v1058_v5  ;;  %v970_v15 = vrot.slane %v969_v11, 1  ;;  %v976_v38 = vrot.slane %v975_v16, 1  ;;  %v986_v21 = vrot.slane %v985_v54, 2 }
 0x731   :  { %v1054_v23 = vrot.slane %v1053_v18, 2  ;;  %v997_v57 = vmax.f32 %v963_v59, %v996_v19  ;;  %v1039_v22 = vmax.f32 %v1037_v49, %v1038_v20  ;;  %v1049_v13 = vmax.f32 %v1047_v48, %v1048_v56  ;;  %v6689_v59 = vld [vmem:[#allocation13 + $0xa0] sm:$0xf]  ;;  %v8015_v49 = vld [vmem:[#allocation13 + $0xa4] sm:$0xf] }
 0x732   :  { %v1065_v32 = vmax.f32 %v1021_v44, %v1064_v6  ;;  %v1008_v25 = vrot.slane %v965_v58, 4  ;;  %v1044_v50 = vrot.slane %v1043_v28, 1  ;;  %v1070_v27 = vsub.f32 0.0, %v1027_v62  ;;  %v8016_v44 = vld [vmem:[#allocation13 + $0xa4] sm:$0xf0] }
 0x733   :  { %v1071_v52 = vsub.f32 0.0, %v1033_v47  ;;  %v982_v30 = vrot.slane %v981_v7, 1  ;;  %v992_v3 = vrot.slane %v991_v12, 2  ;;  %v1003_v29 = vmax.f32 %v964_v61, %v1002_v14  ;;  %v6691_v61 = vld [vmem:[#allocation13 + $0xa8] sm:$0xf0] }
 0x734   :  { %v1060_v26 = vrot.slane %v1059_v10, 2  ;;  %v971_v31 = vmax.f32 %v969_v11, %v970_v15  ;;  %v977_v33 = vmax.f32 %v975_v16, %v976_v38  ;;  %v987_v34 = vmax.f32 %v985_v54, %v986_v21  ;;  %v6683_v19 = vld [vmem:[#allocation13 + $0x98] sm:$0xf0]  ;;  %v8012_v14 = vld [vmem:[#allocation13 + $0x84] sm:$0xf0] }
 0x735   :  { %v1055_v55 = vmax.f32 %v1053_v18, %v1054_v23  ;;  %v998_v8 = vrot.slane %v997_v57, 2  ;;  %v1050_v36 = vrot.slane %v1049_v13, 1  ;;  %v1066_v39 = vrot.slane %v1065_v32, 2  ;;  %v8013_v18 = vld [vmem:[#allocation13 + $0x94] sm:$0xf] }
 0x736   :  { %v1072_v37 = vsub.f32 0.0, %v1039_v22  ;;  %v1009_v41 = vmax.f32 %v965_v58, %v1008_v25  ;;  %v1045_v40 = vmax.f32 %v1043_v28, %v1044_v50  ;;  %v1121_v43 = vsel %vm534_vm13, %v1071_v52, %v1070_v27  ;;  %v8011_v21 = vld [vmem:[#allocation13 + $0x84] sm:$0xf]  ;;  %v6675_v23 = vld [vmem:[#allocation13 + $0x88] sm:$0xf0] }
 0x737   :  { %v983_v48 = vmax.f32 %v981_v7, %v982_v30  ;;  %v993_v1 = vmax.f32 %v991_v12, %v992_v3  ;;  %v1061_v4 = vmax.f32 %v1059_v10, %v1060_v26  ;;  %v6690_v53 = vor.u32 %v8016_v44, %v6689_v59  ;;  %v6673_v12 = vld [vmem:[#allocation13 + $0x80] sm:$0xf] }
 0x738   :  { %v988_v5 = vrot.slane %v987_v34, 1  ;;  %v1056_v11 = vrot.slane %v1055_v55, 1  ;;  %v1104_v16 = vsel %vm534_vm13, %v977_v33, %v971_v31  ;;  %v6694_v54 = vor.u32 %v8015_v49, %v6691_v61 }
 0x739   :  { %v1004_v20 = vrot.slane %v1003_v29, 2  ;;  %v1051_v56 = vmax.f32 %v1049_v13, %v1050_v36  ;;  %v1122_v6 = vsel %vm536_vm14, %v1072_v37, %v1121_v43  ;;  %1239 = vmatpush.bf16.msra.mxu2 %v6690_v53  ;;  %v6682_v58 = vor.u32 %v8014_v63, %v6681_v46 }
 0x73a   :  { %v999_v62 = vmax.f32 %v997_v57, %v998_v8  ;;  %v1067_v47 = vmax.f32 %v1065_v32, %v1066_v39  ;;  %v1073_v28 = vsub.f32 0.0, %v1045_v40  ;;  %1252 = vmatpush.bf16.msra.mxu0 %v6694_v54  ;;  %v6686_v7 = vor.u32 %v8013_v18, %v6683_v19 }
 0x73b   :  { %v994_v10 = vrot.slane %v993_v1, 1  ;;  %v1062_v15 = vrot.slane %v1061_v4, 1  ;;  %v1105_v38 = vsel %vm536_vm14, %v983_v48, %v1104_v16  ;;  %v989_v22 = vmax.f32 %v987_v34, %v988_v5 }
 0x73c   :  { %v1010_v25 = vrot.slane %v1009_v41, 2  ;;  %v1057_v13 = vmax.f32 %v1055_v55, %v1056_v11  ;;  %v1123_v50 = vsel %vm538_vm15, %v1073_v28, %v1122_v6  ;;  %v1005_v27 = vmax.f32 %v1003_v29, %v1004_v20  ;;  %v9037_v6 = vld [vmem:[#allocation16 + $0x18] sm:$0xff] }
 0x73d   :  { %v1074_v52 = vsub.f32 0.0, %v1051_v56  ;;  %1240 = vmatpush.bf16.msra.mxu2 %v6682_v58  ;;  %v6674_v57 = vor.u32 %v8012_v14, %v6673_v12  ;;  %v1000_v32 = vrot.slane %v999_v62, 1  ;;  %v1068_v30 = vrot.slane %v1067_v47, 1 }
 0x73e   :  { %v1106_v3 = vsel %vm538_vm15, %v989_v22, %v1105_v38  ;;  %1253 = vmatpush.bf16.msra.mxu0 %v6686_v7  ;;  %v6678_v26 = vor.u32 %v8011_v21, %v6675_v23  ;;  %v995_v31 = vmax.f32 %v993_v1, %v994_v10  ;;  %v1063_v33 = vmax.f32 %v1061_v4, %v1062_v15 }
 0x73f   :  { %v1124_v8 = vsel %vm540_vm0, %v1074_v52, %v1123_v50  ;;  %v1011_v36 = vmax.f32 %v1009_v41, %v1010_v25  ;;  %v1075_v34 = vsub.f32 0.0, %v1057_v13  ;;  %v1006_v39 = vrot.slane %v1005_v27, 1  ;;  %v8034_v50 = vld [vmem:[#allocation15 + $0xb8] sm:$0xff]  ;;  %v8033_v52 = vld [vmem:[#allocation15 + $0xb0] sm:$0xff] }
 0x740   :  { %v1107_v55 = vsel %vm540_vm0, %v995_v31, %v1106_v3  ;;  %v1001_v29 = vmax.f32 %v999_v62, %v1000_v32  ;;  %v1069_v37 = vmax.f32 %v1067_v47, %v1068_v30  ;;  %v1076_v43 = vsub.f32 0.0, %v1063_v33  ;;  %1427 = vmatpush.bf16.msra.mxu3 %v8034_v50  ;;  %v8032_v32 = vld [vmem:[#allocation15 + $0xa8] sm:$0xff]  ;;  %v8031_v3 = vld [vmem:[#allocation15 + $0xa0] sm:$0xff]  ;;  %v8030_v31 = vld [vmem:[#allocation15 + $0x98] sm:$0xff] }
 0x741   :  { %1241 = vmatpush.bf16.msra.mxu2 %v6674_v57  ;;  %v1125_v40 = vsel %vm542_vm1, %v1075_v34, %v1124_v8  ;;  %v1012_v59 = vrot.slane %v1011_v36, 1  ;;  %v1007_v49 = vmax.f32 %v1005_v27, %v1006_v39  ;;  %v1153_v62 = vperm.slane %v9037_v6, 2  ;;  %v8042_v27 = vld [vmem:[#allocation15 + $0xf8] sm:$0xff]  ;;  %v8041_v57 = vld [vmem:[#allocation15 + $0xf0] sm:$0xff]  ;;  %v8040_v30 = vld [vmem:[#allocation15 + $0xe8] sm:$0xff] }
 0x742   :  { %1254 = vmatpush.bf16.msra.mxu0 %v6678_v26  ;;  %v1108_v44 = vsel %vm542_vm1, %v1001_v29, %v1107_v55  ;;  %v1126_v48 = vsel %vm544_vm2, %v1076_v43, %v1125_v40  ;;  %v1077_v1 = vsub.f32 0.0, %v1069_v37  ;;  %v1152_v47 = vperm.slane %v8990_v24, 2  ;;  %1440 = vmatpush.bf16.msra.mxu1 %v8042_v27  ;;  %v8039_v26 = vld [vmem:[#allocation15 + $0xe0] sm:$0xff]  ;;  %v8038_v33 = vld [vmem:[#allocation15 + $0xd8] sm:$0xff]  ;;  %v8029_v34 = vld [vmem:[#allocation15 + $0x90] sm:$0xff] }
 0x743   :  { %v1109_v41 = vsel %vm544_vm2, %v1007_v49, %v1108_v44  ;;  %v1013_v4 = vmax.f32 %v1011_v36, %v1012_v59  ;;  %v8037_v39 = vld [vmem:[#allocation15 + $0xd0] sm:$0xff]  ;;  %v8028_v29 = vld [vmem:[#allocation15 + $0x88] sm:$0xff]  ;;  %v8027_v40 = vld [vmem:[#allocation15 + $0x80] sm:$0xff] }
 0x744   :  { %v1127_v53 = vsel %vm546_vm3, %v1077_v1, %v1126_v48  ;;  %1428 = vmatpush.bf16.msra.mxu3 %v8033_v52  ;;  %v8036_v37 = vld [vmem:[#allocation15 + $0xc8] sm:$0xff]  ;;  %v8035_v43 = vld [vmem:[#allocation15 + $0xc0] sm:$0xff] }
 0x745   :  { %v1110_v61 = vsel %vm546_vm3, %v1013_v4, %v1109_v41  ;;  %v1129_v46 = vsel %vm525_vm4, %v1127_v53, 0.0  ;;  %v1286_v4 = vperm.slane %v9037_v6, 3  ;;  %v1285_v53 = vperm.slane %v8990_v24, 3 }
 0x746   :  { %v1112_v5 = vsel %vm525_vm4, %v1110_v61, 0.0  ;;  %1441 = vmatpush.bf16.msra.mxu1 %v8041_v57 }
 0x747   :  { %v1130_v16 = vadd.f32 %v1129_v46, %v1112_v5  ;;  %v1290_v46 = vperm.slane %v9037_v6, 4 }
 0x748   :  { %1429 = vmatpush.bf16.msra.mxu3 %v8032_v32 }
 0x74a   :  { %1442 = vmatpush.bf16.msra.mxu1 %v8040_v30 }
 0x74c   :  { %1430 = vmatpush.bf16.msra.mxu3 %v8031_v3 }
 0x74e   :  { %1443 = vmatpush.bf16.msra.mxu1 %v8039_v26 }
 0x750   :  { %1431 = vmatpush.bf16.msra.mxu3 %v8030_v31 }
 0x752   :  { %1444 = vmatpush.bf16.msra.mxu1 %v8038_v33 }
 0x754   :  { %1432 = vmatpush.bf16.msra.mxu3 %v8029_v34 }
 0x756   :  { %1445 = vmatpush.bf16.msra.mxu1 %v8037_v39 }
 0x758   :  { %1433 = vmatpush.bf16.msra.mxu3 %v8028_v29 }
 0x75a   :  { %1446 = vmatpush.bf16.msra.mxu1 %v8036_v37  ;;  %v8058_v37 = vld [vmem:[#allocation13 + $0x174] sm:$0xf0] }
 0x75c   :  { %1434 = vmatpush.bf16.msra.mxu3 %v8027_v40  ;;  %v8057_v40 = vld [vmem:[#allocation13 + $0x174] sm:$0xf] }
 0x75e   :  { %1447 = vmatpush.bf16.msra.mxu1 %v8035_v43 }
 0x7a9   :  { %v1091_v63 = vpop.f32.mrf.mxu3 }
 0x7aa   :  { %v1095_v11 = vmul.f32 %v1091_v63, %v8949_v0 }
 0x7ac   :  { %v1131_v54 = vadd.f32 %v1130_v16, %v1095_v11  ;;  %v1289_v11 = vperm.slane %v8990_v24, 4 }
 0x7ae   :  { %v1132_v18 = vmul.f32 0.33333334, %v1131_v54 }
 0x7b0   :  { %v1133_v19 = vadd.f32 %v1132_v18, %v8995_v9 }
 0x7b1   :  { %v1093_v20 = vpop.f32.mrf.mxu3 }
 0x7b2   :  { %v1134_v56 = vpack.c.bf16 %v1133_v19, %v1133_v19 }
 0x7b4   :  { %1242 = vmatmul.bf16.vlgmr.msra.gmra.mxu2 %v1134_v56  ;;  %1255 = vmatmul.bf16.vlgmr.msra.gmra.mxu0 %v1134_v56 }
 0x831   :  { %v1256_v58 = vpop.f32.mrf.mxu0 }
 0x832   :  { %v1257_v7 = vadd.f32 %v1256_v58, %v1153_v62 }
 0x837   :  { %v1243_v28 = vpop.f32.mrf.mxu2 }
 0x838   :  { %v1244_v12 = vadd.f32 %v1243_v28, %v1152_v47  ;;  %v1330_v28 = vperm.slane %v8990_v24, 5 }
 0x839   :  { %v1258_v14 = vpop.f32.mrf.mxu0 }
 0x83a   :  { %v1260_v10 = vadd.f32 %v1257_v7, %v1244_v12 }
 0x83c   :  { %1261 = vadd.xlane.f32.xlu2 %v1260_v10 }
 0x83f   :  { %v1245_v15 = vpop.f32.mrf.mxu2 }
 0x8af   :  { %v1262_v38 = vpop.xlane.xlu2 %1261 }
 0x8b0   :  { %v1263_v9 = vmul.f32 %v1262_v38, %v8961_v17 }
 0x8b2   :  { %v1264_v21 = vsub.f32 %v1244_v12, %v1263_v9  ;;  %v1265_v23 = vsub.f32 %v1257_v7, %v1263_v9 }
 0x8b4   :  { %v1266_v22 = vmul.f32 %v1264_v21, %v1264_v21  ;;  %v1267_v25 = vmul.f32 %v1265_v23, %v1265_v23 }
 0x8b6   :  { %v1268_v13 = vadd.f32 %v1267_v25, %v1266_v22 }
 0x8b8   :  { %1269 = vadd.xlane.f32.xlu0 %v1268_v13 }
 0x92b   :  { %v1270_v8 = vpop.xlane.xlu0 %1269 }
 0x92c   :  { %v1271_v36 = vmul.f32 %v1270_v8, %v8961_v17 }
 0x92e   :  { %v1272_v55 = vadd.f32 1e-05, %v1271_v36 }
 0x930   :  { %8375 = vrsqrt.f32 %v1272_v55  ;;  %vm1279_vm6 = vweird.f32 %v1272_v55 }
 0x936   :  { %v8376_v59 = vpop.eup %8375 }
 0x937   :  { %v1274_v44 = vmul.f32 %v8376_v59, %v1272_v55  ;;  %vm1280_vm5 = vweird.f32 %v8376_v59 }
 0x938   :  { %vm1281_vm7 = vmor %vm1279_vm6, %vm1280_vm5 }
 0x939   :  { %v1275_v49 = vmul.f32 %v8376_v59, %v1274_v44  ;;  %v6861_v44 = vld [vmem:[#allocation13 + $0x178] sm:$0xf0] }
 0x93b   :  { %v1276_v48 = vmul.f32 0.5, %v1275_v49  ;;  %v6851_v49 = vld [vmem:[#allocation13 + $0x160] sm:$0xf] }
 0x93d   :  { %v1277_v1 = vsub.f32 1.5, %v1276_v48  ;;  %v8056_v48 = vld [vmem:[#allocation13 + $0x164] sm:$0xf0] }
 0x93f   :  { %v1278_v41 = vmul.f32 %v8376_v59, %v1277_v1 }
 0x941   :  { %v1282_v61 = vsel %vm1281_vm7, %v8376_v59, %v1278_v41  ;;  %v6864_v41 = vor.u32 %v8057_v40, %v6861_v44 }
 0x942   :  { %v1283_v63 = vmul.f32 %v1282_v61, %v1264_v21  ;;  %v1284_v5 = vmul.f32 %v1282_v61, %v1265_v23  ;;  %v6852_v61 = vor.u32 %v8056_v48, %v6851_v49 }
 0x943   :  { %1802 = vmatpush.bf16.msrb.mxu3 %v6864_v41 }
 0x944   :  { %v1287_v16 = vmul.f32 %v1285_v53, %v1283_v63  ;;  %v1288_v54 = vmul.f32 %v1286_v4, %v1284_v5  ;;  %v8055_v4 = vld [vmem:[#allocation13 + $0x164] sm:$0xf]  ;;  %v6853_v53 = vld [vmem:[#allocation13 + $0x168] sm:$0xf0]  ;;  %v6843_v5 = vld [vmem:[#allocation13 + $0x150] sm:$0xf] }
 0x945   :  { %v6856_v63 = vor.u32 %v8055_v4, %v6853_v53  ;;  %v9101_v53 = vld [vmem:[#allocation7 + $0x20] sm:$0xff] }
 0x946   :  { %v1291_v18 = vadd.f32 %v1289_v11, %v1287_v16  ;;  %v1292_v19 = vadd.f32 %v1290_v46, %v1288_v54  ;;  %v8054_v11 = vld [vmem:[#allocation13 + $0x154] sm:$0xf0]  ;;  %v8053_v16 = vld [vmem:[#allocation13 + $0x154] sm:$0xf]  ;;  %v6845_v54 = vld [vmem:[#allocation13 + $0x158] sm:$0xf0] }
 0x947   :  { %1803 = vmatpush.bf16.msrb.mxu3 %v6856_v63 }
 0x948   :  { %v1293_v20 = vmax.f32 %v1291_v18, 0.0  ;;  %v1294_v56 = vmax.f32 %v1292_v19, 0.0  ;;  %v6844_v19 = vor.u32 %v8054_v11, %v6843_v5 }
 0x94a   :  { %v1295_v58 = vpack.c.bf16 %v1293_v20, %v1293_v20  ;;  %v1296_v62 = vpack.c.bf16 %v1294_v56, %v1294_v56  ;;  %v9062_v20 = vld [vmem:[#allocation16 + $0x20] sm:$0xff] }
 0x94c   :  { %1435 = vmatmul.bf16.vlgmr.msra.gmra.mxu3 %v1295_v58  ;;  %1448 = vmatmul.bf16.vlgmr.msra.gmra.mxu1 %v1296_v62  ;;  %v6848_v58 = vor.u32 %v8053_v16, %v6845_v54  ;;  %v6835_v62 = vld [vmem:[#allocation13 + $0x140] sm:$0xf] }
 0x94e   :  { %1804 = vmatpush.bf16.msrb.mxu3 %v6848_v58 }
 0x9c9   :  { %v1449_v47 = vpop.f32.mrf.mxu1 }
 0x9cf   :  { %v1436_v7 = vpop.f32.mrf.mxu3 }
 0x9d0   :  { %v1437_v12 = vadd.f32 %v1436_v7, %v1330_v28  ;;  %v8051_v28 = vld [vmem:[#allocation13 + $0x144] sm:$0xf]  ;;  %v6837_v7 = vld [vmem:[#allocation13 + $0x148] sm:$0xf0] }
 0x9d1   :  { %v1451_v6 = vpop.f32.mrf.mxu1 }
 0x9d2   :  { %v1450_v14 = vadd.f32 %v1449_v47, %v1437_v12  ;;  %v8052_v47 = vld [vmem:[#allocation13 + $0x144] sm:$0xf0]  ;;  %v1503_v6 = vperm.slane %v9062_v20, 0 }
 0x9d4   :  { %v1453_v10 = vadd.f32 %v1450_v14, %v8982_v2  ;;  %v6836_v14 = vor.u32 %v8052_v47, %v6835_v62 }
 0x9d6   :  { %1454 = vadd.xlane.f32.xlu2 %v1453_v10 }
 0x9d7   :  { %v1438_v15 = vpop.f32.mrf.mxu3 }
 0x9d8   :  { %v6840_v15 = vor.u32 %v8051_v28, %v6837_v7 }
 0x9da   :  { %1805 = vmatpush.bf16.msrb.mxu3 %v6840_v15 }
 0xa49   :  { %v1455_v38 = vpop.xlane.xlu2 %1454 }
 0xa4a   :  { %v1456_v9 = vmul.f32 %v1455_v38, %v8855_v51  ;;  %v6827_v38 = vld [vmem:[#allocation13 + $0x130] sm:$0xf] }
 0xa4c   :  { %v1457_v21 = vsub.f32 %v1453_v10, %v1456_v9  ;;  %v8050_v9 = vld [vmem:[#allocation13 + $0x134] sm:$0xf0] }
 0xa4e   :  { %v1458_v23 = vmul.f32 %v1457_v21, %v1457_v21 }
 0xa50   :  { %1459 = vadd.xlane.f32.xlu0 %v1458_v23 }
 0xac3   :  { %v1460_v22 = vpop.xlane.xlu0 %1459 }
 0xac4   :  { %v1461_v25 = vmul.f32 %v1460_v22, %v8855_v51  ;;  %v8049_v22 = vld [vmem:[#allocation13 + $0x134] sm:$0xf] }
 0xac6   :  { %v1462_v13 = vadd.f32 1e-05, %v1461_v25  ;;  %v6829_v25 = vld [vmem:[#allocation13 + $0x138] sm:$0xf0] }
 0xac8   :  { %8377 = vrsqrt.f32 %v1462_v13  ;;  %vm1469_vm9 = vweird.f32 %v1462_v13 }
 0xace   :  { %v8378_v24 = vpop.eup %8377 }
 0xacf   :  { %v1464_v50 = vmul.f32 %v8378_v24, %v1462_v13  ;;  %vm1470_vm8 = vweird.f32 %v8378_v24 }
 0xad0   :  { %vm1471_vm10 = vmor %vm1469_vm9, %vm1470_vm8 }
 0xad1   :  { %v1465_v27 = vmul.f32 %v8378_v24, %v1464_v50  ;;  %v1508_v50 = vstv %s9060_s25 }
 0xad3   :  { %v1466_v52 = vmul.f32 0.5, %v1465_v27  ;;  %v6832_v27 = vor.u32 %v8049_v22, %v6829_v25  ;;  %v9119_v25 = vld [vmem:[#allocation7 + $0x38] sm:$0xff] }
 0xad5   :  { %v1467_v57 = vsub.f32 1.5, %v1466_v52  ;;  %1806 = vmatpush.bf16.msrb.mxu3 %v6832_v27 }
 0xad7   :  { %v1468_v2 = vmul.f32 %v8378_v24, %v1467_v57 }
 0xad9   :  { %v1472_v32 = vsel %vm1471_vm10, %v8378_v24, %v1468_v2  ;;  %v6828_v24 = vor.u32 %v8050_v9, %v6827_v38 }
 0xada   :  { %v1473_v30 = vmul.f32 %v1472_v32, %v1457_v21  ;;  %v1505_v21 = vperm.slane %v9062_v20, 1 }
 0xadc   :  { %v1474_v3 = vmul.f32 %v8973_v42, %v1473_v30 }
 0xade   :  { %v1475_v26 = vadd.f32 %v8975_v45, %v1474_v3  ;;  %v6859_v45 = vld [vmem:[#allocation13 + $0x170] sm:$0xf] }
 0xadf   :  { %v6860_v59 = vor.u32 %v8058_v37, %v6859_v45 }
 0xae0   :  { %vm1476_vm5 = vcmp.ge.f32.partialorder %v1475_v26, 0.0  ;;  %v1477_v31 = vmul.f32 %v1475_v26, %v8978_v60 }
 0xae1   :  { %1789 = vmatpush.bf16.msrb.mxu0 %v6860_v59  ;;  %v9095_v59 = vld [vmem:[#allocation7 + $0x18] sm:$0xff] }
 0xae2   :  { %v9054_v33 = vsel %vm1476_vm5, %v1475_v26, %v1477_v31  ;;  %v9075_v31 = vld [vmem:[#allocation6] sm:$0xf] }
 0xae3   :  { %1483 = vadd.xlane.f32.xlu2 %v9054_v33 }
 0xae5   :  { %1790 = vmatpush.bf16.msrb.mxu0 %v6852_v61 }
 0xae9   :  { %1791 = vmatpush.bf16.msrb.mxu0 %v6844_v19 }
 0xaed   :  { %1792 = vmatpush.bf16.msrb.mxu0 %v6836_v14 }
 0xaf1   :  { %1793 = vmatpush.bf16.msrb.mxu0 %v6828_v24 }
 0xb56   :  { %v1484_v8 = vpop.xlane.xlu2 %1483 }
 0xb57   :  { %v1485_v36 = vmul.f32 %v1484_v8, %v8855_v51  ;;  %v9079_v8 = vld [vmem:[#allocation7] sm:$0xff] }
 0xb59   :  { %v1486_v34 = vsub.f32 %v9054_v33, %v1485_v36 }
 0xb5b   :  { %v1487_v39 = vmul.f32 %v1486_v34, %v1486_v34 }
 0xb5d   :  { %1488 = vadd.xlane.f32.xlu0 %v1487_v39 }
 0xbd0   :  { %v1489_v55 = vpop.xlane.xlu0 %1488 }
 0xbd1   :  { %v1490_v29 = vmul.f32 %v1489_v55, %v8855_v51  ;;  %v9087_v55 = vld [vmem:[#allocation7 + $0x10] sm:$0xff] }
 0xbd3   :  { %v1491_v42 = vadd.f32 1e-05, %v1490_v29 }
 0xbd5   :  { %8379 = vrsqrt.f32 %v1491_v42  ;;  %vm1498_vm7 = vweird.f32 %v1491_v42 }
 0xbdb   :  { %v8380_v43 = vpop.eup %8379 }
 0xbdc   :  { %v1493_v1 = vmul.f32 %v8380_v43, %v1491_v42  ;;  %vm1499_vm6 = vweird.f32 %v8380_v43 }
 0xbdd   :  { %vm1500_vm8 = vmor %vm1498_vm7, %vm1499_vm6 }
 0xbde   :  { %v1494_v46 = vmul.f32 %v8380_v43, %v1493_v1 }
 0xbe0   :  { %v1495_v18 = vmul.f32 0.5, %v1494_v46 }
 0xbe2   :  { %v1496_v56 = vsub.f32 1.5, %v1495_v18 }
 0xbe4   :  { %v1497_v12 = vmul.f32 %v8380_v43, %v1496_v56  ;;  %v9107_v56 = vld [vmem:[#allocation7 + $0x28] sm:$0xff] }
 0xbe6   :  { %v1501_v10 = vsel %vm1500_vm8, %v8380_v43, %v1497_v12 }
 0xbe7   :  { %v1502_v23 = vmul.f32 %v1501_v10, %v1486_v34  ;;  %v9083_v34 = vld [vmem:[#allocation7 + $0x8] sm:$0xff]  ;;  %v9113_v10 = vld [vmem:[#allocation7 + $0x30] sm:$0xff] }
 0xbe9   :  { %v1504_v13 = vmul.f32 %v1503_v6, %v1502_v23 }
 0xbeb   :  { %v1506_v52 = vadd.f32 %v1505_v21, %v1504_v13 }
 0xbed   :  { %vm1507_vm9 = vcmp.ge.f32.partialorder %v1506_v52, 0.0  ;;  %v1509_v57 = vmul.f32 %v1508_v50, %v1506_v52 }
 0xbef   :  { %v9067_v2 = vsel %vm1507_vm9, %v1506_v52, %v1509_v57 }
 0xbf0   :  { %v1511_v32 = vmax.f32 %v9067_v2, 0.0 }
 0xbf2   :  { %v9070_v30 = vadd.f32 1e-07, %v1511_v32 }
 0xbf4   :  { %v1633_v3 = vpack.c.bf16 %v9070_v30, %v9070_v30  ;;  %v1569_v36 = vsub.f32 %v9079_v8, %v9070_v30  ;;  %v1570_v39 = vsub.f32 %v9083_v34, %v9070_v30  ;;  %v1571_v29 = vsub.f32 %v9087_v55, %v9070_v30 }
 0xbf5   :  { %v1513_v37 = vadd.f32 %v9079_v8, %v9070_v30  ;;  %v1514_v40 = vadd.f32 %v9083_v34, %v9070_v30  ;;  %v1572_v44 = vsub.f32 %v9095_v59, %v9070_v30  ;;  %v1515_v1 = vadd.f32 %v9087_v55, %v9070_v30 }
 0xbf6   :  { %v1635_v26 = vsel %vm498_vm11, %v1633_v3, 0  ;;  %v1577_v42 = vrot.slane %v1569_v36, 4  ;;  %v1583_v45 = vrot.slane %v1570_v39, 4  ;;  %v1589_v43 = vrot.slane %v1571_v29, 4 }
 0xbf7   :  { %1644 = vmatpush.bf16.msrb.mxu2 %v1635_v26  ;;  %v1521_v41 = vrot.slane %v1513_v37, 4  ;;  %v1527_v4 = vrot.slane %v1514_v40, 4  ;;  %v1573_v61 = vsub.f32 %v9101_v53, %v9070_v30  ;;  %v1595_v11 = vrot.slane %v1572_v44, 4 }
 0xbf8   :  { %v1578_v49 = vmax.f32 %v1569_v36, %v1577_v42  ;;  %v1584_v48 = vmax.f32 %v1570_v39, %v1583_v45  ;;  %v1590_v46 = vmax.f32 %v1571_v29, %v1589_v43  ;;  %v1533_v16 = vrot.slane %v1515_v1, 4 }
 0xbf9   :  { %v1516_v54 = vadd.f32 %v9095_v59, %v9070_v30  ;;  %v1522_v18 = vmax.f32 %v1513_v37, %v1521_v41  ;;  %v1528_v19 = vmax.f32 %v1514_v40, %v1527_v4  ;;  %v1574_v58 = vsub.f32 %v9107_v56, %v9070_v30 }
 0xbfa   :  { %6800 = vmatmul.msk.bf16.vlgmr.msrb.gmra.mxu2 %vm494_vm12, %v9075_v31  ;;  %v1579_v63 = vrot.slane %v1578_v49, 2  ;;  %v1585_v5 = vrot.slane %v1584_v48, 2  ;;  %v1591_v62 = vrot.slane %v1590_v46, 2  ;;  %v1601_v47 = vrot.slane %v1573_v61, 4 }
 0xbfb   :  { %v1596_v12 = vmax.f32 %v1572_v44, %v1595_v11  ;;  %v1517_v6 = vadd.f32 %v9101_v53, %v9070_v30  ;;  %v1534_v14 = vmax.f32 %v1515_v1, %v1533_v16  ;;  %v1575_v15 = vsub.f32 %v9113_v10, %v9070_v30 }
 0xbfc   :  { %v1580_v28 = vmax.f32 %v1578_v49, %v1579_v63  ;;  %v1586_v7 = vmax.f32 %v1584_v48, %v1585_v5  ;;  %v1523_v38 = vrot.slane %v1522_v18, 2  ;;  %v1529_v9 = vrot.slane %v1528_v19, 2 }
 0xbfd   :  { %v1539_v21 = vrot.slane %v1516_v54, 4  ;;  %v1607_v23 = vrot.slane %v1574_v58, 4  ;;  %v1518_v22 = vadd.f32 %v9107_v56, %v9070_v30  ;;  %v1576_v13 = vsub.f32 %v9119_v25, %v9070_v30 }
 0xbfe   :  { %v1592_v24 = vmax.f32 %v1590_v46, %v1591_v62  ;;  %v1602_v50 = vmax.f32 %v1573_v61, %v1601_v47  ;;  %v1581_v27 = vrot.slane %v1580_v28, 1  ;;  %v1587_v52 = vrot.slane %v1586_v7, 1 }
 0xbff   :  { %v1597_v57 = vrot.slane %v1596_v12, 2  ;;  %v1519_v32 = vadd.f32 %v9113_v10, %v9070_v30  ;;  %v1535_v3 = vrot.slane %v1534_v14, 2  ;;  %v1545_v26 = vrot.slane %v1517_v6, 4 }
 0xc00   :  { %v1613_v36 = vrot.slane %v1575_v15, 4  ;;  %v1524_v39 = vmax.f32 %v1522_v18, %v1523_v38  ;;  %v1530_v29 = vmax.f32 %v1528_v19, %v1529_v9  ;;  %v1540_v42 = vmax.f32 %v1516_v54, %v1539_v21 }
 0xc01   :  { %v1608_v45 = vmax.f32 %v1574_v58, %v1607_v23  ;;  %v1551_v37 = vrot.slane %v1518_v22, 4  ;;  %v1593_v40 = vrot.slane %v1592_v24, 1  ;;  %v1603_v43 = vrot.slane %v1602_v50, 2 }
 0xc02   :  { %v1619_v44 = vrot.slane %v1576_v13, 4  ;;  %v1520_v49 = vadd.f32 %v9119_v25, %v9070_v30  ;;  %v1582_v48 = vmax.f32 %v1580_v28, %v1581_v27  ;;  %v1588_v1 = vmax.f32 %v1586_v7, %v1587_v52 }
 0xc03   :  { %v1598_v41 = vmax.f32 %v1596_v12, %v1597_v57  ;;  %v1536_v4 = vmax.f32 %v1534_v14, %v1535_v3  ;;  %v1546_v61 = vmax.f32 %v1517_v6, %v1545_v26  ;;  %v1557_v46 = vrot.slane %v1519_v32, 4  ;;  %v8048_v26 = vld [vmem:[#allocation13 + $0x124] sm:$0xf0] }
 0xc04   :  { %v1614_v63 = vmax.f32 %v1575_v15, %v1613_v36  ;;  %v1525_v5 = vrot.slane %v1524_v39, 1  ;;  %v1531_v11 = vrot.slane %v1530_v29, 1  ;;  %v1541_v16 = vrot.slane %v1540_v42, 2  ;;  %v8047_v36 = vld [vmem:[#allocation13 + $0x124] sm:$0xf] }
 0xc05   :  { %v1609_v18 = vrot.slane %v1608_v45, 2  ;;  %v1552_v54 = vmax.f32 %v1518_v22, %v1551_v37  ;;  %v1594_v19 = vmax.f32 %v1592_v24, %v1593_v40  ;;  %v1604_v58 = vmax.f32 %v1602_v50, %v1603_v43  ;;  %v6819_v50 = vld [vmem:[#allocation13 + $0x120] sm:$0xf] }
 0xc06   :  { %v1620_v62 = vmax.f32 %v1576_v13, %v1619_v44  ;;  %v1563_v47 = vrot.slane %v1520_v49, 4  ;;  %v1599_v38 = vrot.slane %v1598_v41, 1  ;;  %v1625_v9 = vsub.f32 0.0, %v1582_v48  ;;  %v6821_v44 = vld [vmem:[#allocation13 + $0x128] sm:$0xf0] }
 0xc07   :  { %v1626_v21 = vsub.f32 0.0, %v1588_v1  ;;  %v1537_v30 = vrot.slane %v1536_v4, 1  ;;  %v1547_v28 = vrot.slane %v1546_v61, 2  ;;  %v1558_v7 = vmax.f32 %v1519_v32, %v1557_v46  ;;  %v8045_v46 = vld [vmem:[#allocation13 + $0x114] sm:$0xf] }
 0xc08   :  { %v1615_v12 = vrot.slane %v1614_v63, 2  ;;  %v1526_v14 = vmax.f32 %v1524_v39, %v1525_v5  ;;  %v1532_v6 = vmax.f32 %v1530_v29, %v1531_v11  ;;  %v1542_v23 = vmax.f32 %v1540_v42, %v1541_v16  ;;  %v6811_v39 = vld [vmem:[#allocation13 + $0x110] sm:$0xf]  ;;  %v8046_v29 = vld [vmem:[#allocation13 + $0x114] sm:$0xf0] }
 0xc09   :  { %v1610_v15 = vmax.f32 %v1608_v45, %v1609_v18  ;;  %v1553_v27 = vrot.slane %v1552_v54, 2  ;;  %v1605_v52 = vrot.slane %v1604_v58, 1  ;;  %v1621_v57 = vrot.slane %v1620_v62, 2 }
 0xc0a   :  { %v1627_v3 = vsub.f32 0.0, %v1594_v19  ;;  %v1564_v22 = vmax.f32 %v1520_v49, %v1563_v47  ;;  %v1600_v24 = vmax.f32 %v1598_v41, %v1599_v38  ;;  %v1676_v13 = vsel %vm534_vm13, %v1626_v21, %v1625_v9  ;;  %v6813_v49 = vld [vmem:[#allocation13 + $0x118] sm:$0xf0]  ;;  %v6803_v19 = vld [vmem:[#allocation13 + $0x100] sm:$0xf] }
 0xc0b   :  { %v1538_v37 = vmax.f32 %v1536_v4, %v1537_v30  ;;  %v1548_v40 = vmax.f32 %v1546_v61, %v1547_v28  ;;  %v1616_v43 = vmax.f32 %v1614_v63, %v1615_v12  ;;  %v6820_v32 = vor.u32 %v8048_v26, %v6819_v50  ;;  %v8044_v47 = vld [vmem:[#allocation13 + $0x104] sm:$0xf0]  ;;  %v8043_v30 = vld [vmem:[#allocation13 + $0x104] sm:$0xf]  ;;  %v6805_v28 = vld [vmem:[#allocation13 + $0x108] sm:$0xf0] }
 0xc0c   :  { %v1543_v42 = vrot.slane %v1542_v23, 1  ;;  %v1611_v45 = vrot.slane %v1610_v15, 1  ;;  %v1659_v48 = vsel %vm534_vm13, %v1532_v6, %v1526_v14  ;;  %v6824_v1 = vor.u32 %v8047_v36, %v6821_v44 }
 0xc0d   :  { %v1559_v41 = vrot.slane %v1558_v7, 2  ;;  %v1606_v5 = vmax.f32 %v1604_v58, %v1605_v52  ;;  %v1677_v11 = vsel %vm536_vm14, %v1627_v3, %v1676_v13  ;;  %1794 = vmatpush.bf16.msrb.mxu0 %v6820_v32  ;;  %v6812_v16 = vor.u32 %v8046_v29, %v6811_v39 }
 0xc0e   :  { %v1554_v4 = vmax.f32 %v1552_v54, %v1553_v27  ;;  %v1622_v61 = vmax.f32 %v1620_v62, %v1621_v57  ;;  %v1628_v63 = vsub.f32 0.0, %v1600_v24  ;;  %1807 = vmatpush.bf16.msrb.mxu3 %v6824_v1  ;;  %v6816_v18 = vor.u32 %v8045_v46, %v6813_v49 }
 0xc0f   :  { %v1549_v38 = vrot.slane %v1548_v40, 1  ;;  %v1617_v9 = vrot.slane %v1616_v43, 1  ;;  %v1660_v21 = vsel %vm536_vm14, %v1538_v37, %v1659_v48  ;;  %v1544_v12 = vmax.f32 %v1542_v23, %v1543_v42 }
 0xc10   :  { %v1565_v14 = vrot.slane %v1564_v22, 2  ;;  %v1612_v58 = vmax.f32 %v1610_v15, %v1611_v45  ;;  %v1678_v6 = vsel %vm538_vm15, %v1628_v63, %v1677_v11  ;;  %v1560_v52 = vmax.f32 %v1558_v7, %v1559_v41 }
 0xc11   :  { %v1629_v3 = vsub.f32 0.0, %v1606_v5  ;;  %1795 = vmatpush.bf16.msrb.mxu0 %v6812_v16  ;;  %v6804_v54 = vor.u32 %v8044_v47, %v6803_v19  ;;  %v1555_v62 = vrot.slane %v1554_v4, 1  ;;  %v1623_v27 = vrot.slane %v1622_v61, 1 }
 0xc12   :  { %v1661_v57 = vsel %vm538_vm15, %v1544_v12, %v1660_v21  ;;  %1808 = vmatpush.bf16.msrb.mxu3 %v6816_v18  ;;  %v6808_v24 = vor.u32 %v8043_v30, %v6805_v28  ;;  %v1550_v13 = vmax.f32 %v1548_v40, %v1549_v38  ;;  %v1618_v50 = vmax.f32 %v1616_v43, %v1617_v9  ;;  %v9147_v38 = vld [vmem:[#allocation16 + $0x28] sm:$0xff] }
 0xc13   :  { %v1679_v26 = vsel %vm540_vm0, %v1629_v3, %v1678_v6  ;;  %v1566_v36 = vmax.f32 %v1564_v22, %v1565_v14  ;;  %v1630_v23 = vsub.f32 0.0, %v1612_v58  ;;  %v1561_v37 = vrot.slane %v1560_v52, 1 }
 0xc14   :  { %v1662_v15 = vsel %vm540_vm0, %v1550_v13, %v1661_v57  ;;  %v1556_v7 = vmax.f32 %v1554_v4, %v1555_v62  ;;  %v1624_v32 = vmax.f32 %v1622_v61, %v1623_v27  ;;  %v1631_v39 = vsub.f32 0.0, %v1618_v50  ;;  %v8074_v13 = vld [vmem:[#allocation15 + $0x178] sm:$0xff]  ;;  %v8065_v50 = vld [vmem:[#allocation15 + $0x130] sm:$0xff] }
 0xc15   :  { %1796 = vmatpush.bf16.msrb.mxu0 %v6804_v54  ;;  %v1680_v44 = vsel %vm542_vm1, %v1630_v23, %v1679_v26  ;;  %v1567_v29 = vrot.slane %v1566_v36, 1  ;;  %v1562_v45 = vmax.f32 %v1560_v52, %v1561_v37  ;;  %v1707_v9 = vperm.slane %v9062_v20, 2  ;;  %1995 = vmatpush.bf16.msrb.mxu1 %v8074_v13  ;;  %v8073_v26 = vld [vmem:[#allocation15 + $0x170] sm:$0xff]  ;;  %v8072_v23 = vld [vmem:[#allocation15 + $0x168] sm:$0xff]  ;;  %v8063_v37 = vld [vmem:[#allocation15 + $0x120] sm:$0xff] }
 0xc16   :  { %1809 = vmatpush.bf16.msrb.mxu3 %v6808_v24  ;;  %v1663_v42 = vsel %vm542_vm1, %v1556_v7, %v1662_v15  ;;  %v1681_v40 = vsel %vm544_vm2, %v1631_v39, %v1680_v44  ;;  %v1632_v43 = vsub.f32 0.0, %v1624_v32  ;;  %v1708_v21 = vperm.slane %v9147_v38, 2  ;;  %v8066_v24 = vld [vmem:[#allocation15 + $0x138] sm:$0xff]  ;;  %v8071_v15 = vld [vmem:[#allocation15 + $0x160] sm:$0xff] }
 0xc17   :  { %v1664_v22 = vsel %vm544_vm2, %v1562_v45, %v1663_v42  ;;  %v1568_v48 = vmax.f32 %v1566_v36, %v1567_v29  ;;  %1982 = vmatpush.bf16.msra.mxu2 %v8066_v24  ;;  %v8064_v36 = vld [vmem:[#allocation15 + $0x128] sm:$0xff]  ;;  %v8062_v7 = vld [vmem:[#allocation15 + $0x118] sm:$0xff]  ;;  %v8061_v29 = vld [vmem:[#allocation15 + $0x110] sm:$0xff] }
 0xc18   :  { %v1682_v1 = vsel %vm546_vm3, %v1632_v43, %v1681_v40  ;;  %v8070_v32 = vld [vmem:[#allocation15 + $0x158] sm:$0xff]  ;;  %v8069_v42 = vld [vmem:[#allocation15 + $0x150] sm:$0xff]  ;;  %v8060_v40 = vld [vmem:[#allocation15 + $0x108] sm:$0xff] }
 0xc19   :  { %v1665_v46 = vsel %vm546_vm3, %v1568_v48, %v1664_v22  ;;  %v1684_v49 = vsel %vm525_vm4, %v1682_v1, 0.0  ;;  %1996 = vmatpush.bf16.msrb.mxu1 %v8073_v26  ;;  %v8068_v43 = vld [vmem:[#allocation15 + $0x148] sm:$0xff]  ;;  %v8059_v22 = vld [vmem:[#allocation15 + $0x100] sm:$0xff] }
 0xc1a   :  { %v1667_v5 = vsel %vm525_vm4, %v1665_v46, 0.0  ;;  %v8067_v48 = vld [vmem:[#allocation15 + $0x140] sm:$0xff] }
 0xc1b   :  { %v1685_v16 = vadd.f32 %v1684_v49, %v1667_v5  ;;  %1983 = vmatpush.bf16.msra.mxu2 %v8065_v50 }
 0xc1d   :  { %1997 = vmatpush.bf16.msrb.mxu1 %v8072_v23 }
 0xc1f   :  { %1984 = vmatpush.bf16.msra.mxu2 %v8064_v36 }
 0xc21   :  { %1998 = vmatpush.bf16.msrb.mxu1 %v8071_v15 }
 0xc23   :  { %1985 = vmatpush.bf16.msra.mxu2 %v8063_v37 }
 0xc25   :  { %1999 = vmatpush.bf16.msrb.mxu1 %v8070_v32 }
 0xc27   :  { %1986 = vmatpush.bf16.msra.mxu2 %v8062_v7 }
 0xc29   :  { %2000 = vmatpush.bf16.msrb.mxu1 %v8069_v42  ;;  %v9161_v42 = vld [vmem:[#allocation12 + $0x6] ss:$0 sm:$0xff] }
 0xc2b   :  { %1987 = vmatpush.bf16.msra.mxu2 %v8061_v29 }
 0xc2d   :  { %2001 = vmatpush.bf16.msrb.mxu1 %v8068_v43 }
 0xc2f   :  { %1988 = vmatpush.bf16.msra.mxu2 %v8060_v40  ;;  %v9164_v40 = vld [vmem:[#allocation12 + $0x7] ss:$0 sm:$0xff] }
 0xc31   :  { %2002 = vmatpush.bf16.msrb.mxu1 %v8067_v48 }
 0xc33   :  { %1989 = vmatpush.bf16.msra.mxu2 %v8059_v22 }
 0xc7d   :  { %v1646_v41 = vpop.f32.mrf.mxu2 }
 0xc7e   :  { %v1650_v11 = vmul.f32 %v1646_v41, %v8949_v0 }
 0xc80   :  { %v1686_v4 = vadd.f32 %v1685_v16, %v1650_v11  ;;  %v1841_v16 = vperm.slane %v9147_v38, 3 }
 0xc82   :  { %v1687_v61 = vmul.f32 0.33333334, %v1686_v4  ;;  %v1840_v4 = vperm.slane %v9062_v20, 3 }
 0xc84   :  { %v1688_v63 = vadd.f32 %v1687_v61, %v9067_v2 }
 0xc85   :  { %v1648_v18 = vpop.f32.mrf.mxu2 }
 0xc86   :  { %v1689_v19 = vpack.c.bf16 %v1688_v63, %v1688_v63  ;;  %v1845_v63 = vperm.slane %v9147_v38, 4 }
 0xc88   :  { %1797 = vmatmul.bf16.vlgmr.msrb.gmra.mxu0 %v1689_v19  ;;  %1810 = vmatmul.bf16.vlgmr.msrb.gmra.mxu3 %v1689_v19 }
 0xd05   :  { %v1798_v47 = vpop.f32.mrf.mxu0 }
 0xd06   :  { %v1799_v28 = vadd.f32 %v1798_v47, %v1707_v9  ;;  %v1844_v47 = vperm.slane %v9062_v20, 4 }
 0xd0b   :  { %v1811_v30 = vpop.f32.mrf.mxu3 }
 0xd0c   :  { %v1812_v12 = vadd.f32 %v1811_v30, %v1708_v21 }
 0xd0d   :  { %v1800_v14 = vpop.f32.mrf.mxu0 }
 0xd0e   :  { %v1815_v58 = vadd.f32 %v1812_v12, %v1799_v28 }
 0xd10   :  { %1816 = vadd.xlane.f32.xlu2 %v1815_v58 }
 0xd13   :  { %v1813_v6 = vpop.f32.mrf.mxu3 }
 0xd83   :  { %v1817_v52 = vpop.xlane.xlu2 %1816 }
 0xd84   :  { %v1818_v2 = vmul.f32 %v1817_v52, %v8961_v17 }
 0xd86   :  { %v1819_v3 = vsub.f32 %v1799_v28, %v1818_v2  ;;  %v1820_v54 = vsub.f32 %v1812_v12, %v1818_v2  ;;  %v1885_v2 = vperm.slane %v9062_v20, 5 }
 0xd88   :  { %v1821_v62 = vmul.f32 %v1819_v3, %v1819_v3  ;;  %v1822_v27 = vmul.f32 %v1820_v54, %v1820_v54 }
 0xd8a   :  { %v1823_v57 = vadd.f32 %v1822_v27, %v1821_v62 }
 0xd8c   :  { %1824 = vadd.xlane.f32.xlu0 %v1823_v57 }
 0xdff   :  { %v1825_v44 = vpop.xlane.xlu0 %1824 }
 0xe00   :  { %v1826_v39 = vmul.f32 %v1825_v44, %v8961_v17 }
 0xe02   :  { %v1827_v45 = vadd.f32 1e-05, %v1826_v39 }
 0xe04   :  { %8381 = vrsqrt.f32 %v1827_v45  ;;  %vm1834_vm5 = vweird.f32 %v1827_v45 }
 0xe0a   :  { %v8382_v1 = vpop.eup %8381 }
 0xe0b   :  { %v1829_v46 = vmul.f32 %v8382_v1, %v1827_v45  ;;  %vm1835_vm10 = vweird.f32 %v8382_v1 }
 0xe0c   :  { %vm1836_vm6 = vmor %vm1834_vm5, %vm1835_vm10 }
 0xe0d   :  { %v1830_v49 = vmul.f32 %v8382_v1, %v1829_v46 }
 0xe0f   :  { %v1831_v41 = vmul.f32 0.5, %v1830_v49 }
 0xe11   :  { %v1832_v5 = vsub.f32 1.5, %v1831_v41 }
 0xe13   :  { %v1833_v11 = vmul.f32 %v8382_v1, %v1832_v5 }
 0xe15   :  { %v1837_v61 = vsel %vm1836_vm6, %v8382_v1, %v1833_v11 }
 0xe16   :  { %v1838_v18 = vmul.f32 %v1837_v61, %v1819_v3  ;;  %v1839_v19 = vmul.f32 %v1837_v61, %v1820_v54  ;;  %v8090_v61 = vld [vmem:[#allocation13 + $0x1f4] sm:$0xf0] }
 0xe18   :  { %v1842_v9 = vmul.f32 %v1840_v4, %v1838_v18  ;;  %v1843_v21 = vmul.f32 %v1841_v16, %v1839_v19  ;;  %v6989_v4 = vld [vmem:[#allocation13 + $0x1f0] sm:$0xf] }
 0xe19   :  { %v6990_v19 = vor.u32 %v8090_v61, %v6989_v4 }
 0xe1a   :  { %v1846_v30 = vadd.f32 %v1844_v47, %v1842_v9  ;;  %v1847_v28 = vadd.f32 %v1845_v63, %v1843_v21  ;;  %v8089_v63 = vld [vmem:[#allocation13 + $0x1f4] sm:$0xf]  ;;  %v6991_v47 = vld [vmem:[#allocation13 + $0x1f8] sm:$0xf0]  ;;  %v6981_v9 = vld [vmem:[#allocation13 + $0x1e0] sm:$0xf] }
 0xe1b   :  { %v8088_v21 = vld [vmem:[#allocation13 + $0x1e4] sm:$0xf0]  ;;  %2344 = vmatpush.bf16.msra.mxu3 %v6990_v19 }
 0xe1c   :  { %v1848_v12 = vmax.f32 %v1846_v30, 0.0  ;;  %v1849_v14 = vmax.f32 %v1847_v28, 0.0  ;;  %v6994_v28 = vor.u32 %v8089_v63, %v6991_v47 }
 0xe1e   :  { %v1850_v58 = vpack.c.bf16 %v1848_v12, %v1848_v12  ;;  %v1851_v6 = vpack.c.bf16 %v1849_v14, %v1849_v14  ;;  %v8087_v12 = vld [vmem:[#allocation13 + $0x1e4] sm:$0xf]  ;;  %v6983_v14 = vld [vmem:[#allocation13 + $0x1e8] sm:$0xf0]  ;;  %2357 = vmatpush.bf16.msrb.mxu2 %v6994_v28 }
 0xe20   :  { %1990 = vmatmul.bf16.vlgmr.msra.gmra.mxu2 %v1850_v58  ;;  %2003 = vmatmul.bf16.vlgmr.msrb.gmra.mxu1 %v1851_v6  ;;  %v6982_v58 = vor.u32 %v8088_v21, %v6981_v9 }
 0xe22   :  { %2345 = vmatpush.bf16.msra.mxu3 %v6982_v58 }
 0xe9d   :  { %v2004_v52 = vpop.f32.mrf.mxu1 }
 0xea3   :  { %v1991_v62 = vpop.f32.mrf.mxu2 }
 0xea4   :  { %v1992_v27 = vadd.f32 %v1991_v62, %v1885_v2  ;;  %v6973_v2 = vld [vmem:[#allocation13 + $0x1d0] sm:$0xf]  ;;  %v8086_v62 = vld [vmem:[#allocation13 + $0x1d4] sm:$0xf0] }
 0xea5   :  { %v2006_v38 = vpop.f32.mrf.mxu1 }
 0xea6   :  { %v2005_v3 = vadd.f32 %v2004_v52, %v1992_v27  ;;  %v6986_v52 = vor.u32 %v8087_v12, %v6983_v14  ;;  %v8085_v27 = vld [vmem:[#allocation13 + $0x1d4] sm:$0xf]  ;;  %v6975_v38 = vld [vmem:[#allocation13 + $0x1d8] sm:$0xf0] }
 0xea8   :  { %v2008_v54 = vadd.f32 %v2005_v3, %v9054_v33  ;;  %2358 = vmatpush.bf16.msrb.mxu2 %v6986_v52 }
 0xeaa   :  { %2009 = vadd.xlane.f32.xlu2 %v2008_v54 }
 0xeab   :  { %v1993_v57 = vpop.f32.mrf.mxu2 }
 0xeac   :  { %v9176_v57 = vld [vmem:[#allocation16 + $0x30] sm:$0xff] }
 0xf1d   :  { %v2010_v24 = vpop.xlane.xlu2 %2009 }
 0xf1e   :  { %v2011_v13 = vmul.f32 %v2010_v24, %v8855_v51 }
 0xf20   :  { %v2012_v50 = vsub.f32 %v2008_v54, %v2011_v13  ;;  %v6974_v54 = vor.u32 %v8086_v62, %v6973_v2  ;;  %v6978_v13 = vor.u32 %v8085_v27, %v6975_v38 }
 0xf22   :  { %v2013_v26 = vmul.f32 %v2012_v50, %v2012_v50  ;;  %2346 = vmatpush.bf16.msra.mxu3 %v6974_v54  ;;  %2359 = vmatpush.bf16.msrb.mxu2 %v6978_v13 }
 0xf24   :  { %2014 = vadd.xlane.f32.xlu1 %v2013_v26  ;;  %v8084_v26 = vld [vmem:[#allocation13 + $0x1c4] sm:$0xf0] }
 0xf97   :  { %v2015_v36 = vpop.xlane.xlu1 %2014 }
 0xf98   :  { %v2016_v23 = vmul.f32 %v2015_v36, %v8855_v51  ;;  %v8083_v36 = vld [vmem:[#allocation13 + $0x1c4] sm:$0xf] }
 0xf9a   :  { %v2017_v37 = vadd.f32 1e-05, %v2016_v23  ;;  %v6967_v23 = vld [vmem:[#allocation13 + $0x1c8] sm:$0xf0] }
 0xf9c   :  { %8383 = vrsqrt.f32 %v2017_v37  ;;  %vm2024_vm8 = vweird.f32 %v2017_v37 }
 0xfa2   :  { %v8384_v20 = vpop.eup %8383 }
 0xfa3   :  { %v2019_v15 = vmul.f32 %v8384_v20, %v2017_v37  ;;  %vm2025_vm7 = vweird.f32 %v8384_v20 }
 0xfa4   :  { %vm2026_vm9 = vmor %vm2024_vm8, %vm2025_vm7 }
 0xfa5   :  { %v2020_v7 = vmul.f32 %v8384_v20, %v2019_v15 }
 0xfa7   :  { %v2021_v32 = vmul.f32 0.5, %v2020_v7 }
 0xfa9   :  { %v2022_v44 = vsub.f32 1.5, %v2021_v32  ;;  %v6970_v32 = vor.u32 %v8083_v36, %v6967_v23 }
 0xfab   :  { %v2023_v33 = vmul.f32 %v8384_v20, %v2022_v44  ;;  %v6957_v44 = vld [vmem:[#allocation13 + $0x1b0] sm:$0xf]  ;;  %2360 = vmatpush.bf16.msrb.mxu2 %v6970_v32 }
 0xfad   :  { %v2027_v39 = vsel %vm2026_vm9, %v8384_v20, %v2023_v33  ;;  %v2058_v20 = vperm.slane %v9176_v57, 0  ;;  %v8082_v33 = vld [vmem:[#allocation13 + $0x1b4] sm:$0xf0] }
 0xfae   :  { %v2028_v29 = vmul.f32 %v2027_v39, %v2012_v50  ;;  %v6965_v50 = vld [vmem:[#allocation13 + $0x1c0] sm:$0xf]  ;;  %v2060_v39 = vperm.slane %v9176_v57, 1 }
 0xfaf   :  { %v6966_v15 = vor.u32 %v8084_v26, %v6965_v50 }
 0xfb0   :  { %v2029_v45 = vmul.f32 %v9161_v42, %v2028_v29 }
 0xfb1   :  { %2347 = vmatpush.bf16.msra.mxu3 %v6966_v15 }
 0xfb2   :  { %v2030_v43 = vadd.f32 %v9164_v40, %v2029_v45  ;;  %v8081_v45 = vld [vmem:[#allocation13 + $0x1b4] sm:$0xf] }
 0xfb4   :  { %vm2031_vm10 = vcmp.ge.f32.partialorder %v2030_v43, 0.0  ;;  %v2032_v22 = vmul.f32 %v2030_v43, %v8978_v60 }
 0xfb6   :  { %v9168_v48 = vsel %vm2031_vm10, %v2030_v43, %v2032_v22  ;;  %v6959_v43 = vld [vmem:[#allocation13 + $0x1b8] sm:$0xf0] }
 0xfb7   :  { %2038 = vadd.xlane.f32.xlu0 %v9168_v48 }
0x102a   :  { %v2039_v1 = vpop.xlane.xlu0 %2038 }
0x102b   :  { %v2040_v46 = vmul.f32 %v2039_v1, %v8855_v51  ;;  %v6958_v1 = vor.u32 %v8082_v33, %v6957_v44 }
0x102d   :  { %v2041_v49 = vsub.f32 %v9168_v48, %v2040_v46  ;;  %v2063_v46 = vstv %s9174_s26  ;;  %2348 = vmatpush.bf16.msra.mxu3 %v6958_v1 }
0x102f   :  { %v2042_v41 = vmul.f32 %v2041_v49, %v2041_v49 }
0x1031   :  { %2043 = vadd.xlane.f32.xlu2 %v2042_v41  ;;  %v6962_v41 = vor.u32 %v8081_v45, %v6959_v43 }
0x1033   :  { %2361 = vmatpush.bf16.msrb.mxu2 %v6962_v41 }
0x10a4   :  { %v2044_v5 = vpop.xlane.xlu2 %2043 }
0x10a5   :  { %v2045_v11 = vmul.f32 %v2044_v5, %v8855_v51 }
0x10a7   :  { %v2046_v16 = vadd.f32 1e-05, %v2045_v11 }
0x10a9   :  { %8385 = vrsqrt.f32 %v2046_v16  ;;  %vm2053_vm6 = vweird.f32 %v2046_v16 }
0x10af   :  { %v8386_v18 = vpop.eup %8385 }
0x10b0   :  { %v2048_v30 = vmul.f32 %v8386_v18, %v2046_v16  ;;  %vm2054_vm5 = vweird.f32 %v8386_v18 }
0x10b1   :  { %vm2055_vm7 = vmor %vm2053_vm6, %vm2054_vm5 }
0x10b2   :  { %v2049_v6 = vmul.f32 %v8386_v18, %v2048_v30 }
0x10b4   :  { %v2050_v3 = vmul.f32 0.5, %v2049_v6 }
0x10b6   :  { %v2051_v24 = vsub.f32 1.5, %v2050_v3 }
0x10b8   :  { %v2052_v37 = vmul.f32 %v8386_v18, %v2051_v24 }
0x10ba   :  { %v2056_v7 = vsel %vm2055_vm7, %v8386_v18, %v2052_v37 }
0x10bb   :  { %v2057_v29 = vmul.f32 %v2056_v7, %v2041_v49 }
0x10bd   :  { %v2059_v22 = vmul.f32 %v2058_v20, %v2057_v29 }
0x10bf   :  { %v2061_v5 = vadd.f32 %v2060_v39, %v2059_v22 }
0x10c1   :  { %vm2062_vm8 = vcmp.ge.f32.partialorder %v2061_v5, 0.0  ;;  %v2064_v11 = vmul.f32 %v2063_v46, %v2061_v5 }
0x10c3   :  { %v9181_v16 = vsel %vm2062_vm8, %v2061_v5, %v2064_v11 }
0x10c4   :  { %v2066_v4 = vmax.f32 %v9181_v16, 0.0 }
0x10c6   :  { %v2067_v61 = vadd.f32 1e-07, %v2066_v4 }
0x10c8   :  { %v2188_v63 = vpack.c.bf16 %v2067_v61, %v2067_v61  ;;  %v2124_v18 = vsub.f32 %v9079_v8, %v2067_v61  ;;  %v2125_v19 = vsub.f32 %v9083_v34, %v2067_v61  ;;  %v2126_v47 = vsub.f32 %v9087_v55, %v2067_v61 }
0x10c9   :  { %v2068_v30 = vadd.f32 %v9079_v8, %v2067_v61  ;;  %v2069_v28 = vadd.f32 %v9083_v34, %v2067_v61  ;;  %v2127_v14 = vsub.f32 %v9095_v59, %v2067_v61  ;;  %v2070_v52 = vadd.f32 %v9087_v55, %v2067_v61 }
0x10ca   :  { %v2190_v49 = vsel %vm498_vm11, %v2188_v63, 0  ;;  %v2132_v9 = vrot.slane %v2124_v18, 4  ;;  %v2138_v21 = vrot.slane %v2125_v19, 4  ;;  %v2144_v12 = vrot.slane %v2126_v47, 4 }
0x10cb   :  { %2199 = vmatpush.bf16.msra.mxu0 %v2190_v49  ;;  %v2082_v2 = vrot.slane %v2069_v28, 4  ;;  %v2128_v62 = vsub.f32 %v9101_v53, %v2067_v61  ;;  %v2150_v54 = vrot.slane %v2127_v14, 4  ;;  %v2088_v24 = vrot.slane %v2070_v52, 4 }
0x10cc   :  { %v2133_v58 = vmax.f32 %v2124_v18, %v2132_v9  ;;  %v2139_v6 = vmax.f32 %v2125_v19, %v2138_v21  ;;  %v2145_v27 = vmax.f32 %v2126_v47, %v2144_v12  ;;  %v2071_v8 = vadd.f32 %v9095_v59, %v2067_v61 }
0x10cd   :  { %v2083_v34 = vmax.f32 %v2069_v28, %v2082_v2  ;;  %v2129_v50 = vsub.f32 %v9107_v56, %v2067_v61  ;;  %v2156_v36 = vrot.slane %v2128_v62, 4  ;;  %v2151_v55 = vmax.f32 %v2127_v14, %v2150_v54 }
0x10ce   :  { %6930 = vmatmul.msk.bf16.vlgmr.msra.gmra.mxu0 %vm494_vm12, %v9075_v31  ;;  %v2076_v31 = vrot.slane %v2068_v30, 4  ;;  %v2134_v38 = vrot.slane %v2133_v58, 2  ;;  %v2140_v3 = vrot.slane %v2139_v6, 2  ;;  %v2146_v26 = vrot.slane %v2145_v27, 2 }
0x10cf   :  { %v2072_v20 = vadd.f32 %v9101_v53, %v2067_v61  ;;  %v2089_v15 = vmax.f32 %v2070_v52, %v2088_v24  ;;  %v2130_v7 = vsub.f32 %v9113_v10, %v2067_v61  ;;  %v2084_v44 = vrot.slane %v2083_v34, 2 }
0x10d0   :  { %v2077_v13 = vmax.f32 %v2068_v30, %v2076_v31  ;;  %v2135_v23 = vmax.f32 %v2133_v58, %v2134_v38  ;;  %v2141_v37 = vmax.f32 %v2139_v6, %v2140_v3  ;;  %v2094_v33 = vrot.slane %v2071_v8, 4 }
0x10d1   :  { %v2162_v39 = vrot.slane %v2129_v50, 4  ;;  %v2073_v59 = vadd.f32 %v9107_v56, %v2067_v61  ;;  %v2131_v29 = vsub.f32 %v9119_v25, %v2067_v61  ;;  %v2147_v45 = vmax.f32 %v2145_v27, %v2146_v26 }
0x10d2   :  { %v2078_v32 = vrot.slane %v2077_v13, 2  ;;  %v2157_v43 = vmax.f32 %v2128_v62, %v2156_v36  ;;  %v2136_v22 = vrot.slane %v2135_v23, 1  ;;  %v2142_v1 = vrot.slane %v2141_v37, 1 }
0x10d3   :  { %v2152_v46 = vrot.slane %v2151_v55, 2  ;;  %v2074_v41 = vadd.f32 %v9113_v10, %v2067_v61  ;;  %v2090_v5 = vrot.slane %v2089_v15, 2  ;;  %v2100_v53 = vrot.slane %v2072_v20, 4 }
0x10d4   :  { %v2168_v11 = vrot.slane %v2130_v7, 4  ;;  %v2079_v4 = vmax.f32 %v2077_v13, %v2078_v32  ;;  %v2085_v63 = vmax.f32 %v2083_v34, %v2084_v44  ;;  %v2095_v49 = vmax.f32 %v2071_v8, %v2094_v33 }
0x10d5   :  { %v2163_v18 = vmax.f32 %v2129_v50, %v2162_v39  ;;  %v2106_v19 = vrot.slane %v2073_v59, 4  ;;  %v2148_v47 = vrot.slane %v2147_v45, 1  ;;  %v2158_v9 = vrot.slane %v2157_v43, 2 }
0x10d6   :  { %v2174_v56 = vrot.slane %v2131_v29, 4  ;;  %v2075_v21 = vadd.f32 %v9119_v25, %v2067_v61  ;;  %v2137_v30 = vmax.f32 %v2135_v23, %v2136_v22  ;;  %v2143_v28 = vmax.f32 %v2141_v37, %v2142_v1 }
0x10d7   :  { %v2153_v12 = vmax.f32 %v2151_v55, %v2152_v46  ;;  %v2091_v14 = vmax.f32 %v2089_v15, %v2090_v5  ;;  %v2101_v58 = vmax.f32 %v2072_v20, %v2100_v53  ;;  %v2112_v6 = vrot.slane %v2074_v41, 4  ;;  %v6941_v5 = vld [vmem:[#allocation13 + $0x190] sm:$0xf]  ;;  %v8078_v53 = vld [vmem:[#allocation13 + $0x194] sm:$0xf0] }
0x10d8   :  { %v2169_v10 = vmax.f32 %v2130_v7, %v2168_v11  ;;  %v2080_v52 = vrot.slane %v2079_v4, 1  ;;  %v2086_v31 = vrot.slane %v2085_v63, 1  ;;  %v2096_v2 = vrot.slane %v2095_v49, 2 }
0x10d9   :  { %v2164_v62 = vrot.slane %v2163_v18, 2  ;;  %v2107_v27 = vmax.f32 %v2073_v59, %v2106_v19  ;;  %v2149_v38 = vmax.f32 %v2147_v45, %v2148_v47  ;;  %v2159_v3 = vmax.f32 %v2157_v43, %v2158_v9  ;;  %v6949_v59 = vld [vmem:[#allocation13 + $0x1a0] sm:$0xf]  ;;  %v8079_v45 = vld [vmem:[#allocation13 + $0x1a4] sm:$0xf] }
0x10da   :  { %v2175_v54 = vmax.f32 %v2131_v29, %v2174_v56  ;;  %v2118_v24 = vrot.slane %v2075_v21, 4  ;;  %v2154_v8 = vrot.slane %v2153_v12, 1  ;;  %v2180_v13 = vsub.f32 0.0, %v2137_v30  ;;  %v8080_v29 = vld [vmem:[#allocation13 + $0x1a4] sm:$0xf0] }
0x10db   :  { %v2181_v34 = vsub.f32 0.0, %v2143_v28  ;;  %v2092_v25 = vrot.slane %v2091_v14, 1  ;;  %v2102_v61 = vrot.slane %v2101_v58, 2  ;;  %v2113_v50 = vmax.f32 %v2074_v41, %v2112_v6  ;;  %v6951_v41 = vld [vmem:[#allocation13 + $0x1a8] sm:$0xf0] }
0x10dc   :  { %v2170_v26 = vrot.slane %v2169_v10, 2  ;;  %v2081_v36 = vmax.f32 %v2079_v4, %v2080_v52  ;;  %v2087_v23 = vmax.f32 %v2085_v63, %v2086_v31  ;;  %v2097_v37 = vmax.f32 %v2095_v49, %v2096_v2  ;;  %v6943_v19 = vld [vmem:[#allocation13 + $0x198] sm:$0xf0]  ;;  %v8076_v6 = vld [vmem:[#allocation13 + $0x184] sm:$0xf0] }
0x10dd   :  { %v2165_v55 = vmax.f32 %v2163_v18, %v2164_v62  ;;  %v2108_v20 = vrot.slane %v2107_v27, 2  ;;  %v2160_v15 = vrot.slane %v2159_v3, 1  ;;  %v2176_v7 = vrot.slane %v2175_v54, 2  ;;  %v8077_v18 = vld [vmem:[#allocation13 + $0x194] sm:$0xf] }
0x10de   :  { %v2182_v32 = vsub.f32 0.0, %v2149_v38  ;;  %v2119_v44 = vmax.f32 %v2075_v21, %v2118_v24  ;;  %v2155_v33 = vmax.f32 %v2153_v12, %v2154_v8  ;;  %v2231_v39 = vsel %vm534_vm13, %v2181_v34, %v2180_v13  ;;  %v8075_v2 = vld [vmem:[#allocation13 + $0x184] sm:$0xf]  ;;  %v6935_v62 = vld [vmem:[#allocation13 + $0x188] sm:$0xf0] }
0x10df   :  { %v2093_v43 = vmax.f32 %v2091_v14, %v2092_v25  ;;  %v2103_v22 = vmax.f32 %v2101_v58, %v2102_v61  ;;  %v2171_v1 = vmax.f32 %v2169_v10, %v2170_v26  ;;  %v6950_v46 = vor.u32 %v8080_v29, %v6949_v59  ;;  %v6933_v58 = vld [vmem:[#allocation13 + $0x180] sm:$0xf] }
0x10e0   :  { %v2098_v11 = vrot.slane %v2097_v37, 1  ;;  %v2166_v4 = vrot.slane %v2165_v55, 1  ;;  %v2214_v63 = vsel %vm534_vm13, %v2087_v23, %v2081_v36  ;;  %v6954_v49 = vor.u32 %v8079_v45, %v6951_v41 }
0x10e1   :  { %v2114_v47 = vrot.slane %v2113_v50, 2  ;;  %v2161_v9 = vmax.f32 %v2159_v3, %v2160_v15  ;;  %v2232_v56 = vsel %vm536_vm14, %v2182_v32, %v2231_v39  ;;  %2349 = vmatpush.bf16.msra.mxu3 %v6950_v46  ;;  %v6942_v21 = vor.u32 %v8078_v53, %v6941_v5 }
0x10e2   :  { %v2109_v30 = vmax.f32 %v2107_v27, %v2108_v20  ;;  %v2177_v28 = vmax.f32 %v2175_v54, %v2176_v7  ;;  %v2183_v12 = vsub.f32 0.0, %v2155_v33  ;;  %2362 = vmatpush.bf16.msrb.mxu2 %v6954_v49  ;;  %v6946_v14 = vor.u32 %v8077_v18, %v6943_v19 }
0x10e3   :  { %v2104_v10 = vrot.slane %v2103_v22, 1  ;;  %v2172_v52 = vrot.slane %v2171_v1, 1  ;;  %v2215_v31 = vsel %vm536_vm14, %v2093_v43, %v2214_v63  ;;  %v2099_v38 = vmax.f32 %v2097_v37, %v2098_v11 }
0x10e4   :  { %v2120_v24 = vrot.slane %v2119_v44, 2  ;;  %v2167_v3 = vmax.f32 %v2165_v55, %v2166_v4  ;;  %v2233_v8 = vsel %vm538_vm15, %v2183_v12, %v2232_v56  ;;  %v2115_v13 = vmax.f32 %v2113_v50, %v2114_v47  ;;  %v9223_v56 = vld [vmem:[#allocation16 + $0x38] sm:$0xff] }
0x10e5   :  { %v2184_v34 = vsub.f32 0.0, %v2161_v9  ;;  %2350 = vmatpush.bf16.msra.mxu3 %v6942_v21  ;;  %v6934_v27 = vor.u32 %v8076_v6, %v6933_v58  ;;  %v2110_v54 = vrot.slane %v2109_v30, 1  ;;  %v2178_v25 = vrot.slane %v2177_v28, 1 }
0x10e6   :  { %v2216_v61 = vsel %vm538_vm15, %v2099_v38, %v2215_v31  ;;  %2363 = vmatpush.bf16.msrb.mxu2 %v6946_v14  ;;  %v6938_v26 = vor.u32 %v8075_v2, %v6935_v62  ;;  %v2105_v36 = vmax.f32 %v2103_v22, %v2104_v10  ;;  %v2173_v23 = vmax.f32 %v2171_v1, %v2172_v52 }
0x10e7   :  { %v2234_v20 = vsel %vm540_vm0, %v2184_v34, %v2233_v8  ;;  %v2121_v15 = vmax.f32 %v2119_v44, %v2120_v24  ;;  %v2185_v37 = vsub.f32 0.0, %v2167_v3  ;;  %v2116_v7 = vrot.slane %v2115_v13, 1  ;;  %v8098_v8 = vld [vmem:[#allocation15 + $0x1b8] sm:$0xff]  ;;  %v8097_v34 = vld [vmem:[#allocation15 + $0x1b0] sm:$0xff] }
0x10e8   :  { %v2217_v55 = vsel %vm540_vm0, %v2105_v36, %v2216_v61  ;;  %v2111_v50 = vmax.f32 %v2109_v30, %v2110_v54  ;;  %v2179_v32 = vmax.f32 %v2177_v28, %v2178_v25  ;;  %v2186_v39 = vsub.f32 0.0, %v2173_v23  ;;  %2537 = vmatpush.bf16.msrb.mxu0 %v8098_v8  ;;  %v8096_v54 = vld [vmem:[#allocation15 + $0x1a8] sm:$0xff]  ;;  %v8095_v61 = vld [vmem:[#allocation15 + $0x1a0] sm:$0xff]  ;;  %v8094_v36 = vld [vmem:[#allocation15 + $0x198] sm:$0xff] }
0x10e9   :  { %2351 = vmatpush.bf16.msra.mxu3 %v6934_v27  ;;  %v2235_v33 = vsel %vm542_vm1, %v2185_v37, %v2234_v20  ;;  %v2122_v59 = vrot.slane %v2121_v15, 1  ;;  %v2117_v45 = vmax.f32 %v2115_v13, %v2116_v7  ;;  %v2262_v21 = vperm.slane %v9176_v57, 2  ;;  %v8106_v13 = vld [vmem:[#allocation15 + $0x1f8] sm:$0xff]  ;;  %v8105_v27 = vld [vmem:[#allocation15 + $0x1f0] sm:$0xff]  ;;  %v8104_v25 = vld [vmem:[#allocation15 + $0x1e8] sm:$0xff] }
0x10ea   :  { %2364 = vmatpush.bf16.msrb.mxu2 %v6938_v26  ;;  %v2218_v29 = vsel %vm542_vm1, %v2111_v50, %v2217_v55  ;;  %v2236_v43 = vsel %vm544_vm2, %v2186_v39, %v2235_v33  ;;  %v2187_v22 = vsub.f32 0.0, %v2179_v32  ;;  %v2263_v30 = vperm.slane %v9223_v56, 2  ;;  %2550 = vmatpush.bf16.msra.mxu1 %v8106_v13  ;;  %v8103_v26 = vld [vmem:[#allocation15 + $0x1e0] sm:$0xff]  ;;  %v8102_v23 = vld [vmem:[#allocation15 + $0x1d8] sm:$0xff]  ;;  %v8093_v37 = vld [vmem:[#allocation15 + $0x190] sm:$0xff] }
0x10eb   :  { %v2219_v44 = vsel %vm544_vm2, %v2117_v45, %v2218_v29  ;;  %v2123_v1 = vmax.f32 %v2121_v15, %v2122_v59  ;;  %v8101_v7 = vld [vmem:[#allocation15 + $0x1d0] sm:$0xff]  ;;  %v8092_v50 = vld [vmem:[#allocation15 + $0x188] sm:$0xff]  ;;  %v8091_v33 = vld [vmem:[#allocation15 + $0x180] sm:$0xff] }
0x10ec   :  { %v2237_v46 = vsel %vm546_vm3, %v2187_v22, %v2236_v43  ;;  %2538 = vmatpush.bf16.msrb.mxu0 %v8097_v34  ;;  %v8100_v32 = vld [vmem:[#allocation15 + $0x1c8] sm:$0xff]  ;;  %v8099_v39 = vld [vmem:[#allocation15 + $0x1c0] sm:$0xff] }
0x10ed   :  { %v2220_v41 = vsel %vm546_vm3, %v2123_v1, %v2219_v44  ;;  %v2239_v5 = vsel %vm525_vm4, %v2237_v46, 0.0  ;;  %v2396_v1 = vperm.slane %v9223_v56, 3  ;;  %v2395_v46 = vperm.slane %v9176_v57, 3 }
0x10ee   :  { %v2222_v11 = vsel %vm525_vm4, %v2220_v41, 0.0  ;;  %2551 = vmatpush.bf16.msra.mxu1 %v8105_v27 }
0x10ef   :  { %v2240_v63 = vadd.f32 %v2239_v5, %v2222_v11  ;;  %v2400_v5 = vperm.slane %v9223_v56, 4 }
0x10f0   :  { %2539 = vmatpush.bf16.msrb.mxu0 %v8096_v54 }
0x10f2   :  { %2552 = vmatpush.bf16.msra.mxu1 %v8104_v25 }
0x10f4   :  { %2540 = vmatpush.bf16.msrb.mxu0 %v8095_v61 }
0x10f6   :  { %2553 = vmatpush.bf16.msra.mxu1 %v8103_v26 }
0x10f8   :  { %2541 = vmatpush.bf16.msrb.mxu0 %v8094_v36 }
0x10fa   :  { %2554 = vmatpush.bf16.msra.mxu1 %v8102_v23 }
0x10fc   :  { %2542 = vmatpush.bf16.msrb.mxu0 %v8093_v37 }
0x10fe   :  { %2555 = vmatpush.bf16.msra.mxu1 %v8101_v7 }
0x1100   :  { %2543 = vmatpush.bf16.msrb.mxu0 %v8092_v50 }
0x1102   :  { %2556 = vmatpush.bf16.msra.mxu1 %v8100_v32  ;;  %v8122_v32 = vld [vmem:[#allocation13 + $0x274] sm:$0xf0] }
0x1104   :  { %2544 = vmatpush.bf16.msrb.mxu0 %v8091_v33  ;;  %v8121_v33 = vld [vmem:[#allocation13 + $0x274] sm:$0xf] }
0x1106   :  { %2557 = vmatpush.bf16.msra.mxu1 %v8099_v39 }
0x114b   :  { %v2201_v53 = vpop.f32.mrf.mxu0 }
0x114c   :  { %v2205_v4 = vmul.f32 %v2201_v53, %v8949_v0 }
0x114e   :  { %v2241_v49 = vadd.f32 %v2240_v63, %v2205_v4  ;;  %v2399_v4 = vperm.slane %v9176_v57, 4 }
0x1150   :  { %v2242_v18 = vmul.f32 0.33333334, %v2241_v49 }
0x1152   :  { %v2243_v19 = vadd.f32 %v2242_v18, %v9181_v16 }
0x1153   :  { %v2203_v47 = vpop.f32.mrf.mxu0 }
0x1154   :  { %v2244_v9 = vpack.c.bf16 %v2243_v19, %v2243_v19 }
0x1156   :  { %2352 = vmatmul.bf16.vlgmr.msra.gmra.mxu3 %v2244_v9  ;;  %2365 = vmatmul.bf16.vlgmr.msrb.gmra.mxu2 %v2244_v9 }
0x11d9   :  { %v2353_v28 = vpop.f32.mrf.mxu3  ;;  %v2366_v12 = vpop.f32.mrf.mxu2 }
0x11da   :  { %v2354_v14 = vadd.f32 %v2353_v28, %v2262_v21  ;;  %v2367_v58 = vadd.f32 %v2366_v12, %v2263_v30  ;;  %v2440_v28 = vperm.slane %v9176_v57, 5 }
0x11dc   :  { %v2370_v6 = vadd.f32 %v2367_v58, %v2354_v14 }
0x11de   :  { %2371 = vadd.xlane.f32.xlu1 %v2370_v6 }
0x11e1   :  { %v2355_v10 = vpop.f32.mrf.mxu3  ;;  %v2368_v52 = vpop.f32.mrf.mxu2 }
0x1251   :  { %v2372_v31 = vpop.xlane.xlu1 %2371 }
0x1252   :  { %v2373_v16 = vmul.f32 %v2372_v31, %v8961_v17 }
0x1254   :  { %v2374_v2 = vsub.f32 %v2354_v14, %v2373_v16  ;;  %v2375_v62 = vsub.f32 %v2367_v58, %v2373_v16 }
0x1256   :  { %v2376_v38 = vmul.f32 %v2374_v2, %v2374_v2  ;;  %v2377_v24 = vmul.f32 %v2375_v62, %v2375_v62 }
0x1258   :  { %v2378_v3 = vadd.f32 %v2377_v24, %v2376_v38 }
0x125a   :  { %2379 = vadd.xlane.f32.xlu0 %v2378_v3 }
0x12cd   :  { %v2380_v20 = vpop.xlane.xlu0 %2379 }
0x12ce   :  { %v2381_v15 = vmul.f32 %v2380_v20, %v8961_v17 }
0x12d0   :  { %v2382_v55 = vadd.f32 1e-05, %v2381_v15 }
0x12d2   :  { %8387 = vrsqrt.f32 %v2382_v55  ;;  %vm2389_vm10 = vweird.f32 %v2382_v55 }
0x12d8   :  { %v8388_v59 = vpop.eup %8387 }
0x12d9   :  { %v2384_v29 = vmul.f32 %v8388_v59, %v2382_v55  ;;  %vm2390_vm9 = vweird.f32 %v8388_v59 }
0x12da   :  { %vm2391_vm5 = vmor %vm2389_vm10, %vm2390_vm9 }
0x12db   :  { %v2385_v45 = vmul.f32 %v8388_v59, %v2384_v29  ;;  %v7121_v29 = vld [vmem:[#allocation13 + $0x278] sm:$0xf0] }
0x12dd   :  { %v2386_v43 = vmul.f32 0.5, %v2385_v45  ;;  %v7111_v45 = vld [vmem:[#allocation13 + $0x260] sm:$0xf] }
0x12df   :  { %v2387_v22 = vsub.f32 1.5, %v2386_v43  ;;  %v8120_v43 = vld [vmem:[#allocation13 + $0x264] sm:$0xf0] }
0x12e1   :  { %v2388_v44 = vmul.f32 %v8388_v59, %v2387_v22 }
0x12e3   :  { %v2392_v41 = vsel %vm2391_vm5, %v8388_v59, %v2388_v44  ;;  %v7124_v44 = vor.u32 %v8121_v33, %v7121_v29 }
0x12e4   :  { %v2393_v53 = vmul.f32 %v2392_v41, %v2374_v2  ;;  %v2394_v11 = vmul.f32 %v2392_v41, %v2375_v62  ;;  %v7112_v41 = vor.u32 %v8120_v43, %v7111_v45 }
0x12e5   :  { %2912 = vmatpush.bf16.msra.mxu0 %v7124_v44 }
0x12e6   :  { %v2397_v63 = vmul.f32 %v2395_v46, %v2393_v53  ;;  %v2398_v49 = vmul.f32 %v2396_v1, %v2394_v11  ;;  %v8119_v1 = vld [vmem:[#allocation13 + $0x264] sm:$0xf]  ;;  %v7113_v46 = vld [vmem:[#allocation13 + $0x268] sm:$0xf0]  ;;  %v7103_v11 = vld [vmem:[#allocation13 + $0x250] sm:$0xf] }
0x12e7   :  { %v7116_v53 = vor.u32 %v8119_v1, %v7113_v46  ;;  %v9287_v46 = vld [vmem:[#allocation7 + $0x20] sm:$0xff] }
0x12e8   :  { %v2401_v18 = vadd.f32 %v2399_v4, %v2397_v63  ;;  %v2402_v19 = vadd.f32 %v2400_v5, %v2398_v49  ;;  %v8118_v4 = vld [vmem:[#allocation13 + $0x254] sm:$0xf0]  ;;  %v8117_v63 = vld [vmem:[#allocation13 + $0x254] sm:$0xf]  ;;  %v7105_v49 = vld [vmem:[#allocation13 + $0x258] sm:$0xf0] }
0x12e9   :  { %2913 = vmatpush.bf16.msra.mxu0 %v7116_v53 }
0x12ea   :  { %v2403_v47 = vmax.f32 %v2401_v18, 0.0  ;;  %v2404_v9 = vmax.f32 %v2402_v19, 0.0  ;;  %v7104_v19 = vor.u32 %v8118_v4, %v7103_v11 }
0x12ec   :  { %v2405_v21 = vpack.c.bf16 %v2403_v47, %v2403_v47  ;;  %v2406_v30 = vpack.c.bf16 %v2404_v9, %v2404_v9  ;;  %v9248_v47 = vld [vmem:[#allocation16 + $0x40] sm:$0xff] }
0x12ee   :  { %2545 = vmatmul.bf16.vlgmr.msrb.gmra.mxu0 %v2405_v21  ;;  %2558 = vmatmul.bf16.vlgmr.msra.gmra.mxu1 %v2406_v30  ;;  %v7108_v21 = vor.u32 %v8117_v63, %v7105_v49  ;;  %v7095_v30 = vld [vmem:[#allocation13 + $0x240] sm:$0xf] }
0x12f0   :  { %2914 = vmatpush.bf16.msra.mxu0 %v7108_v21 }
0x136b   :  { %v2546_v12 = vpop.f32.mrf.mxu0  ;;  %v2559_v14 = vpop.f32.mrf.mxu1 }
0x136c   :  { %v2547_v58 = vadd.f32 %v2546_v12, %v2440_v28  ;;  %v8116_v28 = vld [vmem:[#allocation13 + $0x244] sm:$0xf0]  ;;  %v8115_v12 = vld [vmem:[#allocation13 + $0x244] sm:$0xf] }
0x136e   :  { %v2560_v56 = vadd.f32 %v2559_v14, %v2547_v58  ;;  %v7097_v14 = vld [vmem:[#allocation13 + $0x248] sm:$0xf0] }
0x1370   :  { %v2563_v6 = vadd.f32 %v2560_v56, %v9168_v48  ;;  %v2613_v56 = vperm.slane %v9248_v47, 0 }
0x1372   :  { %2564 = vadd.xlane.f32.xlu2 %v2563_v6 }
0x1373   :  { %v2548_v10 = vpop.f32.mrf.mxu0  ;;  %v2561_v52 = vpop.f32.mrf.mxu1 }
0x1374   :  { %v7100_v52 = vor.u32 %v8115_v12, %v7097_v14 }
0x1376   :  { %2915 = vmatpush.bf16.msra.mxu0 %v7100_v52 }
0x13e5   :  { %v2565_v31 = vpop.xlane.xlu2 %2564 }
0x13e6   :  { %v2566_v16 = vmul.f32 %v2565_v31, %v8855_v51  ;;  %v7087_v31 = vld [vmem:[#allocation13 + $0x230] sm:$0xf] }
0x13e8   :  { %v2567_v2 = vsub.f32 %v2563_v6, %v2566_v16  ;;  %v7096_v6 = vor.u32 %v8116_v28, %v7095_v30  ;;  %v8114_v16 = vld [vmem:[#allocation13 + $0x234] sm:$0xf0] }
0x13ea   :  { %v2568_v62 = vmul.f32 %v2567_v2, %v2567_v2 }
0x13ec   :  { %2569 = vadd.xlane.f32.xlu1 %v2568_v62 }
0x145f   :  { %v2570_v38 = vpop.xlane.xlu1 %2569 }
0x1460   :  { %v2571_v24 = vmul.f32 %v2570_v38, %v8855_v51  ;;  %v8113_v38 = vld [vmem:[#allocation13 + $0x234] sm:$0xf] }
0x1462   :  { %v2572_v3 = vadd.f32 1e-05, %v2571_v24  ;;  %v7089_v24 = vld [vmem:[#allocation13 + $0x238] sm:$0xf0] }
0x1464   :  { %8389 = vrsqrt.f32 %v2572_v3  ;;  %vm2579_vm7 = vweird.f32 %v2572_v3 }
0x146a   :  { %v8390_v57 = vpop.eup %8389 }
0x146b   :  { %v2574_v8 = vmul.f32 %v8390_v57, %v2572_v3  ;;  %vm2580_vm6 = vweird.f32 %v8390_v57 }
0x146c   :  { %vm2581_vm8 = vmor %vm2579_vm7, %vm2580_vm6 }
0x146d   :  { %v2575_v13 = vmul.f32 %v8390_v57, %v2574_v8  ;;  %v2618_v8 = vstv %s9246_s27 }
0x146f   :  { %v2576_v34 = vmul.f32 0.5, %v2575_v13  ;;  %v7092_v13 = vor.u32 %v8113_v38, %v7089_v24  ;;  %v9305_v24 = vld [vmem:[#allocation7 + $0x38] sm:$0xff] }
0x1471   :  { %v2577_v27 = vsub.f32 1.5, %v2576_v34  ;;  %2916 = vmatpush.bf16.msra.mxu0 %v7092_v13 }
0x1473   :  { %v2578_v48 = vmul.f32 %v8390_v57, %v2577_v27 }
0x1475   :  { %v2582_v54 = vsel %vm2581_vm8, %v8390_v57, %v2578_v48  ;;  %v7088_v57 = vor.u32 %v8114_v16, %v7087_v31 }
0x1476   :  { %v2583_v25 = vmul.f32 %v2582_v54, %v2567_v2  ;;  %v2615_v2 = vperm.slane %v9248_v47, 1 }
0x1478   :  { %v2584_v61 = vmul.f32 %v9161_v42, %v2583_v25 }
0x147a   :  { %v2585_v26 = vadd.f32 %v9164_v40, %v2584_v61  ;;  %v7119_v40 = vld [vmem:[#allocation13 + $0x270] sm:$0xf] }
0x147b   :  { %v7120_v59 = vor.u32 %v8122_v32, %v7119_v40 }
0x147c   :  { %vm2586_vm9 = vcmp.ge.f32.partialorder %v2585_v26, 0.0  ;;  %v2587_v36 = vmul.f32 %v2585_v26, %v8978_v60 }
0x147d   :  { %2899 = vmatpush.bf16.msra.mxu2 %v7120_v59  ;;  %v9281_v59 = vld [vmem:[#allocation7 + $0x18] sm:$0xff] }
0x147e   :  { %v9240_v23 = vsel %vm2586_vm9, %v2585_v26, %v2587_v36  ;;  %v9261_v36 = vld [vmem:[#allocation6] sm:$0xf] }
0x147f   :  { %2593 = vadd.xlane.f32.xlu0 %v9240_v23 }
0x1481   :  { %2900 = vmatpush.bf16.msra.mxu2 %v7112_v41 }
0x1485   :  { %2901 = vmatpush.bf16.msra.mxu2 %v7104_v19 }
0x1489   :  { %2902 = vmatpush.bf16.msra.mxu2 %v7096_v6 }
0x148d   :  { %2903 = vmatpush.bf16.msra.mxu2 %v7088_v57 }
0x14f2   :  { %v2594_v20 = vpop.xlane.xlu0 %2593 }
0x14f3   :  { %v2595_v15 = vmul.f32 %v2594_v20, %v8855_v51  ;;  %v9265_v20 = vld [vmem:[#allocation7] sm:$0xff] }
0x14f5   :  { %v2596_v37 = vsub.f32 %v9240_v23, %v2595_v15 }
0x14f7   :  { %v2597_v7 = vmul.f32 %v2596_v37, %v2596_v37 }
0x14f9   :  { %2598 = vadd.xlane.f32.xlu2 %v2597_v7 }
0x156c   :  { %v2599_v55 = vpop.xlane.xlu2 %2598 }
0x156d   :  { %v2600_v50 = vmul.f32 %v2599_v55, %v8855_v51  ;;  %v9273_v55 = vld [vmem:[#allocation7 + $0x10] sm:$0xff] }
0x156f   :  { %v2601_v42 = vadd.f32 1e-05, %v2600_v50 }
0x1571   :  { %8391 = vrsqrt.f32 %v2601_v42  ;;  %vm2608_vm5 = vweird.f32 %v2601_v42 }
0x1577   :  { %v8392_v39 = vpop.eup %8391 }
0x1578   :  { %v2603_v22 = vmul.f32 %v8392_v39, %v2601_v42  ;;  %vm2609_vm10 = vweird.f32 %v8392_v39 }
0x1579   :  { %vm2610_vm6 = vmor %vm2608_vm5, %vm2609_vm10 }
0x157a   :  { %v2604_v5 = vmul.f32 %v8392_v39, %v2603_v22 }
0x157c   :  { %v2605_v18 = vmul.f32 0.5, %v2604_v5 }
0x157e   :  { %v2606_v9 = vsub.f32 1.5, %v2605_v18 }
0x1580   :  { %v2607_v58 = vmul.f32 %v8392_v39, %v2606_v9  ;;  %v9293_v9 = vld [vmem:[#allocation7 + $0x28] sm:$0xff] }
0x1582   :  { %v2611_v10 = vsel %vm2610_vm6, %v8392_v39, %v2607_v58 }
0x1583   :  { %v2612_v62 = vmul.f32 %v2611_v10, %v2596_v37  ;;  %v9269_v37 = vld [vmem:[#allocation7 + $0x8] sm:$0xff]  ;;  %v9299_v10 = vld [vmem:[#allocation7 + $0x30] sm:$0xff] }
0x1585   :  { %v2614_v3 = vmul.f32 %v2613_v56, %v2612_v62 }
0x1587   :  { %v2616_v34 = vadd.f32 %v2615_v2, %v2614_v3 }
0x1589   :  { %vm2617_vm7 = vcmp.ge.f32.partialorder %v2616_v34, 0.0  ;;  %v2619_v27 = vmul.f32 %v2618_v8, %v2616_v34 }
0x158b   :  { %v9253_v48 = vsel %vm2617_vm7, %v2616_v34, %v2619_v27 }
0x158c   :  { %v2621_v54 = vmax.f32 %v9253_v48, 0.0 }
0x158e   :  { %v9256_v25 = vadd.f32 1e-07, %v2621_v54 }
0x1590   :  { %v2743_v61 = vpack.c.bf16 %v9256_v25, %v9256_v25  ;;  %v2679_v15 = vsub.f32 %v9265_v20, %v9256_v25  ;;  %v2680_v7 = vsub.f32 %v9269_v37, %v9256_v25  ;;  %v2681_v50 = vsub.f32 %v9273_v55, %v9256_v25 }
0x1591   :  { %v2623_v32 = vadd.f32 %v9265_v20, %v9256_v25  ;;  %v2624_v33 = vadd.f32 %v9269_v37, %v9256_v25  ;;  %v2682_v29 = vsub.f32 %v9281_v59, %v9256_v25  ;;  %v2625_v22 = vadd.f32 %v9273_v55, %v9256_v25 }
0x1592   :  { %v2745_v26 = vsel %vm498_vm11, %v2743_v61, 0  ;;  %v2687_v42 = vrot.slane %v2679_v15, 4  ;;  %v2693_v40 = vrot.slane %v2680_v7, 4  ;;  %v2699_v39 = vrot.slane %v2681_v50, 4 }
0x1593   :  { %2754 = vmatpush.bf16.msrb.mxu3 %v2745_v26  ;;  %v2631_v44 = vrot.slane %v2623_v32, 4  ;;  %v2637_v1 = vrot.slane %v2624_v33, 4  ;;  %v2683_v41 = vsub.f32 %v9287_v46, %v9256_v25  ;;  %v2705_v4 = vrot.slane %v2682_v29, 4 }
0x1594   :  { %v2688_v45 = vmax.f32 %v2679_v15, %v2687_v42  ;;  %v2694_v43 = vmax.f32 %v2680_v7, %v2693_v40  ;;  %v2700_v5 = vmax.f32 %v2681_v50, %v2699_v39  ;;  %v2643_v63 = vrot.slane %v2625_v22, 4 }
0x1595   :  { %v2626_v49 = vadd.f32 %v9281_v59, %v9256_v25  ;;  %v2632_v18 = vmax.f32 %v2623_v32, %v2631_v44  ;;  %v2638_v19 = vmax.f32 %v2624_v33, %v2637_v1  ;;  %v2684_v21 = vsub.f32 %v9293_v9, %v9256_v25 }
0x1596   :  { %7060 = vmatmul.msk.bf16.vlgmr.msrb.gmra.mxu3 %vm494_vm12, %v9261_v36  ;;  %v2689_v53 = vrot.slane %v2688_v45, 2  ;;  %v2695_v11 = vrot.slane %v2694_v43, 2  ;;  %v2701_v30 = vrot.slane %v2700_v5, 2  ;;  %v2711_v28 = vrot.slane %v2683_v41, 4 }
0x1597   :  { %v2706_v58 = vmax.f32 %v2682_v29, %v2705_v4  ;;  %v2627_v56 = vadd.f32 %v9287_v46, %v9256_v25  ;;  %v2644_v6 = vmax.f32 %v2625_v22, %v2643_v63  ;;  %v2685_v52 = vsub.f32 %v9299_v10, %v9256_v25 }
0x1598   :  { %v2690_v12 = vmax.f32 %v2688_v45, %v2689_v53  ;;  %v2696_v14 = vmax.f32 %v2694_v43, %v2695_v11  ;;  %v2633_v31 = vrot.slane %v2632_v18, 2  ;;  %v2639_v16 = vrot.slane %v2638_v19, 2 }
0x1599   :  { %v2649_v2 = vrot.slane %v2626_v49, 4  ;;  %v2717_v62 = vrot.slane %v2684_v21, 4  ;;  %v2628_v38 = vadd.f32 %v9293_v9, %v9256_v25  ;;  %v2686_v3 = vsub.f32 %v9305_v24, %v9256_v25 }
0x159a   :  { %v2702_v57 = vmax.f32 %v2700_v5, %v2701_v30  ;;  %v2712_v8 = vmax.f32 %v2683_v41, %v2711_v28  ;;  %v2691_v13 = vrot.slane %v2690_v12, 1  ;;  %v2697_v34 = vrot.slane %v2696_v14, 1 }
0x159b   :  { %v2707_v27 = vrot.slane %v2706_v58, 2  ;;  %v2629_v54 = vadd.f32 %v9299_v10, %v9256_v25  ;;  %v2645_v61 = vrot.slane %v2644_v6, 2  ;;  %v2655_v26 = vrot.slane %v2627_v56, 4 }
0x159c   :  { %v2723_v15 = vrot.slane %v2685_v52, 4  ;;  %v2634_v7 = vmax.f32 %v2632_v18, %v2633_v31  ;;  %v2640_v50 = vmax.f32 %v2638_v19, %v2639_v16  ;;  %v2650_v42 = vmax.f32 %v2626_v49, %v2649_v2 }
0x159d   :  { %v2718_v40 = vmax.f32 %v2684_v21, %v2717_v62  ;;  %v2661_v32 = vrot.slane %v2628_v38, 4  ;;  %v2703_v33 = vrot.slane %v2702_v57, 1  ;;  %v2713_v39 = vrot.slane %v2712_v8, 2 }
0x159e   :  { %v2729_v29 = vrot.slane %v2686_v3, 4  ;;  %v2630_v45 = vadd.f32 %v9305_v24, %v9256_v25  ;;  %v2692_v43 = vmax.f32 %v2690_v12, %v2691_v13  ;;  %v2698_v22 = vmax.f32 %v2696_v14, %v2697_v34 }
0x159f   :  { %v2708_v44 = vmax.f32 %v2706_v58, %v2707_v27  ;;  %v2646_v1 = vmax.f32 %v2644_v6, %v2645_v61  ;;  %v2656_v41 = vmax.f32 %v2627_v56, %v2655_v26  ;;  %v2667_v5 = vrot.slane %v2629_v54, 4  ;;  %v8112_v26 = vld [vmem:[#allocation13 + $0x224] sm:$0xf0] }
0x15a0   :  { %v2724_v53 = vmax.f32 %v2685_v52, %v2723_v15  ;;  %v2635_v11 = vrot.slane %v2634_v7, 1  ;;  %v2641_v4 = vrot.slane %v2640_v50, 1  ;;  %v2651_v63 = vrot.slane %v2650_v42, 2  ;;  %v8111_v15 = vld [vmem:[#allocation13 + $0x224] sm:$0xf] }
0x15a1   :  { %v2719_v18 = vrot.slane %v2718_v40, 2  ;;  %v2662_v49 = vmax.f32 %v2628_v38, %v2661_v32  ;;  %v2704_v19 = vmax.f32 %v2702_v57, %v2703_v33  ;;  %v2714_v21 = vmax.f32 %v2712_v8, %v2713_v39  ;;  %v7079_v8 = vld [vmem:[#allocation13 + $0x220] sm:$0xf] }
0x15a2   :  { %v2730_v30 = vmax.f32 %v2686_v3, %v2729_v29  ;;  %v2673_v28 = vrot.slane %v2630_v45, 4  ;;  %v2709_v31 = vrot.slane %v2708_v44, 1  ;;  %v2735_v16 = vsub.f32 0.0, %v2692_v43  ;;  %v7081_v29 = vld [vmem:[#allocation13 + $0x228] sm:$0xf0] }
0x15a3   :  { %v2736_v2 = vsub.f32 0.0, %v2698_v22  ;;  %v2647_v25 = vrot.slane %v2646_v1, 1  ;;  %v2657_v12 = vrot.slane %v2656_v41, 2  ;;  %v2668_v14 = vmax.f32 %v2629_v54, %v2667_v5  ;;  %v8109_v5 = vld [vmem:[#allocation13 + $0x214] sm:$0xf] }
0x15a4   :  { %v2725_v58 = vrot.slane %v2724_v53, 2  ;;  %v2636_v6 = vmax.f32 %v2634_v7, %v2635_v11  ;;  %v2642_v56 = vmax.f32 %v2640_v50, %v2641_v4  ;;  %v2652_v62 = vmax.f32 %v2650_v42, %v2651_v63  ;;  %v7071_v7 = vld [vmem:[#allocation13 + $0x210] sm:$0xf]  ;;  %v8110_v50 = vld [vmem:[#allocation13 + $0x214] sm:$0xf0] }
0x15a5   :  { %v2720_v52 = vmax.f32 %v2718_v40, %v2719_v18  ;;  %v2663_v13 = vrot.slane %v2662_v49, 2  ;;  %v2715_v34 = vrot.slane %v2714_v21, 1  ;;  %v2731_v27 = vrot.slane %v2730_v30, 2 }
0x15a6   :  { %v2737_v61 = vsub.f32 0.0, %v2704_v19  ;;  %v2674_v38 = vmax.f32 %v2630_v45, %v2673_v28  ;;  %v2710_v57 = vmax.f32 %v2708_v44, %v2709_v31  ;;  %v2786_v3 = vsel %vm534_vm13, %v2736_v2, %v2735_v16  ;;  %v7073_v45 = vld [vmem:[#allocation13 + $0x218] sm:$0xf0]  ;;  %v7063_v19 = vld [vmem:[#allocation13 + $0x200] sm:$0xf] }
0x15a7   :  { %v2648_v32 = vmax.f32 %v2646_v1, %v2647_v25  ;;  %v2658_v33 = vmax.f32 %v2656_v41, %v2657_v12  ;;  %v2726_v39 = vmax.f32 %v2724_v53, %v2725_v58  ;;  %v7080_v54 = vor.u32 %v8112_v26, %v7079_v8  ;;  %v8108_v28 = vld [vmem:[#allocation13 + $0x204] sm:$0xf0]  ;;  %v8107_v25 = vld [vmem:[#allocation13 + $0x204] sm:$0xf]  ;;  %v7065_v12 = vld [vmem:[#allocation13 + $0x208] sm:$0xf0] }
0x15a8   :  { %v2653_v42 = vrot.slane %v2652_v62, 1  ;;  %v2721_v40 = vrot.slane %v2720_v52, 1  ;;  %v2769_v43 = vsel %vm534_vm13, %v2642_v56, %v2636_v6  ;;  %v7084_v22 = vor.u32 %v8111_v15, %v7081_v29 }
0x15a9   :  { %v2669_v44 = vrot.slane %v2668_v14, 2  ;;  %v2716_v11 = vmax.f32 %v2714_v21, %v2715_v34  ;;  %v2787_v4 = vsel %vm536_vm14, %v2737_v61, %v2786_v3  ;;  %2904 = vmatpush.bf16.msra.mxu2 %v7080_v54  ;;  %v7072_v63 = vor.u32 %v8110_v50, %v7071_v7 }
0x15aa   :  { %v2664_v1 = vmax.f32 %v2662_v49, %v2663_v13  ;;  %v2732_v41 = vmax.f32 %v2730_v30, %v2731_v27  ;;  %v2738_v53 = vsub.f32 0.0, %v2710_v57  ;;  %2917 = vmatpush.bf16.msra.mxu0 %v7084_v22  ;;  %v7076_v18 = vor.u32 %v8109_v5, %v7073_v45 }
0x15ab   :  { %v2659_v31 = vrot.slane %v2658_v33, 1  ;;  %v2727_v16 = vrot.slane %v2726_v39, 1  ;;  %v2770_v2 = vsel %vm536_vm14, %v2648_v32, %v2769_v43  ;;  %v2654_v58 = vmax.f32 %v2652_v62, %v2653_v42 }
0x15ac   :  { %v2675_v6 = vrot.slane %v2674_v38, 2  ;;  %v2722_v21 = vmax.f32 %v2720_v52, %v2721_v40  ;;  %v2788_v56 = vsel %vm538_vm15, %v2738_v53, %v2787_v4  ;;  %v2670_v34 = vmax.f32 %v2668_v14, %v2669_v44 }
0x15ad   :  { %v2739_v61 = vsub.f32 0.0, %v2716_v11  ;;  %2905 = vmatpush.bf16.msra.mxu2 %v7072_v63  ;;  %v7064_v49 = vor.u32 %v8108_v28, %v7063_v19  ;;  %v2665_v30 = vrot.slane %v2664_v1, 1  ;;  %v2733_v13 = vrot.slane %v2732_v41, 1  ;;  %v9333_v28 = vld [vmem:[#allocation16 + $0x48] sm:$0xff] }
0x15ae   :  { %v2771_v27 = vsel %vm538_vm15, %v2654_v58, %v2770_v2  ;;  %2918 = vmatpush.bf16.msra.mxu0 %v7076_v18  ;;  %v7068_v57 = vor.u32 %v8107_v25, %v7065_v12  ;;  %v2660_v3 = vmax.f32 %v2658_v33, %v2659_v31  ;;  %v2728_v8 = vmax.f32 %v2726_v39, %v2727_v16 }
0x15af   :  { %v2789_v26 = vsel %vm540_vm0, %v2739_v61, %v2788_v56  ;;  %v2676_v15 = vmax.f32 %v2674_v38, %v2675_v6  ;;  %v2740_v62 = vsub.f32 0.0, %v2722_v21  ;;  %v2671_v32 = vrot.slane %v2670_v34, 1 }
0x15b0   :  { %v2772_v52 = vsel %vm540_vm0, %v2660_v3, %v2771_v27  ;;  %v2666_v14 = vmax.f32 %v2664_v1, %v2665_v30  ;;  %v2734_v54 = vmax.f32 %v2732_v41, %v2733_v13  ;;  %v2741_v7 = vsub.f32 0.0, %v2728_v8  ;;  %v8138_v3 = vld [vmem:[#allocation15 + $0x278] sm:$0xff]  ;;  %v8129_v8 = vld [vmem:[#allocation15 + $0x230] sm:$0xff] }
0x15b1   :  { %2906 = vmatpush.bf16.msra.mxu2 %v7064_v49  ;;  %v2790_v29 = vsel %vm542_vm1, %v2740_v62, %v2789_v26  ;;  %v2677_v50 = vrot.slane %v2676_v15, 1  ;;  %v2672_v40 = vmax.f32 %v2670_v34, %v2671_v32  ;;  %v2818_v16 = vperm.slane %v9333_v28, 2  ;;  %3105 = vmatpush.bf16.msra.mxu3 %v8138_v3  ;;  %v8137_v26 = vld [vmem:[#allocation15 + $0x270] sm:$0xff]  ;;  %v8136_v62 = vld [vmem:[#allocation15 + $0x268] sm:$0xff]  ;;  %v8127_v32 = vld [vmem:[#allocation15 + $0x220] sm:$0xff] }
0x15b2   :  { %2919 = vmatpush.bf16.msra.mxu0 %v7068_v57  ;;  %v2773_v42 = vsel %vm542_vm1, %v2666_v14, %v2772_v52  ;;  %v2791_v33 = vsel %vm544_vm2, %v2741_v7, %v2790_v29  ;;  %v2742_v39 = vsub.f32 0.0, %v2734_v54  ;;  %v2817_v2 = vperm.slane %v9248_v47, 2  ;;  %v8130_v57 = vld [vmem:[#allocation15 + $0x238] sm:$0xff]  ;;  %v8135_v52 = vld [vmem:[#allocation15 + $0x260] sm:$0xff] }
0x15b3   :  { %v2774_v38 = vsel %vm544_vm2, %v2672_v40, %v2773_v42  ;;  %v2678_v43 = vmax.f32 %v2676_v15, %v2677_v50  ;;  %3092 = vmatpush.bf16.msrb.mxu1 %v8130_v57  ;;  %v8128_v15 = vld [vmem:[#allocation15 + $0x228] sm:$0xff]  ;;  %v8126_v14 = vld [vmem:[#allocation15 + $0x218] sm:$0xff]  ;;  %v8125_v50 = vld [vmem:[#allocation15 + $0x210] sm:$0xff] }
0x15b4   :  { %v2792_v22 = vsel %vm546_vm3, %v2742_v39, %v2791_v33  ;;  %v8134_v54 = vld [vmem:[#allocation15 + $0x258] sm:$0xff]  ;;  %v8133_v42 = vld [vmem:[#allocation15 + $0x250] sm:$0xff]  ;;  %v8124_v33 = vld [vmem:[#allocation15 + $0x208] sm:$0xff] }
0x15b5   :  { %v2775_v5 = vsel %vm546_vm3, %v2678_v43, %v2774_v38  ;;  %v2794_v45 = vsel %vm525_vm4, %v2792_v22, 0.0  ;;  %3106 = vmatpush.bf16.msra.mxu3 %v8137_v26  ;;  %v8132_v39 = vld [vmem:[#allocation15 + $0x248] sm:$0xff]  ;;  %v8123_v38 = vld [vmem:[#allocation15 + $0x200] sm:$0xff] }
0x15b6   :  { %v2777_v11 = vsel %vm525_vm4, %v2775_v5, 0.0  ;;  %v8131_v43 = vld [vmem:[#allocation15 + $0x240] sm:$0xff] }
0x15b7   :  { %v2795_v63 = vadd.f32 %v2794_v45, %v2777_v11  ;;  %3093 = vmatpush.bf16.msrb.mxu1 %v8129_v8 }
0x15b9   :  { %3107 = vmatpush.bf16.msra.mxu3 %v8136_v62 }
0x15bb   :  { %3094 = vmatpush.bf16.msrb.mxu1 %v8128_v15 }
0x15bd   :  { %3108 = vmatpush.bf16.msra.mxu3 %v8135_v52 }
0x15bf   :  { %3095 = vmatpush.bf16.msrb.mxu1 %v8127_v32 }
0x15c1   :  { %3109 = vmatpush.bf16.msra.mxu3 %v8134_v54 }
0x15c3   :  { %3096 = vmatpush.bf16.msrb.mxu1 %v8126_v14 }
0x15c5   :  { %3110 = vmatpush.bf16.msra.mxu3 %v8133_v42  ;;  %v9347_v42 = vld [vmem:[#allocation12 + $0x6] ss:$0 sm:$0xff] }
0x15c7   :  { %3097 = vmatpush.bf16.msrb.mxu1 %v8125_v50 }
0x15c9   :  { %3111 = vmatpush.bf16.msra.mxu3 %v8132_v39 }
0x15cb   :  { %3098 = vmatpush.bf16.msrb.mxu1 %v8124_v33  ;;  %v9350_v33 = vld [vmem:[#allocation12 + $0x7] ss:$0 sm:$0xff] }
0x15cd   :  { %3112 = vmatpush.bf16.msra.mxu3 %v8131_v43 }
0x15cf   :  { %3099 = vmatpush.bf16.msrb.mxu1 %v8123_v38 }
0x1619   :  { %v2756_v44 = vpop.f32.mrf.mxu3 }
0x161a   :  { %v2760_v4 = vmul.f32 %v2756_v44, %v8949_v0 }
0x161c   :  { %v2796_v1 = vadd.f32 %v2795_v63, %v2760_v4  ;;  %v2951_v63 = vperm.slane %v9333_v28, 3 }
0x161e   :  { %v2797_v41 = vmul.f32 0.33333334, %v2796_v1  ;;  %v2950_v1 = vperm.slane %v9248_v47, 3 }
0x1620   :  { %v2798_v53 = vadd.f32 %v2797_v41, %v9253_v48 }
0x1621   :  { %v2758_v18 = vpop.f32.mrf.mxu3 }
0x1622   :  { %v2799_v19 = vpack.c.bf16 %v2798_v53, %v2798_v53  ;;  %v2955_v53 = vperm.slane %v9333_v28, 4 }
0x1624   :  { %2907 = vmatmul.bf16.vlgmr.msra.gmra.mxu2 %v2799_v19  ;;  %2920 = vmatmul.bf16.vlgmr.msra.gmra.mxu0 %v2799_v19 }
0x16a1   :  { %v2921_v31 = vpop.f32.mrf.mxu0 }
0x16a2   :  { %v2922_v12 = vadd.f32 %v2921_v31, %v2818_v16  ;;  %v2954_v31 = vperm.slane %v9248_v47, 4 }
0x16a7   :  { %v2908_v25 = vpop.f32.mrf.mxu2 }
0x16a8   :  { %v2909_v58 = vadd.f32 %v2908_v25, %v2817_v2 }
0x16a9   :  { %v2923_v6 = vpop.f32.mrf.mxu0 }
0x16aa   :  { %v2925_v21 = vadd.f32 %v2922_v12, %v2909_v58 }
0x16ac   :  { %2926 = vadd.xlane.f32.xlu1 %v2925_v21 }
0x16af   :  { %v2910_v56 = vpop.f32.mrf.mxu2 }
0x171f   :  { %v2927_v34 = vpop.xlane.xlu1 %2926 }
0x1720   :  { %v2928_v48 = vmul.f32 %v2927_v34, %v8961_v17 }
0x1722   :  { %v2929_v61 = vsub.f32 %v2909_v58, %v2928_v48  ;;  %v2930_v49 = vsub.f32 %v2922_v12, %v2928_v48  ;;  %v2995_v48 = vperm.slane %v9248_v47, 5 }
0x1724   :  { %v2931_v30 = vmul.f32 %v2929_v61, %v2929_v61  ;;  %v2932_v13 = vmul.f32 %v2930_v49, %v2930_v49 }
0x1726   :  { %v2933_v27 = vadd.f32 %v2932_v13, %v2931_v30 }
0x1728   :  { %2934 = vadd.xlane.f32.xlu0 %v2933_v27 }
0x179b   :  { %v2935_v29 = vpop.xlane.xlu0 %2934 }
0x179c   :  { %v2936_v7 = vmul.f32 %v2935_v29, %v8961_v17 }
0x179e   :  { %v2937_v40 = vadd.f32 1e-05, %v2936_v7 }
0x17a0   :  { %8393 = vrsqrt.f32 %v2937_v40  ;;  %vm2944_vm9 = vweird.f32 %v2937_v40 }
0x17a6   :  { %v8394_v22 = vpop.eup %8393 }
0x17a7   :  { %v2939_v5 = vmul.f32 %v8394_v22, %v2937_v40  ;;  %vm2945_vm8 = vweird.f32 %v8394_v22 }
0x17a8   :  { %vm2946_vm10 = vmor %vm2944_vm9, %vm2945_vm8 }
0x17a9   :  { %v2940_v45 = vmul.f32 %v8394_v22, %v2939_v5 }
0x17ab   :  { %v2941_v44 = vmul.f32 0.5, %v2940_v45 }
0x17ad   :  { %v2942_v11 = vsub.f32 1.5, %v2941_v44 }
0x17af   :  { %v2943_v4 = vmul.f32 %v8394_v22, %v2942_v11 }
0x17b1   :  { %v2947_v41 = vsel %vm2946_vm10, %v8394_v22, %v2943_v4 }
0x17b2   :  { %v2948_v18 = vmul.f32 %v2947_v41, %v2929_v61  ;;  %v2949_v19 = vmul.f32 %v2947_v41, %v2930_v49  ;;  %v8154_v41 = vld [vmem:[#allocation13 + $0x2f4] sm:$0xf0] }
0x17b4   :  { %v2952_v16 = vmul.f32 %v2950_v1, %v2948_v18  ;;  %v2953_v2 = vmul.f32 %v2951_v63, %v2949_v19  ;;  %v7249_v1 = vld [vmem:[#allocation13 + $0x2f0] sm:$0xf] }
0x17b5   :  { %v7250_v19 = vor.u32 %v8154_v41, %v7249_v1 }
0x17b6   :  { %v2956_v25 = vadd.f32 %v2954_v31, %v2952_v16  ;;  %v2957_v12 = vadd.f32 %v2955_v53, %v2953_v2  ;;  %v8153_v53 = vld [vmem:[#allocation13 + $0x2f4] sm:$0xf]  ;;  %v7251_v31 = vld [vmem:[#allocation13 + $0x2f8] sm:$0xf0]  ;;  %v7241_v16 = vld [vmem:[#allocation13 + $0x2e0] sm:$0xf] }
0x17b7   :  { %v8152_v2 = vld [vmem:[#allocation13 + $0x2e4] sm:$0xf0]  ;;  %3454 = vmatpush.bf16.msrb.mxu0 %v7250_v19 }
0x17b8   :  { %v2958_v58 = vmax.f32 %v2956_v25, 0.0  ;;  %v2959_v6 = vmax.f32 %v2957_v12, 0.0  ;;  %v7254_v12 = vor.u32 %v8153_v53, %v7251_v31 }
0x17ba   :  { %v2960_v21 = vpack.c.bf16 %v2958_v58, %v2958_v58  ;;  %v2961_v56 = vpack.c.bf16 %v2959_v6, %v2959_v6  ;;  %v8151_v58 = vld [vmem:[#allocation13 + $0x2e4] sm:$0xf]  ;;  %v7243_v6 = vld [vmem:[#allocation13 + $0x2e8] sm:$0xf0]  ;;  %3467 = vmatpush.bf16.msra.mxu1 %v7254_v12 }
0x17bc   :  { %3100 = vmatmul.bf16.vlgmr.msrb.gmra.mxu1 %v2960_v21  ;;  %3113 = vmatmul.bf16.vlgmr.msra.gmra.mxu3 %v2961_v56  ;;  %v7242_v21 = vor.u32 %v8152_v2, %v7241_v16 }
0x17be   :  { %3455 = vmatpush.bf16.msrb.mxu0 %v7242_v21 }
0x1839   :  { %v3101_v34 = vpop.f32.mrf.mxu1 }
0x183a   :  { %v3102_v30 = vadd.f32 %v3101_v34, %v2995_v48  ;;  %v7246_v34 = vor.u32 %v8151_v58, %v7243_v6  ;;  %v7233_v48 = vld [vmem:[#allocation13 + $0x2d0] sm:$0xf] }
0x183c   :  { %3468 = vmatpush.bf16.msra.mxu1 %v7246_v34 }
0x183f   :  { %v3114_v13 = vpop.f32.mrf.mxu3 }
0x1840   :  { %v3115_v28 = vadd.f32 %v3114_v13, %v3102_v30  ;;  %v8150_v30 = vld [vmem:[#allocation13 + $0x2d4] sm:$0xf0]  ;;  %v8149_v13 = vld [vmem:[#allocation13 + $0x2d4] sm:$0xf] }
0x1841   :  { %v3103_v61 = vpop.f32.mrf.mxu1 }
0x1842   :  { %v3118_v49 = vadd.f32 %v3115_v28, %v9240_v23  ;;  %v7235_v28 = vld [vmem:[#allocation13 + $0x2d8] sm:$0xf0] }
0x1844   :  { %3119 = vadd.xlane.f32.xlu2 %v3118_v49 }
0x1847   :  { %v3116_v27 = vpop.f32.mrf.mxu3 }
0x1848   :  { %v9362_v27 = vld [vmem:[#allocation16 + $0x50] sm:$0xff] }
0x18b7   :  { %v3120_v57 = vpop.xlane.xlu2 %3119 }
0x18b8   :  { %v3121_v3 = vmul.f32 %v3120_v57, %v8855_v51 }
0x18ba   :  { %v3122_v8 = vsub.f32 %v3118_v49, %v3121_v3  ;;  %v7234_v49 = vor.u32 %v8150_v30, %v7233_v48  ;;  %v7238_v3 = vor.u32 %v8149_v13, %v7235_v28 }
0x18bc   :  { %v3123_v26 = vmul.f32 %v3122_v8, %v3122_v8  ;;  %3456 = vmatpush.bf16.msrb.mxu0 %v7234_v49  ;;  %3469 = vmatpush.bf16.msra.mxu1 %v7238_v3 }
0x18be   :  { %3124 = vadd.xlane.f32.xlu1 %v3123_v26  ;;  %v8148_v26 = vld [vmem:[#allocation13 + $0x2c4] sm:$0xf0] }
0x1931   :  { %v3125_v15 = vpop.xlane.xlu1 %3124 }
0x1932   :  { %v3126_v62 = vmul.f32 %v3125_v15, %v8855_v51  ;;  %v8147_v15 = vld [vmem:[#allocation13 + $0x2c4] sm:$0xf] }
0x1934   :  { %v3127_v32 = vadd.f32 1e-05, %v3126_v62  ;;  %v7227_v62 = vld [vmem:[#allocation13 + $0x2c8] sm:$0xf0] }
0x1936   :  { %8395 = vrsqrt.f32 %v3127_v32  ;;  %vm3134_vm6 = vweird.f32 %v3127_v32 }
0x193c   :  { %v8396_v47 = vpop.eup %8395 }
0x193d   :  { %v3129_v52 = vmul.f32 %v8396_v47, %v3127_v32  ;;  %vm3135_vm5 = vweird.f32 %v8396_v47 }
0x193e   :  { %vm3136_vm7 = vmor %vm3134_vm6, %vm3135_vm5 }
0x193f   :  { %v3130_v14 = vmul.f32 %v8396_v47, %v3129_v52 }
0x1941   :  { %v3131_v54 = vmul.f32 0.5, %v3130_v14 }
0x1943   :  { %v3132_v29 = vsub.f32 1.5, %v3131_v54  ;;  %v7230_v54 = vor.u32 %v8147_v15, %v7227_v62 }
0x1945   :  { %v3133_v23 = vmul.f32 %v8396_v47, %v3132_v29  ;;  %v7217_v29 = vld [vmem:[#allocation13 + $0x2b0] sm:$0xf]  ;;  %3470 = vmatpush.bf16.msra.mxu1 %v7230_v54 }
0x1947   :  { %v3137_v7 = vsel %vm3136_vm7, %v8396_v47, %v3133_v23  ;;  %v3168_v47 = vperm.slane %v9362_v27, 0  ;;  %v8146_v23 = vld [vmem:[#allocation13 + $0x2b4] sm:$0xf0] }
0x1948   :  { %v3138_v50 = vmul.f32 %v3137_v7, %v3122_v8  ;;  %v7225_v8 = vld [vmem:[#allocation13 + $0x2c0] sm:$0xf]  ;;  %v3170_v7 = vperm.slane %v9362_v27, 1 }
0x1949   :  { %v7226_v52 = vor.u32 %v8148_v26, %v7225_v8 }
0x194a   :  { %v3139_v40 = vmul.f32 %v9347_v42, %v3138_v50 }
0x194b   :  { %3457 = vmatpush.bf16.msrb.mxu0 %v7226_v52 }
0x194c   :  { %v3140_v39 = vadd.f32 %v9350_v33, %v3139_v40  ;;  %v8145_v40 = vld [vmem:[#allocation13 + $0x2b4] sm:$0xf] }
0x194e   :  { %vm3141_vm8 = vcmp.ge.f32.partialorder %v3140_v39, 0.0  ;;  %v3142_v38 = vmul.f32 %v3140_v39, %v8978_v60 }
0x1950   :  { %v9354_v43 = vsel %vm3141_vm8, %v3140_v39, %v3142_v38  ;;  %v7219_v39 = vld [vmem:[#allocation13 + $0x2b8] sm:$0xf0] }
0x1951   :  { %3148 = vadd.xlane.f32.xlu0 %v9354_v43 }
0x19c4   :  { %v3149_v22 = vpop.xlane.xlu0 %3148 }
0x19c5   :  { %v3150_v5 = vmul.f32 %v3149_v22, %v8855_v51  ;;  %v7218_v22 = vor.u32 %v8146_v23, %v7217_v29 }
0x19c7   :  { %v3151_v45 = vsub.f32 %v9354_v43, %v3150_v5  ;;  %v3173_v5 = vstv %s9360_s0  ;;  %3458 = vmatpush.bf16.msrb.mxu0 %v7218_v22 }
0x19c9   :  { %v3152_v44 = vmul.f32 %v3151_v45, %v3151_v45 }
0x19cb   :  { %3153 = vadd.xlane.f32.xlu2 %v3152_v44  ;;  %v7222_v44 = vor.u32 %v8145_v40, %v7219_v39 }
0x19cd   :  { %3471 = vmatpush.bf16.msra.mxu1 %v7222_v44 }
0x1a3e   :  { %v3154_v11 = vpop.xlane.xlu2 %3153 }
0x1a3f   :  { %v3155_v4 = vmul.f32 %v3154_v11, %v8855_v51 }
0x1a41   :  { %v3156_v63 = vadd.f32 1e-05, %v3155_v4 }
0x1a43   :  { %8397 = vrsqrt.f32 %v3156_v63  ;;  %vm3163_vm10 = vweird.f32 %v3156_v63 }
0x1a49   :  { %v8398_v18 = vpop.eup %8397 }
0x1a4a   :  { %v3158_v25 = vmul.f32 %v8398_v18, %v3156_v63  ;;  %vm3164_vm9 = vweird.f32 %v8398_v18 }
0x1a4b   :  { %vm3165_vm5 = vmor %vm3163_vm10, %vm3164_vm9 }
0x1a4c   :  { %v3159_v56 = vmul.f32 %v8398_v18, %v3158_v25 }
0x1a4e   :  { %v3160_v61 = vmul.f32 0.5, %v3159_v56 }
0x1a50   :  { %v3161_v57 = vsub.f32 1.5, %v3160_v61 }
0x1a52   :  { %v3162_v32 = vmul.f32 %v8398_v18, %v3161_v57 }
0x1a54   :  { %v3166_v14 = vsel %vm3165_vm5, %v8398_v18, %v3162_v32 }
0x1a55   :  { %v3167_v50 = vmul.f32 %v3166_v14, %v3151_v45 }
0x1a57   :  { %v3169_v38 = vmul.f32 %v3168_v47, %v3167_v50 }
0x1a59   :  { %v3171_v11 = vadd.f32 %v3170_v7, %v3169_v38 }
0x1a5b   :  { %vm3172_vm6 = vcmp.ge.f32.partialorder %v3171_v11, 0.0  ;;  %v3174_v4 = vmul.f32 %v3173_v5, %v3171_v11 }
0x1a5d   :  { %v9367_v63 = vsel %vm3172_vm6, %v3171_v11, %v3174_v4 }
0x1a5e   :  { %v3176_v1 = vmax.f32 %v9367_v63, 0.0 }
0x1a60   :  { %v3177_v41 = vadd.f32 1e-07, %v3176_v1 }
0x1a62   :  { %v3298_v53 = vpack.c.bf16 %v3177_v41, %v3177_v41  ;;  %v3234_v18 = vsub.f32 %v9265_v20, %v3177_v41  ;;  %v3235_v19 = vsub.f32 %v9269_v37, %v3177_v41  ;;  %v3236_v31 = vsub.f32 %v9273_v55, %v3177_v41 }
0x1a63   :  { %v3178_v25 = vadd.f32 %v9265_v20, %v3177_v41  ;;  %v3179_v12 = vadd.f32 %v9269_v37, %v3177_v41  ;;  %v3237_v6 = vsub.f32 %v9281_v59, %v3177_v41  ;;  %v3180_v34 = vadd.f32 %v9273_v55, %v3177_v41 }
0x1a64   :  { %v3300_v45 = vsel %vm498_vm11, %v3298_v53, 0  ;;  %v3242_v16 = vrot.slane %v3234_v18, 4  ;;  %v3248_v2 = vrot.slane %v3235_v19, 4  ;;  %v3254_v58 = vrot.slane %v3236_v31, 4 }
0x1a65   :  { %3309 = vmatpush.bf16.msrb.mxu2 %v3300_v45  ;;  %v3192_v48 = vrot.slane %v3179_v12, 4  ;;  %v3238_v30 = vsub.f32 %v9287_v46, %v3177_v41  ;;  %v3260_v49 = vrot.slane %v3237_v6, 4  ;;  %v3198_v57 = vrot.slane %v3180_v34, 4 }
0x1a66   :  { %v3243_v21 = vmax.f32 %v3234_v18, %v3242_v16  ;;  %v3249_v56 = vmax.f32 %v3235_v19, %v3248_v2  ;;  %v3255_v13 = vmax.f32 %v3236_v31, %v3254_v58  ;;  %v3181_v20 = vadd.f32 %v9281_v59, %v3177_v41 }
0x1a67   :  { %v3193_v37 = vmax.f32 %v3179_v12, %v3192_v48  ;;  %v3239_v8 = vsub.f32 %v9293_v9, %v3177_v41  ;;  %v3266_v15 = vrot.slane %v3238_v30, 4  ;;  %v3261_v55 = vmax.f32 %v3237_v6, %v3260_v49 }
0x1a68   :  { %7190 = vmatmul.msk.bf16.vlgmr.msrb.gmra.mxu2 %vm494_vm12, %v9261_v36  ;;  %v3186_v36 = vrot.slane %v3178_v25, 4  ;;  %v3244_v28 = vrot.slane %v3243_v21, 2  ;;  %v3250_v61 = vrot.slane %v3249_v56, 2  ;;  %v3256_v26 = vrot.slane %v3255_v13, 2 }
0x1a69   :  { %v3182_v47 = vadd.f32 %v9287_v46, %v3177_v41  ;;  %v3199_v52 = vmax.f32 %v3180_v34, %v3198_v57  ;;  %v3240_v14 = vsub.f32 %v9299_v10, %v3177_v41  ;;  %v3194_v29 = vrot.slane %v3193_v37, 2 }
0x1a6a   :  { %v3187_v3 = vmax.f32 %v3178_v25, %v3186_v36  ;;  %v3245_v62 = vmax.f32 %v3243_v21, %v3244_v28  ;;  %v3251_v32 = vmax.f32 %v3249_v56, %v3250_v61  ;;  %v3204_v23 = vrot.slane %v3181_v20, 4 }
0x1a6b   :  { %v3272_v7 = vrot.slane %v3239_v8, 4  ;;  %v3183_v59 = vadd.f32 %v9293_v9, %v3177_v41  ;;  %v3241_v50 = vsub.f32 %v9305_v24, %v3177_v41  ;;  %v3257_v40 = vmax.f32 %v3255_v13, %v3256_v26 }
0x1a6c   :  { %v3188_v54 = vrot.slane %v3187_v3, 2  ;;  %v3267_v39 = vmax.f32 %v3238_v30, %v3266_v15  ;;  %v3246_v38 = vrot.slane %v3245_v62, 1  ;;  %v3252_v22 = vrot.slane %v3251_v32, 1 }
0x1a6d   :  { %v3262_v5 = vrot.slane %v3261_v55, 2  ;;  %v3184_v44 = vadd.f32 %v9299_v10, %v3177_v41  ;;  %v3200_v11 = vrot.slane %v3199_v52, 2  ;;  %v3210_v46 = vrot.slane %v3182_v47, 4 }
0x1a6e   :  { %v3278_v4 = vrot.slane %v3240_v14, 4  ;;  %v3189_v1 = vmax.f32 %v3187_v3, %v3188_v54  ;;  %v3195_v53 = vmax.f32 %v3193_v37, %v3194_v29  ;;  %v3205_v45 = vmax.f32 %v3181_v20, %v3204_v23 }
0x1a6f   :  { %v3273_v18 = vmax.f32 %v3239_v8, %v3272_v7  ;;  %v3216_v19 = vrot.slane %v3183_v59, 4  ;;  %v3258_v31 = vrot.slane %v3257_v40, 1  ;;  %v3268_v16 = vrot.slane %v3267_v39, 2 }
0x1a70   :  { %v3284_v9 = vrot.slane %v3241_v50, 4  ;;  %v3185_v2 = vadd.f32 %v9305_v24, %v3177_v41  ;;  %v3247_v25 = vmax.f32 %v3245_v62, %v3246_v38  ;;  %v3253_v12 = vmax.f32 %v3251_v32, %v3252_v22 }
0x1a71   :  { %v3263_v58 = vmax.f32 %v3261_v55, %v3262_v5  ;;  %v3201_v6 = vmax.f32 %v3199_v52, %v3200_v11  ;;  %v3211_v21 = vmax.f32 %v3182_v47, %v3210_v46  ;;  %v3222_v56 = vrot.slane %v3184_v44, 4  ;;  %v7201_v11 = vld [vmem:[#allocation13 + $0x290] sm:$0xf]  ;;  %v8142_v46 = vld [vmem:[#allocation13 + $0x294] sm:$0xf0] }
0x1a72   :  { %v3279_v10 = vmax.f32 %v3240_v14, %v3278_v4  ;;  %v3190_v34 = vrot.slane %v3189_v1, 1  ;;  %v3196_v36 = vrot.slane %v3195_v53, 1  ;;  %v3206_v48 = vrot.slane %v3205_v45, 2 }
0x1a73   :  { %v3274_v30 = vrot.slane %v3273_v18, 2  ;;  %v3217_v13 = vmax.f32 %v3183_v59, %v3216_v19  ;;  %v3259_v28 = vmax.f32 %v3257_v40, %v3258_v31  ;;  %v3269_v61 = vmax.f32 %v3267_v39, %v3268_v16  ;;  %v7209_v59 = vld [vmem:[#allocation13 + $0x2a0] sm:$0xf]  ;;  %v8143_v40 = vld [vmem:[#allocation13 + $0x2a4] sm:$0xf] }
0x1a74   :  { %v3285_v49 = vmax.f32 %v3241_v50, %v3284_v9  ;;  %v3228_v57 = vrot.slane %v3185_v2, 4  ;;  %v3264_v20 = vrot.slane %v3263_v58, 1  ;;  %v3290_v3 = vsub.f32 0.0, %v3247_v25  ;;  %v8144_v50 = vld [vmem:[#allocation13 + $0x2a4] sm:$0xf0] }
0x1a75   :  { %v3291_v37 = vsub.f32 0.0, %v3253_v12  ;;  %v3202_v24 = vrot.slane %v3201_v6, 1  ;;  %v3212_v41 = vrot.slane %v3211_v21, 2  ;;  %v3223_v8 = vmax.f32 %v3184_v44, %v3222_v56  ;;  %v7211_v44 = vld [vmem:[#allocation13 + $0x2a8] sm:$0xf0] }
0x1a76   :  { %v3280_v26 = vrot.slane %v3279_v10, 2  ;;  %v3191_v15 = vmax.f32 %v3189_v1, %v3190_v34  ;;  %v3197_v62 = vmax.f32 %v3195_v53, %v3196_v36  ;;  %v3207_v32 = vmax.f32 %v3205_v45, %v3206_v48  ;;  %v7203_v19 = vld [vmem:[#allocation13 + $0x298] sm:$0xf0]  ;;  %v8140_v56 = vld [vmem:[#allocation13 + $0x284] sm:$0xf0] }
0x1a77   :  { %v3275_v55 = vmax.f32 %v3273_v18, %v3274_v30  ;;  %v3218_v47 = vrot.slane %v3217_v13, 2  ;;  %v3270_v52 = vrot.slane %v3269_v61, 1  ;;  %v3286_v14 = vrot.slane %v3285_v49, 2  ;;  %v8141_v18 = vld [vmem:[#allocation13 + $0x294] sm:$0xf] }
0x1a78   :  { %v3292_v54 = vsub.f32 0.0, %v3259_v28  ;;  %v3229_v29 = vmax.f32 %v3185_v2, %v3228_v57  ;;  %v3265_v23 = vmax.f32 %v3263_v58, %v3264_v20  ;;  %v3341_v7 = vsel %vm534_vm13, %v3291_v37, %v3290_v3  ;;  %v8139_v48 = vld [vmem:[#allocation13 + $0x284] sm:$0xf]  ;;  %v7195_v30 = vld [vmem:[#allocation13 + $0x288] sm:$0xf0] }
0x1a79   :  { %v3203_v39 = vmax.f32 %v3201_v6, %v3202_v24  ;;  %v3213_v38 = vmax.f32 %v3211_v21, %v3212_v41  ;;  %v3281_v22 = vmax.f32 %v3279_v10, %v3280_v26  ;;  %v7210_v5 = vor.u32 %v8144_v50, %v7209_v59  ;;  %v7193_v21 = vld [vmem:[#allocation13 + $0x280] sm:$0xf] }
0x1a7a   :  { %v3208_v4 = vrot.slane %v3207_v32, 1  ;;  %v3276_v1 = vrot.slane %v3275_v55, 1  ;;  %v3324_v53 = vsel %vm534_vm13, %v3197_v62, %v3191_v15  ;;  %v7214_v45 = vor.u32 %v8143_v40, %v7211_v44 }
0x1a7b   :  { %v3224_v31 = vrot.slane %v3223_v8, 2  ;;  %v3271_v16 = vmax.f32 %v3269_v61, %v3270_v52  ;;  %v3342_v9 = vsel %vm536_vm14, %v3292_v54, %v3341_v7  ;;  %3459 = vmatpush.bf16.msrb.mxu0 %v7210_v5  ;;  %v7202_v2 = vor.u32 %v8142_v46, %v7201_v11 }
0x1a7c   :  { %v3219_v25 = vmax.f32 %v3217_v13, %v3218_v47  ;;  %v3287_v12 = vmax.f32 %v3285_v49, %v3286_v14  ;;  %v3293_v58 = vsub.f32 0.0, %v3265_v23  ;;  %3472 = vmatpush.bf16.msra.mxu1 %v7214_v45  ;;  %v7206_v6 = vor.u32 %v8141_v18, %v7203_v19 }
0x1a7d   :  { %v3214_v10 = vrot.slane %v3213_v38, 1  ;;  %v3282_v34 = vrot.slane %v3281_v22, 1  ;;  %v3325_v36 = vsel %vm536_vm14, %v3203_v39, %v3324_v53  ;;  %v3209_v28 = vmax.f32 %v3207_v32, %v3208_v4 }
0x1a7e   :  { %v3230_v57 = vrot.slane %v3229_v29, 2  ;;  %v3277_v61 = vmax.f32 %v3275_v55, %v3276_v1  ;;  %v3343_v20 = vsel %vm538_vm15, %v3293_v58, %v3342_v9  ;;  %v3225_v3 = vmax.f32 %v3223_v8, %v3224_v31  ;;  %v9409_v9 = vld [vmem:[#allocation16 + $0x58] sm:$0xff] }
0x1a7f   :  { %v3294_v37 = vsub.f32 0.0, %v3271_v16  ;;  %3460 = vmatpush.bf16.msrb.mxu0 %v7202_v2  ;;  %v7194_v13 = vor.u32 %v8140_v56, %v7193_v21  ;;  %v3220_v49 = vrot.slane %v3219_v25, 1  ;;  %v3288_v24 = vrot.slane %v3287_v12, 1 }
0x1a80   :  { %v3326_v41 = vsel %vm538_vm15, %v3209_v28, %v3325_v36  ;;  %3473 = vmatpush.bf16.msra.mxu1 %v7206_v6  ;;  %v7198_v26 = vor.u32 %v8139_v48, %v7195_v30  ;;  %v3215_v15 = vmax.f32 %v3213_v38, %v3214_v10  ;;  %v3283_v62 = vmax.f32 %v3281_v22, %v3282_v34 }
0x1a81   :  { %v3344_v47 = vsel %vm540_vm0, %v3294_v37, %v3343_v20  ;;  %v3231_v52 = vmax.f32 %v3229_v29, %v3230_v57  ;;  %v3295_v32 = vsub.f32 0.0, %v3277_v61  ;;  %v3226_v14 = vrot.slane %v3225_v3, 1  ;;  %v8162_v20 = vld [vmem:[#allocation15 + $0x2b8] sm:$0xff]  ;;  %v8161_v37 = vld [vmem:[#allocation15 + $0x2b0] sm:$0xff] }
0x1a82   :  { %v3327_v55 = vsel %vm540_vm0, %v3215_v15, %v3326_v41  ;;  %v3221_v8 = vmax.f32 %v3219_v25, %v3220_v49  ;;  %v3289_v54 = vmax.f32 %v3287_v12, %v3288_v24  ;;  %v3296_v7 = vsub.f32 0.0, %v3283_v62  ;;  %3647 = vmatpush.bf16.msrb.mxu3 %v8162_v20  ;;  %v8160_v49 = vld [vmem:[#allocation15 + $0x2a8] sm:$0xff]  ;;  %v8159_v41 = vld [vmem:[#allocation15 + $0x2a0] sm:$0xff]  ;;  %v8158_v15 = vld [vmem:[#allocation15 + $0x298] sm:$0xff] }
0x1a83   :  { %3461 = vmatpush.bf16.msrb.mxu0 %v7194_v13  ;;  %v3345_v23 = vsel %vm542_vm1, %v3295_v32, %v3344_v47  ;;  %v3232_v59 = vrot.slane %v3231_v52, 1  ;;  %v3227_v40 = vmax.f32 %v3225_v3, %v3226_v14  ;;  %v3372_v2 = vperm.slane %v9362_v27, 2  ;;  %v8170_v3 = vld [vmem:[#allocation15 + $0x2f8] sm:$0xff]  ;;  %v8169_v13 = vld [vmem:[#allocation15 + $0x2f0] sm:$0xff]  ;;  %v8168_v24 = vld [vmem:[#allocation15 + $0x2e8] sm:$0xff] }
0x1a84   :  { %3474 = vmatpush.bf16.msra.mxu1 %v7198_v26  ;;  %v3328_v50 = vsel %vm542_vm1, %v3221_v8, %v3327_v55  ;;  %v3346_v39 = vsel %vm544_vm2, %v3296_v7, %v3345_v23  ;;  %v3297_v38 = vsub.f32 0.0, %v3289_v54  ;;  %v3373_v25 = vperm.slane %v9409_v9, 2  ;;  %3660 = vmatpush.bf16.msra.mxu2 %v8170_v3  ;;  %v8167_v26 = vld [vmem:[#allocation15 + $0x2e0] sm:$0xff]  ;;  %v8166_v62 = vld [vmem:[#allocation15 + $0x2d8] sm:$0xff]  ;;  %v8157_v32 = vld [vmem:[#allocation15 + $0x290] sm:$0xff] }
0x1a85   :  { %v3329_v29 = vsel %vm544_vm2, %v3227_v40, %v3328_v50  ;;  %v3233_v22 = vmax.f32 %v3231_v52, %v3232_v59  ;;  %v8165_v14 = vld [vmem:[#allocation15 + $0x2d0] sm:$0xff]  ;;  %v8156_v8 = vld [vmem:[#allocation15 + $0x288] sm:$0xff]  ;;  %v8155_v23 = vld [vmem:[#allocation15 + $0x280] sm:$0xff] }
0x1a86   :  { %v3347_v5 = vsel %vm546_vm3, %v3297_v38, %v3346_v39  ;;  %3648 = vmatpush.bf16.msrb.mxu3 %v8161_v37  ;;  %v8164_v54 = vld [vmem:[#allocation15 + $0x2c8] sm:$0xff]  ;;  %v8163_v7 = vld [vmem:[#allocation15 + $0x2c0] sm:$0xff] }
0x1a87   :  { %v3330_v44 = vsel %vm546_vm3, %v3233_v22, %v3329_v29  ;;  %v3349_v11 = vsel %vm525_vm4, %v3347_v5, 0.0  ;;  %v3506_v22 = vperm.slane %v9409_v9, 3  ;;  %v3505_v5 = vperm.slane %v9362_v27, 3 }
0x1a88   :  { %v3332_v4 = vsel %vm525_vm4, %v3330_v44, 0.0  ;;  %3661 = vmatpush.bf16.msra.mxu2 %v8169_v13 }
0x1a89   :  { %v3350_v53 = vadd.f32 %v3349_v11, %v3332_v4  ;;  %v3510_v11 = vperm.slane %v9409_v9, 4 }
0x1a8a   :  { %3649 = vmatpush.bf16.msrb.mxu3 %v8160_v49 }
0x1a8c   :  { %3662 = vmatpush.bf16.msra.mxu2 %v8168_v24 }
0x1a8e   :  { %3650 = vmatpush.bf16.msrb.mxu3 %v8159_v41 }
0x1a90   :  { %3663 = vmatpush.bf16.msra.mxu2 %v8167_v26 }
0x1a92   :  { %3651 = vmatpush.bf16.msrb.mxu3 %v8158_v15 }
0x1a94   :  { %3664 = vmatpush.bf16.msra.mxu2 %v8166_v62 }
0x1a96   :  { %3652 = vmatpush.bf16.msrb.mxu3 %v8157_v32 }
0x1a98   :  { %3665 = vmatpush.bf16.msra.mxu2 %v8165_v14 }
0x1a9a   :  { %3653 = vmatpush.bf16.msrb.mxu3 %v8156_v8 }
0x1a9c   :  { %3666 = vmatpush.bf16.msra.mxu2 %v8164_v54  ;;  %v8186_v54 = vld [vmem:[#allocation13 + $0x374] sm:$0xf0] }
0x1a9e   :  { %3654 = vmatpush.bf16.msrb.mxu3 %v8155_v23  ;;  %v8185_v23 = vld [vmem:[#allocation13 + $0x374] sm:$0xf] }
0x1aa0   :  { %3667 = vmatpush.bf16.msra.mxu2 %v8163_v7 }
0x1aeb   :  { %v3311_v46 = vpop.f32.mrf.mxu2 }
0x1aec   :  { %v3315_v1 = vmul.f32 %v3311_v46, %v8949_v0 }
0x1aee   :  { %v3351_v45 = vadd.f32 %v3350_v53, %v3315_v1  ;;  %v3509_v1 = vperm.slane %v9362_v27, 4 }
0x1af0   :  { %v3352_v18 = vmul.f32 0.33333334, %v3351_v45 }
0x1af2   :  { %v3353_v19 = vadd.f32 %v3352_v18, %v9367_v63 }
0x1af3   :  { %v3313_v31 = vpop.f32.mrf.mxu2 }
0x1af4   :  { %v3354_v16 = vpack.c.bf16 %v3353_v19, %v3353_v19 }
0x1af6   :  { %3462 = vmatmul.bf16.vlgmr.msrb.gmra.mxu0 %v3354_v16  ;;  %3475 = vmatmul.bf16.vlgmr.msra.gmra.mxu1 %v3354_v16 }
0x1b73   :  { %v3463_v12 = vpop.f32.mrf.mxu0  ;;  %v3476_v58 = vpop.f32.mrf.mxu1 }
0x1b74   :  { %v3464_v6 = vadd.f32 %v3463_v12, %v3372_v2  ;;  %v3477_v21 = vadd.f32 %v3476_v58, %v3373_v25  ;;  %v3550_v12 = vperm.slane %v9362_v27, 5 }
0x1b76   :  { %v3480_v56 = vadd.f32 %v3477_v21, %v3464_v6 }
0x1b78   :  { %3481 = vadd.xlane.f32.xlu1 %v3480_v56 }
0x1b7b   :  { %v3465_v10 = vpop.f32.mrf.mxu0  ;;  %v3478_v34 = vpop.f32.mrf.mxu1 }
0x1beb   :  { %v3482_v36 = vpop.xlane.xlu1 %3481 }
0x1bec   :  { %v3483_v63 = vmul.f32 %v3482_v36, %v8961_v17 }
0x1bee   :  { %v3484_v48 = vsub.f32 %v3464_v6, %v3483_v63  ;;  %v3485_v30 = vsub.f32 %v3477_v21, %v3483_v63 }
0x1bf0   :  { %v3486_v28 = vmul.f32 %v3484_v48, %v3484_v48  ;;  %v3487_v57 = vmul.f32 %v3485_v30, %v3485_v30 }
0x1bf2   :  { %v3488_v61 = vadd.f32 %v3487_v57, %v3486_v28 }
0x1bf4   :  { %3489 = vadd.xlane.f32.xlu0 %v3488_v61 }
0x1c67   :  { %v3490_v47 = vpop.xlane.xlu0 %3489 }
0x1c68   :  { %v3491_v52 = vmul.f32 %v3490_v47, %v8961_v17 }
0x1c6a   :  { %v3492_v55 = vadd.f32 1e-05, %v3491_v52 }
0x1c6c   :  { %8399 = vrsqrt.f32 %v3492_v55  ;;  %vm3499_vm8 = vweird.f32 %v3492_v55 }
0x1c72   :  { %v8400_v59 = vpop.eup %8399 }
0x1c73   :  { %v3494_v50 = vmul.f32 %v8400_v59, %v3492_v55  ;;  %vm3500_vm7 = vweird.f32 %v8400_v59 }
0x1c74   :  { %vm3501_vm9 = vmor %vm3499_vm8, %vm3500_vm7 }
0x1c75   :  { %v3495_v40 = vmul.f32 %v8400_v59, %v3494_v50  ;;  %v7381_v50 = vld [vmem:[#allocation13 + $0x378] sm:$0xf0] }
0x1c77   :  { %v3496_v39 = vmul.f32 0.5, %v3495_v40  ;;  %v7371_v40 = vld [vmem:[#allocation13 + $0x360] sm:$0xf] }
0x1c79   :  { %v3497_v38 = vsub.f32 1.5, %v3496_v39  ;;  %v8184_v39 = vld [vmem:[#allocation13 + $0x364] sm:$0xf0] }
0x1c7b   :  { %v3498_v29 = vmul.f32 %v8400_v59, %v3497_v38 }
0x1c7d   :  { %v3502_v44 = vsel %vm3501_vm9, %v8400_v59, %v3498_v29  ;;  %v7384_v29 = vor.u32 %v8185_v23, %v7381_v50 }
0x1c7e   :  { %v3503_v46 = vmul.f32 %v3502_v44, %v3484_v48  ;;  %v3504_v4 = vmul.f32 %v3502_v44, %v3485_v30  ;;  %v7372_v44 = vor.u32 %v8184_v39, %v7371_v40 }
0x1c7f   :  { %4022 = vmatpush.bf16.msra.mxu3 %v7384_v29 }
0x1c80   :  { %v3507_v53 = vmul.f32 %v3505_v5, %v3503_v46  ;;  %v3508_v45 = vmul.f32 %v3506_v22, %v3504_v4  ;;  %v8183_v22 = vld [vmem:[#allocation13 + $0x364] sm:$0xf]  ;;  %v7373_v5 = vld [vmem:[#allocation13 + $0x368] sm:$0xf0]  ;;  %v7363_v4 = vld [vmem:[#allocation13 + $0x350] sm:$0xf] }
0x1c81   :  { %v7376_v46 = vor.u32 %v8183_v22, %v7373_v5  ;;  %v9473_v5 = vld [vmem:[#allocation7 + $0x20] sm:$0xff] }
0x1c82   :  { %v3511_v18 = vadd.f32 %v3509_v1, %v3507_v53  ;;  %v3512_v19 = vadd.f32 %v3510_v11, %v3508_v45  ;;  %v8182_v1 = vld [vmem:[#allocation13 + $0x354] sm:$0xf0]  ;;  %v8181_v53 = vld [vmem:[#allocation13 + $0x354] sm:$0xf]  ;;  %v7365_v45 = vld [vmem:[#allocation13 + $0x358] sm:$0xf0] }
0x1c83   :  { %4023 = vmatpush.bf16.msra.mxu3 %v7376_v46 }
0x1c84   :  { %v3513_v31 = vmax.f32 %v3511_v18, 0.0  ;;  %v3514_v16 = vmax.f32 %v3512_v19, 0.0  ;;  %v7364_v19 = vor.u32 %v8182_v1, %v7363_v4 }
0x1c86   :  { %v3515_v2 = vpack.c.bf16 %v3513_v31, %v3513_v31  ;;  %v3516_v25 = vpack.c.bf16 %v3514_v16, %v3514_v16  ;;  %v9434_v31 = vld [vmem:[#allocation16 + $0x60] sm:$0xff] }
0x1c88   :  { %3655 = vmatmul.bf16.vlgmr.msrb.gmra.mxu3 %v3515_v2  ;;  %3668 = vmatmul.bf16.vlgmr.msra.gmra.mxu2 %v3516_v25  ;;  %v7368_v2 = vor.u32 %v8181_v53, %v7365_v45  ;;  %v7355_v25 = vld [vmem:[#allocation13 + $0x340] sm:$0xf] }
0x1c8a   :  { %4024 = vmatpush.bf16.msra.mxu3 %v7368_v2 }
0x1d0b   :  { %v3656_v58 = vpop.f32.mrf.mxu3  ;;  %v3669_v6 = vpop.f32.mrf.mxu2 }
0x1d0c   :  { %v3657_v21 = vadd.f32 %v3656_v58, %v3550_v12  ;;  %v8180_v12 = vld [vmem:[#allocation13 + $0x344] sm:$0xf0]  ;;  %v8179_v58 = vld [vmem:[#allocation13 + $0x344] sm:$0xf] }
0x1d0e   :  { %v3670_v9 = vadd.f32 %v3669_v6, %v3657_v21  ;;  %v7357_v6 = vld [vmem:[#allocation13 + $0x348] sm:$0xf0] }
0x1d10   :  { %v3673_v56 = vadd.f32 %v3670_v9, %v9354_v43  ;;  %v3723_v9 = vperm.slane %v9434_v31, 0 }
0x1d12   :  { %3674 = vadd.xlane.f32.xlu2 %v3673_v56 }
0x1d13   :  { %v3658_v10 = vpop.f32.mrf.mxu3  ;;  %v3671_v34 = vpop.f32.mrf.mxu2 }
0x1d14   :  { %v7360_v34 = vor.u32 %v8179_v58, %v7357_v6 }
0x1d16   :  { %4025 = vmatpush.bf16.msra.mxu3 %v7360_v34 }
0x1d85   :  { %v3675_v36 = vpop.xlane.xlu2 %3674 }
0x1d86   :  { %v3676_v63 = vmul.f32 %v3675_v36, %v8855_v51  ;;  %v7347_v36 = vld [vmem:[#allocation13 + $0x330] sm:$0xf] }
0x1d88   :  { %v3677_v48 = vsub.f32 %v3673_v56, %v3676_v63  ;;  %v7356_v56 = vor.u32 %v8180_v12, %v7355_v25  ;;  %v8178_v63 = vld [vmem:[#allocation13 + $0x334] sm:$0xf0] }
0x1d8a   :  { %v3678_v30 = vmul.f32 %v3677_v48, %v3677_v48 }
0x1d8c   :  { %3679 = vadd.xlane.f32.xlu1 %v3678_v30 }
0x1dff   :  { %v3680_v28 = vpop.xlane.xlu1 %3679 }
0x1e00   :  { %v3681_v57 = vmul.f32 %v3680_v28, %v8855_v51  ;;  %v8177_v28 = vld [vmem:[#allocation13 + $0x334] sm:$0xf] }
0x1e02   :  { %v3682_v61 = vadd.f32 1e-05, %v3681_v57  ;;  %v7349_v57 = vld [vmem:[#allocation13 + $0x338] sm:$0xf0] }
0x1e04   :  { %8401 = vrsqrt.f32 %v3682_v61  ;;  %vm3689_vm5 = vweird.f32 %v3682_v61 }
0x1e0a   :  { %v8402_v27 = vpop.eup %8401 }
0x1e0b   :  { %v3684_v20 = vmul.f32 %v8402_v27, %v3682_v61  ;;  %vm3690_vm10 = vweird.f32 %v8402_v27 }
0x1e0c   :  { %vm3691_vm6 = vmor %vm3689_vm5, %vm3690_vm10 }
0x1e0d   :  { %v3685_v3 = vmul.f32 %v8402_v27, %v3684_v20  ;;  %v3728_v20 = vstv %s9432_s28 }
0x1e0f   :  { %v3686_v37 = vmul.f32 0.5, %v3685_v3  ;;  %v7352_v3 = vor.u32 %v8177_v28, %v7349_v57  ;;  %v9491_v57 = vld [vmem:[#allocation7 + $0x38] sm:$0xff] }
0x1e11   :  { %v3687_v13 = vsub.f32 1.5, %v3686_v37  ;;  %4026 = vmatpush.bf16.msra.mxu3 %v7352_v3 }
0x1e13   :  { %v3688_v43 = vmul.f32 %v8402_v27, %v3687_v13 }
0x1e15   :  { %v3692_v49 = vsel %vm3691_vm6, %v8402_v27, %v3688_v43  ;;  %v7348_v27 = vor.u32 %v8178_v63, %v7347_v36 }
0x1e16   :  { %v3693_v24 = vmul.f32 %v3692_v49, %v3677_v48  ;;  %v3725_v48 = vperm.slane %v9434_v31, 1 }
0x1e18   :  { %v3694_v41 = vmul.f32 %v9347_v42, %v3693_v24 }
0x1e1a   :  { %v3695_v26 = vadd.f32 %v9350_v33, %v3694_v41  ;;  %v7379_v33 = vld [vmem:[#allocation13 + $0x370] sm:$0xf] }
0x1e1b   :  { %v7380_v59 = vor.u32 %v8186_v54, %v7379_v33 }
0x1e1c   :  { %vm3696_vm7 = vcmp.ge.f32.partialorder %v3695_v26, 0.0  ;;  %v3697_v15 = vmul.f32 %v3695_v26, %v8978_v60 }
0x1e1d   :  { %4009 = vmatpush.bf16.msrb.mxu1 %v7380_v59  ;;  %v9467_v59 = vld [vmem:[#allocation7 + $0x18] sm:$0xff] }
0x1e1e   :  { %v9426_v62 = vsel %vm3696_vm7, %v3695_v26, %v3697_v15  ;;  %v9447_v15 = vld [vmem:[#allocation6] sm:$0xf] }
0x1e1f   :  { %3703 = vadd.xlane.f32.xlu0 %v9426_v62 }
0x1e21   :  { %4010 = vmatpush.bf16.msrb.mxu1 %v7372_v44 }
0x1e25   :  { %4011 = vmatpush.bf16.msrb.mxu1 %v7364_v19 }
0x1e29   :  { %4012 = vmatpush.bf16.msrb.mxu1 %v7356_v56 }
0x1e2d   :  { %4013 = vmatpush.bf16.msrb.mxu1 %v7348_v27 }
0x1e92   :  { %v3704_v47 = vpop.xlane.xlu0 %3703 }
0x1e93   :  { %v3705_v52 = vmul.f32 %v3704_v47, %v8855_v51  ;;  %v9451_v47 = vld [vmem:[#allocation7] sm:$0xff] }
0x1e95   :  { %v3706_v32 = vsub.f32 %v9426_v62, %v3705_v52 }
0x1e97   :  { %v3707_v14 = vmul.f32 %v3706_v32, %v3706_v32 }
0x1e99   :  { %3708 = vadd.xlane.f32.xlu2 %v3707_v14 }
0x1f0c   :  { %v3709_v55 = vpop.xlane.xlu2 %3708 }
0x1f0d   :  { %v3710_v8 = vmul.f32 %v3709_v55, %v8855_v51  ;;  %v9459_v55 = vld [vmem:[#allocation7 + $0x10] sm:$0xff] }
0x1f0f   :  { %v3711_v42 = vadd.f32 1e-05, %v3710_v8 }
0x1f11   :  { %8403 = vrsqrt.f32 %v3711_v42  ;;  %vm3718_vm9 = vweird.f32 %v3711_v42 }
0x1f17   :  { %v8404_v7 = vpop.eup %8403 }
0x1f18   :  { %v3713_v38 = vmul.f32 %v8404_v7, %v3711_v42  ;;  %vm3719_vm8 = vweird.f32 %v8404_v7 }
0x1f19   :  { %vm3720_vm10 = vmor %vm3718_vm9, %vm3719_vm8 }
0x1f1a   :  { %v3714_v11 = vmul.f32 %v8404_v7, %v3713_v38 }
0x1f1c   :  { %v3715_v18 = vmul.f32 0.5, %v3714_v11 }
0x1f1e   :  { %v3716_v16 = vsub.f32 1.5, %v3715_v18 }
0x1f20   :  { %v3717_v21 = vmul.f32 %v8404_v7, %v3716_v16  ;;  %v9479_v16 = vld [vmem:[#allocation7 + $0x28] sm:$0xff] }
0x1f22   :  { %v3721_v10 = vsel %vm3720_vm10, %v8404_v7, %v3717_v21 }
0x1f23   :  { %v3722_v30 = vmul.f32 %v3721_v10, %v3706_v32  ;;  %v9455_v32 = vld [vmem:[#allocation7 + $0x8] sm:$0xff]  ;;  %v9485_v10 = vld [vmem:[#allocation7 + $0x30] sm:$0xff] }
0x1f25   :  { %v3724_v61 = vmul.f32 %v3723_v9, %v3722_v30 }
0x1f27   :  { %v3726_v37 = vadd.f32 %v3725_v48, %v3724_v61 }
0x1f29   :  { %vm3727_vm5 = vcmp.ge.f32.partialorder %v3726_v37, 0.0  ;;  %v3729_v13 = vmul.f32 %v3728_v20, %v3726_v37 }
0x1f2b   :  { %v9439_v43 = vsel %vm3727_vm5, %v3726_v37, %v3729_v13 }
0x1f2c   :  { %v3731_v49 = vmax.f32 %v9439_v43, 0.0 }
0x1f2e   :  { %v9442_v24 = vadd.f32 1e-07, %v3731_v49 }
0x1f30   :  { %v3853_v41 = vpack.c.bf16 %v9442_v24, %v9442_v24  ;;  %v3789_v52 = vsub.f32 %v9451_v47, %v9442_v24  ;;  %v3790_v14 = vsub.f32 %v9455_v32, %v9442_v24  ;;  %v3791_v8 = vsub.f32 %v9459_v55, %v9442_v24 }
0x1f31   :  { %v3733_v54 = vadd.f32 %v9451_v47, %v9442_v24  ;;  %v3734_v23 = vadd.f32 %v9455_v32, %v9442_v24  ;;  %v3792_v50 = vsub.f32 %v9467_v59, %v9442_v24  ;;  %v3735_v38 = vadd.f32 %v9459_v55, %v9442_v24 }
0x1f32   :  { %v3855_v26 = vsel %vm498_vm11, %v3853_v41, 0  ;;  %v3797_v42 = vrot.slane %v3789_v52, 4  ;;  %v3803_v33 = vrot.slane %v3790_v14, 4  ;;  %v3809_v7 = vrot.slane %v3791_v8, 4 }
0x1f33   :  { %3864 = vmatpush.bf16.msra.mxu0 %v3855_v26  ;;  %v3741_v29 = vrot.slane %v3733_v54, 4  ;;  %v3747_v22 = vrot.slane %v3734_v23, 4  ;;  %v3793_v44 = vsub.f32 %v9473_v5, %v9442_v24  ;;  %v3815_v1 = vrot.slane %v3792_v50, 4 }
0x1f34   :  { %v3798_v40 = vmax.f32 %v3789_v52, %v3797_v42  ;;  %v3804_v39 = vmax.f32 %v3790_v14, %v3803_v33  ;;  %v3810_v11 = vmax.f32 %v3791_v8, %v3809_v7  ;;  %v3753_v53 = vrot.slane %v3735_v38, 4 }
0x1f35   :  { %v3736_v45 = vadd.f32 %v9467_v59, %v9442_v24  ;;  %v3742_v18 = vmax.f32 %v3733_v54, %v3741_v29  ;;  %v3748_v19 = vmax.f32 %v3734_v23, %v3747_v22  ;;  %v3794_v2 = vsub.f32 %v9479_v16, %v9442_v24 }
0x1f36   :  { %7320 = vmatmul.msk.bf16.vlgmr.msra.gmra.mxu0 %vm494_vm12, %v9447_v15  ;;  %v3799_v46 = vrot.slane %v3798_v40, 2  ;;  %v3805_v4 = vrot.slane %v3804_v39, 2  ;;  %v3811_v25 = vrot.slane %v3810_v11, 2  ;;  %v3821_v12 = vrot.slane %v3793_v44, 4 }
0x1f37   :  { %v3816_v21 = vmax.f32 %v3792_v50, %v3815_v1  ;;  %v3737_v9 = vadd.f32 %v9473_v5, %v9442_v24  ;;  %v3754_v56 = vmax.f32 %v3735_v38, %v3753_v53  ;;  %v3795_v34 = vsub.f32 %v9485_v10, %v9442_v24 }
0x1f38   :  { %v3800_v58 = vmax.f32 %v3798_v40, %v3799_v46  ;;  %v3806_v6 = vmax.f32 %v3804_v39, %v3805_v4  ;;  %v3743_v36 = vrot.slane %v3742_v18, 2  ;;  %v3749_v63 = vrot.slane %v3748_v19, 2 }
0x1f39   :  { %v3759_v48 = vrot.slane %v3736_v45, 4  ;;  %v3827_v30 = vrot.slane %v3794_v2, 4  ;;  %v3738_v28 = vadd.f32 %v9479_v16, %v9442_v24  ;;  %v3796_v61 = vsub.f32 %v9491_v57, %v9442_v24 }
0x1f3a   :  { %v3812_v27 = vmax.f32 %v3810_v11, %v3811_v25  ;;  %v3822_v20 = vmax.f32 %v3793_v44, %v3821_v12  ;;  %v3801_v3 = vrot.slane %v3800_v58, 1  ;;  %v3807_v37 = vrot.slane %v3806_v6, 1 }
0x1f3b   :  { %v3817_v13 = vrot.slane %v3816_v21, 2  ;;  %v3739_v49 = vadd.f32 %v9485_v10, %v9442_v24  ;;  %v3755_v41 = vrot.slane %v3754_v56, 2  ;;  %v3765_v26 = vrot.slane %v3737_v9, 4 }
0x1f3c   :  { %v3833_v52 = vrot.slane %v3795_v34, 4  ;;  %v3744_v14 = vmax.f32 %v3742_v18, %v3743_v36  ;;  %v3750_v8 = vmax.f32 %v3748_v19, %v3749_v63  ;;  %v3760_v42 = vmax.f32 %v3736_v45, %v3759_v48 }
0x1f3d   :  { %v3828_v33 = vmax.f32 %v3794_v2, %v3827_v30  ;;  %v3771_v54 = vrot.slane %v3738_v28, 4  ;;  %v3813_v23 = vrot.slane %v3812_v27, 1  ;;  %v3823_v7 = vrot.slane %v3822_v20, 2 }
0x1f3e   :  { %v3839_v50 = vrot.slane %v3796_v61, 4  ;;  %v3740_v40 = vadd.f32 %v9491_v57, %v9442_v24  ;;  %v3802_v39 = vmax.f32 %v3800_v58, %v3801_v3  ;;  %v3808_v38 = vmax.f32 %v3806_v6, %v3807_v37 }
0x1f3f   :  { %v3818_v29 = vmax.f32 %v3816_v21, %v3817_v13  ;;  %v3756_v22 = vmax.f32 %v3754_v56, %v3755_v41  ;;  %v3766_v44 = vmax.f32 %v3737_v9, %v3765_v26  ;;  %v3777_v11 = vrot.slane %v3739_v49, 4  ;;  %v8176_v26 = vld [vmem:[#allocation13 + $0x324] sm:$0xf0] }
0x1f40   :  { %v3834_v46 = vmax.f32 %v3795_v34, %v3833_v52  ;;  %v3745_v4 = vrot.slane %v3744_v14, 1  ;;  %v3751_v1 = vrot.slane %v3750_v8, 1  ;;  %v3761_v53 = vrot.slane %v3760_v42, 2  ;;  %v8175_v52 = vld [vmem:[#allocation13 + $0x324] sm:$0xf] }
0x1f41   :  { %v3829_v18 = vrot.slane %v3828_v33, 2  ;;  %v3772_v45 = vmax.f32 %v3738_v28, %v3771_v54  ;;  %v3814_v19 = vmax.f32 %v3812_v27, %v3813_v23  ;;  %v3824_v2 = vmax.f32 %v3822_v20, %v3823_v7  ;;  %v7339_v20 = vld [vmem:[#allocation13 + $0x320] sm:$0xf] }
0x1f42   :  { %v3840_v25 = vmax.f32 %v3796_v61, %v3839_v50  ;;  %v3783_v12 = vrot.slane %v3740_v40, 4  ;;  %v3819_v36 = vrot.slane %v3818_v29, 1  ;;  %v3845_v63 = vsub.f32 0.0, %v3802_v39  ;;  %v7341_v50 = vld [vmem:[#allocation13 + $0x328] sm:$0xf0] }
0x1f43   :  { %v3846_v48 = vsub.f32 0.0, %v3808_v38  ;;  %v3757_v24 = vrot.slane %v3756_v22, 1  ;;  %v3767_v58 = vrot.slane %v3766_v44, 2  ;;  %v3778_v6 = vmax.f32 %v3739_v49, %v3777_v11  ;;  %v8173_v11 = vld [vmem:[#allocation13 + $0x314] sm:$0xf] }
0x1f44   :  { %v3835_v21 = vrot.slane %v3834_v46, 2  ;;  %v3746_v56 = vmax.f32 %v3744_v14, %v3745_v4  ;;  %v3752_v9 = vmax.f32 %v3750_v8, %v3751_v1  ;;  %v3762_v30 = vmax.f32 %v3760_v42, %v3761_v53  ;;  %v7331_v14 = vld [vmem:[#allocation13 + $0x310] sm:$0xf]  ;;  %v8174_v8 = vld [vmem:[#allocation13 + $0x314] sm:$0xf0] }
0x1f45   :  { %v3830_v34 = vmax.f32 %v3828_v33, %v3829_v18  ;;  %v3773_v3 = vrot.slane %v3772_v45, 2  ;;  %v3825_v37 = vrot.slane %v3824_v2, 1  ;;  %v3841_v13 = vrot.slane %v3840_v25, 2 }
0x1f46   :  { %v3847_v41 = vsub.f32 0.0, %v3814_v19  ;;  %v3784_v28 = vmax.f32 %v3740_v40, %v3783_v12  ;;  %v3820_v27 = vmax.f32 %v3818_v29, %v3819_v36  ;;  %v3896_v61 = vsel %vm534_vm13, %v3846_v48, %v3845_v63  ;;  %v7333_v40 = vld [vmem:[#allocation13 + $0x318] sm:$0xf0]  ;;  %v7323_v19 = vld [vmem:[#allocation13 + $0x300] sm:$0xf] }
0x1f47   :  { %v3758_v54 = vmax.f32 %v3756_v22, %v3757_v24  ;;  %v3768_v23 = vmax.f32 %v3766_v44, %v3767_v58  ;;  %v3836_v7 = vmax.f32 %v3834_v46, %v3835_v21  ;;  %v7340_v49 = vor.u32 %v8176_v26, %v7339_v20  ;;  %v8172_v12 = vld [vmem:[#allocation13 + $0x304] sm:$0xf0]  ;;  %v8171_v24 = vld [vmem:[#allocation13 + $0x304] sm:$0xf]  ;;  %v7325_v58 = vld [vmem:[#allocation13 + $0x308] sm:$0xf0] }
0x1f48   :  { %v3763_v42 = vrot.slane %v3762_v30, 1  ;;  %v3831_v33 = vrot.slane %v3830_v34, 1  ;;  %v3879_v39 = vsel %vm534_vm13, %v3752_v9, %v3746_v56  ;;  %v7344_v38 = vor.u32 %v8175_v52, %v7341_v50 }
0x1f49   :  { %v3779_v29 = vrot.slane %v3778_v6, 2  ;;  %v3826_v4 = vmax.f32 %v3824_v2, %v3825_v37  ;;  %v3897_v1 = vsel %vm536_vm14, %v3847_v41, %v3896_v61  ;;  %4014 = vmatpush.bf16.msrb.mxu1 %v7340_v49  ;;  %v7332_v53 = vor.u32 %v8174_v8, %v7331_v14 }
0x1f4a   :  { %v3774_v22 = vmax.f32 %v3772_v45, %v3773_v3  ;;  %v3842_v44 = vmax.f32 %v3840_v25, %v3841_v13  ;;  %v3848_v46 = vsub.f32 0.0, %v3820_v27  ;;  %4027 = vmatpush.bf16.msra.mxu3 %v7344_v38  ;;  %v7336_v18 = vor.u32 %v8173_v11, %v7333_v40 }
0x1f4b   :  { %v3769_v36 = vrot.slane %v3768_v23, 1  ;;  %v3837_v63 = vrot.slane %v3836_v7, 1  ;;  %v3880_v48 = vsel %vm536_vm14, %v3758_v54, %v3879_v39  ;;  %v3764_v21 = vmax.f32 %v3762_v30, %v3763_v42 }
0x1f4c   :  { %v3785_v56 = vrot.slane %v3784_v28, 2  ;;  %v3832_v2 = vmax.f32 %v3830_v34, %v3831_v33  ;;  %v3898_v9 = vsel %vm538_vm15, %v3848_v46, %v3897_v1  ;;  %v3780_v37 = vmax.f32 %v3778_v6, %v3779_v29 }
0x1f4d   :  { %v3849_v41 = vsub.f32 0.0, %v3826_v4  ;;  %4015 = vmatpush.bf16.msrb.mxu1 %v7332_v53  ;;  %v7324_v45 = vor.u32 %v8172_v12, %v7323_v19  ;;  %v3775_v25 = vrot.slane %v3774_v22, 1  ;;  %v3843_v3 = vrot.slane %v3842_v44, 1 }
0x1f4e   :  { %v3881_v13 = vsel %vm538_vm15, %v3764_v21, %v3880_v48  ;;  %4028 = vmatpush.bf16.msra.mxu3 %v7336_v18  ;;  %v7328_v27 = vor.u32 %v8171_v24, %v7325_v58  ;;  %v3770_v61 = vmax.f32 %v3768_v23, %v3769_v36  ;;  %v3838_v20 = vmax.f32 %v3836_v7, %v3837_v63  ;;  %v9519_v36 = vld [vmem:[#allocation16 + $0x68] sm:$0xff] }
0x1f4f   :  { %v3899_v26 = vsel %vm540_vm0, %v3849_v41, %v3898_v9  ;;  %v3786_v52 = vmax.f32 %v3784_v28, %v3785_v56  ;;  %v3850_v30 = vsub.f32 0.0, %v3832_v2  ;;  %v3781_v54 = vrot.slane %v3780_v37, 1 }
0x1f50   :  { %v3882_v34 = vsel %vm540_vm0, %v3770_v61, %v3881_v13  ;;  %v3776_v6 = vmax.f32 %v3774_v22, %v3775_v25  ;;  %v3844_v49 = vmax.f32 %v3842_v44, %v3843_v3  ;;  %v3851_v14 = vsub.f32 0.0, %v3838_v20  ;;  %v8202_v61 = vld [vmem:[#allocation15 + $0x378] sm:$0xff]  ;;  %v8193_v20 = vld [vmem:[#allocation15 + $0x330] sm:$0xff] }
0x1f51   :  { %4016 = vmatpush.bf16.msrb.mxu1 %v7324_v45  ;;  %v3900_v50 = vsel %vm542_vm1, %v3850_v30, %v3899_v26  ;;  %v3787_v8 = vrot.slane %v3786_v52, 1  ;;  %v3782_v33 = vmax.f32 %v3780_v37, %v3781_v54  ;;  %v3927_v63 = vperm.slane %v9434_v31, 2  ;;  %4215 = vmatpush.bf16.msrb.mxu0 %v8202_v61  ;;  %v8201_v26 = vld [vmem:[#allocation15 + $0x370] sm:$0xff]  ;;  %v8200_v30 = vld [vmem:[#allocation15 + $0x368] sm:$0xff]  ;;  %v8191_v54 = vld [vmem:[#allocation15 + $0x320] sm:$0xff] }
0x1f52   :  { %4029 = vmatpush.bf16.msra.mxu3 %v7328_v27  ;;  %v3883_v42 = vsel %vm542_vm1, %v3776_v6, %v3882_v34  ;;  %v3901_v23 = vsel %vm544_vm2, %v3851_v14, %v3900_v50  ;;  %v3852_v7 = vsub.f32 0.0, %v3844_v49  ;;  %v3928_v48 = vperm.slane %v9519_v36, 2  ;;  %v8194_v27 = vld [vmem:[#allocation15 + $0x338] sm:$0xff]  ;;  %v8199_v34 = vld [vmem:[#allocation15 + $0x360] sm:$0xff] }
0x1f53   :  { %v3884_v28 = vsel %vm544_vm2, %v3782_v33, %v3883_v42  ;;  %v3788_v39 = vmax.f32 %v3786_v52, %v3787_v8  ;;  %4202 = vmatpush.bf16.msrb.mxu2 %v8194_v27  ;;  %v8192_v52 = vld [vmem:[#allocation15 + $0x328] sm:$0xff]  ;;  %v8190_v6 = vld [vmem:[#allocation15 + $0x318] sm:$0xff]  ;;  %v8189_v8 = vld [vmem:[#allocation15 + $0x310] sm:$0xff] }
0x1f54   :  { %v3902_v38 = vsel %vm546_vm3, %v3852_v7, %v3901_v23  ;;  %v8198_v49 = vld [vmem:[#allocation15 + $0x358] sm:$0xff]  ;;  %v8197_v42 = vld [vmem:[#allocation15 + $0x350] sm:$0xff]  ;;  %v8188_v23 = vld [vmem:[#allocation15 + $0x308] sm:$0xff] }
0x1f55   :  { %v3885_v11 = vsel %vm546_vm3, %v3788_v39, %v3884_v28  ;;  %v3904_v40 = vsel %vm525_vm4, %v3902_v38, 0.0  ;;  %4216 = vmatpush.bf16.msrb.mxu0 %v8201_v26  ;;  %v8196_v7 = vld [vmem:[#allocation15 + $0x348] sm:$0xff]  ;;  %v8187_v28 = vld [vmem:[#allocation15 + $0x300] sm:$0xff] }
0x1f56   :  { %v3887_v4 = vsel %vm525_vm4, %v3885_v11, 0.0  ;;  %v8195_v39 = vld [vmem:[#allocation15 + $0x340] sm:$0xff] }
0x1f57   :  { %v3905_v53 = vadd.f32 %v3904_v40, %v3887_v4  ;;  %4203 = vmatpush.bf16.msrb.mxu2 %v8193_v20 }
0x1f59   :  { %4217 = vmatpush.bf16.msrb.mxu0 %v8200_v30 }
0x1f5b   :  { %4204 = vmatpush.bf16.msrb.mxu2 %v8192_v52 }
0x1f5d   :  { %4218 = vmatpush.bf16.msrb.mxu0 %v8199_v34 }
0x1f5f   :  { %4205 = vmatpush.bf16.msrb.mxu2 %v8191_v54 }
0x1f61   :  { %4219 = vmatpush.bf16.msrb.mxu0 %v8198_v49 }
0x1f63   :  { %4206 = vmatpush.bf16.msrb.mxu2 %v8190_v6 }
0x1f65   :  { %4220 = vmatpush.bf16.msrb.mxu0 %v8197_v42  ;;  %v9533_v42 = vld [vmem:[#allocation12 + $0x6] ss:$0 sm:$0xff] }
0x1f67   :  { %4207 = vmatpush.bf16.msrb.mxu2 %v8189_v8 }
0x1f69   :  { %4221 = vmatpush.bf16.msrb.mxu0 %v8196_v7 }
0x1f6b   :  { %4208 = vmatpush.bf16.msrb.mxu2 %v8188_v23  ;;  %v9536_v23 = vld [vmem:[#allocation12 + $0x7] ss:$0 sm:$0xff] }
0x1f6d   :  { %4222 = vmatpush.bf16.msrb.mxu0 %v8195_v39 }
0x1f6f   :  { %4209 = vmatpush.bf16.msrb.mxu2 %v8187_v28 }
0x1fb3   :  { %v3866_v29 = vpop.f32.mrf.mxu0 }
0x1fb4   :  { %v3870_v1 = vmul.f32 %v3866_v29, %v8949_v0 }
0x1fb6   :  { %v3906_v22 = vadd.f32 %v3905_v53, %v3870_v1  ;;  %v4061_v53 = vperm.slane %v9519_v36, 3 }
0x1fb8   :  { %v3907_v44 = vmul.f32 0.33333334, %v3906_v22  ;;  %v4060_v22 = vperm.slane %v9434_v31, 3 }
0x1fba   :  { %v3908_v46 = vadd.f32 %v3907_v44, %v9439_v43 }
0x1fbb   :  { %v3868_v18 = vpop.f32.mrf.mxu0 }
0x1fbc   :  { %v3909_v19 = vpack.c.bf16 %v3908_v46, %v3908_v46  ;;  %v4065_v46 = vperm.slane %v9519_v36, 4 }
0x1fbe   :  { %4017 = vmatmul.bf16.vlgmr.msrb.gmra.mxu1 %v3909_v19  ;;  %4030 = vmatmul.bf16.vlgmr.msra.gmra.mxu3 %v3909_v19 }
0x203b   :  { %v4018_v12 = vpop.f32.mrf.mxu1 }
0x203c   :  { %v4019_v58 = vadd.f32 %v4018_v12, %v3927_v63  ;;  %v4064_v12 = vperm.slane %v9434_v31, 4 }
0x2041   :  { %v4031_v24 = vpop.f32.mrf.mxu3 }
0x2042   :  { %v4032_v21 = vadd.f32 %v4031_v24, %v3928_v48 }
0x2043   :  { %v4020_v56 = vpop.f32.mrf.mxu1 }
0x2044   :  { %v4035_v2 = vadd.f32 %v4032_v21, %v4019_v58 }
0x2046   :  { %4036 = vadd.xlane.f32.xlu1 %v4035_v2 }
0x2049   :  { %v4033_v9 = vpop.f32.mrf.mxu3 }
0x20b9   :  { %v4037_v37 = vpop.xlane.xlu1 %4036 }
0x20ba   :  { %v4038_v43 = vmul.f32 %v4037_v37, %v8961_v17 }
0x20bc   :  { %v4039_v41 = vsub.f32 %v4019_v58, %v4038_v43  ;;  %v4040_v45 = vsub.f32 %v4032_v21, %v4038_v43  ;;  %v4105_v43 = vperm.slane %v9434_v31, 5 }
0x20be   :  { %v4041_v25 = vmul.f32 %v4039_v41, %v4039_v41  ;;  %v4042_v3 = vmul.f32 %v4040_v45, %v4040_v45 }
0x20c0   :  { %v4043_v13 = vadd.f32 %v4042_v3, %v4041_v25 }
0x20c2   :  { %4044 = vadd.xlane.f32.xlu0 %v4043_v13 }
0x2135   :  { %v4045_v50 = vpop.xlane.xlu0 %4044 }
0x2136   :  { %v4046_v14 = vmul.f32 %v4045_v50, %v8961_v17 }
0x2138   :  { %v4047_v33 = vadd.f32 1e-05, %v4046_v14 }
0x213a   :  { %8405 = vrsqrt.f32 %v4047_v33  ;;  %vm4054_vm7 = vweird.f32 %v4047_v33 }
0x2140   :  { %v8406_v38 = vpop.eup %8405 }
0x2141   :  { %v4049_v11 = vmul.f32 %v8406_v38, %v4047_v33  ;;  %vm4055_vm6 = vweird.f32 %v8406_v38 }
0x2142   :  { %vm4056_vm8 = vmor %vm4054_vm7, %vm4055_vm6 }
0x2143   :  { %v4050_v40 = vmul.f32 %v8406_v38, %v4049_v11 }
0x2145   :  { %v4051_v29 = vmul.f32 0.5, %v4050_v40 }
0x2147   :  { %v4052_v4 = vsub.f32 1.5, %v4051_v29 }
0x2149   :  { %v4053_v1 = vmul.f32 %v8406_v38, %v4052_v4 }
0x214b   :  { %v4057_v44 = vsel %vm4056_vm8, %v8406_v38, %v4053_v1 }
0x214c   :  { %v4058_v18 = vmul.f32 %v4057_v44, %v4039_v41  ;;  %v4059_v19 = vmul.f32 %v4057_v44, %v4040_v45  ;;  %v8218_v44 = vld [vmem:[#allocation13 + $0x3f4] sm:$0xf0] }
0x214e   :  { %v4062_v63 = vmul.f32 %v4060_v22, %v4058_v18  ;;  %v4063_v48 = vmul.f32 %v4061_v53, %v4059_v19  ;;  %v7509_v22 = vld [vmem:[#allocation13 + $0x3f0] sm:$0xf] }
0x214f   :  { %v7510_v19 = vor.u32 %v8218_v44, %v7509_v22 }
0x2150   :  { %v4066_v24 = vadd.f32 %v4064_v12, %v4062_v63  ;;  %v4067_v58 = vadd.f32 %v4065_v46, %v4063_v48  ;;  %v8217_v46 = vld [vmem:[#allocation13 + $0x3f4] sm:$0xf]  ;;  %v7511_v12 = vld [vmem:[#allocation13 + $0x3f8] sm:$0xf0]  ;;  %v7501_v63 = vld [vmem:[#allocation13 + $0x3e0] sm:$0xf] }
0x2151   :  { %v8216_v48 = vld [vmem:[#allocation13 + $0x3e4] sm:$0xf0]  ;;  %4564 = vmatpush.bf16.msrb.mxu3 %v7510_v19 }
0x2152   :  { %v4068_v21 = vmax.f32 %v4066_v24, 0.0  ;;  %v4069_v56 = vmax.f32 %v4067_v58, 0.0  ;;  %v7514_v58 = vor.u32 %v8217_v46, %v7511_v12 }
0x2154   :  { %v4070_v2 = vpack.c.bf16 %v4068_v21, %v4068_v21  ;;  %v4071_v9 = vpack.c.bf16 %v4069_v56, %v4069_v56  ;;  %v8215_v21 = vld [vmem:[#allocation13 + $0x3e4] sm:$0xf]  ;;  %v7503_v56 = vld [vmem:[#allocation13 + $0x3e8] sm:$0xf0]  ;;  %4577 = vmatpush.bf16.msra.mxu2 %v7514_v58 }
0x2156   :  { %4210 = vmatmul.bf16.vlgmr.msrb.gmra.mxu2 %v4070_v2  ;;  %4223 = vmatmul.bf16.vlgmr.msrb.gmra.mxu0 %v4071_v9  ;;  %v7502_v2 = vor.u32 %v8216_v48, %v7501_v63 }
0x2158   :  { %4565 = vmatpush.bf16.msrb.mxu3 %v7502_v2 }
0x21d3   :  { %v4224_v37 = vpop.f32.mrf.mxu0 }
0x21d9   :  { %v4211_v25 = vpop.f32.mrf.mxu2 }
0x21da   :  { %v4212_v3 = vadd.f32 %v4211_v25, %v4105_v43  ;;  %v7493_v43 = vld [vmem:[#allocation13 + $0x3d0] sm:$0xf]  ;;  %v8214_v25 = vld [vmem:[#allocation13 + $0x3d4] sm:$0xf0] }
0x21db   :  { %v4226_v36 = vpop.f32.mrf.mxu0 }
0x21dc   :  { %v4225_v41 = vadd.f32 %v4224_v37, %v4212_v3  ;;  %v7506_v37 = vor.u32 %v8215_v21, %v7503_v56  ;;  %v8213_v3 = vld [vmem:[#allocation13 + $0x3d4] sm:$0xf]  ;;  %v7495_v36 = vld [vmem:[#allocation13 + $0x3d8] sm:$0xf0] }
0x21de   :  { %v4228_v45 = vadd.f32 %v4225_v41, %v9426_v62  ;;  %4578 = vmatpush.bf16.msra.mxu2 %v7506_v37 }
0x21e0   :  { %4229 = vadd.xlane.f32.xlu2 %v4228_v45 }
0x21e1   :  { %v4213_v13 = vpop.f32.mrf.mxu2 }
0x21e2   :  { %v9548_v13 = vld [vmem:[#allocation16 + $0x70] sm:$0xff] }
0x2253   :  { %v4230_v27 = vpop.xlane.xlu2 %4229 }
0x2254   :  { %v4231_v61 = vmul.f32 %v4230_v27, %v8855_v51 }
0x2256   :  { %v4232_v20 = vsub.f32 %v4228_v45, %v4231_v61  ;;  %v7494_v45 = vor.u32 %v8214_v25, %v7493_v43  ;;  %v7498_v61 = vor.u32 %v8213_v3, %v7495_v36 }
0x2258   :  { %v4233_v26 = vmul.f32 %v4232_v20, %v4232_v20  ;;  %4566 = vmatpush.bf16.msrb.mxu3 %v7494_v45  ;;  %4579 = vmatpush.bf16.msra.mxu2 %v7498_v61 }
0x225a   :  { %4234 = vadd.xlane.f32.xlu1 %v4233_v26  ;;  %v8212_v26 = vld [vmem:[#allocation13 + $0x3c4] sm:$0xf0] }
0x22cd   :  { %v4235_v52 = vpop.xlane.xlu1 %4234 }
0x22ce   :  { %v4236_v30 = vmul.f32 %v4235_v52, %v8855_v51  ;;  %v8211_v52 = vld [vmem:[#allocation13 + $0x3c4] sm:$0xf] }
0x22d0   :  { %v4237_v54 = vadd.f32 1e-05, %v4236_v30  ;;  %v7487_v30 = vld [vmem:[#allocation13 + $0x3c8] sm:$0xf0] }
0x22d2   :  { %8407 = vrsqrt.f32 %v4237_v54  ;;  %vm4244_vm10 = vweird.f32 %v4237_v54 }
0x22d8   :  { %v8408_v31 = vpop.eup %8407 }
0x22d9   :  { %v4239_v34 = vmul.f32 %v8408_v31, %v4237_v54  ;;  %vm4245_vm9 = vweird.f32 %v8408_v31 }
0x22da   :  { %vm4246_vm5 = vmor %vm4244_vm10, %vm4245_vm9 }
0x22db   :  { %v4240_v6 = vmul.f32 %v8408_v31, %v4239_v34 }
0x22dd   :  { %v4241_v49 = vmul.f32 0.5, %v4240_v6 }
0x22df   :  { %v4242_v50 = vsub.f32 1.5, %v4241_v49  ;;  %v7490_v49 = vor.u32 %v8211_v52, %v7487_v30 }
0x22e1   :  { %v4243_v62 = vmul.f32 %v8408_v31, %v4242_v50  ;;  %v7477_v50 = vld [vmem:[#allocation13 + $0x3b0] sm:$0xf]  ;;  %4580 = vmatpush.bf16.msra.mxu2 %v7490_v49 }
0x22e3   :  { %v4247_v14 = vsel %vm4246_vm5, %v8408_v31, %v4243_v62  ;;  %v4278_v31 = vperm.slane %v9548_v13, 0  ;;  %v8210_v62 = vld [vmem:[#allocation13 + $0x3b4] sm:$0xf0] }
0x22e4   :  { %v4248_v8 = vmul.f32 %v4247_v14, %v4232_v20  ;;  %v7485_v20 = vld [vmem:[#allocation13 + $0x3c0] sm:$0xf]  ;;  %v4280_v14 = vperm.slane %v9548_v13, 1 }
0x22e5   :  { %v7486_v34 = vor.u32 %v8212_v26, %v7485_v20 }
0x22e6   :  { %v4249_v33 = vmul.f32 %v9533_v42, %v4248_v8 }
0x22e7   :  { %4567 = vmatpush.bf16.msrb.mxu3 %v7486_v34 }
0x22e8   :  { %v4250_v7 = vadd.f32 %v9536_v23, %v4249_v33  ;;  %v8209_v33 = vld [vmem:[#allocation13 + $0x3b4] sm:$0xf] }
0x22ea   :  { %vm4251_vm6 = vcmp.ge.f32.partialorder %v4250_v7, 0.0  ;;  %v4252_v28 = vmul.f32 %v4250_v7, %v8978_v60 }
0x22ec   :  { %v9540_v39 = vsel %vm4251_vm6, %v4250_v7, %v4252_v28  ;;  %v7479_v7 = vld [vmem:[#allocation13 + $0x3b8] sm:$0xf0] }
0x22ed   :  { %4258 = vadd.xlane.f32.xlu0 %v9540_v39 }
0x2360   :  { %v4259_v38 = vpop.xlane.xlu0 %4258 }
0x2361   :  { %v4260_v11 = vmul.f32 %v4259_v38, %v8855_v51  ;;  %v7478_v38 = vor.u32 %v8210_v62, %v7477_v50 }
0x2363   :  { %v4261_v40 = vsub.f32 %v9540_v39, %v4260_v11  ;;  %v4283_v11 = vstv %s9546_s29  ;;  %4568 = vmatpush.bf16.msrb.mxu3 %v7478_v38 }
0x2365   :  { %v4262_v29 = vmul.f32 %v4261_v40, %v4261_v40 }
0x2367   :  { %4263 = vadd.xlane.f32.xlu2 %v4262_v29  ;;  %v7482_v29 = vor.u32 %v8209_v33, %v7479_v7 }
0x2369   :  { %4581 = vmatpush.bf16.msra.mxu2 %v7482_v29 }
0x23da   :  { %v4264_v4 = vpop.xlane.xlu2 %4263 }
0x23db   :  { %v4265_v1 = vmul.f32 %v4264_v4, %v8855_v51 }
0x23dd   :  { %v4266_v53 = vadd.f32 1e-05, %v4265_v1 }
0x23df   :  { %8409 = vrsqrt.f32 %v4266_v53  ;;  %vm4273_vm8 = vweird.f32 %v4266_v53 }
0x23e5   :  { %v8410_v18 = vpop.eup %8409 }
0x23e6   :  { %v4268_v24 = vmul.f32 %v8410_v18, %v4266_v53  ;;  %vm4274_vm7 = vweird.f32 %v8410_v18 }
0x23e7   :  { %vm4275_vm9 = vmor %vm4273_vm8, %vm4274_vm7 }
0x23e8   :  { %v4269_v9 = vmul.f32 %v8410_v18, %v4268_v24 }
0x23ea   :  { %v4270_v41 = vmul.f32 0.5, %v4269_v9 }
0x23ec   :  { %v4271_v27 = vsub.f32 1.5, %v4270_v41 }
0x23ee   :  { %v4272_v54 = vmul.f32 %v8410_v18, %v4271_v27 }
0x23f0   :  { %v4276_v6 = vsel %vm4275_vm9, %v8410_v18, %v4272_v54 }
0x23f1   :  { %v4277_v8 = vmul.f32 %v4276_v6, %v4261_v40 }
0x23f3   :  { %v4279_v28 = vmul.f32 %v4278_v31, %v4277_v8 }
0x23f5   :  { %v4281_v4 = vadd.f32 %v4280_v14, %v4279_v28 }
0x23f7   :  { %vm4282_vm10 = vcmp.ge.f32.partialorder %v4281_v4, 0.0  ;;  %v4284_v1 = vmul.f32 %v4283_v11, %v4281_v4 }
0x23f9   :  { %v9553_v53 = vsel %vm4282_vm10, %v4281_v4, %v4284_v1 }
0x23fa   :  { %v4286_v22 = vmax.f32 %v9553_v53, 0.0 }
0x23fc   :  { %v4287_v44 = vadd.f32 1e-07, %v4286_v22 }
0x23fe   :  { %v4408_v46 = vpack.c.bf16 %v4287_v44, %v4287_v44  ;;  %v4344_v18 = vsub.f32 %v9451_v47, %v4287_v44  ;;  %v4345_v19 = vsub.f32 %v9455_v32, %v4287_v44  ;;  %v4346_v12 = vsub.f32 %v9459_v55, %v4287_v44 }
0x23ff   :  { %v4288_v24 = vadd.f32 %v9451_v47, %v4287_v44  ;;  %v4289_v58 = vadd.f32 %v9455_v32, %v4287_v44  ;;  %v4347_v56 = vsub.f32 %v9467_v59, %v4287_v44  ;;  %v4290_v37 = vadd.f32 %v9459_v55, %v4287_v44 }
0x2400   :  { %v4410_v40 = vsel %vm498_vm11, %v4408_v46, 0  ;;  %v4352_v63 = vrot.slane %v4344_v18, 4  ;;  %v4358_v48 = vrot.slane %v4345_v19, 4  ;;  %v4364_v21 = vrot.slane %v4346_v12, 4 }
0x2401   :  { %4419 = vmatpush.bf16.msra.mxu1 %v4410_v40  ;;  %v4302_v43 = vrot.slane %v4289_v58, 4  ;;  %v4348_v25 = vsub.f32 %v9473_v5, %v4287_v44  ;;  %v4370_v45 = vrot.slane %v4347_v56, 4  ;;  %v4308_v27 = vrot.slane %v4290_v37, 4 }
0x2402   :  { %v4353_v2 = vmax.f32 %v4344_v18, %v4352_v63  ;;  %v4359_v9 = vmax.f32 %v4345_v19, %v4358_v48  ;;  %v4365_v3 = vmax.f32 %v4346_v12, %v4364_v21  ;;  %v4291_v47 = vadd.f32 %v9467_v59, %v4287_v44 }
0x2403   :  { %v4303_v32 = vmax.f32 %v4289_v58, %v4302_v43  ;;  %v4349_v20 = vsub.f32 %v9479_v16, %v4287_v44  ;;  %v4376_v52 = vrot.slane %v4348_v25, 4  ;;  %v4371_v55 = vmax.f32 %v4347_v56, %v4370_v45 }
0x2404   :  { %7450 = vmatmul.msk.bf16.vlgmr.msra.gmra.mxu1 %vm494_vm12, %v9447_v15  ;;  %v4296_v15 = vrot.slane %v4288_v24, 4  ;;  %v4354_v36 = vrot.slane %v4353_v2, 2  ;;  %v4360_v41 = vrot.slane %v4359_v9, 2  ;;  %v4366_v26 = vrot.slane %v4365_v3, 2 }
0x2405   :  { %v4292_v31 = vadd.f32 %v9473_v5, %v4287_v44  ;;  %v4309_v34 = vmax.f32 %v4290_v37, %v4308_v27  ;;  %v4350_v6 = vsub.f32 %v9485_v10, %v4287_v44  ;;  %v4304_v50 = vrot.slane %v4303_v32, 2 }
0x2406   :  { %v4297_v61 = vmax.f32 %v4288_v24, %v4296_v15  ;;  %v4355_v30 = vmax.f32 %v4353_v2, %v4354_v36  ;;  %v4361_v54 = vmax.f32 %v4359_v9, %v4360_v41  ;;  %v4314_v62 = vrot.slane %v4291_v47, 4 }
0x2407   :  { %v4382_v14 = vrot.slane %v4349_v20, 4  ;;  %v4293_v59 = vadd.f32 %v9479_v16, %v4287_v44  ;;  %v4351_v8 = vsub.f32 %v9491_v57, %v4287_v44  ;;  %v4367_v33 = vmax.f32 %v4365_v3, %v4366_v26 }
0x2408   :  { %v4298_v49 = vrot.slane %v4297_v61, 2  ;;  %v4377_v7 = vmax.f32 %v4348_v25, %v4376_v52  ;;  %v4356_v28 = vrot.slane %v4355_v30, 1  ;;  %v4362_v38 = vrot.slane %v4361_v54, 1 }
0x2409   :  { %v4372_v11 = vrot.slane %v4371_v55, 2  ;;  %v4294_v29 = vadd.f32 %v9485_v10, %v4287_v44  ;;  %v4310_v4 = vrot.slane %v4309_v34, 2  ;;  %v4320_v5 = vrot.slane %v4292_v31, 4 }
0x240a   :  { %v4388_v1 = vrot.slane %v4350_v6, 4  ;;  %v4299_v22 = vmax.f32 %v4297_v61, %v4298_v49  ;;  %v4305_v46 = vmax.f32 %v4303_v32, %v4304_v50  ;;  %v4315_v40 = vmax.f32 %v4291_v47, %v4314_v62 }
0x240b   :  { %v4383_v18 = vmax.f32 %v4349_v20, %v4382_v14  ;;  %v4326_v19 = vrot.slane %v4293_v59, 4  ;;  %v4368_v12 = vrot.slane %v4367_v33, 1  ;;  %v4378_v63 = vrot.slane %v4377_v7, 2 }
0x240c   :  { %v4394_v16 = vrot.slane %v4351_v8, 4  ;;  %v4295_v48 = vadd.f32 %v9491_v57, %v4287_v44  ;;  %v4357_v24 = vmax.f32 %v4355_v30, %v4356_v28  ;;  %v4363_v58 = vmax.f32 %v4361_v54, %v4362_v38 }
0x240d   :  { %v4373_v21 = vmax.f32 %v4371_v55, %v4372_v11  ;;  %v4311_v56 = vmax.f32 %v4309_v34, %v4310_v4  ;;  %v4321_v2 = vmax.f32 %v4292_v31, %v4320_v5  ;;  %v4332_v9 = vrot.slane %v4294_v29, 4  ;;  %v7461_v4 = vld [vmem:[#allocation13 + $0x390] sm:$0xf]  ;;  %v8206_v5 = vld [vmem:[#allocation13 + $0x394] sm:$0xf0] }
0x240e   :  { %v4389_v10 = vmax.f32 %v4350_v6, %v4388_v1  ;;  %v4300_v37 = vrot.slane %v4299_v22, 1  ;;  %v4306_v15 = vrot.slane %v4305_v46, 1  ;;  %v4316_v43 = vrot.slane %v4315_v40, 2 }
0x240f   :  { %v4384_v25 = vrot.slane %v4383_v18, 2  ;;  %v4327_v3 = vmax.f32 %v4293_v59, %v4326_v19  ;;  %v4369_v36 = vmax.f32 %v4367_v33, %v4368_v12  ;;  %v4379_v41 = vmax.f32 %v4377_v7, %v4378_v63  ;;  %v7469_v59 = vld [vmem:[#allocation13 + $0x3a0] sm:$0xf]  ;;  %v8207_v33 = vld [vmem:[#allocation13 + $0x3a4] sm:$0xf] }
0x2410   :  { %v4395_v45 = vmax.f32 %v4351_v8, %v4394_v16  ;;  %v4338_v27 = vrot.slane %v4295_v48, 4  ;;  %v4374_v47 = vrot.slane %v4373_v21, 1  ;;  %v4400_v61 = vsub.f32 0.0, %v4357_v24  ;;  %v8208_v8 = vld [vmem:[#allocation13 + $0x3a4] sm:$0xf0] }
0x2411   :  { %v4401_v32 = vsub.f32 0.0, %v4363_v58  ;;  %v4312_v57 = vrot.slane %v4311_v56, 1  ;;  %v4322_v44 = vrot.slane %v4321_v2, 2  ;;  %v4333_v20 = vmax.f32 %v4294_v29, %v4332_v9  ;;  %v7471_v29 = vld [vmem:[#allocation13 + $0x3a8] sm:$0xf0] }
0x2412   :  { %v4390_v26 = vrot.slane %v4389_v10, 2  ;;  %v4301_v52 = vmax.f32 %v4299_v22, %v4300_v37  ;;  %v4307_v30 = vmax.f32 %v4305_v46, %v4306_v15  ;;  %v4317_v54 = vmax.f32 %v4315_v40, %v4316_v43  ;;  %v7463_v19 = vld [vmem:[#allocation13 + $0x398] sm:$0xf0]  ;;  %v8204_v9 = vld [vmem:[#allocation13 + $0x384] sm:$0xf0] }
0x2413   :  { %v4385_v55 = vmax.f32 %v4383_v18, %v4384_v25  ;;  %v4328_v31 = vrot.slane %v4327_v3, 2  ;;  %v4380_v34 = vrot.slane %v4379_v41, 1  ;;  %v4396_v6 = vrot.slane %v4395_v45, 2  ;;  %v8205_v18 = vld [vmem:[#allocation13 + $0x394] sm:$0xf] }
0x2414   :  { %v4402_v49 = vsub.f32 0.0, %v4369_v36  ;;  %v4339_v50 = vmax.f32 %v4295_v48, %v4338_v27  ;;  %v4375_v62 = vmax.f32 %v4373_v21, %v4374_v47  ;;  %v4451_v14 = vsel %vm534_vm13, %v4401_v32, %v4400_v61  ;;  %v8203_v43 = vld [vmem:[#allocation13 + $0x384] sm:$0xf]  ;;  %v7455_v25 = vld [vmem:[#allocation13 + $0x388] sm:$0xf0] }
0x2415   :  { %v4313_v7 = vmax.f32 %v4311_v56, %v4312_v57  ;;  %v4323_v28 = vmax.f32 %v4321_v2, %v4322_v44  ;;  %v4391_v38 = vmax.f32 %v4389_v10, %v4390_v26  ;;  %v7470_v11 = vor.u32 %v8208_v8, %v7469_v59  ;;  %v7453_v2 = vld [vmem:[#allocation13 + $0x380] sm:$0xf] }
0x2416   :  { %v4318_v1 = vrot.slane %v4317_v54, 1  ;;  %v4386_v22 = vrot.slane %v4385_v55, 1  ;;  %v4434_v46 = vsel %vm534_vm13, %v4307_v30, %v4301_v52  ;;  %v7474_v40 = vor.u32 %v8207_v33, %v7471_v29 }
0x2417   :  { %v4334_v12 = vrot.slane %v4333_v20, 2  ;;  %v4381_v63 = vmax.f32 %v4379_v41, %v4380_v34  ;;  %v4452_v16 = vsel %vm536_vm14, %v4402_v49, %v4451_v14  ;;  %4569 = vmatpush.bf16.msrb.mxu3 %v7470_v11  ;;  %v7462_v48 = vor.u32 %v8206_v5, %v7461_v4 }
0x2418   :  { %v4329_v24 = vmax.f32 %v4327_v3, %v4328_v31  ;;  %v4397_v58 = vmax.f32 %v4395_v45, %v4396_v6  ;;  %v4403_v21 = vsub.f32 0.0, %v4375_v62  ;;  %4582 = vmatpush.bf16.msra.mxu2 %v7474_v40  ;;  %v7466_v56 = vor.u32 %v8205_v18, %v7463_v19 }
0x2419   :  { %v4324_v10 = vrot.slane %v4323_v28, 1  ;;  %v4392_v37 = vrot.slane %v4391_v38, 1  ;;  %v4435_v15 = vsel %vm536_vm14, %v4313_v7, %v4434_v46  ;;  %v4319_v36 = vmax.f32 %v4317_v54, %v4318_v1 }
0x241a   :  { %v4340_v27 = vrot.slane %v4339_v50, 2  ;;  %v4387_v41 = vmax.f32 %v4385_v55, %v4386_v22  ;;  %v4453_v47 = vsel %vm538_vm15, %v4403_v21, %v4452_v16  ;;  %v4335_v61 = vmax.f32 %v4333_v20, %v4334_v12  ;;  %v9595_v16 = vld [vmem:[#allocation16 + $0x78] sm:$0xff] }
0x241b   :  { %v4404_v32 = vsub.f32 0.0, %v4381_v63  ;;  %4570 = vmatpush.bf16.msrb.mxu3 %v7462_v48  ;;  %v7454_v3 = vor.u32 %v8204_v9, %v7453_v2  ;;  %v4330_v45 = vrot.slane %v4329_v24, 1  ;;  %v4398_v57 = vrot.slane %v4397_v58, 1 }
0x241c   :  { %v4436_v44 = vsel %vm538_vm15, %v4319_v36, %v4435_v15  ;;  %4583 = vmatpush.bf16.msra.mxu2 %v7466_v56  ;;  %v7458_v26 = vor.u32 %v8203_v43, %v7455_v25  ;;  %v4325_v52 = vmax.f32 %v4323_v28, %v4324_v10  ;;  %v4393_v30 = vmax.f32 %v4391_v38, %v4392_v37 }
0x241d   :  { %v4454_v31 = vsel %vm540_vm0, %v4404_v32, %v4453_v47  ;;  %v4341_v34 = vmax.f32 %v4339_v50, %v4340_v27  ;;  %v4405_v54 = vsub.f32 0.0, %v4387_v41  ;;  %v4336_v6 = vrot.slane %v4335_v61, 1  ;;  %v8226_v47 = vld [vmem:[#allocation15 + $0x3b8] sm:$0xff]  ;;  %v8225_v32 = vld [vmem:[#allocation15 + $0x3b0] sm:$0xff] }
0x241e   :  { %v4437_v55 = vsel %vm540_vm0, %v4325_v52, %v4436_v44  ;;  %v4331_v20 = vmax.f32 %v4329_v24, %v4330_v45  ;;  %v4399_v49 = vmax.f32 %v4397_v58, %v4398_v57  ;;  %v4406_v14 = vsub.f32 0.0, %v4393_v30  ;;  %4757 = vmatpush.bf16.msra.mxu0 %v8226_v47  ;;  %v8224_v45 = vld [vmem:[#allocation15 + $0x3a8] sm:$0xff]  ;;  %v8223_v44 = vld [vmem:[#allocation15 + $0x3a0] sm:$0xff]  ;;  %v8222_v52 = vld [vmem:[#allocation15 + $0x398] sm:$0xff] }
0x241f   :  { %4571 = vmatpush.bf16.msrb.mxu3 %v7454_v3  ;;  %v4455_v62 = vsel %vm542_vm1, %v4405_v54, %v4454_v31  ;;  %v4342_v59 = vrot.slane %v4341_v34, 1  ;;  %v4337_v33 = vmax.f32 %v4335_v61, %v4336_v6  ;;  %v4482_v48 = vperm.slane %v9548_v13, 2  ;;  %v8234_v61 = vld [vmem:[#allocation15 + $0x3f8] sm:$0xff]  ;;  %v8233_v3 = vld [vmem:[#allocation15 + $0x3f0] sm:$0xff]  ;;  %v8232_v57 = vld [vmem:[#allocation15 + $0x3e8] sm:$0xff] }
0x2420   :  { %4584 = vmatpush.bf16.msra.mxu2 %v7458_v26  ;;  %v4438_v8 = vsel %vm542_vm1, %v4331_v20, %v4437_v55  ;;  %v4456_v7 = vsel %vm544_vm2, %v4406_v14, %v4455_v62  ;;  %v4407_v28 = vsub.f32 0.0, %v4399_v49  ;;  %v4483_v24 = vperm.slane %v9595_v16, 2  ;;  %4770 = vmatpush.bf16.msrb.mxu1 %v8234_v61  ;;  %v8231_v26 = vld [vmem:[#allocation15 + $0x3e0] sm:$0xff]  ;;  %v8230_v30 = vld [vmem:[#allocation15 + $0x3d8] sm:$0xff]  ;;  %v8221_v54 = vld [vmem:[#allocation15 + $0x390] sm:$0xff] }
0x2421   :  { %v4439_v50 = vsel %vm544_vm2, %v4337_v33, %v4438_v8  ;;  %v4343_v38 = vmax.f32 %v4341_v34, %v4342_v59  ;;  %v8229_v6 = vld [vmem:[#allocation15 + $0x3d0] sm:$0xff]  ;;  %v8220_v20 = vld [vmem:[#allocation15 + $0x388] sm:$0xff]  ;;  %v8219_v62 = vld [vmem:[#allocation15 + $0x380] sm:$0xff] }
0x2422   :  { %v4457_v11 = vsel %vm546_vm3, %v4407_v28, %v4456_v7  ;;  %4758 = vmatpush.bf16.msra.mxu0 %v8225_v32  ;;  %v8228_v49 = vld [vmem:[#allocation15 + $0x3c8] sm:$0xff]  ;;  %v8227_v14 = vld [vmem:[#allocation15 + $0x3c0] sm:$0xff] }
0x2423   :  { %v4440_v29 = vsel %vm546_vm3, %v4343_v38, %v4439_v50  ;;  %v4459_v4 = vsel %vm525_vm4, %v4457_v11, 0.0  ;;  %v4616_v38 = vperm.slane %v9595_v16, 3  ;;  %v4615_v11 = vperm.slane %v9548_v13, 3 }
0x2424   :  { %v4442_v1 = vsel %vm525_vm4, %v4440_v29, 0.0  ;;  %4771 = vmatpush.bf16.msrb.mxu1 %v8233_v3 }
0x2425   :  { %v4460_v46 = vadd.f32 %v4459_v4, %v4442_v1  ;;  %v4620_v4 = vperm.slane %v9595_v16, 4 }
0x2426   :  { %4759 = vmatpush.bf16.msra.mxu0 %v8224_v45 }
0x2428   :  { %4772 = vmatpush.bf16.msrb.mxu1 %v8232_v57 }
0x242a   :  { %4760 = vmatpush.bf16.msra.mxu0 %v8223_v44 }
0x242c   :  { %4773 = vmatpush.bf16.msrb.mxu1 %v8231_v26 }
0x242e   :  { %4761 = vmatpush.bf16.msra.mxu0 %v8222_v52 }
0x2430   :  { %4774 = vmatpush.bf16.msrb.mxu1 %v8230_v30 }
0x2432   :  { %4762 = vmatpush.bf16.msra.mxu0 %v8221_v54 }
0x2434   :  { %4775 = vmatpush.bf16.msrb.mxu1 %v8229_v6 }
0x2436   :  { %4763 = vmatpush.bf16.msra.mxu0 %v8220_v20 }
0x2438   :  { %4776 = vmatpush.bf16.msrb.mxu1 %v8228_v49  ;;  %v8250_v49 = vld [vmem:[#allocation13 + $0x474] sm:$0xf0] }
0x243a   :  { %4764 = vmatpush.bf16.msra.mxu0 %v8219_v62  ;;  %v8249_v62 = vld [vmem:[#allocation13 + $0x474] sm:$0xf] }
0x243c   :  { %4777 = vmatpush.bf16.msrb.mxu1 %v8227_v14 }
0x2481   :  { %v4421_v5 = vpop.f32.mrf.mxu1 }
0x2482   :  { %v4425_v22 = vmul.f32 %v4421_v5, %v8949_v0 }
0x2484   :  { %v4461_v40 = vadd.f32 %v4460_v46, %v4425_v22  ;;  %v4619_v22 = vperm.slane %v9548_v13, 4 }
0x2486   :  { %v4462_v18 = vmul.f32 0.33333334, %v4461_v40 }
0x2488   :  { %v4463_v19 = vadd.f32 %v4462_v18, %v9553_v53 }
0x2489   :  { %v4423_v12 = vpop.f32.mrf.mxu1 }
0x248a   :  { %v4464_v63 = vpack.c.bf16 %v4463_v19, %v4463_v19 }
0x248c   :  { %4572 = vmatmul.bf16.vlgmr.msrb.gmra.mxu3 %v4464_v63  ;;  %4585 = vmatmul.bf16.vlgmr.msra.gmra.mxu2 %v4464_v63 }
0x250f   :  { %v4573_v58 = vpop.f32.mrf.mxu3  ;;  %v4586_v21 = vpop.f32.mrf.mxu2 }
0x2510   :  { %v4574_v56 = vadd.f32 %v4573_v58, %v4482_v48  ;;  %v4587_v2 = vadd.f32 %v4586_v21, %v4483_v24  ;;  %v4660_v58 = vperm.slane %v9548_v13, 5 }
0x2512   :  { %v4590_v9 = vadd.f32 %v4587_v2, %v4574_v56 }
0x2514   :  { %4591 = vadd.xlane.f32.xlu1 %v4590_v9 }
0x2517   :  { %v4575_v10 = vpop.f32.mrf.mxu3  ;;  %v4588_v37 = vpop.f32.mrf.mxu2 }
0x2587   :  { %v4592_v15 = vpop.xlane.xlu1 %4591 }
0x2588   :  { %v4593_v53 = vmul.f32 %v4592_v15, %v8961_v17 }
0x258a   :  { %v4594_v43 = vsub.f32 %v4574_v56, %v4593_v53  ;;  %v4595_v25 = vsub.f32 %v4587_v2, %v4593_v53 }
0x258c   :  { %v4596_v36 = vmul.f32 %v4594_v43, %v4594_v43  ;;  %v4597_v27 = vmul.f32 %v4595_v25, %v4595_v25 }
0x258e   :  { %v4598_v41 = vadd.f32 %v4597_v27, %v4596_v36 }
0x2590   :  { %4599 = vadd.xlane.f32.xlu0 %v4598_v41 }
0x2603   :  { %v4600_v31 = vpop.xlane.xlu0 %4599 }
0x2604   :  { %v4601_v34 = vmul.f32 %v4600_v31, %v8961_v17 }
0x2606   :  { %v4602_v55 = vadd.f32 1e-05, %v4601_v34 }
0x2608   :  { %8411 = vrsqrt.f32 %v4602_v55  ;;  %vm4609_vm6 = vweird.f32 %v4602_v55 }
0x260e   :  { %v8412_v59 = vpop.eup %8411 }
0x260f   :  { %v4604_v8 = vmul.f32 %v8412_v59, %v4602_v55  ;;  %vm4610_vm5 = vweird.f32 %v8412_v59 }
0x2610   :  { %vm4611_vm7 = vmor %vm4609_vm6, %vm4610_vm5 }
0x2611   :  { %v4605_v33 = vmul.f32 %v8412_v59, %v4604_v8  ;;  %v7641_v8 = vld [vmem:[#allocation13 + $0x478] sm:$0xf0] }
0x2613   :  { %v4606_v7 = vmul.f32 0.5, %v4605_v33  ;;  %v7631_v33 = vld [vmem:[#allocation13 + $0x460] sm:$0xf] }
0x2615   :  { %v4607_v28 = vsub.f32 1.5, %v4606_v7  ;;  %v8248_v7 = vld [vmem:[#allocation13 + $0x464] sm:$0xf0] }
0x2617   :  { %v4608_v50 = vmul.f32 %v8412_v59, %v4607_v28 }
0x2619   :  { %v4612_v29 = vsel %vm4611_vm7, %v8412_v59, %v4608_v50  ;;  %v7644_v50 = vor.u32 %v8249_v62, %v7641_v8 }
0x261a   :  { %v4613_v5 = vmul.f32 %v4612_v29, %v4594_v43  ;;  %v4614_v1 = vmul.f32 %v4612_v29, %v4595_v25  ;;  %v7632_v29 = vor.u32 %v8248_v7, %v7631_v33 }
0x261b   :  { %5132 = vmatpush.bf16.msrb.mxu0 %v7644_v50 }
0x261c   :  { %v4617_v46 = vmul.f32 %v4615_v11, %v4613_v5  ;;  %v4618_v40 = vmul.f32 %v4616_v38, %v4614_v1  ;;  %v8247_v38 = vld [vmem:[#allocation13 + $0x464] sm:$0xf]  ;;  %v7633_v11 = vld [vmem:[#allocation13 + $0x468] sm:$0xf0]  ;;  %v7623_v1 = vld [vmem:[#allocation13 + $0x450] sm:$0xf] }
0x261d   :  { %v7636_v5 = vor.u32 %v8247_v38, %v7633_v11  ;;  %v9659_v11 = vld [vmem:[#allocation7 + $0x20] sm:$0xff] }
0x261e   :  { %v4621_v18 = vadd.f32 %v4619_v22, %v4617_v46  ;;  %v4622_v19 = vadd.f32 %v4620_v4, %v4618_v40  ;;  %v8246_v22 = vld [vmem:[#allocation13 + $0x454] sm:$0xf0]  ;;  %v8245_v46 = vld [vmem:[#allocation13 + $0x454] sm:$0xf]  ;;  %v7625_v40 = vld [vmem:[#allocation13 + $0x458] sm:$0xf0] }
0x261f   :  { %5133 = vmatpush.bf16.msrb.mxu0 %v7636_v5 }
0x2620   :  { %v4623_v12 = vmax.f32 %v4621_v18, 0.0  ;;  %v4624_v63 = vmax.f32 %v4622_v19, 0.0  ;;  %v7624_v19 = vor.u32 %v8246_v22, %v7623_v1 }
0x2622   :  { %v4625_v48 = vpack.c.bf16 %v4623_v12, %v4623_v12  ;;  %v4626_v24 = vpack.c.bf16 %v4624_v63, %v4624_v63  ;;  %v9620_v12 = vld [vmem:[#allocation16 + $0x80] sm:$0xff] }
0x2624   :  { %4765 = vmatmul.bf16.vlgmr.msra.gmra.mxu0 %v4625_v48  ;;  %4778 = vmatmul.bf16.vlgmr.msrb.gmra.mxu1 %v4626_v24  ;;  %v7628_v48 = vor.u32 %v8245_v46, %v7625_v40  ;;  %v7615_v24 = vld [vmem:[#allocation13 + $0x440] sm:$0xf] }
0x2626   :  { %5134 = vmatpush.bf16.msrb.mxu0 %v7628_v48 }
0x26a1   :  { %v4766_v21 = vpop.f32.mrf.mxu0  ;;  %v4779_v56 = vpop.f32.mrf.mxu1 }
0x26a2   :  { %v4767_v2 = vadd.f32 %v4766_v21, %v4660_v58  ;;  %v8244_v58 = vld [vmem:[#allocation13 + $0x444] sm:$0xf0]  ;;  %v8243_v21 = vld [vmem:[#allocation13 + $0x444] sm:$0xf] }
0x26a4   :  { %v4780_v16 = vadd.f32 %v4779_v56, %v4767_v2  ;;  %v7617_v56 = vld [vmem:[#allocation13 + $0x448] sm:$0xf0] }
0x26a6   :  { %v4783_v9 = vadd.f32 %v4780_v16, %v9540_v39  ;;  %v4833_v16 = vperm.slane %v9620_v12, 0 }
0x26a8   :  { %4784 = vadd.xlane.f32.xlu2 %v4783_v9 }
0x26a9   :  { %v4768_v10 = vpop.f32.mrf.mxu0  ;;  %v4781_v37 = vpop.f32.mrf.mxu1 }
0x26aa   :  { %v7620_v37 = vor.u32 %v8243_v21, %v7617_v56 }
0x26ac   :  { %5135 = vmatpush.bf16.msrb.mxu0 %v7620_v37 }
0x271b   :  { %v4785_v15 = vpop.xlane.xlu2 %4784 }
0x271c   :  { %v4786_v53 = vmul.f32 %v4785_v15, %v8855_v51  ;;  %v7607_v15 = vld [vmem:[#allocation13 + $0x430] sm:$0xf] }
0x271e   :  { %v4787_v43 = vsub.f32 %v4783_v9, %v4786_v53  ;;  %v7616_v9 = vor.u32 %v8244_v58, %v7615_v24  ;;  %v8242_v53 = vld [vmem:[#allocation13 + $0x434] sm:$0xf0] }
0x2720   :  { %v4788_v25 = vmul.f32 %v4787_v43, %v4787_v43 }
0x2722   :  { %4789 = vadd.xlane.f32.xlu1 %v4788_v25 }
0x2795   :  { %v4790_v36 = vpop.xlane.xlu1 %4789 }
0x2796   :  { %v4791_v27 = vmul.f32 %v4790_v36, %v8855_v51  ;;  %v8241_v36 = vld [vmem:[#allocation13 + $0x434] sm:$0xf] }
0x2798   :  { %v4792_v41 = vadd.f32 1e-05, %v4791_v27  ;;  %v7609_v27 = vld [vmem:[#allocation13 + $0x438] sm:$0xf0] }
0x279a   :  { %8413 = vrsqrt.f32 %v4792_v41  ;;  %vm4799_vm9 = vweird.f32 %v4792_v41 }
0x27a0   :  { %v8414_v13 = vpop.eup %8413 }
0x27a1   :  { %v4794_v47 = vmul.f32 %v8414_v13, %v4792_v41  ;;  %vm4800_vm8 = vweird.f32 %v8414_v13 }
0x27a2   :  { %vm4801_vm10 = vmor %vm4799_vm9, %vm4800_vm8 }
0x27a3   :  { %v4795_v61 = vmul.f32 %v8414_v13, %v4794_v47  ;;  %v4838_v47 = vstv %s9618_s22 }
0x27a5   :  { %v4796_v32 = vmul.f32 0.5, %v4795_v61  ;;  %v7612_v61 = vor.u32 %v8241_v36, %v7609_v27  ;;  %v9677_v27 = vld [vmem:[#allocation7 + $0x38] sm:$0xff] }
0x27a7   :  { %v4797_v3 = vsub.f32 1.5, %v4796_v32  ;;  %5136 = vmatpush.bf16.msrb.mxu0 %v7612_v61 }
0x27a9   :  { %v4798_v39 = vmul.f32 %v8414_v13, %v4797_v3 }
0x27ab   :  { %v4802_v45 = vsel %vm4801_vm10, %v8414_v13, %v4798_v39  ;;  %v7608_v13 = vor.u32 %v8242_v53, %v7607_v15 }
0x27ac   :  { %v4803_v57 = vmul.f32 %v4802_v45, %v4787_v43  ;;  %v4835_v43 = vperm.slane %v9620_v12, 1 }
0x27ae   :  { %v4804_v44 = vmul.f32 %v9533_v42, %v4803_v57 }
0x27b0   :  { %v4805_v26 = vadd.f32 %v9536_v23, %v4804_v44  ;;  %v7639_v23 = vld [vmem:[#allocation13 + $0x470] sm:$0xf] }
0x27b1   :  { %v7640_v59 = vor.u32 %v8250_v49, %v7639_v23 }
0x27b2   :  { %vm4806_vm5 = vcmp.ge.f32.partialorder %v4805_v26, 0.0  ;;  %v4807_v52 = vmul.f32 %v4805_v26, %v8978_v60 }
0x27b3   :  { %5119 = vmatpush.bf16.msrb.mxu2 %v7640_v59  ;;  %v9653_v59 = vld [vmem:[#allocation7 + $0x18] sm:$0xff] }
0x27b4   :  { %v9612_v30 = vsel %vm4806_vm5, %v4805_v26, %v4807_v52  ;;  %v9633_v52 = vld [vmem:[#allocation6] sm:$0xf] }
0x27b5   :  { %4813 = vadd.xlane.f32.xlu0 %v9612_v30 }
0x27b7   :  { %5120 = vmatpush.bf16.msrb.mxu2 %v7632_v29 }
0x27bb   :  { %5121 = vmatpush.bf16.msrb.mxu2 %v7624_v19 }
0x27bf   :  { %5122 = vmatpush.bf16.msrb.mxu2 %v7616_v9 }
0x27c3   :  { %5123 = vmatpush.bf16.msrb.mxu2 %v7608_v13 }
0x2828   :  { %v4814_v31 = vpop.xlane.xlu0 %4813 }
0x2829   :  { %v4815_v34 = vmul.f32 %v4814_v31, %v8855_v51  ;;  %v9637_v31 = vld [vmem:[#allocation7] sm:$0xff] }
0x282b   :  { %v4816_v54 = vsub.f32 %v9612_v30, %v4815_v34 }
0x282d   :  { %v4817_v6 = vmul.f32 %v4816_v54, %v4816_v54 }
0x282f   :  { %4818 = vadd.xlane.f32.xlu2 %v4817_v6 }
0x28a2   :  { %v4819_v55 = vpop.xlane.xlu2 %4818 }
0x28a3   :  { %v4820_v20 = vmul.f32 %v4819_v55, %v8855_v51  ;;  %v9645_v55 = vld [vmem:[#allocation7 + $0x10] sm:$0xff] }
0x28a5   :  { %v4821_v42 = vadd.f32 1e-05, %v4820_v20 }
0x28a7   :  { %8415 = vrsqrt.f32 %v4821_v42  ;;  %vm4828_vm7 = vweird.f32 %v4821_v42 }
0x28ad   :  { %v8416_v14 = vpop.eup %8415 }
0x28ae   :  { %v4823_v28 = vmul.f32 %v8416_v14, %v4821_v42  ;;  %vm4829_vm6 = vweird.f32 %v8416_v14 }
0x28af   :  { %vm4830_vm8 = vmor %vm4828_vm7, %vm4829_vm6 }
0x28b0   :  { %v4824_v4 = vmul.f32 %v8416_v14, %v4823_v28 }
0x28b2   :  { %v4825_v18 = vmul.f32 0.5, %v4824_v4 }
0x28b4   :  { %v4826_v63 = vsub.f32 1.5, %v4825_v18 }
0x28b6   :  { %v4827_v2 = vmul.f32 %v8416_v14, %v4826_v63  ;;  %v9665_v63 = vld [vmem:[#allocation7 + $0x28] sm:$0xff] }
0x28b8   :  { %v4831_v10 = vsel %vm4830_vm8, %v8416_v14, %v4827_v2 }
0x28b9   :  { %v4832_v25 = vmul.f32 %v4831_v10, %v4816_v54  ;;  %v9641_v54 = vld [vmem:[#allocation7 + $0x8] sm:$0xff]  ;;  %v9671_v10 = vld [vmem:[#allocation7 + $0x30] sm:$0xff] }
0x28bb   :  { %v4834_v41 = vmul.f32 %v4833_v16, %v4832_v25 }
0x28bd   :  { %v4836_v32 = vadd.f32 %v4835_v43, %v4834_v41 }
0x28bf   :  { %vm4837_vm9 = vcmp.ge.f32.partialorder %v4836_v32, 0.0  ;;  %v4839_v3 = vmul.f32 %v4838_v47, %v4836_v32 }
0x28c1   :  { %v9625_v39 = vsel %vm4837_vm9, %v4836_v32, %v4839_v3 }
0x28c2   :  { %v4841_v45 = vmax.f32 %v9625_v39, 0.0 }
0x28c4   :  { %v9628_v57 = vadd.f32 1e-07, %v4841_v45 }
0x28c6   :  { %v4963_v44 = vpack.c.bf16 %v9628_v57, %v9628_v57  ;;  %v4899_v34 = vsub.f32 %v9637_v31, %v9628_v57  ;;  %v4900_v6 = vsub.f32 %v9641_v54, %v9628_v57  ;;  %v4901_v20 = vsub.f32 %v9645_v55, %v9628_v57 }
0x28c7   :  { %v4843_v49 = vadd.f32 %v9637_v31, %v9628_v57  ;;  %v4844_v62 = vadd.f32 %v9641_v54, %v9628_v57  ;;  %v4902_v8 = vsub.f32 %v9653_v59, %v9628_v57  ;;  %v4845_v28 = vadd.f32 %v9645_v55, %v9628_v57 }
0x28c8   :  { %v4965_v26 = vsel %vm498_vm11, %v4963_v44, 0  ;;  %v4907_v42 = vrot.slane %v4899_v34, 4  ;;  %v4913_v23 = vrot.slane %v4900_v6, 4  ;;  %v4919_v14 = vrot.slane %v4901_v20, 4 }
0x28c9   :  { %4974 = vmatpush.bf16.msra.mxu3 %v4965_v26  ;;  %v4851_v50 = vrot.slane %v4843_v49, 4  ;;  %v4857_v38 = vrot.slane %v4844_v62, 4  ;;  %v4903_v29 = vsub.f32 %v9659_v11, %v9628_v57  ;;  %v4925_v22 = vrot.slane %v4902_v8, 4 }
0x28ca   :  { %v4908_v33 = vmax.f32 %v4899_v34, %v4907_v42  ;;  %v4914_v7 = vmax.f32 %v4900_v6, %v4913_v23  ;;  %v4920_v4 = vmax.f32 %v4901_v20, %v4919_v14  ;;  %v4863_v46 = vrot.slane %v4845_v28, 4 }
0x28cb   :  { %v4846_v40 = vadd.f32 %v9653_v59, %v9628_v57  ;;  %v4852_v18 = vmax.f32 %v4843_v49, %v4851_v50  ;;  %v4858_v19 = vmax.f32 %v4844_v62, %v4857_v38  ;;  %v4904_v48 = vsub.f32 %v9665_v63, %v9628_v57 }
0x28cc   :  { %7580 = vmatmul.msk.bf16.vlgmr.msra.gmra.mxu3 %vm494_vm12, %v9633_v52  ;;  %v4909_v5 = vrot.slane %v4908_v33, 2  ;;  %v4915_v1 = vrot.slane %v4914_v7, 2  ;;  %v4921_v24 = vrot.slane %v4920_v4, 2  ;;  %v4931_v58 = vrot.slane %v4903_v29, 4 }
0x28cd   :  { %v4926_v2 = vmax.f32 %v4902_v8, %v4925_v22  ;;  %v4847_v16 = vadd.f32 %v9659_v11, %v9628_v57  ;;  %v4864_v9 = vmax.f32 %v4845_v28, %v4863_v46  ;;  %v4905_v37 = vsub.f32 %v9671_v10, %v9628_v57 }
0x28ce   :  { %v4910_v21 = vmax.f32 %v4908_v33, %v4909_v5  ;;  %v4916_v56 = vmax.f32 %v4914_v7, %v4915_v1  ;;  %v4853_v15 = vrot.slane %v4852_v18, 2  ;;  %v4859_v53 = vrot.slane %v4858_v19, 2 }
0x28cf   :  { %v4869_v43 = vrot.slane %v4846_v40, 4  ;;  %v4937_v25 = vrot.slane %v4904_v48, 4  ;;  %v4848_v36 = vadd.f32 %v9665_v63, %v9628_v57  ;;  %v4906_v41 = vsub.f32 %v9677_v27, %v9628_v57 }
0x28d0   :  { %v4922_v13 = vmax.f32 %v4920_v4, %v4921_v24  ;;  %v4932_v47 = vmax.f32 %v4903_v29, %v4931_v58  ;;  %v4911_v61 = vrot.slane %v4910_v21, 1  ;;  %v4917_v32 = vrot.slane %v4916_v56, 1 }
0x28d1   :  { %v4927_v3 = vrot.slane %v4926_v2, 2  ;;  %v4849_v45 = vadd.f32 %v9671_v10, %v9628_v57  ;;  %v4865_v44 = vrot.slane %v4864_v9, 2  ;;  %v4875_v26 = vrot.slane %v4847_v16, 4 }
0x28d2   :  { %v4943_v34 = vrot.slane %v4905_v37, 4  ;;  %v4854_v6 = vmax.f32 %v4852_v18, %v4853_v15  ;;  %v4860_v20 = vmax.f32 %v4858_v19, %v4859_v53  ;;  %v4870_v42 = vmax.f32 %v4846_v40, %v4869_v43 }
0x28d3   :  { %v4938_v23 = vmax.f32 %v4904_v48, %v4937_v25  ;;  %v4881_v49 = vrot.slane %v4848_v36, 4  ;;  %v4923_v62 = vrot.slane %v4922_v13, 1  ;;  %v4933_v14 = vrot.slane %v4932_v47, 2 }
0x28d4   :  { %v4949_v8 = vrot.slane %v4906_v41, 4  ;;  %v4850_v33 = vadd.f32 %v9677_v27, %v9628_v57  ;;  %v4912_v7 = vmax.f32 %v4910_v21, %v4911_v61  ;;  %v4918_v28 = vmax.f32 %v4916_v56, %v4917_v32 }
0x28d5   :  { %v4928_v50 = vmax.f32 %v4926_v2, %v4927_v3  ;;  %v4866_v38 = vmax.f32 %v4864_v9, %v4865_v44  ;;  %v4876_v29 = vmax.f32 %v4847_v16, %v4875_v26  ;;  %v4887_v4 = vrot.slane %v4849_v45, 4  ;;  %v8240_v26 = vld [vmem:[#allocation13 + $0x424] sm:$0xf0] }
0x28d6   :  { %v4944_v5 = vmax.f32 %v4905_v37, %v4943_v34  ;;  %v4855_v1 = vrot.slane %v4854_v6, 1  ;;  %v4861_v22 = vrot.slane %v4860_v20, 1  ;;  %v4871_v46 = vrot.slane %v4870_v42, 2  ;;  %v8239_v34 = vld [vmem:[#allocation13 + $0x424] sm:$0xf] }
0x28d7   :  { %v4939_v18 = vrot.slane %v4938_v23, 2  ;;  %v4882_v40 = vmax.f32 %v4848_v36, %v4881_v49  ;;  %v4924_v19 = vmax.f32 %v4922_v13, %v4923_v62  ;;  %v4934_v48 = vmax.f32 %v4932_v47, %v4933_v14  ;;  %v7599_v47 = vld [vmem:[#allocation13 + $0x420] sm:$0xf] }
0x28d8   :  { %v4950_v24 = vmax.f32 %v4906_v41, %v4949_v8  ;;  %v4893_v58 = vrot.slane %v4850_v33, 4  ;;  %v4929_v15 = vrot.slane %v4928_v50, 1  ;;  %v4955_v53 = vsub.f32 0.0, %v4912_v7  ;;  %v7601_v8 = vld [vmem:[#allocation13 + $0x428] sm:$0xf0] }
0x28d9   :  { %v4956_v43 = vsub.f32 0.0, %v4918_v28  ;;  %v4867_v57 = vrot.slane %v4866_v38, 1  ;;  %v4877_v21 = vrot.slane %v4876_v29, 2  ;;  %v4888_v56 = vmax.f32 %v4849_v45, %v4887_v4  ;;  %v8237_v4 = vld [vmem:[#allocation13 + $0x414] sm:$0xf] }
0x28da   :  { %v4945_v2 = vrot.slane %v4944_v5, 2  ;;  %v4856_v9 = vmax.f32 %v4854_v6, %v4855_v1  ;;  %v4862_v16 = vmax.f32 %v4860_v20, %v4861_v22  ;;  %v4872_v25 = vmax.f32 %v4870_v42, %v4871_v46  ;;  %v7591_v6 = vld [vmem:[#allocation13 + $0x410] sm:$0xf]  ;;  %v8238_v20 = vld [vmem:[#allocation13 + $0x414] sm:$0xf0] }
0x28db   :  { %v4940_v37 = vmax.f32 %v4938_v23, %v4939_v18  ;;  %v4883_v61 = vrot.slane %v4882_v40, 2  ;;  %v4935_v32 = vrot.slane %v4934_v48, 1  ;;  %v4951_v3 = vrot.slane %v4950_v24, 2 }
0x28dc   :  { %v4957_v44 = vsub.f32 0.0, %v4924_v19  ;;  %v4894_v36 = vmax.f32 %v4850_v33, %v4893_v58  ;;  %v4930_v13 = vmax.f32 %v4928_v50, %v4929_v15  ;;  %v5006_v41 = vsel %vm534_vm13, %v4956_v43, %v4955_v53  ;;  %v7593_v33 = vld [vmem:[#allocation13 + $0x418] sm:$0xf0]  ;;  %v7583_v19 = vld [vmem:[#allocation13 + $0x400] sm:$0xf] }
0x28dd   :  { %v4868_v49 = vmax.f32 %v4866_v38, %v4867_v57  ;;  %v4878_v62 = vmax.f32 %v4876_v29, %v4877_v21  ;;  %v4946_v14 = vmax.f32 %v4944_v5, %v4945_v2  ;;  %v7600_v45 = vor.u32 %v8240_v26, %v7599_v47  ;;  %v8236_v58 = vld [vmem:[#allocation13 + $0x404] sm:$0xf0]  ;;  %v8235_v57 = vld [vmem:[#allocation13 + $0x404] sm:$0xf]  ;;  %v7585_v21 = vld [vmem:[#allocation13 + $0x408] sm:$0xf0] }
0x28de   :  { %v4873_v42 = vrot.slane %v4872_v25, 1  ;;  %v4941_v23 = vrot.slane %v4940_v37, 1  ;;  %v4989_v7 = vsel %vm534_vm13, %v4862_v16, %v4856_v9  ;;  %v7604_v28 = vor.u32 %v8239_v34, %v7601_v8 }
0x28df   :  { %v4889_v50 = vrot.slane %v4888_v56, 2  ;;  %v4936_v1 = vmax.f32 %v4934_v48, %v4935_v32  ;;  %v5007_v22 = vsel %vm536_vm14, %v4957_v44, %v5006_v41  ;;  %5124 = vmatpush.bf16.msrb.mxu2 %v7600_v45  ;;  %v7592_v46 = vor.u32 %v8238_v20, %v7591_v6 }
0x28e0   :  { %v4884_v38 = vmax.f32 %v4882_v40, %v4883_v61  ;;  %v4952_v29 = vmax.f32 %v4950_v24, %v4951_v3  ;;  %v4958_v5 = vsub.f32 0.0, %v4930_v13  ;;  %5137 = vmatpush.bf16.msrb.mxu0 %v7604_v28  ;;  %v7596_v18 = vor.u32 %v8237_v4, %v7593_v33 }
0x28e1   :  { %v4879_v15 = vrot.slane %v4878_v62, 1  ;;  %v4947_v53 = vrot.slane %v4946_v14, 1  ;;  %v4990_v43 = vsel %vm536_vm14, %v4868_v49, %v4989_v7  ;;  %v4874_v2 = vmax.f32 %v4872_v25, %v4873_v42 }
0x28e2   :  { %v4895_v9 = vrot.slane %v4894_v36, 2  ;;  %v4942_v48 = vmax.f32 %v4940_v37, %v4941_v23  ;;  %v5008_v16 = vsel %vm538_vm15, %v4958_v5, %v5007_v22  ;;  %v4890_v32 = vmax.f32 %v4888_v56, %v4889_v50 }
0x28e3   :  { %v4959_v44 = vsub.f32 0.0, %v4936_v1  ;;  %5125 = vmatpush.bf16.msrb.mxu2 %v7592_v46  ;;  %v7584_v40 = vor.u32 %v8236_v58, %v7583_v19  ;;  %v4885_v24 = vrot.slane %v4884_v38, 1  ;;  %v4953_v61 = vrot.slane %v4952_v29, 1  ;;  %v9705_v58 = vld [vmem:[#allocation16 + $0x88] sm:$0xff] }
0x28e4   :  { %v4991_v3 = vsel %vm538_vm15, %v4874_v2, %v4990_v43  ;;  %5138 = vmatpush.bf16.msrb.mxu0 %v7596_v18  ;;  %v7588_v13 = vor.u32 %v8235_v57, %v7585_v21  ;;  %v4880_v41 = vmax.f32 %v4878_v62, %v4879_v15  ;;  %v4948_v47 = vmax.f32 %v4946_v14, %v4947_v53 }
0x28e5   :  { %v5009_v26 = vsel %vm540_vm0, %v4959_v44, %v5008_v16  ;;  %v4896_v34 = vmax.f32 %v4894_v36, %v4895_v9  ;;  %v4960_v25 = vsub.f32 0.0, %v4942_v48  ;;  %v4891_v49 = vrot.slane %v4890_v32, 1 }
0x28e6   :  { %v4992_v37 = vsel %vm540_vm0, %v4880_v41, %v4991_v3  ;;  %v4886_v56 = vmax.f32 %v4884_v38, %v4885_v24  ;;  %v4954_v45 = vmax.f32 %v4952_v29, %v4953_v61  ;;  %v4961_v6 = vsub.f32 0.0, %v4948_v47  ;;  %v8266_v41 = vld [vmem:[#allocation15 + $0x478] sm:$0xff]  ;;  %v8257_v47 = vld [vmem:[#allocation15 + $0x430] sm:$0xff] }
0x28e7   :  { %5126 = vmatpush.bf16.msrb.mxu2 %v7584_v40  ;;  %v5010_v8 = vsel %vm542_vm1, %v4960_v25, %v5009_v26  ;;  %v4897_v20 = vrot.slane %v4896_v34, 1  ;;  %v4892_v23 = vmax.f32 %v4890_v32, %v4891_v49  ;;  %v5038_v53 = vperm.slane %v9705_v58, 2  ;;  %5325 = vmatpush.bf16.msrb.mxu3 %v8266_v41  ;;  %v8265_v26 = vld [vmem:[#allocation15 + $0x470] sm:$0xff]  ;;  %v8264_v25 = vld [vmem:[#allocation15 + $0x468] sm:$0xff]  ;;  %v8255_v49 = vld [vmem:[#allocation15 + $0x420] sm:$0xff] }
0x28e8   :  { %5139 = vmatpush.bf16.msrb.mxu0 %v7588_v13  ;;  %v4993_v42 = vsel %vm542_vm1, %v4886_v56, %v4992_v37  ;;  %v5011_v62 = vsel %vm544_vm2, %v4961_v6, %v5010_v8  ;;  %v4962_v14 = vsub.f32 0.0, %v4954_v45  ;;  %v5037_v43 = vperm.slane %v9620_v12, 2  ;;  %v8258_v13 = vld [vmem:[#allocation15 + $0x438] sm:$0xff]  ;;  %v8263_v37 = vld [vmem:[#allocation15 + $0x460] sm:$0xff] }
0x28e9   :  { %v4994_v36 = vsel %vm544_vm2, %v4892_v23, %v4993_v42  ;;  %v4898_v7 = vmax.f32 %v4896_v34, %v4897_v20  ;;  %5312 = vmatpush.bf16.msra.mxu1 %v8258_v13  ;;  %v8256_v34 = vld [vmem:[#allocation15 + $0x428] sm:$0xff]  ;;  %v8254_v56 = vld [vmem:[#allocation15 + $0x418] sm:$0xff]  ;;  %v8253_v20 = vld [vmem:[#allocation15 + $0x410] sm:$0xff] }
0x28ea   :  { %v5012_v28 = vsel %vm546_vm3, %v4962_v14, %v5011_v62  ;;  %v8262_v45 = vld [vmem:[#allocation15 + $0x458] sm:$0xff]  ;;  %v8261_v42 = vld [vmem:[#allocation15 + $0x450] sm:$0xff]  ;;  %v8252_v62 = vld [vmem:[#allocation15 + $0x408] sm:$0xff] }
0x28eb   :  { %v4995_v4 = vsel %vm546_vm3, %v4898_v7, %v4994_v36  ;;  %v5014_v33 = vsel %vm525_vm4, %v5012_v28, 0.0  ;;  %5326 = vmatpush.bf16.msrb.mxu3 %v8265_v26  ;;  %v8260_v14 = vld [vmem:[#allocation15 + $0x448] sm:$0xff]  ;;  %v8251_v36 = vld [vmem:[#allocation15 + $0x400] sm:$0xff] }
0x28ec   :  { %v4997_v1 = vsel %vm525_vm4, %v4995_v4, 0.0  ;;  %v8259_v7 = vld [vmem:[#allocation15 + $0x440] sm:$0xff] }
0x28ed   :  { %v5015_v46 = vadd.f32 %v5014_v33, %v4997_v1  ;;  %5313 = vmatpush.bf16.msra.mxu1 %v8257_v47 }
0x28ef   :  { %5327 = vmatpush.bf16.msrb.mxu3 %v8264_v25 }
0x28f1   :  { %5314 = vmatpush.bf16.msra.mxu1 %v8256_v34 }
0x28f3   :  { %5328 = vmatpush.bf16.msrb.mxu3 %v8263_v37 }
0x28f5   :  { %5315 = vmatpush.bf16.msra.mxu1 %v8255_v49 }
0x28f7   :  { %5329 = vmatpush.bf16.msrb.mxu3 %v8262_v45 }
0x28f9   :  { %5316 = vmatpush.bf16.msra.mxu1 %v8254_v56 }
0x28fb   :  { %5330 = vmatpush.bf16.msrb.mxu3 %v8261_v42  ;;  %v9719_v42 = vld [vmem:[#allocation12 + $0x6] ss:$0 sm:$0xff] }
0x28fd   :  { %5317 = vmatpush.bf16.msra.mxu1 %v8253_v20 }
0x28ff   :  { %5331 = vmatpush.bf16.msrb.mxu3 %v8260_v14 }
0x2901   :  { %5318 = vmatpush.bf16.msra.mxu1 %v8252_v62  ;;  %v9722_v62 = vld [vmem:[#allocation12 + $0x7] ss:$0 sm:$0xff] }
0x2903   :  { %5332 = vmatpush.bf16.msrb.mxu3 %v8259_v7 }
0x2905   :  { %5319 = vmatpush.bf16.msra.mxu1 %v8251_v36 }
0x294f   :  { %v4976_v50 = vpop.f32.mrf.mxu3 }
0x2950   :  { %v4980_v22 = vmul.f32 %v4976_v50, %v8949_v0 }
0x2952   :  { %v5016_v38 = vadd.f32 %v5015_v46, %v4980_v22  ;;  %v5171_v46 = vperm.slane %v9705_v58, 3 }
0x2954   :  { %v5017_v29 = vmul.f32 0.33333334, %v5016_v38  ;;  %v5170_v38 = vperm.slane %v9620_v12, 3 }
0x2956   :  { %v5018_v5 = vadd.f32 %v5017_v29, %v9625_v39 }
0x2957   :  { %v4978_v18 = vpop.f32.mrf.mxu3 }
0x2958   :  { %v5019_v19 = vpack.c.bf16 %v5018_v5, %v5018_v5  ;;  %v5175_v5 = vperm.slane %v9705_v58, 4 }
0x295a   :  { %5127 = vmatmul.bf16.vlgmr.msrb.gmra.mxu2 %v5019_v19  ;;  %5140 = vmatmul.bf16.vlgmr.msrb.gmra.mxu0 %v5019_v19 }
0x29d7   :  { %v5141_v15 = vpop.f32.mrf.mxu0 }
0x29d8   :  { %v5142_v21 = vadd.f32 %v5141_v15, %v5038_v53  ;;  %v5174_v15 = vperm.slane %v9620_v12, 4 }
0x29dd   :  { %v5128_v57 = vpop.f32.mrf.mxu2 }
0x29de   :  { %v5129_v2 = vadd.f32 %v5128_v57, %v5037_v43 }
0x29df   :  { %v5143_v9 = vpop.f32.mrf.mxu0 }
0x29e0   :  { %v5145_v48 = vadd.f32 %v5142_v21, %v5129_v2 }
0x29e2   :  { %5146 = vadd.xlane.f32.xlu1 %v5145_v48 }
0x29e5   :  { %v5130_v16 = vpop.f32.mrf.mxu2 }
0x2a55   :  { %v5147_v32 = vpop.xlane.xlu1 %5146 }
0x2a56   :  { %v5148_v39 = vmul.f32 %v5147_v32, %v8961_v17 }
0x2a58   :  { %v5149_v44 = vsub.f32 %v5129_v2, %v5148_v39  ;;  %v5150_v40 = vsub.f32 %v5142_v21, %v5148_v39  ;;  %v5215_v39 = vperm.slane %v9620_v12, 5 }
0x2a5a   :  { %v5151_v24 = vmul.f32 %v5149_v44, %v5149_v44  ;;  %v5152_v61 = vmul.f32 %v5150_v40, %v5150_v40 }
0x2a5c   :  { %v5153_v3 = vadd.f32 %v5152_v61, %v5151_v24 }
0x2a5e   :  { %5154 = vadd.xlane.f32.xlu0 %v5153_v3 }
0x2ad1   :  { %v5155_v8 = vpop.xlane.xlu0 %5154 }
0x2ad2   :  { %v5156_v6 = vmul.f32 %v5155_v8, %v8961_v17 }
0x2ad4   :  { %v5157_v23 = vadd.f32 1e-05, %v5156_v6 }
0x2ad6   :  { %8417 = vrsqrt.f32 %v5157_v23  ;;  %vm5164_vm5 = vweird.f32 %v5157_v23 }
0x2adc   :  { %v8418_v28 = vpop.eup %8417 }
0x2add   :  { %v5159_v4 = vmul.f32 %v8418_v28, %v5157_v23  ;;  %vm5165_vm10 = vweird.f32 %v8418_v28 }
0x2ade   :  { %vm5166_vm6 = vmor %vm5164_vm5, %vm5165_vm10 }
0x2adf   :  { %v5160_v33 = vmul.f32 %v8418_v28, %v5159_v4 }
0x2ae1   :  { %v5161_v50 = vmul.f32 0.5, %v5160_v33 }
0x2ae3   :  { %v5162_v1 = vsub.f32 1.5, %v5161_v50 }
0x2ae5   :  { %v5163_v22 = vmul.f32 %v8418_v28, %v5162_v1 }
0x2ae7   :  { %v5167_v29 = vsel %vm5166_vm6, %v8418_v28, %v5163_v22 }
0x2ae8   :  { %v5168_v18 = vmul.f32 %v5167_v29, %v5149_v44  ;;  %v5169_v19 = vmul.f32 %v5167_v29, %v5150_v40  ;;  %v8282_v29 = vld [vmem:[#allocation13 + $0x4f4] sm:$0xf0] }
0x2aea   :  { %v5172_v53 = vmul.f32 %v5170_v38, %v5168_v18  ;;  %v5173_v43 = vmul.f32 %v5171_v46, %v5169_v19  ;;  %v7769_v38 = vld [vmem:[#allocation13 + $0x4f0] sm:$0xf] }
0x2aeb   :  { %v7770_v19 = vor.u32 %v8282_v29, %v7769_v38 }
0x2aec   :  { %v5176_v57 = vadd.f32 %v5174_v15, %v5172_v53  ;;  %v5177_v21 = vadd.f32 %v5175_v5, %v5173_v43  ;;  %v8281_v5 = vld [vmem:[#allocation13 + $0x4f4] sm:$0xf]  ;;  %v7771_v15 = vld [vmem:[#allocation13 + $0x4f8] sm:$0xf0]  ;;  %v7761_v53 = vld [vmem:[#allocation13 + $0x4e0] sm:$0xf] }
0x2aed   :  { %v8280_v43 = vld [vmem:[#allocation13 + $0x4e4] sm:$0xf0]  ;;  %5674 = vmatpush.bf16.msra.mxu0 %v7770_v19 }
0x2aee   :  { %v5178_v2 = vmax.f32 %v5176_v57, 0.0  ;;  %v5179_v9 = vmax.f32 %v5177_v21, 0.0  ;;  %v7774_v21 = vor.u32 %v8281_v5, %v7771_v15 }
0x2af0   :  { %v5180_v48 = vpack.c.bf16 %v5178_v2, %v5178_v2  ;;  %v5181_v16 = vpack.c.bf16 %v5179_v9, %v5179_v9  ;;  %v8279_v2 = vld [vmem:[#allocation13 + $0x4e4] sm:$0xf]  ;;  %v7763_v9 = vld [vmem:[#allocation13 + $0x4e8] sm:$0xf0]  ;;  %5687 = vmatpush.bf16.msrb.mxu1 %v7774_v21 }
0x2af2   :  { %5320 = vmatmul.bf16.vlgmr.msra.gmra.mxu1 %v5180_v48  ;;  %5333 = vmatmul.bf16.vlgmr.msrb.gmra.mxu3 %v5181_v16  ;;  %v7762_v48 = vor.u32 %v8280_v43, %v7761_v53 }
0x2af4   :  { %5675 = vmatpush.bf16.msra.mxu0 %v7762_v48 }
0x2b6f   :  { %v5321_v32 = vpop.f32.mrf.mxu1 }
0x2b70   :  { %v5322_v24 = vadd.f32 %v5321_v32, %v5215_v39  ;;  %v7766_v32 = vor.u32 %v8279_v2, %v7763_v9  ;;  %v7753_v39 = vld [vmem:[#allocation13 + $0x4d0] sm:$0xf] }
0x2b72   :  { %5688 = vmatpush.bf16.msrb.mxu1 %v7766_v32 }
0x2b75   :  { %v5334_v61 = vpop.f32.mrf.mxu3 }
0x2b76   :  { %v5335_v58 = vadd.f32 %v5334_v61, %v5322_v24  ;;  %v8278_v24 = vld [vmem:[#allocation13 + $0x4d4] sm:$0xf0]  ;;  %v8277_v61 = vld [vmem:[#allocation13 + $0x4d4] sm:$0xf] }
0x2b77   :  { %v5323_v44 = vpop.f32.mrf.mxu1 }
0x2b78   :  { %v5338_v40 = vadd.f32 %v5335_v58, %v9612_v30  ;;  %v7755_v58 = vld [vmem:[#allocation13 + $0x4d8] sm:$0xf0] }
0x2b7a   :  { %5339 = vadd.xlane.f32.xlu2 %v5338_v40 }
0x2b7d   :  { %v5336_v3 = vpop.f32.mrf.mxu3 }
0x2b7e   :  { %v9734_v3 = vld [vmem:[#allocation16 + $0x90] sm:$0xff] }
0x2bed   :  { %v5340_v13 = vpop.xlane.xlu2 %5339 }
0x2bee   :  { %v5341_v41 = vmul.f32 %v5340_v13, %v8855_v51 }
0x2bf0   :  { %v5342_v47 = vsub.f32 %v5338_v40, %v5341_v41  ;;  %v7754_v40 = vor.u32 %v8278_v24, %v7753_v39  ;;  %v7758_v41 = vor.u32 %v8277_v61, %v7755_v58 }
0x2bf2   :  { %v5343_v26 = vmul.f32 %v5342_v47, %v5342_v47  ;;  %5676 = vmatpush.bf16.msra.mxu0 %v7754_v40  ;;  %5689 = vmatpush.bf16.msrb.mxu1 %v7758_v41 }
0x2bf4   :  { %5344 = vadd.xlane.f32.xlu1 %v5343_v26  ;;  %v8276_v26 = vld [vmem:[#allocation13 + $0x4c4] sm:$0xf0] }
0x2c67   :  { %v5345_v34 = vpop.xlane.xlu1 %5344 }
0x2c68   :  { %v5346_v25 = vmul.f32 %v5345_v34, %v8855_v51  ;;  %v8275_v34 = vld [vmem:[#allocation13 + $0x4c4] sm:$0xf] }
0x2c6a   :  { %v5347_v49 = vadd.f32 1e-05, %v5346_v25  ;;  %v7747_v25 = vld [vmem:[#allocation13 + $0x4c8] sm:$0xf0] }
0x2c6c   :  { %8419 = vrsqrt.f32 %v5347_v49  ;;  %vm5354_vm8 = vweird.f32 %v5347_v49 }
0x2c72   :  { %v8420_v12 = vpop.eup %8419 }
0x2c73   :  { %v5349_v37 = vmul.f32 %v8420_v12, %v5347_v49  ;;  %vm5355_vm7 = vweird.f32 %v8420_v12 }
0x2c74   :  { %vm5356_vm9 = vmor %vm5354_vm8, %vm5355_vm7 }
0x2c75   :  { %v5350_v56 = vmul.f32 %v8420_v12, %v5349_v37 }
0x2c77   :  { %v5351_v45 = vmul.f32 0.5, %v5350_v56 }
0x2c79   :  { %v5352_v8 = vsub.f32 1.5, %v5351_v45  ;;  %v7750_v45 = vor.u32 %v8275_v34, %v7747_v25 }
0x2c7b   :  { %v5353_v30 = vmul.f32 %v8420_v12, %v5352_v8  ;;  %v7737_v8 = vld [vmem:[#allocation13 + $0x4b0] sm:$0xf]  ;;  %5690 = vmatpush.bf16.msrb.mxu1 %v7750_v45 }
0x2c7d   :  { %v5357_v6 = vsel %vm5356_vm9, %v8420_v12, %v5353_v30  ;;  %v5388_v12 = vperm.slane %v9734_v3, 0  ;;  %v8274_v30 = vld [vmem:[#allocation13 + $0x4b4] sm:$0xf0] }
0x2c7e   :  { %v5358_v20 = vmul.f32 %v5357_v6, %v5342_v47  ;;  %v7745_v47 = vld [vmem:[#allocation13 + $0x4c0] sm:$0xf]  ;;  %v5390_v6 = vperm.slane %v9734_v3, 1 }
0x2c7f   :  { %v7746_v37 = vor.u32 %v8276_v26, %v7745_v47 }
0x2c80   :  { %v5359_v23 = vmul.f32 %v9719_v42, %v5358_v20 }
0x2c81   :  { %5677 = vmatpush.bf16.msra.mxu0 %v7746_v37 }
0x2c82   :  { %v5360_v14 = vadd.f32 %v9722_v62, %v5359_v23  ;;  %v8273_v23 = vld [vmem:[#allocation13 + $0x4b4] sm:$0xf] }
0x2c84   :  { %vm5361_vm10 = vcmp.ge.f32.partialorder %v5360_v14, 0.0  ;;  %v5362_v36 = vmul.f32 %v5360_v14, %v8978_v60 }
0x2c86   :  { %v9726_v7 = vsel %vm5361_vm10, %v5360_v14, %v5362_v36  ;;  %v7739_v14 = vld [vmem:[#allocation13 + $0x4b8] sm:$0xf0] }
0x2c87   :  { %5368 = vadd.xlane.f32.xlu0 %v9726_v7 }
0x2cfa   :  { %v5369_v28 = vpop.xlane.xlu0 %5368 }
0x2cfb   :  { %v5370_v4 = vmul.f32 %v5369_v28, %v8855_v51  ;;  %v7738_v28 = vor.u32 %v8274_v30, %v7737_v8 }
0x2cfd   :  { %v5371_v33 = vsub.f32 %v9726_v7, %v5370_v4  ;;  %v5393_v4 = vstv %s9732_s23  ;;  %5678 = vmatpush.bf16.msra.mxu0 %v7738_v28 }
0x2cff   :  { %v5372_v50 = vmul.f32 %v5371_v33, %v5371_v33 }
0x2d01   :  { %5373 = vadd.xlane.f32.xlu2 %v5372_v50  ;;  %v7742_v50 = vor.u32 %v8273_v23, %v7739_v14 }
0x2d03   :  { %5691 = vmatpush.bf16.msrb.mxu1 %v7742_v50 }
0x2d74   :  { %v5374_v1 = vpop.xlane.xlu2 %5373 }
0x2d75   :  { %v5375_v22 = vmul.f32 %v5374_v1, %v8855_v51 }
0x2d77   :  { %v5376_v46 = vadd.f32 1e-05, %v5375_v22 }
0x2d79   :  { %8421 = vrsqrt.f32 %v5376_v46  ;;  %vm5383_vm6 = vweird.f32 %v5376_v46 }
0x2d7f   :  { %v8422_v18 = vpop.eup %8421 }
0x2d80   :  { %v5378_v57 = vmul.f32 %v8422_v18, %v5376_v46  ;;  %vm5384_vm5 = vweird.f32 %v8422_v18 }
0x2d81   :  { %vm5385_vm7 = vmor %vm5383_vm6, %vm5384_vm5 }
0x2d82   :  { %v5379_v16 = vmul.f32 %v8422_v18, %v5378_v57 }
0x2d84   :  { %v5380_v44 = vmul.f32 0.5, %v5379_v16 }
0x2d86   :  { %v5381_v13 = vsub.f32 1.5, %v5380_v44 }
0x2d88   :  { %v5382_v49 = vmul.f32 %v8422_v18, %v5381_v13 }
0x2d8a   :  { %v5386_v56 = vsel %vm5385_vm7, %v8422_v18, %v5382_v49 }
0x2d8b   :  { %v5387_v20 = vmul.f32 %v5386_v56, %v5371_v33 }
0x2d8d   :  { %v5389_v36 = vmul.f32 %v5388_v12, %v5387_v20 }
0x2d8f   :  { %v5391_v1 = vadd.f32 %v5390_v6, %v5389_v36 }
0x2d91   :  { %vm5392_vm8 = vcmp.ge.f32.partialorder %v5391_v1, 0.0  ;;  %v5394_v22 = vmul.f32 %v5393_v4, %v5391_v1 }
0x2d93   :  { %v9739_v46 = vsel %vm5392_vm8, %v5391_v1, %v5394_v22 }
0x2d94   :  { %v5396_v38 = vmax.f32 %v9739_v46, 0.0 }
0x2d96   :  { %v5397_v29 = vadd.f32 1e-07, %v5396_v38 }
0x2d98   :  { %v5518_v5 = vpack.c.bf16 %v5397_v29, %v5397_v29  ;;  %v5454_v18 = vsub.f32 %v9637_v31, %v5397_v29  ;;  %v5455_v19 = vsub.f32 %v9641_v54, %v5397_v29  ;;  %v5456_v15 = vsub.f32 %v9645_v55, %v5397_v29 }
0x2d99   :  { %v5398_v57 = vadd.f32 %v9637_v31, %v5397_v29  ;;  %v5399_v21 = vadd.f32 %v9641_v54, %v5397_v29  ;;  %v5457_v9 = vsub.f32 %v9653_v59, %v5397_v29  ;;  %v5400_v32 = vadd.f32 %v9645_v55, %v5397_v29 }
0x2d9a   :  { %v5520_v33 = vsel %vm498_vm11, %v5518_v5, 0  ;;  %v5462_v53 = vrot.slane %v5454_v18, 4  ;;  %v5468_v43 = vrot.slane %v5455_v19, 4  ;;  %v5474_v2 = vrot.slane %v5456_v15, 4 }
0x2d9b   :  { %5529 = vmatpush.bf16.msra.mxu2 %v5520_v33  ;;  %v5412_v39 = vrot.slane %v5399_v21, 4  ;;  %v5458_v24 = vsub.f32 %v9659_v11, %v5397_v29  ;;  %v5480_v40 = vrot.slane %v5457_v9, 4  ;;  %v5418_v13 = vrot.slane %v5400_v32, 4 }
0x2d9c   :  { %v5463_v48 = vmax.f32 %v5454_v18, %v5462_v53  ;;  %v5469_v16 = vmax.f32 %v5455_v19, %v5468_v43  ;;  %v5475_v61 = vmax.f32 %v5456_v15, %v5474_v2  ;;  %v5401_v31 = vadd.f32 %v9653_v59, %v5397_v29 }
0x2d9d   :  { %v5413_v54 = vmax.f32 %v5399_v21, %v5412_v39  ;;  %v5459_v47 = vsub.f32 %v9665_v63, %v5397_v29  ;;  %v5486_v34 = vrot.slane %v5458_v24, 4  ;;  %v5481_v55 = vmax.f32 %v5457_v9, %v5480_v40 }
0x2d9e   :  { %7710 = vmatmul.msk.bf16.vlgmr.msra.gmra.mxu2 %vm494_vm12, %v9633_v52  ;;  %v5406_v52 = vrot.slane %v5398_v57, 4  ;;  %v5464_v58 = vrot.slane %v5463_v48, 2  ;;  %v5470_v44 = vrot.slane %v5469_v16, 2  ;;  %v5476_v26 = vrot.slane %v5475_v61, 2 }
0x2d9f   :  { %v5402_v12 = vadd.f32 %v9659_v11, %v5397_v29  ;;  %v5419_v37 = vmax.f32 %v5400_v32, %v5418_v13  ;;  %v5460_v56 = vsub.f32 %v9671_v10, %v5397_v29  ;;  %v5414_v8 = vrot.slane %v5413_v54, 2 }
0x2da0   :  { %v5407_v41 = vmax.f32 %v5398_v57, %v5406_v52  ;;  %v5465_v25 = vmax.f32 %v5463_v48, %v5464_v58  ;;  %v5471_v49 = vmax.f32 %v5469_v16, %v5470_v44  ;;  %v5424_v30 = vrot.slane %v5401_v31, 4 }
0x2da1   :  { %v5492_v6 = vrot.slane %v5459_v47, 4  ;;  %v5403_v59 = vadd.f32 %v9665_v63, %v5397_v29  ;;  %v5461_v20 = vsub.f32 %v9677_v27, %v5397_v29  ;;  %v5477_v23 = vmax.f32 %v5475_v61, %v5476_v26 }
0x2da2   :  { %v5408_v45 = vrot.slane %v5407_v41, 2  ;;  %v5487_v14 = vmax.f32 %v5458_v24, %v5486_v34  ;;  %v5466_v36 = vrot.slane %v5465_v25, 1  ;;  %v5472_v28 = vrot.slane %v5471_v49, 1 }
0x2da3   :  { %v5482_v4 = vrot.slane %v5481_v55, 2  ;;  %v5404_v50 = vadd.f32 %v9671_v10, %v5397_v29  ;;  %v5420_v1 = vrot.slane %v5419_v37, 2  ;;  %v5430_v11 = vrot.slane %v5402_v12, 4 }
0x2da4   :  { %v5498_v22 = vrot.slane %v5460_v56, 4  ;;  %v5409_v38 = vmax.f32 %v5407_v41, %v5408_v45  ;;  %v5415_v5 = vmax.f32 %v5413_v54, %v5414_v8  ;;  %v5425_v33 = vmax.f32 %v5401_v31, %v5424_v30 }
0x2da5   :  { %v5493_v18 = vmax.f32 %v5459_v47, %v5492_v6  ;;  %v5436_v19 = vrot.slane %v5403_v59, 4  ;;  %v5478_v15 = vrot.slane %v5477_v23, 1  ;;  %v5488_v53 = vrot.slane %v5487_v14, 2 }
0x2da6   :  { %v5504_v63 = vrot.slane %v5461_v20, 4  ;;  %v5405_v43 = vadd.f32 %v9677_v27, %v5397_v29  ;;  %v5467_v57 = vmax.f32 %v5465_v25, %v5466_v36  ;;  %v5473_v21 = vmax.f32 %v5471_v49, %v5472_v28 }
0x2da7   :  { %v5483_v2 = vmax.f32 %v5481_v55, %v5482_v4  ;;  %v5421_v9 = vmax.f32 %v5419_v37, %v5420_v1  ;;  %v5431_v48 = vmax.f32 %v5402_v12, %v5430_v11  ;;  %v5442_v16 = vrot.slane %v5404_v50, 4  ;;  %v7721_v1 = vld [vmem:[#allocation13 + $0x490] sm:$0xf]  ;;  %v8270_v11 = vld [vmem:[#allocation13 + $0x494] sm:$0xf0] }
0x2da8   :  { %v5499_v10 = vmax.f32 %v5460_v56, %v5498_v22  ;;  %v5410_v32 = vrot.slane %v5409_v38, 1  ;;  %v5416_v52 = vrot.slane %v5415_v5, 1  ;;  %v5426_v39 = vrot.slane %v5425_v33, 2 }
0x2da9   :  { %v5494_v24 = vrot.slane %v5493_v18, 2  ;;  %v5437_v61 = vmax.f32 %v5403_v59, %v5436_v19  ;;  %v5479_v58 = vmax.f32 %v5477_v23, %v5478_v15  ;;  %v5489_v44 = vmax.f32 %v5487_v14, %v5488_v53  ;;  %v7729_v59 = vld [vmem:[#allocation13 + $0x4a0] sm:$0xf]  ;;  %v8271_v23 = vld [vmem:[#allocation13 + $0x4a4] sm:$0xf] }
0x2daa   :  { %v5505_v40 = vmax.f32 %v5461_v20, %v5504_v63  ;;  %v5448_v13 = vrot.slane %v5405_v43, 4  ;;  %v5484_v31 = vrot.slane %v5483_v2, 1  ;;  %v5510_v41 = vsub.f32 0.0, %v5467_v57  ;;  %v8272_v20 = vld [vmem:[#allocation13 + $0x4a4] sm:$0xf0] }
0x2dab   :  { %v5511_v54 = vsub.f32 0.0, %v5473_v21  ;;  %v5422_v27 = vrot.slane %v5421_v9, 1  ;;  %v5432_v29 = vrot.slane %v5431_v48, 2  ;;  %v5443_v47 = vmax.f32 %v5404_v50, %v5442_v16  ;;  %v7731_v50 = vld [vmem:[#allocation13 + $0x4a8] sm:$0xf0] }
0x2dac   :  { %v5500_v26 = vrot.slane %v5499_v10, 2  ;;  %v5411_v34 = vmax.f32 %v5409_v38, %v5410_v32  ;;  %v5417_v25 = vmax.f32 %v5415_v5, %v5416_v52  ;;  %v5427_v49 = vmax.f32 %v5425_v33, %v5426_v39  ;;  %v7723_v19 = vld [vmem:[#allocation13 + $0x498] sm:$0xf0]  ;;  %v8268_v16 = vld [vmem:[#allocation13 + $0x484] sm:$0xf0] }
0x2dad   :  { %v5495_v55 = vmax.f32 %v5493_v18, %v5494_v24  ;;  %v5438_v12 = vrot.slane %v5437_v61, 2  ;;  %v5490_v37 = vrot.slane %v5489_v44, 1  ;;  %v5506_v56 = vrot.slane %v5505_v40, 2  ;;  %v8269_v18 = vld [vmem:[#allocation13 + $0x494] sm:$0xf] }
0x2dae   :  { %v5512_v45 = vsub.f32 0.0, %v5479_v58  ;;  %v5449_v8 = vmax.f32 %v5405_v43, %v5448_v13  ;;  %v5485_v30 = vmax.f32 %v5483_v2, %v5484_v31  ;;  %v5561_v6 = vsel %vm534_vm13, %v5511_v54, %v5510_v41  ;;  %v8267_v39 = vld [vmem:[#allocation13 + $0x484] sm:$0xf]  ;;  %v7715_v24 = vld [vmem:[#allocation13 + $0x488] sm:$0xf0] }
0x2daf   :  { %v5423_v14 = vmax.f32 %v5421_v9, %v5422_v27  ;;  %v5433_v36 = vmax.f32 %v5431_v48, %v5432_v29  ;;  %v5501_v28 = vmax.f32 %v5499_v10, %v5500_v26  ;;  %v7730_v4 = vor.u32 %v8272_v20, %v7729_v59  ;;  %v7713_v48 = vld [vmem:[#allocation13 + $0x480] sm:$0xf] }
0x2db0   :  { %v5428_v22 = vrot.slane %v5427_v49, 1  ;;  %v5496_v38 = vrot.slane %v5495_v55, 1  ;;  %v5544_v5 = vsel %vm534_vm13, %v5417_v25, %v5411_v34  ;;  %v7734_v33 = vor.u32 %v8271_v23, %v7731_v50 }
0x2db1   :  { %v5444_v15 = vrot.slane %v5443_v47, 2  ;;  %v5491_v53 = vmax.f32 %v5489_v44, %v5490_v37  ;;  %v5562_v63 = vsel %vm536_vm14, %v5512_v45, %v5561_v6  ;;  %5679 = vmatpush.bf16.msra.mxu0 %v7730_v4  ;;  %v7722_v43 = vor.u32 %v8270_v11, %v7721_v1 }
0x2db2   :  { %v5439_v57 = vmax.f32 %v5437_v61, %v5438_v12  ;;  %v5507_v21 = vmax.f32 %v5505_v40, %v5506_v56  ;;  %v5513_v2 = vsub.f32 0.0, %v5485_v30  ;;  %5692 = vmatpush.bf16.msrb.mxu1 %v7734_v33  ;;  %v7726_v9 = vor.u32 %v8269_v18, %v7723_v19 }
0x2db3   :  { %v5434_v10 = vrot.slane %v5433_v36, 1  ;;  %v5502_v32 = vrot.slane %v5501_v28, 1  ;;  %v5545_v52 = vsel %vm536_vm14, %v5423_v14, %v5544_v5  ;;  %v5429_v58 = vmax.f32 %v5427_v49, %v5428_v22 }
0x2db4   :  { %v5450_v13 = vrot.slane %v5449_v8, 2  ;;  %v5497_v44 = vmax.f32 %v5495_v55, %v5496_v38  ;;  %v5563_v31 = vsel %vm538_vm15, %v5513_v2, %v5562_v63  ;;  %v5445_v41 = vmax.f32 %v5443_v47, %v5444_v15  ;;  %v9781_v63 = vld [vmem:[#allocation16 + $0x98] sm:$0xff] }
0x2db5   :  { %v5514_v54 = vsub.f32 0.0, %v5491_v53  ;;  %5680 = vmatpush.bf16.msra.mxu0 %v7722_v43  ;;  %v7714_v61 = vor.u32 %v8268_v16, %v7713_v48  ;;  %v5440_v40 = vrot.slane %v5439_v57, 1  ;;  %v5508_v27 = vrot.slane %v5507_v21, 1 }
0x2db6   :  { %v5546_v29 = vsel %vm538_vm15, %v5429_v58, %v5545_v52  ;;  %5693 = vmatpush.bf16.msrb.mxu1 %v7726_v9  ;;  %v7718_v26 = vor.u32 %v8267_v39, %v7715_v24  ;;  %v5435_v34 = vmax.f32 %v5433_v36, %v5434_v10  ;;  %v5503_v25 = vmax.f32 %v5501_v28, %v5502_v32 }
0x2db7   :  { %v5564_v12 = vsel %vm540_vm0, %v5514_v54, %v5563_v31  ;;  %v5451_v37 = vmax.f32 %v5449_v8, %v5450_v13  ;;  %v5515_v49 = vsub.f32 0.0, %v5497_v44  ;;  %v5446_v56 = vrot.slane %v5445_v41, 1  ;;  %v8290_v31 = vld [vmem:[#allocation15 + $0x4b8] sm:$0xff]  ;;  %v8289_v54 = vld [vmem:[#allocation15 + $0x4b0] sm:$0xff] }
0x2db8   :  { %v5547_v55 = vsel %vm540_vm0, %v5435_v34, %v5546_v29  ;;  %v5441_v47 = vmax.f32 %v5439_v57, %v5440_v40  ;;  %v5509_v45 = vmax.f32 %v5507_v21, %v5508_v27  ;;  %v5516_v6 = vsub.f32 0.0, %v5503_v25  ;;  %5867 = vmatpush.bf16.msra.mxu3 %v8290_v31  ;;  %v8288_v40 = vld [vmem:[#allocation15 + $0x4a8] sm:$0xff]  ;;  %v8287_v29 = vld [vmem:[#allocation15 + $0x4a0] sm:$0xff]  ;;  %v8286_v34 = vld [vmem:[#allocation15 + $0x498] sm:$0xff] }
0x2db9   :  { %5681 = vmatpush.bf16.msra.mxu0 %v7714_v61  ;;  %v5565_v30 = vsel %vm542_vm1, %v5515_v49, %v5564_v12  ;;  %v5452_v59 = vrot.slane %v5451_v37, 1  ;;  %v5447_v23 = vmax.f32 %v5445_v41, %v5446_v56  ;;  %v5592_v43 = vperm.slane %v9734_v3, 2  ;;  %v8298_v41 = vld [vmem:[#allocation15 + $0x4f8] sm:$0xff]  ;;  %v8297_v61 = vld [vmem:[#allocation15 + $0x4f0] sm:$0xff]  ;;  %v8296_v27 = vld [vmem:[#allocation15 + $0x4e8] sm:$0xff] }
0x2dba   :  { %5694 = vmatpush.bf16.msrb.mxu1 %v7718_v26  ;;  %v5548_v20 = vsel %vm542_vm1, %v5441_v47, %v5547_v55  ;;  %v5566_v14 = vsel %vm544_vm2, %v5516_v6, %v5565_v30  ;;  %v5517_v36 = vsub.f32 0.0, %v5509_v45  ;;  %v5593_v57 = vperm.slane %v9781_v63, 2  ;;  %5880 = vmatpush.bf16.msrb.mxu2 %v8298_v41  ;;  %v8295_v26 = vld [vmem:[#allocation15 + $0x4e0] sm:$0xff]  ;;  %v8294_v25 = vld [vmem:[#allocation15 + $0x4d8] sm:$0xff]  ;;  %v8285_v49 = vld [vmem:[#allocation15 + $0x490] sm:$0xff] }
0x2dbb   :  { %v5549_v8 = vsel %vm544_vm2, %v5447_v23, %v5548_v20  ;;  %v5453_v28 = vmax.f32 %v5451_v37, %v5452_v59  ;;  %v8293_v56 = vld [vmem:[#allocation15 + $0x4d0] sm:$0xff]  ;;  %v8284_v47 = vld [vmem:[#allocation15 + $0x488] sm:$0xff]  ;;  %v8283_v30 = vld [vmem:[#allocation15 + $0x480] sm:$0xff] }
0x2dbc   :  { %v5567_v4 = vsel %vm546_vm3, %v5517_v36, %v5566_v14  ;;  %5868 = vmatpush.bf16.msra.mxu3 %v8289_v54  ;;  %v8292_v45 = vld [vmem:[#allocation15 + $0x4c8] sm:$0xff]  ;;  %v8291_v6 = vld [vmem:[#allocation15 + $0x4c0] sm:$0xff] }
0x2dbd   :  { %v5550_v50 = vsel %vm546_vm3, %v5453_v28, %v5549_v8  ;;  %v5569_v1 = vsel %vm525_vm4, %v5567_v4, 0.0  ;;  %v5726_v28 = vperm.slane %v9781_v63, 3  ;;  %v5725_v4 = vperm.slane %v9734_v3, 3 }
0x2dbe   :  { %v5552_v22 = vsel %vm525_vm4, %v5550_v50, 0.0  ;;  %5881 = vmatpush.bf16.msrb.mxu2 %v8297_v61 }
0x2dbf   :  { %v5570_v5 = vadd.f32 %v5569_v1, %v5552_v22  ;;  %v5730_v1 = vperm.slane %v9781_v63, 4 }
0x2dc0   :  { %5869 = vmatpush.bf16.msra.mxu3 %v8288_v40 }
0x2dc2   :  { %5882 = vmatpush.bf16.msrb.mxu2 %v8296_v27 }
0x2dc4   :  { %5870 = vmatpush.bf16.msra.mxu3 %v8287_v29 }
0x2dc6   :  { %5883 = vmatpush.bf16.msrb.mxu2 %v8295_v26 }
0x2dc8   :  { %5871 = vmatpush.bf16.msra.mxu3 %v8286_v34 }
0x2dca   :  { %5884 = vmatpush.bf16.msrb.mxu2 %v8294_v25 }
0x2dcc   :  { %5872 = vmatpush.bf16.msra.mxu3 %v8285_v49 }
0x2dce   :  { %5885 = vmatpush.bf16.msrb.mxu2 %v8293_v56 }
0x2dd0   :  { %5873 = vmatpush.bf16.msra.mxu3 %v8284_v47 }
0x2dd2   :  { %5886 = vmatpush.bf16.msrb.mxu2 %v8292_v45  ;;  %v8314_v45 = vld [vmem:[#allocation13 + $0x574] sm:$0xf0] }
0x2dd4   :  { %5874 = vmatpush.bf16.msra.mxu3 %v8283_v30  ;;  %v8313_v30 = vld [vmem:[#allocation13 + $0x574] sm:$0xf] }
0x2dd6   :  { %5887 = vmatpush.bf16.msrb.mxu2 %v8291_v6 }
0x2e21   :  { %v5531_v11 = vpop.f32.mrf.mxu2 }
0x2e22   :  { %v5535_v38 = vmul.f32 %v5531_v11, %v8949_v0 }
0x2e24   :  { %v5571_v33 = vadd.f32 %v5570_v5, %v5535_v38  ;;  %v5729_v38 = vperm.slane %v9734_v3, 4 }
0x2e26   :  { %v5572_v18 = vmul.f32 0.33333334, %v5571_v33 }
0x2e28   :  { %v5573_v19 = vadd.f32 %v5572_v18, %v9739_v46 }
0x2e29   :  { %v5533_v15 = vpop.f32.mrf.mxu2 }
0x2e2a   :  { %v5574_v53 = vpack.c.bf16 %v5573_v19, %v5573_v19 }
0x2e2c   :  { %5682 = vmatmul.bf16.vlgmr.msra.gmra.mxu0 %v5574_v53  ;;  %5695 = vmatmul.bf16.vlgmr.msrb.gmra.mxu1 %v5574_v53 }
0x2ea9   :  { %v5683_v21 = vpop.f32.mrf.mxu0  ;;  %v5696_v2 = vpop.f32.mrf.mxu1 }
0x2eaa   :  { %v5684_v9 = vadd.f32 %v5683_v21, %v5592_v43  ;;  %v5697_v48 = vadd.f32 %v5696_v2, %v5593_v57  ;;  %v5770_v21 = vperm.slane %v9734_v3, 5 }
0x2eac   :  { %v5700_v16 = vadd.f32 %v5697_v48, %v5684_v9 }
0x2eae   :  { %5701 = vadd.xlane.f32.xlu1 %v5700_v16 }
0x2eb1   :  { %v5685_v10 = vpop.f32.mrf.mxu0  ;;  %v5698_v32 = vpop.f32.mrf.mxu1 }
0x2f21   :  { %v5702_v52 = vpop.xlane.xlu1 %5701 }
0x2f22   :  { %v5703_v46 = vmul.f32 %v5702_v52, %v8961_v17 }
0x2f24   :  { %v5704_v39 = vsub.f32 %v5684_v9, %v5703_v46  ;;  %v5705_v24 = vsub.f32 %v5697_v48, %v5703_v46 }
0x2f26   :  { %v5706_v58 = vmul.f32 %v5704_v39, %v5704_v39  ;;  %v5707_v13 = vmul.f32 %v5705_v24, %v5705_v24 }
0x2f28   :  { %v5708_v44 = vadd.f32 %v5707_v13, %v5706_v58 }
0x2f2a   :  { %5709 = vadd.xlane.f32.xlu0 %v5708_v44 }
0x2f9d   :  { %v5710_v12 = vpop.xlane.xlu0 %5709 }
0x2f9e   :  { %v5711_v37 = vmul.f32 %v5710_v12, %v8961_v17 }
0x2fa0   :  { %v5712_v55 = vadd.f32 1e-05, %v5711_v37 }
0x2fa2   :  { %8423 = vrsqrt.f32 %v5712_v55  ;;  %vm5719_vm10 = vweird.f32 %v5712_v55 }
0x2fa8   :  { %v8424_v59 = vpop.eup %8423 }
0x2fa9   :  { %v5714_v20 = vmul.f32 %v8424_v59, %v5712_v55  ;;  %vm5720_vm9 = vweird.f32 %v8424_v59 }
0x2faa   :  { %vm5721_vm5 = vmor %vm5719_vm10, %vm5720_vm9 }
0x2fab   :  { %v5715_v23 = vmul.f32 %v8424_v59, %v5714_v20  ;;  %v7901_v20 = vld [vmem:[#allocation13 + $0x578] sm:$0xf0] }
0x2fad   :  { %v5716_v14 = vmul.f32 0.5, %v5715_v23  ;;  %v7891_v23 = vld [vmem:[#allocation13 + $0x560] sm:$0xf] }
0x2faf   :  { %v5717_v36 = vsub.f32 1.5, %v5716_v14  ;;  %v8312_v14 = vld [vmem:[#allocation13 + $0x564] sm:$0xf0] }
0x2fb1   :  { %v5718_v8 = vmul.f32 %v8424_v59, %v5717_v36 }
0x2fb3   :  { %v5722_v50 = vsel %vm5721_vm5, %v8424_v59, %v5718_v8  ;;  %v7904_v8 = vor.u32 %v8313_v30, %v7901_v20 }
0x2fb4   :  { %v5723_v11 = vmul.f32 %v5722_v50, %v5704_v39  ;;  %v5724_v22 = vmul.f32 %v5722_v50, %v5705_v24  ;;  %v7892_v50 = vor.u32 %v8312_v14, %v7891_v23 }
0x2fb5   :  { %6242 = vmatpush.bf16.msrb.mxu3 %v7904_v8 }
0x2fb6   :  { %v5727_v5 = vmul.f32 %v5725_v4, %v5723_v11  ;;  %v5728_v33 = vmul.f32 %v5726_v28, %v5724_v22  ;;  %v8311_v28 = vld [vmem:[#allocation13 + $0x564] sm:$0xf]  ;;  %v7893_v4 = vld [vmem:[#allocation13 + $0x568] sm:$0xf0]  ;;  %v7883_v22 = vld [vmem:[#allocation13 + $0x550] sm:$0xf] }
0x2fb7   :  { %v7896_v11 = vor.u32 %v8311_v28, %v7893_v4  ;;  %v8482_v4 = vld [vmem:[#allocation7 + $0x20] sm:$0xff] }
0x2fb8   :  { %v5731_v18 = vadd.f32 %v5729_v38, %v5727_v5  ;;  %v5732_v19 = vadd.f32 %v5730_v1, %v5728_v33  ;;  %v8310_v38 = vld [vmem:[#allocation13 + $0x554] sm:$0xf0]  ;;  %v8309_v5 = vld [vmem:[#allocation13 + $0x554] sm:$0xf]  ;;  %v7885_v33 = vld [vmem:[#allocation13 + $0x558] sm:$0xf0] }
0x2fb9   :  { %6243 = vmatpush.bf16.msrb.mxu3 %v7896_v11 }
0x2fba   :  { %v5733_v15 = vmax.f32 %v5731_v18, 0.0  ;;  %v5734_v53 = vmax.f32 %v5732_v19, 0.0  ;;  %v7884_v19 = vor.u32 %v8310_v38, %v7883_v22 }
0x2fbc   :  { %v5735_v43 = vpack.c.bf16 %v5733_v15, %v5733_v15  ;;  %v5736_v57 = vpack.c.bf16 %v5734_v53, %v5734_v53  ;;  %v9806_v15 = vld [vmem:[#allocation16 + $0xa0] sm:$0xff] }
0x2fbe   :  { %5875 = vmatmul.bf16.vlgmr.msra.gmra.mxu3 %v5735_v43  ;;  %5888 = vmatmul.bf16.vlgmr.msrb.gmra.mxu2 %v5736_v57  ;;  %v7888_v43 = vor.u32 %v8309_v5, %v7885_v33  ;;  %v7875_v57 = vld [vmem:[#allocation13 + $0x540] sm:$0xf] }
0x2fc0   :  { %6244 = vmatpush.bf16.msrb.mxu3 %v7888_v43 }
0x3041   :  { %v5876_v2 = vpop.f32.mrf.mxu3  ;;  %v5889_v9 = vpop.f32.mrf.mxu2 }
0x3042   :  { %v5877_v48 = vadd.f32 %v5876_v2, %v5770_v21  ;;  %v8308_v21 = vld [vmem:[#allocation13 + $0x544] sm:$0xf0]  ;;  %v8307_v2 = vld [vmem:[#allocation13 + $0x544] sm:$0xf] }
0x3044   :  { %v5890_v63 = vadd.f32 %v5889_v9, %v5877_v48  ;;  %v7877_v9 = vld [vmem:[#allocation13 + $0x548] sm:$0xf0] }
0x3046   :  { %v5893_v16 = vadd.f32 %v5890_v63, %v9726_v7  ;;  %v5943_v63 = vperm.slane %v9806_v15, 0 }
0x3048   :  { %5894 = vadd.xlane.f32.xlu2 %v5893_v16 }
0x3049   :  { %v5878_v10 = vpop.f32.mrf.mxu3  ;;  %v5891_v32 = vpop.f32.mrf.mxu2 }
0x304a   :  { %v7880_v32 = vor.u32 %v8307_v2, %v7877_v9 }
0x304c   :  { %6245 = vmatpush.bf16.msrb.mxu3 %v7880_v32 }
0x30bb   :  { %v5895_v52 = vpop.xlane.xlu2 %5894 }
0x30bc   :  { %v5896_v46 = vmul.f32 %v5895_v52, %v8855_v51  ;;  %v7867_v52 = vld [vmem:[#allocation13 + $0x530] sm:$0xf] }
0x30be   :  { %v5897_v39 = vsub.f32 %v5893_v16, %v5896_v46  ;;  %v7876_v16 = vor.u32 %v8308_v21, %v7875_v57  ;;  %v8306_v46 = vld [vmem:[#allocation13 + $0x534] sm:$0xf0] }
0x30c0   :  { %v5898_v24 = vmul.f32 %v5897_v39, %v5897_v39 }
0x30c2   :  { %5899 = vadd.xlane.f32.xlu1 %v5898_v24 }
0x3135   :  { %v5900_v58 = vpop.xlane.xlu1 %5899 }
0x3136   :  { %v5901_v13 = vmul.f32 %v5900_v58, %v8855_v51  ;;  %v8305_v58 = vld [vmem:[#allocation13 + $0x534] sm:$0xf] }
0x3138   :  { %v5902_v44 = vadd.f32 1e-05, %v5901_v13  ;;  %v7869_v13 = vld [vmem:[#allocation13 + $0x538] sm:$0xf0] }
0x313a   :  { %8425 = vrsqrt.f32 %v5902_v44  ;;  %vm5909_vm7 = vweird.f32 %v5902_v44 }
0x3140   :  { %v8426_v3 = vpop.eup %8425 }
0x3141   :  { %v5904_v31 = vmul.f32 %v8426_v3, %v5902_v44  ;;  %vm5910_vm6 = vweird.f32 %v8426_v3 }
0x3142   :  { %vm5911_vm8 = vmor %vm5909_vm7, %vm5910_vm6 }
0x3143   :  { %v5905_v41 = vmul.f32 %v8426_v3, %v5904_v31  ;;  %v5948_v31 = vstv %s9804_s2 }
0x3145   :  { %v5906_v54 = vmul.f32 0.5, %v5905_v41  ;;  %v7872_v41 = vor.u32 %v8305_v58, %v7869_v13  ;;  %v8485_v13 = vld [vmem:[#allocation7 + $0x38] sm:$0xff] }
0x3147   :  { %v5907_v61 = vsub.f32 1.5, %v5906_v54  ;;  %6246 = vmatpush.bf16.msrb.mxu3 %v7872_v41 }
0x3149   :  { %v5908_v7 = vmul.f32 %v8426_v3, %v5907_v61 }
0x314b   :  { %v5912_v40 = vsel %vm5911_vm8, %v8426_v3, %v5908_v7  ;;  %v7868_v3 = vor.u32 %v8306_v46, %v7867_v52 }
0x314c   :  { %v5913_v27 = vmul.f32 %v5912_v40, %v5897_v39  ;;  %v5945_v39 = vperm.slane %v9806_v15, 1 }
0x314e   :  { %v5914_v29 = vmul.f32 %v9719_v42, %v5913_v27 }
0x3150   :  { %v5915_v26 = vadd.f32 %v9722_v62, %v5914_v29  ;;  %v7899_v62 = vld [vmem:[#allocation13 + $0x570] sm:$0xf] }
0x3151   :  { %v7900_v59 = vor.u32 %v8314_v45, %v7899_v62 }
0x3152   :  { %vm5916_vm9 = vcmp.ge.f32.partialorder %v5915_v26, 0.0  ;;  %v5917_v34 = vmul.f32 %v5915_v26, %v8978_v60 }
0x3153   :  { %6229 = vmatpush.bf16.msra.mxu1 %v7900_v59  ;;  %v8481_v59 = vld [vmem:[#allocation7 + $0x18] sm:$0xff] }
0x3154   :  { %v9798_v25 = vsel %vm5916_vm9, %v5915_v26, %v5917_v34  ;;  %v8477_v34 = vld [vmem:[#allocation6] sm:$0xf] }
0x3155   :  { %5923 = vadd.xlane.f32.xlu0 %v9798_v25 }
0x3157   :  { %6230 = vmatpush.bf16.msra.mxu1 %v7892_v50 }
0x315b   :  { %6231 = vmatpush.bf16.msra.mxu1 %v7884_v19 }
0x315f   :  { %6232 = vmatpush.bf16.msra.mxu1 %v7876_v16 }
0x3163   :  { %6233 = vmatpush.bf16.msra.mxu1 %v7868_v3 }
0x31c8   :  { %v5924_v12 = vpop.xlane.xlu0 %5923 }
0x31c9   :  { %v5925_v37 = vmul.f32 %v5924_v12, %v8855_v51  ;;  %v8478_v12 = vld [vmem:[#allocation7] sm:$0xff] }
0x31cb   :  { %v5926_v49 = vsub.f32 %v9798_v25, %v5925_v37 }
0x31cd   :  { %v5927_v56 = vmul.f32 %v5926_v49, %v5926_v49 }
0x31cf   :  { %5928 = vadd.xlane.f32.xlu2 %v5927_v56 }
0x3242   :  { %v5929_v55 = vpop.xlane.xlu2 %5928 }
0x3243   :  { %v5930_v47 = vmul.f32 %v5929_v55, %v8855_v51  ;;  %v8480_v55 = vld [vmem:[#allocation7 + $0x10] sm:$0xff] }
0x3245   :  { %v5931_v42 = vadd.f32 1e-05, %v5930_v47 }
0x3247   :  { %8427 = vrsqrt.f32 %v5931_v42  ;;  %vm5938_vm5 = vweird.f32 %v5931_v42 }
0x324d   :  { %v8428_v6 = vpop.eup %8427 }
0x324e   :  { %v5933_v36 = vmul.f32 %v8428_v6, %v5931_v42  ;;  %vm5939_vm10 = vweird.f32 %v8428_v6 }
0x324f   :  { %vm5940_vm6 = vmor %vm5938_vm5, %vm5939_vm10 }
0x3250   :  { %v5934_v1 = vmul.f32 %v8428_v6, %v5933_v36 }
0x3252   :  { %v5935_v18 = vmul.f32 0.5, %v5934_v1 }
0x3254   :  { %v5936_v53 = vsub.f32 1.5, %v5935_v18 }
0x3256   :  { %v5937_v48 = vmul.f32 %v8428_v6, %v5936_v53  ;;  %v8483_v53 = vld [vmem:[#allocation7 + $0x28] sm:$0xff] }
0x3258   :  { %v5941_v10 = vsel %vm5940_vm6, %v8428_v6, %v5937_v48 }
0x3259   :  { %v5942_v24 = vmul.f32 %v5941_v10, %v5926_v49  ;;  %v8479_v49 = vld [vmem:[#allocation7 + $0x8] sm:$0xff]  ;;  %v8484_v10 = vld [vmem:[#allocation7 + $0x30] sm:$0xff] }
0x325b   :  { %v5944_v44 = vmul.f32 %v5943_v63, %v5942_v24 }
0x325d   :  { %v5946_v54 = vadd.f32 %v5945_v39, %v5944_v44 }
0x325f   :  { %vm5947_vm7 = vcmp.ge.f32.partialorder %v5946_v54, 0.0  ;;  %v5949_v61 = vmul.f32 %v5948_v31, %v5946_v54 }
0x3261   :  { %v9811_v7 = vsel %vm5947_vm7, %v5946_v54, %v5949_v61 }
0x3262   :  { %v5951_v40 = vmax.f32 %v9811_v7, 0.0 }
0x3264   :  { %v9814_v27 = vadd.f32 1e-07, %v5951_v40 }
0x3266   :  { %v6073_v29 = vpack.c.bf16 %v9814_v27, %v9814_v27  ;;  %v6009_v37 = vsub.f32 %v8478_v12, %v9814_v27  ;;  %v6010_v56 = vsub.f32 %v8479_v49, %v9814_v27  ;;  %v6011_v47 = vsub.f32 %v8480_v55, %v9814_v27 }
0x3267   :  { %v5953_v45 = vadd.f32 %v8478_v12, %v9814_v27  ;;  %v5954_v30 = vadd.f32 %v8479_v49, %v9814_v27  ;;  %v6012_v20 = vsub.f32 %v8481_v59, %v9814_v27  ;;  %v5955_v36 = vadd.f32 %v8480_v55, %v9814_v27 }
0x3268   :  { %v6075_v26 = vsel %vm498_vm11, %v6073_v29, 0  ;;  %v6017_v42 = vrot.slane %v6009_v37, 4  ;;  %v6023_v62 = vrot.slane %v6010_v56, 4  ;;  %v6029_v6 = vrot.slane %v6011_v47, 4 }
0x3269   :  { %6084 = vmatpush.bf16.msrb.mxu0 %v6075_v26  ;;  %v5961_v8 = vrot.slane %v5953_v45, 4  ;;  %v5967_v28 = vrot.slane %v5954_v30, 4  ;;  %v6013_v50 = vsub.f32 %v8482_v4, %v9814_v27  ;;  %v6035_v38 = vrot.slane %v6012_v20, 4 }
0x326a   :  { %v6018_v23 = vmax.f32 %v6009_v37, %v6017_v42  ;;  %v6024_v14 = vmax.f32 %v6010_v56, %v6023_v62  ;;  %v6030_v1 = vmax.f32 %v6011_v47, %v6029_v6  ;;  %v5973_v5 = vrot.slane %v5955_v36, 4 }
0x326b   :  { %v5956_v33 = vadd.f32 %v8481_v59, %v9814_v27  ;;  %v5962_v18 = vmax.f32 %v5953_v45, %v5961_v8  ;;  %v5968_v19 = vmax.f32 %v5954_v30, %v5967_v28  ;;  %v6014_v43 = vsub.f32 %v8483_v53, %v9814_v27 }
0x326c   :  { %7840 = vmatmul.msk.bf16.vlgmr.msrb.gmra.mxu0 %vm494_vm12, %v8477_v34  ;;  %v6019_v11 = vrot.slane %v6018_v23, 2  ;;  %v6025_v22 = vrot.slane %v6024_v14, 2  ;;  %v6031_v57 = vrot.slane %v6030_v1, 2  ;;  %v6041_v21 = vrot.slane %v6013_v50, 4 }
0x326d   :  { %v6036_v48 = vmax.f32 %v6012_v20, %v6035_v38  ;;  %v5957_v63 = vadd.f32 %v8482_v4, %v9814_v27  ;;  %v5974_v16 = vmax.f32 %v5955_v36, %v5973_v5  ;;  %v6015_v32 = vsub.f32 %v8484_v10, %v9814_v27 }
0x326e   :  { %v6020_v2 = vmax.f32 %v6018_v23, %v6019_v11  ;;  %v6026_v9 = vmax.f32 %v6024_v14, %v6025_v22  ;;  %v5963_v52 = vrot.slane %v5962_v18, 2  ;;  %v5969_v46 = vrot.slane %v5968_v19, 2 }
0x326f   :  { %v5979_v39 = vrot.slane %v5956_v33, 4  ;;  %v6047_v24 = vrot.slane %v6014_v43, 4  ;;  %v5958_v58 = vadd.f32 %v8483_v53, %v9814_v27  ;;  %v6016_v44 = vsub.f32 %v8485_v13, %v9814_v27 }
0x3270   :  { %v6032_v3 = vmax.f32 %v6030_v1, %v6031_v57  ;;  %v6042_v31 = vmax.f32 %v6013_v50, %v6041_v21  ;;  %v6021_v41 = vrot.slane %v6020_v2, 1  ;;  %v6027_v54 = vrot.slane %v6026_v9, 1 }
0x3271   :  { %v6037_v61 = vrot.slane %v6036_v48, 2  ;;  %v5959_v40 = vadd.f32 %v8484_v10, %v9814_v27  ;;  %v5975_v29 = vrot.slane %v5974_v16, 2  ;;  %v5985_v26 = vrot.slane %v5957_v63, 4 }
0x3272   :  { %v6053_v34 = vrot.slane %v6015_v32, 4  ;;  %v5964_v12 = vmax.f32 %v5962_v18, %v5963_v52  ;;  %v5970_v37 = vmax.f32 %v5968_v19, %v5969_v46  ;;  %v5980_v49 = vmax.f32 %v5956_v33, %v5979_v39 }
0x3273   :  { %v6048_v56 = vmax.f32 %v6014_v43, %v6047_v24  ;;  %v5991_v55 = vrot.slane %v5958_v58, 4  ;;  %v6033_v47 = vrot.slane %v6032_v3, 1  ;;  %v6043_v42 = vrot.slane %v6042_v31, 2  ;;  %v7859_v24 = vld [vmem:[#allocation13 + $0x520] sm:$0xf] }
0x3274   :  { %v6059_v62 = vrot.slane %v6016_v44, 4  ;;  %v5960_v45 = vadd.f32 %v8485_v13, %v9814_v27  ;;  %v6022_v30 = vmax.f32 %v6020_v2, %v6021_v41  ;;  %v6028_v6 = vmax.f32 %v6026_v9, %v6027_v54  ;;  %v8303_v13 = vld [vmem:[#allocation13 + $0x524] sm:$0xf]  ;;  %v7861_v54 = vld [vmem:[#allocation13 + $0x528] sm:$0xf0] }
0x3275   :  { %v6038_v59 = vmax.f32 %v6036_v48, %v6037_v61  ;;  %v5976_v20 = vmax.f32 %v5974_v16, %v5975_v29  ;;  %v5986_v23 = vmax.f32 %v5957_v63, %v5985_v26  ;;  %v5997_v14 = vrot.slane %v5959_v40, 4  ;;  %v7851_v61 = vld [vmem:[#allocation13 + $0x510] sm:$0xf] }
0x3276   :  { %v6054_v36 = vmax.f32 %v6015_v32, %v6053_v34  ;;  %v5965_v8 = vrot.slane %v5964_v12, 1  ;;  %v5971_v28 = vrot.slane %v5970_v37, 1  ;;  %v5981_v4 = vrot.slane %v5980_v49, 2 }
0x3277   :  { %v6049_v50 = vrot.slane %v6048_v56, 2  ;;  %v5992_v1 = vmax.f32 %v5958_v58, %v5991_v55  ;;  %v6034_v11 = vmax.f32 %v6032_v3, %v6033_v47  ;;  %v6044_v22 = vmax.f32 %v6042_v31, %v6043_v42  ;;  %v8304_v58 = vld [vmem:[#allocation13 + $0x524] sm:$0xf0] }
0x3278   :  { %v6060_v38 = vmax.f32 %v6016_v44, %v6059_v62  ;;  %v6003_v5 = vrot.slane %v5960_v45, 4  ;;  %v6039_v33 = vrot.slane %v6038_v59, 1  ;;  %v6065_v18 = vsub.f32 0.0, %v6022_v30 }
0x3279   :  { %v6066_v19 = vsub.f32 0.0, %v6028_v6  ;;  %v5977_v27 = vrot.slane %v5976_v20, 1  ;;  %v5987_v53 = vrot.slane %v5986_v23, 2  ;;  %v5998_v43 = vmax.f32 %v5959_v40, %v5997_v14  ;;  %v8302_v40 = vld [vmem:[#allocation13 + $0x514] sm:$0xf0] }
0x327a   :  { %v6055_v57 = vrot.slane %v6054_v36, 2  ;;  %v5966_v21 = vmax.f32 %v5964_v12, %v5965_v8  ;;  %v5972_v2 = vmax.f32 %v5970_v37, %v5971_v28  ;;  %v5982_v9 = vmax.f32 %v5980_v49, %v5981_v4  ;;  %v8301_v37 = vld [vmem:[#allocation13 + $0x514] sm:$0xf]  ;;  %v7853_v49 = vld [vmem:[#allocation13 + $0x518] sm:$0xf0] }
0x327b   :  { %v6050_v48 = vmax.f32 %v6048_v56, %v6049_v50  ;;  %v5993_v63 = vrot.slane %v5992_v1, 2  ;;  %v6045_v16 = vrot.slane %v6044_v22, 1  ;;  %v6061_v10 = vrot.slane %v6060_v38, 2  ;;  %v8299_v8 = vld [vmem:[#allocation13 + $0x504] sm:$0xf] }
0x327c   :  { %v6067_v32 = vsub.f32 0.0, %v6034_v11  ;;  %v6004_v52 = vmax.f32 %v5960_v45, %v6003_v5  ;;  %v6040_v46 = vmax.f32 %v6038_v59, %v6039_v33  ;;  %v6116_v39 = vsel %vm534_vm13, %v6066_v19, %v6065_v18  ;;  %v7843_v59 = vld [vmem:[#allocation13 + $0x500] sm:$0xf]  ;;  %v7845_v28 = vld [vmem:[#allocation13 + $0x508] sm:$0xf0] }
0x327d   :  { %v5978_v44 = vmax.f32 %v5976_v20, %v5977_v27  ;;  %v5988_v3 = vmax.f32 %v5986_v23, %v5987_v53  ;;  %v6056_v31 = vmax.f32 %v6054_v36, %v6055_v57  ;;  %v7860_v41 = vor.u32 %v8304_v58, %v7859_v24  ;;  %v8300_v20 = vld [vmem:[#allocation13 + $0x504] sm:$0xf0] }
0x327e   :  { %v5983_v29 = vrot.slane %v5982_v9, 1  ;;  %v6051_v26 = vrot.slane %v6050_v48, 1  ;;  %v6099_v34 = vsel %vm534_vm13, %v5972_v2, %v5966_v21  ;;  %v7864_v12 = vor.u32 %v8303_v13, %v7861_v54 }
0x327f   :  { %v5999_v56 = vrot.slane %v5998_v43, 2  ;;  %v6046_v55 = vmax.f32 %v6044_v22, %v6045_v16  ;;  %v6117_v47 = vsel %vm536_vm14, %v6067_v32, %v6116_v39  ;;  %6234 = vmatpush.bf16.msra.mxu1 %v7860_v41  ;;  %v7852_v42 = vor.u32 %v8302_v40, %v7851_v61 }
0x3280   :  { %v5994_v62 = vmax.f32 %v5992_v1, %v5993_v63  ;;  %v6062_v45 = vmax.f32 %v6060_v38, %v6061_v10  ;;  %v6068_v30 = vsub.f32 0.0, %v6040_v46  ;;  %6247 = vmatpush.bf16.msrb.mxu3 %v7864_v12  ;;  %v7856_v6 = vor.u32 %v8301_v37, %v7853_v49 }
0x3281   :  { %v5989_v23 = vrot.slane %v5988_v3, 1  ;;  %v6057_v14 = vrot.slane %v6056_v31, 1  ;;  %v6100_v36 = vsel %vm536_vm14, %v5978_v44, %v6099_v34  ;;  %v5984_v4 = vmax.f32 %v5982_v9, %v5983_v29 }
0x3282   :  { %v6005_v50 = vrot.slane %v6004_v52, 2  ;;  %v6052_v11 = vmax.f32 %v6050_v48, %v6051_v26  ;;  %v6118_v22 = vsel %vm538_vm15, %v6068_v30, %v6117_v47  ;;  %v6000_v5 = vmax.f32 %v5998_v43, %v5999_v56 }
0x3283   :  { %v6069_v33 = vsub.f32 0.0, %v6046_v55  ;;  %6235 = vmatpush.bf16.msra.mxu1 %v7852_v42  ;;  %v7844_v1 = vor.u32 %v8300_v20, %v7843_v59  ;;  %v5995_v38 = vrot.slane %v5994_v62, 1  ;;  %v6063_v18 = vrot.slane %v6062_v45, 1  ;;  %v9856_v55 = vld [vmem:[#allocation16 + $0xa8] sm:$0xff] }
0x3284   :  { %v6101_v19 = vsel %vm538_vm15, %v5984_v4, %v6100_v36  ;;  %6248 = vmatpush.bf16.msrb.mxu3 %v7856_v6  ;;  %v7848_v27 = vor.u32 %v8299_v8, %v7845_v28  ;;  %v5990_v53 = vmax.f32 %v5988_v3, %v5989_v23  ;;  %v6058_v57 = vmax.f32 %v6056_v31, %v6057_v14  ;;  %v8322_v28 = vld [vmem:[#allocation15 + $0x538] sm:$0xff] }
0x3285   :  { %v6119_v21 = vsel %vm540_vm0, %v6069_v33, %v6118_v22  ;;  %v6006_v2 = vmax.f32 %v6004_v52, %v6005_v50  ;;  %v6070_v9 = vsub.f32 0.0, %v6052_v11  ;;  %v6001_v63 = vrot.slane %v6000_v5, 1  ;;  %v8330_v4 = vld [vmem:[#allocation15 + $0x578] sm:$0xff]  ;;  %6422 = vmatpush.bf16.msra.mxu2 %v8322_v28  ;;  %v8321_v50 = vld [vmem:[#allocation15 + $0x530] sm:$0xff]  ;;  %v8320_v22 = vld [vmem:[#allocation15 + $0x528] sm:$0xff] }
0x3286   :  { %v6102_v48 = vsel %vm540_vm0, %v5990_v53, %v6101_v19  ;;  %v5996_v43 = vmax.f32 %v5994_v62, %v5995_v38  ;;  %v6064_v16 = vmax.f32 %v6062_v45, %v6063_v18  ;;  %v6071_v32 = vsub.f32 0.0, %v6058_v57  ;;  %6435 = vmatpush.bf16.msra.mxu0 %v8330_v4  ;;  %v8329_v11 = vld [vmem:[#allocation15 + $0x570] sm:$0xff]  ;;  %v8319_v33 = vld [vmem:[#allocation15 + $0x520] sm:$0xff]  ;;  %v8318_v38 = vld [vmem:[#allocation15 + $0x518] sm:$0xff] }
0x3287   :  { %6236 = vmatpush.bf16.msra.mxu1 %v7844_v1  ;;  %v6120_v10 = vsel %vm542_vm1, %v6070_v9, %v6119_v21  ;;  %v6007_v46 = vrot.slane %v6006_v2, 1  ;;  %v6002_v24 = vmax.f32 %v6000_v5, %v6001_v63  ;;  %v6147_v47 = vperm.slane %v9806_v15, 2  ;;  %v8328_v5 = vld [vmem:[#allocation15 + $0x568] sm:$0xff]  ;;  %v8327_v1 = vld [vmem:[#allocation15 + $0x560] sm:$0xff]  ;;  %v8326_v18 = vld [vmem:[#allocation15 + $0x558] sm:$0xff] }
0x3288   :  { %6249 = vmatpush.bf16.msrb.mxu3 %v7848_v27  ;;  %v6103_v39 = vsel %vm542_vm1, %v5996_v43, %v6102_v48  ;;  %v6121_v58 = vsel %vm544_vm2, %v6071_v32, %v6120_v10  ;;  %v6072_v13 = vsub.f32 0.0, %v6064_v16  ;;  %v6148_v42 = vperm.slane %v9856_v55, 2  ;;  %v8317_v53 = vld [vmem:[#allocation15 + $0x510] sm:$0xff]  ;;  %v8324_v9 = vld [vmem:[#allocation15 + $0x548] sm:$0xff]  ;;  %v8315_v63 = vld [vmem:[#allocation15 + $0x500] sm:$0xff] }
0x3289   :  { %v6104_v52 = vsel %vm544_vm2, %v6002_v24, %v6103_v39  ;;  %v6008_v44 = vmax.f32 %v6006_v2, %v6007_v46  ;;  %6423 = vmatpush.bf16.msra.mxu2 %v8321_v50  ;;  %v8325_v57 = vld [vmem:[#allocation15 + $0x550] sm:$0xff]  ;;  %v8316_v2 = vld [vmem:[#allocation15 + $0x508] sm:$0xff]  ;;  %v8323_v48 = vld [vmem:[#allocation15 + $0x540] sm:$0xff]  ;;  %v6281_v39 = vperm.slane %v9856_v55, 3  ;;  %v6280_v24 = vperm.slane %v9806_v15, 3 }
0x328a   :  { %v6122_v3 = vsel %vm546_vm3, %v6072_v13, %v6121_v58  ;;  %6436 = vmatpush.bf16.msra.mxu0 %v8329_v11  ;;  %v6285_v13 = vperm.slane %v9856_v55, 4  ;;  %v8486_v4 = vld [vmem:[#allocation12 + $0x6] ss:$0 sm:$0xff]  ;;  %v8487_v11 = vld [vmem:[#allocation12 + $0x7] ss:$0 sm:$0xff] }
0x328b   :  { %v6105_v31 = vsel %vm546_vm3, %v6008_v44, %v6104_v52  ;;  %v6124_v41 = vsel %vm525_vm4, %v6122_v3, 0.0  ;;  %v6284_v3 = vperm.slane %v9806_v15, 4 }
0x328c   :  { %v6107_v61 = vsel %vm525_vm4, %v6105_v31, 0.0 }
0x328d   :  { %v6125_v29 = vadd.f32 %v6124_v41, %v6107_v61  ;;  %6424 = vmatpush.bf16.msra.mxu2 %v8320_v22 }
0x328e   :  { %6437 = vmatpush.bf16.msra.mxu0 %v8328_v5 }
0x3291   :  { %6425 = vmatpush.bf16.msra.mxu2 %v8319_v33 }
0x3292   :  { %6438 = vmatpush.bf16.msra.mxu0 %v8327_v1 }
0x3295   :  { %6426 = vmatpush.bf16.msra.mxu2 %v8318_v38 }
0x3296   :  { %6439 = vmatpush.bf16.msra.mxu0 %v8326_v18 }
0x3299   :  { %6427 = vmatpush.bf16.msra.mxu2 %v8317_v53 }
0x329a   :  { %6440 = vmatpush.bf16.msra.mxu0 %v8325_v57 }
0x329d   :  { %6428 = vmatpush.bf16.msra.mxu2 %v8316_v2 }
0x329e   :  { %6441 = vmatpush.bf16.msra.mxu0 %v8324_v9 }
0x32a1   :  { %6429 = vmatpush.bf16.msra.mxu2 %v8315_v63 }
0x32a2   :  { %6442 = vmatpush.bf16.msra.mxu0 %v8323_v48 }
0x32e9   :  { %v6086_v54 = vpop.f32.mrf.mxu0 }
0x32ea   :  { %v6090_v40 = vmul.f32 %v6086_v54, %v8949_v0 }
0x32ec   :  { %v6126_v26 = vadd.f32 %v6125_v29, %v6090_v40 }
0x32ee   :  { %v6127_v34 = vmul.f32 0.33333334, %v6126_v26 }
0x32f0   :  { %v6128_v12 = vadd.f32 %v6127_v34, %v9811_v7 }
0x32f1   :  { %v6088_v37 = vpop.f32.mrf.mxu0 }
0x32f2   :  { %v6129_v49 = vpack.c.bf16 %v6128_v12, %v6128_v12  ;;  %v6325_v37 = vperm.slane %v9806_v15, 5 }
0x32f4   :  { %6237 = vmatmul.bf16.vlgmr.msra.gmra.mxu1 %v6129_v49  ;;  %6250 = vmatmul.bf16.vlgmr.msrb.gmra.mxu3 %v6129_v49 }
0x3371   :  { %v6238_v56 = vpop.f32.mrf.mxu1 }
0x3372   :  { %v6239_v62 = vadd.f32 %v6238_v56, %v6147_v47 }
0x3377   :  { %v6251_v35 = vpop.f32.mrf.mxu3 }
0x3378   :  { %v6252_v45 = vadd.f32 %v6251_v35, %v6148_v42 }
0x3379   :  { %v6240_v0 = vpop.f32.mrf.mxu1 }
0x337a   :  { %v6255_v30 = vadd.f32 %v6252_v45, %v6239_v62 }
0x337c   :  { %6256 = vadd.xlane.f32.xlu1 %v6255_v30 }
0x337f   :  { %v6253_v6 = vpop.f32.mrf.mxu3 }
0x33ef   :  { %v6257_v59 = vpop.xlane.xlu1 %6256 }
0x33f0   :  { %v6258_v7 = vmul.f32 %v6257_v59, %v8961_v17 }
0x33f2   :  { %v6259_v20 = vsub.f32 %v6239_v62, %v6258_v7  ;;  %v6260_v23 = vsub.f32 %v6252_v45, %v6258_v7 }
0x33f4   :  { %v6261_v14 = vmul.f32 %v6259_v20, %v6259_v20  ;;  %v6262_v36 = vmul.f32 %v6260_v23, %v6260_v23 }
0x33f6   :  { %v6263_v8 = vadd.f32 %v6262_v36, %v6261_v14 }
0x33f8   :  { %6264 = vadd.xlane.f32.xlu0 %v6263_v8 }
0x346b   :  { %v6265_v19 = vpop.xlane.xlu0 %6264 }
0x346c   :  { %v6266_v27 = vmul.f32 %v6265_v19, %v8961_v17 }
0x346e   :  { %v6267_v21 = vadd.f32 1e-05, %v6266_v27 }
0x3470   :  { %8429 = vrsqrt.f32 %v6267_v21  ;;  %vm6274_vm12 = vweird.f32 %v6267_v21 }
0x3476   :  { %v8430_v43 = vpop.eup %8429 }
0x3477   :  { %v6269_v16 = vmul.f32 %v8430_v43, %v6267_v21  ;;  %vm6275_vm11 = vweird.f32 %v8430_v43 }
0x3478   :  { %vm6276_vm13 = vmor %vm6274_vm12, %vm6275_vm11 }
0x3479   :  { %v6270_v10 = vmul.f32 %v8430_v43, %v6269_v16 }
0x347b   :  { %v6271_v17 = vmul.f32 0.5, %v6270_v10 }
0x347d   :  { %v6272_v32 = vsub.f32 1.5, %v6271_v17 }
0x347f   :  { %v6273_v46 = vmul.f32 %v8430_v43, %v6272_v32 }
0x3481   :  { %v6277_v58 = vsel %vm6276_vm13, %v8430_v43, %v6273_v46 }
0x3482   :  { %v6278_v52 = vmul.f32 %v6277_v58, %v6259_v20  ;;  %v6279_v44 = vmul.f32 %v6277_v58, %v6260_v23 }
0x3484   :  { %v6282_v31 = vmul.f32 %v6280_v24, %v6278_v52  ;;  %v6283_v41 = vmul.f32 %v6281_v39, %v6279_v44 }
0x3486   :  { %v6286_v54 = vadd.f32 %v6284_v3, %v6282_v31  ;;  %v6287_v61 = vadd.f32 %v6285_v13, %v6283_v41 }
0x3488   :  { %v6288_v40 = vmax.f32 %v6286_v54, 0.0  ;;  %v6289_v29 = vmax.f32 %v6287_v61, 0.0 }
0x348a   :  { %v6290_v26 = vpack.c.bf16 %v6288_v40, %v6288_v40  ;;  %v6291_v34 = vpack.c.bf16 %v6289_v29, %v6289_v29 }
0x348c   :  { %6430 = vmatmul.bf16.vlgmr.msra.gmra.mxu2 %v6290_v26  ;;  %6443 = vmatmul.bf16.vlgmr.msra.gmra.mxu0 %v6291_v34 }
0x3509   :  { %v6444_v12 = vpop.f32.mrf.mxu0 }
0x350f   :  { %v6431_v49 = vpop.f32.mrf.mxu2 }
0x3510   :  { %v6432_v56 = vadd.f32 %v6431_v49, %v6325_v37 }
0x3511   :  { %v6446_v55 = vpop.f32.mrf.mxu0 }
0x3512   :  { %v6445_v47 = vadd.f32 %v6444_v12, %v6432_v56 }
0x3514   :  { %v6448_v42 = vadd.f32 %v6445_v47, %v9798_v25 }
0x3516   :  { %6449 = vadd.xlane.f32.xlu2 %v6448_v42 }
0x3517   :  { %v6433_v35 = vpop.f32.mrf.mxu2 }
0x3589   :  { %v6450_v62 = vpop.xlane.xlu2 %6449 }
0x358a   :  { %v6451_v45 = vmul.f32 %v6450_v62, %v8855_v51 }
0x358c   :  { %v6452_v0 = vsub.f32 %v6448_v42, %v6451_v45 }
0x358e   :  { %v6453_v30 = vmul.f32 %v6452_v0, %v6452_v0 }
0x3590   :  { %6454 = vadd.xlane.f32.xlu1 %v6453_v30 }
0x3603   :  { %v6455_v6 = vpop.xlane.xlu1 %6454 }
0x3604   :  { %v6456_v59 = vmul.f32 %v6455_v6, %v8855_v51 }
0x3606   :  { %v6457_v7 = vadd.f32 1e-05, %v6456_v59 }
0x3608   :  { %8431 = vrsqrt.f32 %v6457_v7  ;;  %vm6464_vm15 = vweird.f32 %v6457_v7 }
0x360e   :  { %v8432_v15 = vpop.eup %8431 }
0x360f   :  { %v6459_v20 = vmul.f32 %v8432_v15, %v6457_v7  ;;  %vm6465_vm14 = vweird.f32 %v8432_v15 }
0x3610   :  { %vm6466_vm0 = vmor %vm6464_vm15, %vm6465_vm14 }
0x3611   :  { %v6460_v23 = vmul.f32 %v8432_v15, %v6459_v20 }
0x3613   :  { %v6461_v14 = vmul.f32 0.5, %v6460_v23 }
0x3615   :  { %v6462_v36 = vsub.f32 1.5, %v6461_v14 }
0x3617   :  { %v6463_v25 = vmul.f32 %v8432_v15, %v6462_v36 }
0x3619   :  { %v6467_v8 = vsel %vm6466_vm0, %v8432_v15, %v6463_v25 }
0x361a   :  { %v6468_v28 = vmul.f32 %v6467_v8, %v6452_v0 }
0x361c   :  { %v6469_v50 = vmul.f32 %v8486_v4, %v6468_v28 }
0x361e   :  { %v6470_v22 = vadd.f32 %v8487_v11, %v6469_v50 }
0x3620   :  { %vm6471_vm1 = vcmp.ge.f32.partialorder %v6470_v22, 0.0  ;;  %v6472_v51 = vmul.f32 %v6470_v22, %v8978_v60 }
0x3622   :  { %v6473_v5 = vsel %vm6471_vm1, %v6470_v22, %v6472_v51 }
0x3623   :  { %6474 = vst [vmem:[#allocation18] sm:$0xff] %v6473_v5 }
0x3624   :  { %6485 = dma.vmem_to_hbm [thread:$0]  %s6481_s12, 128, %s6483_s15, [#allocation4]  }
0x3625   :  { %8728 = dma.done.wait [#allocation4], 128  }
0x3626   :  { %8729 = vsyncadd [#allocation4], 4294967168 }
0x3627   :  { %6490 = vsyncpa [#allocation3], 1 }
0x3628   :  { %6491 = vsyncpa [#allocation8], 1 }
0x3629   :  { %6492 = vsyncpa [#allocation11], 1 }
0x362a   :  { %6493 = vsyncpa [#allocation14], 1 }
0x362b   :  { %6494 = vsyncpa [#allocation17], 1 }
0x362c   :  { %6495 = vsyncpa [#allocation4], 1 }
0x362d   :  { %6496 = vsyncpa [#allocation5], 1 }

</bundles_post_ra>
